<compile_context>
chip_gen: v5e
topology: v5e:2x2
jax: 0.10.0
libtpu: 0.0.40
codegen_flags: <defaults>
</compile_context>

<pallas_src>
import functools

import numpy as np
import jax
import jax.numpy as jnp
from jax.experimental import pallas as pl
from jax.experimental.pallas import tpu as pltpu


# ----------------------------------------------------------------------------
# Fused kernel
# ----------------------------------------------------------------------------

def _vgg_fused_kernel(x_ref, w1_ref, s1_ref, b1_ref, w2_ref, s2_ref, b2_ref,
                      p2_ref, gap_ref,
                      fc1w_ref, fc1b_ref, fc2w_ref, fc2b_ref, clsw_ref, clsb_ref,
                      out_ref,
                      h1_ref, xp2_ref, h2_ref,
                      *, n_batch, wp1, wp2):
    """Whole VGG forward on one VMEM-resident block.

    x_ref   : (Hp1*Wp1*N, Cin)  zero-padded input, rows ordered (y, x, n)
    w*_ref  : (9, Cin, Cout)    conv weights, tap-major (tap = dy*3+dx)
    s*/b*   : (1, Cout)         folded BatchNorm scale / shift
    p2_ref  : (Hp2*Wp2*N, RM1)  0/1 matrix: maxpool1-select + zero-pad for conv2 input
    gap_ref : (N, RM2)          matrix: maxpool2-select + global-average-pool + flatten
    fc*/cls : dense weights (in, out) and biases (1, out)
    out_ref : (N, num_classes)
    h1/xp2/h2_ref : VMEM scratch for conv1 out, padded conv2 in, conv2 out
    """
    f32 = jnp.float32
    r1 = h1_ref.shape[0]          # "wide" conv1 output rows
    rm1 = p2_ref.shape[1]         # pool1 4-way-max rows
    r2 = h2_ref.shape[0]          # "wide" conv2 output rows
    rm2 = gap_ref.shape[1]        # pool2 4-way-max rows
    c1 = w1_ref.shape[2]
    c2 = w2_ref.shape[2]

    # ---- conv1 (3x3, pad=1, no bias) + folded BN + ReLU: 9 shifted row-window dots ----
    acc1 = jnp.zeros((r1, c1), f32)
    for dy in range(3):
        for dx in range(3):
            off = (dy * wp1 + dx) * n_batch
            acc1 = acc1 + jnp.dot(x_ref[off:off + r1, :], w1_ref[dy * 3 + dx],
                                  preferred_element_type=f32)
    h1_ref[...] = jnp.maximum(acc1 * s1_ref[...] + b1_ref[...], 0.0)

    # ---- maxpool1 (2x2 / 2): 4-way shifted max, then select + zero-pad via one matmul ----
    ox, oy = n_batch, wp1 * n_batch
    m1 = jnp.maximum(
        jnp.maximum(h1_ref[0:rm1, :], h1_ref[ox:ox + rm1, :]),
        jnp.maximum(h1_ref[oy:oy + rm1, :], h1_ref[oy + ox:oy + ox + rm1, :]))
    xp2_ref[...] = jnp.dot(p2_ref[...], m1, preferred_element_type=f32)

    # ---- conv2 (3x3, pad=1, no bias) + folded BN + ReLU ----
    acc2 = jnp.zeros((r2, c2), f32)
    for dy in range(3):
        for dx in range(3):
            off = (dy * wp2 + dx) * n_batch
            acc2 = acc2 + jnp.dot(xp2_ref[off:off + r2, :], w2_ref[dy * 3 + dx],
                                  preferred_element_type=f32)
    h2_ref[...] = jnp.maximum(acc2 * s2_ref[...] + b2_ref[...], 0.0)

    # ---- maxpool2 + AdaptiveAvgPool(1,1) + Flatten: shifted max + one averaging matmul ----
    ox2, oy2 = n_batch, wp2 * n_batch
    m2 = jnp.maximum(
        jnp.maximum(h2_ref[0:rm2, :], h2_ref[ox2:ox2 + rm2, :]),
        jnp.maximum(h2_ref[oy2:oy2 + rm2, :], h2_ref[oy2 + ox2:oy2 + ox2 + rm2, :]))
    feats = jnp.dot(gap_ref[...], m2, preferred_element_type=f32)        # (N, C2)

    # ---- head: (Dropout=id) Linear -> ReLU, (Dropout=id) Linear -> ReLU, classifier ----
    z = jnp.maximum(jnp.dot(feats, fc1w_ref[...], preferred_element_type=f32)
                    + fc1b_ref[...], 0.0)
    z = jnp.maximum(jnp.dot(z, fc2w_ref[...], preferred_element_type=f32)
                    + fc2b_ref[...], 0.0)
    out_ref[...] = jnp.dot(z, clsw_ref[...], preferred_element_type=f32) + clsb_ref[...]


# ----------------------------------------------------------------------------
# Host-side constants: pooling / padding / GAP as constant 0/1 selection matrices
# ----------------------------------------------------------------------------

def _build_selection_constants(n_batch, h, w):
    """Matrices that turn maxpool-downsample (+zero-pad / +GAP+flatten) into matmuls
    over the flattened (y, x, n) row axis."""
    wp1 = w + 2
    hp, wpo = h // 2, w // 2              # pool1 output spatial (8, 8)
    hp2, wp2 = hp + 2, wpo + 2            # padded conv2-input spatial (10, 10)
    hq, wq = hp // 2, wpo // 2            # pool2 output spatial (4, 4)

    r1 = ((h + 2) * wp1 - (2 * wp1 + 2)) * n_batch
    rm1 = r1 - (wp1 + 1) * n_batch
    r2 = (hp2 * wp2 - (2 * wp2 + 2)) * n_batch
    rm2 = r2 - (wp2 + 1) * n_batch

    # pool1-select + zero-pad:  (Hp2*Wp2*N, RM1)
    pool1_pad = np.zeros((hp2 * wp2 * n_batch, rm1), np.float32)
    for j in range(hp):
        for i in range(wpo):
            for b in range(n_batch):
                q = ((j + 1) * wp2 + (i + 1)) * n_batch + b
                r = (2 * j * wp1 + 2 * i) * n_batch + b
                pool1_pad[q, r] = 1.0

    # pool2-select + global-average-pool + flatten:  (N, RM2)
    gap = np.zeros((n_batch, rm2), np.float32)
    for j in range(hq):
        for i in range(wq):
            for b in range(n_batch):
                r = (2 * j * wp2 + 2 * i) * n_batch + b
                gap[b, r] = 1.0 / (hq * wq)

    return jnp.asarray(pool1_pad), jnp.asarray(gap)


# ----------------------------------------------------------------------------
# Forward pass wrapper (single pallas_call)
# ----------------------------------------------------------------------------

@jax.jit
def vgg_forward(x_nchw, params):
    n, cin, h, w = x_nchw.shape
    wp1 = w + 2
    wp2 = (w // 2) + 2
    c1 = params["conv1_w"].shape[-1]
    c2 = params["conv2_w"].shape[-1]
    num_classes = params["cls_w"].shape[-1]

    # One-time layout prep on the tiny network input: NCHW -> (Hpad, Wpad, N, Cin) -> 2-D.
    xt = jnp.transpose(x_nchw, (2, 3, 0, 1)).astype(jnp.float32)       # (H, W, N, Cin)
    xp = jnp.pad(xt, ((1, 1), (1, 1), (0, 0), (0, 0)))                 # (H+2, W+2, N, Cin)
    x2d = xp.reshape((h + 2) * wp1 * n, cin)                           # rows = (y, x, n)

    p2, gap = _build_selection_constants(n, h, w)                      # trace-time consts
    r1 = p2.shape[1] + (wp1 + 1) * n
    r2 = gap.shape[1] + (wp2 + 1) * n
    rp2 = p2.shape[0]

    kernel = functools.partial(_vgg_fused_kernel, n_batch=n, wp1=wp1, wp2=wp2)
    return pl.pallas_call(
        kernel,
        out_shape=jax.ShapeDtypeStruct((n, num_classes), jnp.float32),
        scratch_shapes=[
            pltpu.VMEM((r1, c1), jnp.float32),    # conv1 output (wide rows)
            pltpu.VMEM((rp2, c1), jnp.float32),   # padded conv2 input
            pltpu.VMEM((r2, c2), jnp.float32),    # conv2 output (wide rows)
        ],
    )(
        x2d,
        params["conv1_w"].reshape(9, cin, c1),
        params["bn1_scale"].reshape(1, c1),
        params["bn1_shift"].reshape(1, c1),
        params["conv2_w"].reshape(9, c1, c2),
        params["bn2_scale"].reshape(1, c2),
        params["bn2_shift"].reshape(1, c2),
        p2, gap,
        params["fc1_w"], params["fc1_b"].reshape(1, -1),
        params["fc2_w"], params["fc2_b"].reshape(1, -1),
        params["cls_w"], params["cls_b"].reshape(1, -1),
    )


# ----------------------------------------------------------------------------
# Pure-JAX reference (for self-check) and parameter init
# ----------------------------------------------------------------------------

def _reference_forward(x_nchw, params):
    hi = jax.lax.Precision.HIGHEST
    x = jnp.transpose(x_nchw, (0, 2, 3, 1)).astype(jnp.float32)        # NHWC

    def conv_bn_relu(x, wgt, scale, shift):
        hh, ww = x.shape[1], x.shape[2]
        xp = jnp.pad(x, ((0, 0), (1, 1), (1, 1), (0, 0)))
        acc = 0.0
        for dy in range(3):
            for dx in range(3):
                acc = acc + jnp.einsum('nhwc,cd->nhwd',
                                       xp[:, dy:dy + hh, dx:dx + ww, :], wgt[dy, dx],
                                       precision=hi)
        return jnp.maximum(acc * scale + shift, 0.0)

    def pool(x):
        nn, hh, ww, cc = x.shape
        return jnp.max(x.reshape(nn, hh // 2, 2, ww // 2, 2, cc), axis=(2, 4))

    x = conv_bn_relu(x, params["conv1_w"], params["bn1_scale"], params["bn1_shift"])
    x = pool(x)
    x = conv_bn_relu(x, params["conv2_w"], params["bn2_scale"], params["bn2_shift"])
    x = pool(x)
    x = jnp.mean(x, axis=(1, 2))
    x = jnp.maximum(jnp.dot(x, params["fc1_w"], precision=hi) + params["fc1_b"], 0.0)
    x = jnp.maximum(jnp.dot(x, params["fc2_w"], precision=hi) + params["fc2_b"], 0.0)
    return jnp.dot(x, params["cls_w"], precision=hi) + params["cls_b"]


def init_params(key, in_channels=4, c1=8, c2=16, fc=32, num_classes=10):
    eps = 1e-5
    ks = jax.random.split(key, 8)

    def kaiming_conv(k, cin, cout):
        std = jnp.sqrt(2.0 / (3 * 3 * cout))          # kaiming_normal_(fan_out, relu)
        return jax.random.normal(k, (3, 3, cin, cout), jnp.float32) * std

    def torch_linear(kw, kb, din, dout):
        bound = 1.0 / jnp.sqrt(din)
        w = jax.random.uniform(kw, (din, dout), jnp.float32, -bound, bound)
        b = jax.random.uniform(kb, (dout,), jnp.float32, -bound, bound)
        return w, b

    def bn_fold(c):  # gamma=1, beta=0, running_mean=0, running_var=1 (eval-mode fold)
        gamma = jnp.ones((c,), jnp.float32)
        beta = jnp.zeros((c,), jnp.float32)
        mean = jnp.zeros((c,), jnp.float32)
        var = jnp.ones((c,), jnp.float32)
        scale = gamma / jnp.sqrt(var + eps)
        return scale, beta - mean * scale

    p = {}
    p["conv1_w"] = kaiming_conv(ks[0], in_channels, c1)
    p["bn1_scale"], p["bn1_shift"] = bn_fold(c1)
    p["conv2_w"] = kaiming_conv(ks[1], c1, c2)
    p["bn2_scale"], p["bn2_shift"] = bn_fold(c2)
    p["fc1_w"], p["fc1_b"] = torch_linear(ks[2], ks[3], c2, fc)
    p["fc2_w"], p["fc2_b"] = torch_linear(ks[4], ks[5], fc, fc)
    p["cls_w"], p["cls_b"] = torch_linear(ks[6], ks[7], fc, num_classes)
    return p


if __name__ == "__main__":
    key = jax.random.PRNGKey(0)
    kp, kx = jax.random.split(key)
    params = init_params(kp)
    # PyTorch-style NCHW input: batch=2, channels=4, 16x16 spatial.
    x = jax.random.normal(kx, (2, 4, 16, 16), jnp.float32)

    out = jax.block_until_ready(vgg_forward(x, params))
    assert out.shape == (2, 10), out.shape
    assert bool(jnp.all(jnp.isfinite(out)))

    ref = jax.block_until_ready(_reference_forward(x, params))
    max_err = float(jnp.max(jnp.abs(out - ref)))
    assert max_err < 1e-2, f"mismatch vs pure-JAX reference: {max_err}"

    print("KERNEL_OK")
</pallas_src>

<mosaic_0001>
module attributes {stable_mosaic.version = 11 : i64} {
  func.func @_vgg_fused_kernel(%arg0: memref<648x4xf32, #tpu.memory_space<vmem>>, %arg1: memref<9x4x8xf32, #tpu.memory_space<vmem>>, %arg2: memref<1x8xf32, #tpu.memory_space<vmem>>, %arg3: memref<1x8xf32, #tpu.memory_space<vmem>>, %arg4: memref<9x8x16xf32, #tpu.memory_space<vmem>>, %arg5: memref<1x16xf32, #tpu.memory_space<vmem>>, %arg6: memref<1x16xf32, #tpu.memory_space<vmem>>, %arg7: memref<200x534xf32, #tpu.memory_space<vmem>>, %arg8: memref<2x134xf32, #tpu.memory_space<vmem>>, %arg9: memref<16x32xf32, #tpu.memory_space<vmem>>, %arg10: memref<1x32xf32, #tpu.memory_space<vmem>>, %arg11: memref<32x32xf32, #tpu.memory_space<vmem>>, %arg12: memref<1x32xf32, #tpu.memory_space<vmem>>, %arg13: memref<32x10xf32, #tpu.memory_space<vmem>>, %arg14: memref<1x10xf32, #tpu.memory_space<vmem>>, %arg15: memref<2x10xf32, #tpu.memory_space<vmem>>, %arg16: memref<572x8xf32, #tpu.memory_space<vmem>>, %arg17: memref<200x8xf32, #tpu.memory_space<vmem>>, %arg18: memref<156x16xf32, #tpu.memory_space<vmem>>) attributes {dimension_semantics = [], scalar_prefetch = 0 : i64, scratch_operands = 3 : i64, tpu.core_type = #tpu.core_type<tc>} {
    %cst = arith.constant 0.000000e+00 : f32
    %0 = vector.broadcast %cst : f32 to vector<572x8xf32>
    %c0 = arith.constant 0 : index
    %c0_0 = arith.constant 0 : index
    %1 = vector.load %arg0[%c0, %c0_0] : memref<648x4xf32, #tpu.memory_space<vmem>>, vector<572x4xf32>
    %c0_1 = arith.constant 0 : index
    %c0_2 = arith.constant 0 : index
    %c0_3 = arith.constant 0 : index
    %2 = vector.load %arg1[%c0_1, %c0_2, %c0_3] : memref<9x4x8xf32, #tpu.memory_space<vmem>>, vector<1x4x8xf32>
    %3 = vector.shape_cast %2 : vector<1x4x8xf32> to vector<4x8xf32>
    %cst_4 = arith.constant dense<0.000000e+00> : vector<572x8xf32>
    %4 = tpu.matmul %1, %3, %cst_4 {dimension_numbers = #tpu.dot_dimension_numbers<[1], [0], [0], [1], [0, 0, 1, 1], [], []>} : vector<572x4xf32>, vector<4x8xf32>, vector<572x8xf32> -> vector<572x8xf32>
    %5 = arith.addf %0, %4 : vector<572x8xf32>
    %c2 = arith.constant 2 : index
    %c0_5 = arith.constant 0 : index
    %6 = vector.load %arg0[%c2, %c0_5] : memref<648x4xf32, #tpu.memory_space<vmem>>, vector<572x4xf32>
    %c1 = arith.constant 1 : index
    %c0_6 = arith.constant 0 : index
    %c0_7 = arith.constant 0 : index
    %7 = vector.load %arg1[%c1, %c0_6, %c0_7] : memref<9x4x8xf32, #tpu.memory_space<vmem>>, vector<1x4x8xf32>
    %8 = vector.shape_cast %7 : vector<1x4x8xf32> to vector<4x8xf32>
    %cst_8 = arith.constant dense<0.000000e+00> : vector<572x8xf32>
    %9 = tpu.matmul %6, %8, %cst_8 {dimension_numbers = #tpu.dot_dimension_numbers<[1], [0], [0], [1], [0, 0, 1, 1], [], []>} : vector<572x4xf32>, vector<4x8xf32>, vector<572x8xf32> -> vector<572x8xf32>
    %10 = arith.addf %5, %9 : vector<572x8xf32>
    %c4 = arith.constant 4 : index
    %c0_9 = arith.constant 0 : index
    %11 = vector.load %arg0[%c4, %c0_9] : memref<648x4xf32, #tpu.memory_space<vmem>>, vector<572x4xf32>
    %c2_10 = arith.constant 2 : index
    %c0_11 = arith.constant 0 : index
    %c0_12 = arith.constant 0 : index
    %12 = vector.load %arg1[%c2_10, %c0_11, %c0_12] : memref<9x4x8xf32, #tpu.memory_space<vmem>>, vector<1x4x8xf32>
    %13 = vector.shape_cast %12 : vector<1x4x8xf32> to vector<4x8xf32>
    %cst_13 = arith.constant dense<0.000000e+00> : vector<572x8xf32>
    %14 = tpu.matmul %11, %13, %cst_13 {dimension_numbers = #tpu.dot_dimension_numbers<[1], [0], [0], [1], [0, 0, 1, 1], [], []>} : vector<572x4xf32>, vector<4x8xf32>, vector<572x8xf32> -> vector<572x8xf32>
    %15 = arith.addf %10, %14 : vector<572x8xf32>
    %c36 = arith.constant 36 : index
    %c0_14 = arith.constant 0 : index
    %16 = vector.load %arg0[%c36, %c0_14] : memref<648x4xf32, #tpu.memory_space<vmem>>, vector<572x4xf32>
    %c3 = arith.constant 3 : index
    %c0_15 = arith.constant 0 : index
    %c0_16 = arith.constant 0 : index
    %17 = vector.load %arg1[%c3, %c0_15, %c0_16] : memref<9x4x8xf32, #tpu.memory_space<vmem>>, vector<1x4x8xf32>
    %18 = vector.shape_cast %17 : vector<1x4x8xf32> to vector<4x8xf32>
    %cst_17 = arith.constant dense<0.000000e+00> : vector<572x8xf32>
    %19 = tpu.matmul %16, %18, %cst_17 {dimension_numbers = #tpu.dot_dimension_numbers<[1], [0], [0], [1], [0, 0, 1, 1], [], []>} : vector<572x4xf32>, vector<4x8xf32>, vector<572x8xf32> -> vector<572x8xf32>
    %20 = arith.addf %15, %19 : vector<572x8xf32>
    %c38 = arith.constant 38 : index
    %c0_18 = arith.constant 0 : index
    %21 = vector.load %arg0[%c38, %c0_18] : memref<648x4xf32, #tpu.memory_space<vmem>>, vector<572x4xf32>
    %c4_19 = arith.constant 4 : index
    %c0_20 = arith.constant 0 : index
    %c0_21 = arith.constant 0 : index
    %22 = vector.load %arg1[%c4_19, %c0_20, %c0_21] : memref<9x4x8xf32, #tpu.memory_space<vmem>>, vector<1x4x8xf32>
    %23 = vector.shape_cast %22 : vector<1x4x8xf32> to vector<4x8xf32>
    %cst_22 = arith.constant dense<0.000000e+00> : vector<572x8xf32>
    %24 = tpu.matmul %21, %23, %cst_22 {dimension_numbers = #tpu.dot_dimension_numbers<[1], [0], [0], [1], [0, 0, 1, 1], [], []>} : vector<572x4xf32>, vector<4x8xf32>, vector<572x8xf32> -> vector<572x8xf32>
    %25 = arith.addf %20, %24 : vector<572x8xf32>
    %c40 = arith.constant 40 : index
    %c0_23 = arith.constant 0 : index
    %26 = vector.load %arg0[%c40, %c0_23] : memref<648x4xf32, #tpu.memory_space<vmem>>, vector<572x4xf32>
    %c5 = arith.constant 5 : index
    %c0_24 = arith.constant 0 : index
    %c0_25 = arith.constant 0 : index
    %27 = vector.load %arg1[%c5, %c0_24, %c0_25] : memref<9x4x8xf32, #tpu.memory_space<vmem>>, vector<1x4x8xf32>
    %28 = vector.shape_cast %27 : vector<1x4x8xf32> to vector<4x8xf32>
    %cst_26 = arith.constant dense<0.000000e+00> : vector<572x8xf32>
    %29 = tpu.matmul %26, %28, %cst_26 {dimension_numbers = #tpu.dot_dimension_numbers<[1], [0], [0], [1], [0, 0, 1, 1], [], []>} : vector<572x4xf32>, vector<4x8xf32>, vector<572x8xf32> -> vector<572x8xf32>
    %30 = arith.addf %25, %29 : vector<572x8xf32>
    %c72 = arith.constant 72 : index
    %c0_27 = arith.constant 0 : index
    %31 = vector.load %arg0[%c72, %c0_27] : memref<648x4xf32, #tpu.memory_space<vmem>>, vector<572x4xf32>
    %c6 = arith.constant 6 : index
    %c0_28 = arith.constant 0 : index
    %c0_29 = arith.constant 0 : index
    %32 = vector.load %arg1[%c6, %c0_28, %c0_29] : memref<9x4x8xf32, #tpu.memory_space<vmem>>, vector<1x4x8xf32>
    %33 = vector.shape_cast %32 : vector<1x4x8xf32> to vector<4x8xf32>
    %cst_30 = arith.constant dense<0.000000e+00> : vector<572x8xf32>
    %34 = tpu.matmul %31, %33, %cst_30 {dimension_numbers = #tpu.dot_dimension_numbers<[1], [0], [0], [1], [0, 0, 1, 1], [], []>} : vector<572x4xf32>, vector<4x8xf32>, vector<572x8xf32> -> vector<572x8xf32>
    %35 = arith.addf %30, %34 : vector<572x8xf32>
    %c74 = arith.constant 74 : index
    %c0_31 = arith.constant 0 : index
    %36 = vector.load %arg0[%c74, %c0_31] : memref<648x4xf32, #tpu.memory_space<vmem>>, vector<572x4xf32>
    %c7 = arith.constant 7 : index
    %c0_32 = arith.constant 0 : index
    %c0_33 = arith.constant 0 : index
    %37 = vector.load %arg1[%c7, %c0_32, %c0_33] : memref<9x4x8xf32, #tpu.memory_space<vmem>>, vector<1x4x8xf32>
    %38 = vector.shape_cast %37 : vector<1x4x8xf32> to vector<4x8xf32>
    %cst_34 = arith.constant dense<0.000000e+00> : vector<572x8xf32>
    %39 = tpu.matmul %36, %38, %cst_34 {dimension_numbers = #tpu.dot_dimension_numbers<[1], [0], [0], [1], [0, 0, 1, 1], [], []>} : vector<572x4xf32>, vector<4x8xf32>, vector<572x8xf32> -> vector<572x8xf32>
    %40 = arith.addf %35, %39 : vector<572x8xf32>
    %c76 = arith.constant 76 : index
    %c0_35 = arith.constant 0 : index
    %41 = vector.load %arg0[%c76, %c0_35] : memref<648x4xf32, #tpu.memory_space<vmem>>, vector<572x4xf32>
    %c8 = arith.constant 8 : index
    %c0_36 = arith.constant 0 : index
    %c0_37 = arith.constant 0 : index
    %42 = vector.load %arg1[%c8, %c0_36, %c0_37] : memref<9x4x8xf32, #tpu.memory_space<vmem>>, vector<1x4x8xf32>
    %43 = vector.shape_cast %42 : vector<1x4x8xf32> to vector<4x8xf32>
    %cst_38 = arith.constant dense<0.000000e+00> : vector<572x8xf32>
    %44 = tpu.matmul %41, %43, %cst_38 {dimension_numbers = #tpu.dot_dimension_numbers<[1], [0], [0], [1], [0, 0, 1, 1], [], []>} : vector<572x4xf32>, vector<4x8xf32>, vector<572x8xf32> -> vector<572x8xf32>
    %45 = arith.addf %40, %44 : vector<572x8xf32>
    %c0_39 = arith.constant 0 : index
    %c0_40 = arith.constant 0 : index
    %46 = vector.load %arg2[%c0_39, %c0_40] : memref<1x8xf32, #tpu.memory_space<vmem>>, vector<1x8xf32>
    %47 = vector.broadcast %46 : vector<1x8xf32> to vector<572x8xf32>
    %48 = arith.mulf %45, %47 : vector<572x8xf32>
    %c0_41 = arith.constant 0 : index
    %c0_42 = arith.constant 0 : index
    %49 = vector.load %arg3[%c0_41, %c0_42] : memref<1x8xf32, #tpu.memory_space<vmem>>, vector<1x8xf32>
    %50 = vector.broadcast %49 : vector<1x8xf32> to vector<572x8xf32>
    %51 = arith.addf %48, %50 : vector<572x8xf32>
    %cst_43 = arith.constant 0.000000e+00 : f32
    %52 = vector.broadcast %cst_43 : f32 to vector<572x8xf32>
    %53 = arith.maximumf %51, %52 : vector<572x8xf32>
    %c0_44 = arith.constant 0 : index
    %c0_45 = arith.constant 0 : index
    %54 = vector.load %arg16[%c0_44, %c0_45] : memref<572x8xf32, #tpu.memory_space<vmem>>, vector<572x8xf32>
    tpu.vector_store %arg16[%c0_44, %c0_45], %53 {strides = array<i32>} : memref<572x8xf32, #tpu.memory_space<vmem>>, vector<572x8xf32>,
    %c0_46 = arith.constant 0 : index
    %c0_47 = arith.constant 0 : index
    %55 = vector.load %arg16[%c0_46, %c0_47] : memref<572x8xf32, #tpu.memory_space<vmem>>, vector<534x8xf32>
    %c2_48 = arith.constant 2 : index
    %c0_49 = arith.constant 0 : index
    %56 = vector.load %arg16[%c2_48, %c0_49] : memref<572x8xf32, #tpu.memory_space<vmem>>, vector<534x8xf32>
    %57 = arith.maximumf %55, %56 : vector<534x8xf32>
    %c36_50 = arith.constant 36 : index
    %c0_51 = arith.constant 0 : index
    %58 = vector.load %arg16[%c36_50, %c0_51] : memref<572x8xf32, #tpu.memory_space<vmem>>, vector<534x8xf32>
    %c38_52 = arith.constant 38 : index
    %c0_53 = arith.constant 0 : index
    %59 = vector.load %arg16[%c38_52, %c0_53] : memref<572x8xf32, #tpu.memory_space<vmem>>, vector<534x8xf32>
    %60 = arith.maximumf %58, %59 : vector<534x8xf32>
    %61 = arith.maximumf %57, %60 : vector<534x8xf32>
    %c0_54 = arith.constant 0 : index
    %c0_55 = arith.constant 0 : index
    %62 = vector.load %arg7[%c0_54, %c0_55] : memref<200x534xf32, #tpu.memory_space<vmem>>, vector<200x534xf32>
    %cst_56 = arith.constant dense<0.000000e+00> : vector<200x8xf32>
    %63 = tpu.matmul %62, %61, %cst_56 {dimension_numbers = #tpu.dot_dimension_numbers<[1], [0], [0], [1], [0, 0, 1, 1], [], []>} : vector<200x534xf32>, vector<534x8xf32>, vector<200x8xf32> -> vector<200x8xf32>
    %c0_57 = arith.constant 0 : index
    %c0_58 = arith.constant 0 : index
    %64 = vector.load %arg17[%c0_57, %c0_58] : memref<200x8xf32, #tpu.memory_space<vmem>>, vector<200x8xf32>
    tpu.vector_store %arg17[%c0_57, %c0_58], %63 {strides = array<i32>} : memref<200x8xf32, #tpu.memory_space<vmem>>, vector<200x8xf32>,
    %cst_59 = arith.constant 0.000000e+00 : f32
    %65 = vector.broadcast %cst_59 : f32 to vector<156x16xf32>
    %c0_60 = arith.constant 0 : index
    %c0_61 = arith.constant 0 : index
    %66 = vector.load %arg17[%c0_60, %c0_61] : memref<200x8xf32, #tpu.memory_space<vmem>>, vector<156x8xf32>
    %c0_62 = arith.constant 0 : index
    %c0_63 = arith.constant 0 : index
    %c0_64 = arith.constant 0 : index
    %67 = vector.load %arg4[%c0_62, %c0_63, %c0_64] : memref<9x8x16xf32, #tpu.memory_space<vmem>>, vector<1x8x16xf32>
    %68 = vector.shape_cast %67 : vector<1x8x16xf32> to vector<8x16xf32>
    %cst_65 = arith.constant dense<0.000000e+00> : vector<156x16xf32>
    %69 = tpu.matmul %66, %68, %cst_65 {dimension_numbers = #tpu.dot_dimension_numbers<[1], [0], [0], [1], [0, 0, 1, 1], [], []>} : vector<156x8xf32>, vector<8x16xf32>, vector<156x16xf32> -> vector<156x16xf32>
    %70 = arith.addf %65, %69 : vector<156x16xf32>
    %c2_66 = arith.constant 2 : index
    %c0_67 = arith.constant 0 : index
    %71 = vector.load %arg17[%c2_66, %c0_67] : memref<200x8xf32, #tpu.memory_space<vmem>>, vector<156x8xf32>
    %c1_68 = arith.constant 1 : index
    %c0_69 = arith.constant 0 : index
    %c0_70 = arith.constant 0 : index
    %72 = vector.load %arg4[%c1_68, %c0_69, %c0_70] : memref<9x8x16xf32, #tpu.memory_space<vmem>>, vector<1x8x16xf32>
    %73 = vector.shape_cast %72 : vector<1x8x16xf32> to vector<8x16xf32>
    %cst_71 = arith.constant dense<0.000000e+00> : vector<156x16xf32>
    %74 = tpu.matmul %71, %73, %cst_71 {dimension_numbers = #tpu.dot_dimension_numbers<[1], [0], [0], [1], [0, 0, 1, 1], [], []>} : vector<156x8xf32>, vector<8x16xf32>, vector<156x16xf32> -> vector<156x16xf32>
    %75 = arith.addf %70, %74 : vector<156x16xf32>
    %c4_72 = arith.constant 4 : index
    %c0_73 = arith.constant 0 : index
    %76 = vector.load %arg17[%c4_72, %c0_73] : memref<200x8xf32, #tpu.memory_space<vmem>>, vector<156x8xf32>
    %c2_74 = arith.constant 2 : index
    %c0_75 = arith.constant 0 : index
    %c0_76 = arith.constant 0 : index
    %77 = vector.load %arg4[%c2_74, %c0_75, %c0_76] : memref<9x8x16xf32, #tpu.memory_space<vmem>>, vector<1x8x16xf32>
    %78 = vector.shape_cast %77 : vector<1x8x16xf32> to vector<8x16xf32>
    %cst_77 = arith.constant dense<0.000000e+00> : vector<156x16xf32>
    %79 = tpu.matmul %76, %78, %cst_77 {dimension_numbers = #tpu.dot_dimension_numbers<[1], [0], [0], [1], [0, 0, 1, 1], [], []>} : vector<156x8xf32>, vector<8x16xf32>, vector<156x16xf32> -> vector<156x16xf32>
    %80 = arith.addf %75, %79 : vector<156x16xf32>
    %c20 = arith.constant 20 : index
    %c0_78 = arith.constant 0 : index
    %81 = vector.load %arg17[%c20, %c0_78] : memref<200x8xf32, #tpu.memory_space<vmem>>, vector<156x8xf32>
    %c3_79 = arith.constant 3 : index
    %c0_80 = arith.constant 0 : index
    %c0_81 = arith.constant 0 : index
    %82 = vector.load %arg4[%c3_79, %c0_80, %c0_81] : memref<9x8x16xf32, #tpu.memory_space<vmem>>, vector<1x8x16xf32>
    %83 = vector.shape_cast %82 : vector<1x8x16xf32> to vector<8x16xf32>
    %cst_82 = arith.constant dense<0.000000e+00> : vector<156x16xf32>
    %84 = tpu.matmul %81, %83, %cst_82 {dimension_numbers = #tpu.dot_dimension_numbers<[1], [0], [0], [1], [0, 0, 1, 1], [], []>} : vector<156x8xf32>, vector<8x16xf32>, vector<156x16xf32> -> vector<156x16xf32>
    %85 = arith.addf %80, %84 : vector<156x16xf32>
    %c22 = arith.constant 22 : index
    %c0_83 = arith.constant 0 : index
    %86 = vector.load %arg17[%c22, %c0_83] : memref<200x8xf32, #tpu.memory_space<vmem>>, vector<156x8xf32>
    %c4_84 = arith.constant 4 : index
    %c0_85 = arith.constant 0 : index
    %c0_86 = arith.constant 0 : index
    %87 = vector.load %arg4[%c4_84, %c0_85, %c0_86] : memref<9x8x16xf32, #tpu.memory_space<vmem>>, vector<1x8x16xf32>
    %88 = vector.shape_cast %87 : vector<1x8x16xf32> to vector<8x16xf32>
    %cst_87 = arith.constant dense<0.000000e+00> : vector<156x16xf32>
    %89 = tpu.matmul %86, %88, %cst_87 {dimension_numbers = #tpu.dot_dimension_numbers<[1], [0], [0], [1], [0, 0, 1, 1], [], []>} : vector<156x8xf32>, vector<8x16xf32>, vector<156x16xf32> -> vector<156x16xf32>
    %90 = arith.addf %85, %89 : vector<156x16xf32>
    %c24 = arith.constant 24 : index
    %c0_88 = arith.constant 0 : index
    %91 = vector.load %arg17[%c24, %c0_88] : memref<200x8xf32, #tpu.memory_space<vmem>>, vector<156x8xf32>
    %c5_89 = arith.constant 5 : index
    %c0_90 = arith.constant 0 : index
    %c0_91 = arith.constant 0 : index
    %92 = vector.load %arg4[%c5_89, %c0_90, %c0_91] : memref<9x8x16xf32, #tpu.memory_space<vmem>>, vector<1x8x16xf32>
    %93 = vector.shape_cast %92 : vector<1x8x16xf32> to vector<8x16xf32>
    %cst_92 = arith.constant dense<0.000000e+00> : vector<156x16xf32>
    %94 = tpu.matmul %91, %93, %cst_92 {dimension_numbers = #tpu.dot_dimension_numbers<[1], [0], [0], [1], [0, 0, 1, 1], [], []>} : vector<156x8xf32>, vector<8x16xf32>, vector<156x16xf32> -> vector<156x16xf32>
    %95 = arith.addf %90, %94 : vector<156x16xf32>
    %c40_93 = arith.constant 40 : index
    %c0_94 = arith.constant 0 : index
    %96 = vector.load %arg17[%c40_93, %c0_94] : memref<200x8xf32, #tpu.memory_space<vmem>>, vector<156x8xf32>
    %c6_95 = arith.constant 6 : index
    %c0_96 = arith.constant 0 : index
    %c0_97 = arith.constant 0 : index
    %97 = vector.load %arg4[%c6_95, %c0_96, %c0_97] : memref<9x8x16xf32, #tpu.memory_space<vmem>>, vector<1x8x16xf32>
    %98 = vector.shape_cast %97 : vector<1x8x16xf32> to vector<8x16xf32>
    %cst_98 = arith.constant dense<0.000000e+00> : vector<156x16xf32>
    %99 = tpu.matmul %96, %98, %cst_98 {dimension_numbers = #tpu.dot_dimension_numbers<[1], [0], [0], [1], [0, 0, 1, 1], [], []>} : vector<156x8xf32>, vector<8x16xf32>, vector<156x16xf32> -> vector<156x16xf32>
    %100 = arith.addf %95, %99 : vector<156x16xf32>
    %c42 = arith.constant 42 : index
    %c0_99 = arith.constant 0 : index
    %101 = vector.load %arg17[%c42, %c0_99] : memref<200x8xf32, #tpu.memory_space<vmem>>, vector<156x8xf32>
    %c7_100 = arith.constant 7 : index
    %c0_101 = arith.constant 0 : index
    %c0_102 = arith.constant 0 : index
    %102 = vector.load %arg4[%c7_100, %c0_101, %c0_102] : memref<9x8x16xf32, #tpu.memory_space<vmem>>, vector<1x8x16xf32>
    %103 = vector.shape_cast %102 : vector<1x8x16xf32> to vector<8x16xf32>
    %cst_103 = arith.constant dense<0.000000e+00> : vector<156x16xf32>
    %104 = tpu.matmul %101, %103, %cst_103 {dimension_numbers = #tpu.dot_dimension_numbers<[1], [0], [0], [1], [0, 0, 1, 1], [], []>} : vector<156x8xf32>, vector<8x16xf32>, vector<156x16xf32> -> vector<156x16xf32>
    %105 = arith.addf %100, %104 : vector<156x16xf32>
    %c44 = arith.constant 44 : index
    %c0_104 = arith.constant 0 : index
    %106 = vector.load %arg17[%c44, %c0_104] : memref<200x8xf32, #tpu.memory_space<vmem>>, vector<156x8xf32>
    %c8_105 = arith.constant 8 : index
    %c0_106 = arith.constant 0 : index
    %c0_107 = arith.constant 0 : index
    %107 = vector.load %arg4[%c8_105, %c0_106, %c0_107] : memref<9x8x16xf32, #tpu.memory_space<vmem>>, vector<1x8x16xf32>
    %108 = vector.shape_cast %107 : vector<1x8x16xf32> to vector<8x16xf32>
    %cst_108 = arith.constant dense<0.000000e+00> : vector<156x16xf32>
    %109 = tpu.matmul %106, %108, %cst_108 {dimension_numbers = #tpu.dot_dimension_numbers<[1], [0], [0], [1], [0, 0, 1, 1], [], []>} : vector<156x8xf32>, vector<8x16xf32>, vector<156x16xf32> -> vector<156x16xf32>
    %110 = arith.addf %105, %109 : vector<156x16xf32>
    %c0_109 = arith.constant 0 : index
    %c0_110 = arith.constant 0 : index
    %111 = vector.load %arg5[%c0_109, %c0_110] : memref<1x16xf32, #tpu.memory_space<vmem>>, vector<1x16xf32>
    %112 = vector.broadcast %111 : vector<1x16xf32> to vector<156x16xf32>
    %113 = arith.mulf %110, %112 : vector<156x16xf32>
    %c0_111 = arith.constant 0 : index
    %c0_112 = arith.constant 0 : index
    %114 = vector.load %arg6[%c0_111, %c0_112] : memref<1x16xf32, #tpu.memory_space<vmem>>, vector<1x16xf32>
    %115 = vector.broadcast %114 : vector<1x16xf32> to vector<156x16xf32>
    %116 = arith.addf %113, %115 : vector<156x16xf32>
    %cst_113 = arith.constant 0.000000e+00 : f32
    %117 = vector.broadcast %cst_113 : f32 to vector<156x16xf32>
    %118 = arith.maximumf %116, %117 : vector<156x16xf32>
    %c0_114 = arith.constant 0 : index
    %c0_115 = arith.constant 0 : index
    %119 = vector.load %arg18[%c0_114, %c0_115] : memref<156x16xf32, #tpu.memory_space<vmem>>, vector<156x16xf32>
    tpu.vector_store %arg18[%c0_114, %c0_115], %118 {strides = array<i32>} : memref<156x16xf32, #tpu.memory_space<vmem>>, vector<156x16xf32>,
    %c0_116 = arith.constant 0 : index
    %c0_117 = arith.constant 0 : index
    %120 = vector.load %arg18[%c0_116, %c0_117] : memref<156x16xf32, #tpu.memory_space<vmem>>, vector<134x16xf32>
    %c2_118 = arith.constant 2 : index
    %c0_119 = arith.constant 0 : index
    %121 = vector.load %arg18[%c2_118, %c0_119] : memref<156x16xf32, #tpu.memory_space<vmem>>, vector<134x16xf32>
    %122 = arith.maximumf %120, %121 : vector<134x16xf32>
    %c20_120 = arith.constant 20 : index
    %c0_121 = arith.constant 0 : index
    %123 = vector.load %arg18[%c20_120, %c0_121] : memref<156x16xf32, #tpu.memory_space<vmem>>, vector<134x16xf32>
    %c22_122 = arith.constant 22 : index
    %c0_123 = arith.constant 0 : index
    %124 = vector.load %arg18[%c22_122, %c0_123] : memref<156x16xf32, #tpu.memory_space<vmem>>, vector<134x16xf32>
    %125 = arith.maximumf %123, %124 : vector<134x16xf32>
    %126 = arith.maximumf %122, %125 : vector<134x16xf32>
    %c0_124 = arith.constant 0 : index
    %c0_125 = arith.constant 0 : index
    %127 = vector.load %arg8[%c0_124, %c0_125] : memref<2x134xf32, #tpu.memory_space<vmem>>, vector<2x134xf32>
    %cst_126 = arith.constant dense<0.000000e+00> : vector<2x16xf32>
    %128 = tpu.matmul %127, %126, %cst_126 {dimension_numbers = #tpu.dot_dimension_numbers<[1], [0], [0], [1], [0, 0, 1, 1], [], []>} : vector<2x134xf32>, vector<134x16xf32>, vector<2x16xf32> -> vector<2x16xf32>
    %c0_127 = arith.constant 0 : index
    %c0_128 = arith.constant 0 : index
    %129 = vector.load %arg9[%c0_127, %c0_128] : memref<16x32xf32, #tpu.memory_space<vmem>>, vector<16x32xf32>
    %cst_129 = arith.constant dense<0.000000e+00> : vector<2x32xf32>
    %130 = tpu.matmul %128, %129, %cst_129 {dimension_numbers = #tpu.dot_dimension_numbers<[1], [0], [0], [1], [0, 0, 1, 1], [], []>} : vector<2x16xf32>, vector<16x32xf32>, vector<2x32xf32> -> vector<2x32xf32>
    %c0_130 = arith.constant 0 : index
    %c0_131 = arith.constant 0 : index
    %131 = vector.load %arg10[%c0_130, %c0_131] : memref<1x32xf32, #tpu.memory_space<vmem>>, vector<1x32xf32>
    %132 = vector.broadcast %131 : vector<1x32xf32> to vector<2x32xf32>
    %133 = arith.addf %130, %132 : vector<2x32xf32>
    %cst_132 = arith.constant 0.000000e+00 : f32
    %134 = vector.broadcast %cst_132 : f32 to vector<2x32xf32>
    %135 = arith.maximumf %133, %134 : vector<2x32xf32>
    %c0_133 = arith.constant 0 : index
    %c0_134 = arith.constant 0 : index
    %136 = vector.load %arg11[%c0_133, %c0_134] : memref<32x32xf32, #tpu.memory_space<vmem>>, vector<32x32xf32>
    %cst_135 = arith.constant dense<0.000000e+00> : vector<2x32xf32>
    %137 = tpu.matmul %135, %136, %cst_135 {dimension_numbers = #tpu.dot_dimension_numbers<[1], [0], [0], [1], [0, 0, 1, 1], [], []>} : vector<2x32xf32>, vector<32x32xf32>, vector<2x32xf32> -> vector<2x32xf32>
    %c0_136 = arith.constant 0 : index
    %c0_137 = arith.constant 0 : index
    %138 = vector.load %arg12[%c0_136, %c0_137] : memref<1x32xf32, #tpu.memory_space<vmem>>, vector<1x32xf32>
    %139 = vector.broadcast %138 : vector<1x32xf32> to vector<2x32xf32>
    %140 = arith.addf %137, %139 : vector<2x32xf32>
    %cst_138 = arith.constant 0.000000e+00 : f32
    %141 = vector.broadcast %cst_138 : f32 to vector<2x32xf32>
    %142 = arith.maximumf %140, %141 : vector<2x32xf32>
    %c0_139 = arith.constant 0 : index
    %c0_140 = arith.constant 0 : index
    %143 = vector.load %arg13[%c0_139, %c0_140] : memref<32x10xf32, #tpu.memory_space<vmem>>, vector<32x10xf32>
    %cst_141 = arith.constant dense<0.000000e+00> : vector<2x10xf32>
    %144 = tpu.matmul %142, %143, %cst_141 {dimension_numbers = #tpu.dot_dimension_numbers<[1], [0], [0], [1], [0, 0, 1, 1], [], []>} : vector<2x32xf32>, vector<32x10xf32>, vector<2x10xf32> -> vector<2x10xf32>
    %c0_142 = arith.constant 0 : index
    %c0_143 = arith.constant 0 : index
    %145 = vector.load %arg14[%c0_142, %c0_143] : memref<1x10xf32, #tpu.memory_space<vmem>>, vector<1x10xf32>
    %146 = vector.broadcast %145 : vector<1x10xf32> to vector<2x10xf32>
    %147 = arith.addf %144, %146 : vector<2x10xf32>
    %c0_144 = arith.constant 0 : index
    %c0_145 = arith.constant 0 : index
    %148 = vector.load %arg15[%c0_144, %c0_145] : memref<2x10xf32, #tpu.memory_space<vmem>>, vector<2x10xf32>
    tpu.vector_store %arg15[%c0_144, %c0_145], %147 {strides = array<i32>} : memref<2x10xf32, #tpu.memory_space<vmem>>, vector<2x10xf32>,
    return
  }
}

</mosaic_0001>

<bundles_post_ra>
// kernel: vgg_forward.1
= control target key start
LH: loop header
LB: loop body
LE: loop exit
PB: predicated region body
PF: predicated region fallthrough
CT: control target
= control target key end

     0   :  { %vm415_vm0 = vcmask 1043456   ;;  %vm198_vm1 = vcmask 31744   ;;  %s14976_s0 = inlined_call_operand.vmem [shape: f32[648,4], index: 0, kind: input, shape index: {}]   ;;  %s14977_s1 = inlined_call_operand.vmem [shape: f32[9,4,8], index: 1, kind: input, shape index: {}]   ;;  %s14978_s2 = inlined_call_operand.vmem [shape: f32[1,8], index: 2, kind: input, shape index: {}]   ;;  %s14979_s3 = inlined_call_operand.vmem [shape: f32[1,8], index: 3, kind: input, shape index: {}]   ;;  %s14980_s4 = inlined_call_operand.vmem [shape: f32[9,8,16], index: 4, kind: input, shape index: {}]   ;;  %s14981_s5 = inlined_call_operand.vmem [shape: f32[1,16], index: 5, kind: input, shape index: {}]   ;;  %s14982_s6 = inlined_call_operand.vmem [shape: f32[1,16], index: 6, kind: input, shape index: {}]   ;;  %s14983_s7 = inlined_call_operand.vmem [shape: f32[200,534], index: 7, kind: input, shape index: {}]   ;;  %s14984_s8 = inlined_call_operand.vmem [shape: f32[2,134], index: 8, kind: input, shape index: {}]   ;;  %s14985_s9 = inlined_call_operand.vmem [shape: f32[16,32], index: 9, kind: input, shape index: {}]   ;;  %s14986_s10 = inlined_call_operand.vmem [shape: f32[1,32], index: 10, kind: input, shape index: {}]   ;;  %s14987_s11 = inlined_call_operand.vmem [shape: f32[32,32], index: 11, kind: input, shape index: {}]   ;;  %s14988_s12 = inlined_call_operand.vmem [shape: f32[1,32], index: 12, kind: input, shape index: {}]   ;;  %s14989_s13 = inlined_call_operand.vmem [shape: f32[32,10], index: 13, kind: input, shape index: {}]   ;;  %s14990_s14 = inlined_call_operand.vmem [shape: f32[1,10], index: 14, kind: input, shape index: {}]   ;;  %s14991_s15 = inlined_call_operand.hbm [shape: f32[2,10], index: 15, kind: output, shape index: {}]  }
   0x1   :  { %v8690_v0 = vld [vmem:[%s14977_s1 + $0x4] sm:$0xf]  ;;  %v123_v1 = vld [vmem:[%s14977_s1] sm:$0xf]  ;;  %v52_v3 = vld [vmem:[%s14976_s0 + $0x8] sm:$0xff] }
   0x2   :  { %v124_v2 = vld [vmem:[%s14976_s0 + $0x2] sm:$0xff]  ;;  %8691 = vmatpush.msk.msra.mxu0 %vm415_vm0, %v8690_v0  ;;  %9574 = vmatpush.msk.msra.mxu1 %vm415_vm0, %v123_v1  ;;  %v125_v6 = vld [vmem:[%s14976_s0 + $0xa] sm:$0xff] }
   0x3   :  { %v119_v4 = vld [vmem:[%s14976_s0 + $0x220] sm:$0xff]  ;;  %9575 = vmatpush.msk.msra.mxu2 %vm415_vm0, %v123_v1  ;;  %8692 = vmatmul.msk.f32.vlgmr.msra.gmra.mxu0 %vm198_vm1, %v124_v2  ;;  %v8837_v5 = vld [vmem:[%s14977_s1 + $0x8] sm:$0xf]  ;;  %v53_v7 = vld [vmem:[%s14976_s0 + $0x10] sm:$0xff] }
   0x4   :  { %8766 = vmatmul.msk.f32.vlgmr.msra.gmra.mxu1 %vm198_vm1, %v52_v3  ;;  %8833 = vmatmul.msk.f32.vlgmr.msra.gmra.mxu2 %vm198_vm1, %v119_v4  ;;  %v120_v8 = vld [vmem:[%s14976_s0 + $0x228] sm:$0xff] }
   0x5   :  { %8764 = vmatpush.msk.msrb.mxu0 %vm415_vm0, %v123_v1  ;;  %8838 = vmatpush.msk.msrb.mxu2 %vm415_vm0, %v8837_v5 }
   0x6   :  { %20 = vsyncpa [#allocation6], 0  ;;  %v126_v9 = vld [vmem:[%s14976_s0 + $0x12] sm:$0xff]  ;;  %v127_v12 = vld [vmem:[%s14976_s0 + $0x1a] sm:$0xff]  ;;  %vm5514_vm2 = vcmask 64512   ;;  %vm5586_vm3 = vcmask 60416  }
   0x7   :  { %v54_v10 = vld [vmem:[%s14976_s0 + $0x18] sm:$0xff]  ;;  %v121_v11 = vld [vmem:[%s14976_s0 + $0x230] sm:$0xff]  ;;  %v55_v13 = vld [vmem:[%s14976_s0 + $0x20] sm:$0xff]  ;;  %vm6258_vm4 = vcmask 1045504   ;;  %vm6182_vm5 = vcmask 179200   ;;  %vm8385_vm6 = vcmask 130048  }
   0x8   :  { %v122_v14 = vld [vmem:[%s14976_s0 + $0x238] sm:$0xf]  ;;  %v128_v15 = vld [vmem:[%s14976_s0 + $0x22] sm:$0xff]  ;;  %v129_v18 = vld [vmem:[%s14976_s0 + $0x2a] sm:$0xff]  ;;  %vm8405_vm7 = vcmask 125952   ;;  %vm8532_vm8 = vcmask 48128  }
   0x9   :  { %v56_v16 = vld [vmem:[%s14976_s0 + $0x28] sm:$0xff]  ;;  %v57_v19 = vld [vmem:[%s14976_s0 + $0x30] sm:$0xff]  ;;  %v58_v22 = vld [vmem:[%s14976_s0 + $0x38] sm:$0xff]  ;;  %vm8616_vm9 = vcmask 261120   ;;  %vm8672_vm10 = vcmask 74752  }
   0xa   :  { %v1104_v17 = vld [vmem:[%s14976_s0 + $0x4] sm:$0xff]  ;;  %v1105_v20 = vld [vmem:[%s14976_s0 + $0xc] sm:$0xff]  ;;  %v1106_v23 = vld [vmem:[%s14976_s0 + $0x14] sm:$0xff] }
   0xb   :  { %8693 = vmatmul.msk.f32.gmra.mxu0 %vm198_vm1, %v125_v6  ;;  %v130_v21 = vld [vmem:[%s14976_s0 + $0x32] sm:$0xff]  ;;  %v131_v24 = vld [vmem:[%s14976_s0 + $0x3a] sm:$0xff]  ;;  %v132_v27 = vld [vmem:[%s14976_s0 + $0x42] sm:$0xff] }
   0xc   :  { %8767 = vmatmul.msk.f32.gmra.mxu1 %vm198_vm1, %v53_v7  ;;  %8834 = vmatmul.msk.f32.gmra.mxu2 %vm198_vm1, %v120_v8  ;;  %v59_v25 = vld [vmem:[%s14976_s0 + $0x40] sm:$0xff]  ;;  %v60_v28 = vld [vmem:[%s14976_s0 + $0x48] sm:$0xff]  ;;  %v61_v31 = vld [vmem:[%s14976_s0 + $0x50] sm:$0xff] }
   0xd   :  { %v1107_v26 = vld [vmem:[%s14976_s0 + $0x1c] sm:$0xff]  ;;  %v1108_v29 = vld [vmem:[%s14976_s0 + $0x24] sm:$0xff]  ;;  %v1109_v32 = vld [vmem:[%s14976_s0 + $0x2c] sm:$0xff] }
   0xe   :  { %v133_v30 = vld [vmem:[%s14976_s0 + $0x4a] sm:$0xff]  ;;  %v134_v35 = vld [vmem:[%s14976_s0 + $0x52] sm:$0xff]  ;;  %v135_v39 = vld [vmem:[%s14976_s0 + $0x5a] sm:$0xff] }
   0xf   :  { %v8911_v33 = vld [vmem:[%s14977_s1 + $0xc] sm:$0xf]  ;;  %v62_v36 = vld [vmem:[%s14976_s0 + $0x58] sm:$0xff]  ;;  %v63_v40 = vld [vmem:[%s14976_s0 + $0x60] sm:$0xff] }
  0x10   :  { %v9836_v34 = vld [vmem:[%s14976_s0 + $0x6c] sm:$0xff]  ;;  %9576 = vmatpush.msk.msra.mxu3 %vm415_vm0, %v8911_v33  ;;  %8912 = vmatpush.msk.msrb.mxu1 %vm415_vm0, %v8911_v33  ;;  %v1110_v37 = vld [vmem:[%s14976_s0 + $0x34] sm:$0xff]  ;;  %v1111_v41 = vld [vmem:[%s14976_s0 + $0x3c] sm:$0xff] }
  0x11   :  { %8922 = vmatmul.msk.f32.vlgmr.msra.gmra.mxu3 %vm198_vm1, %v9836_v34  ;;  %v9857_v38 = vld [vmem:[%s14976_s0 + $0x74] sm:$0xff]  ;;  %v9876_v42 = vld [vmem:[%s14976_s0 + $0x7c] sm:$0xff]  ;;  %v64_v44 = vld [vmem:[%s14976_s0 + $0x68] sm:$0xff] }
  0x12   :  { %v136_v43 = vld [vmem:[%s14976_s0 + $0x62] sm:$0xff]  ;;  %v137_v47 = vld [vmem:[%s14976_s0 + $0x6a] sm:$0xff]  ;;  %v138_v51 = vld [vmem:[%s14976_s0 + $0x72] sm:$0xff] }
  0x13   :  { %8694 = vmatmul.msk.f32.gmra.mxu0 %vm198_vm1, %v126_v9  ;;  %v1112_v45 = vld [vmem:[%s14976_s0 + $0x44] sm:$0xff]  ;;  %v65_v48 = vld [vmem:[%s14976_s0 + $0x70] sm:$0xff]  ;;  %v66_v52 = vld [vmem:[%s14976_s0 + $0x78] sm:$0xff] }
  0x14   :  { %8768 = vmatmul.msk.f32.gmra.mxu1 %vm198_vm1, %v54_v10  ;;  %8835 = vmatmul.msk.f32.gmra.mxu2 %vm198_vm1, %v121_v11  ;;  %v9895_v46 = vld [vmem:[%s14976_s0 + $0x84] sm:$0xff]  ;;  %v1113_v49 = vld [vmem:[%s14976_s0 + $0x4c] sm:$0xff]  ;;  %v1114_v53 = vld [vmem:[%s14976_s0 + $0x54] sm:$0xff] }
  0x15   :  { %v9914_v50 = vld [vmem:[%s14976_s0 + $0x8c] sm:$0xff]  ;;  %v9933_v54 = vld [vmem:[%s14976_s0 + $0x94] sm:$0xff]  ;;  %v67_v56 = vld [vmem:[%s14976_s0 + $0x80] sm:$0xff] }
  0x16   :  { %v139_v55 = vld [vmem:[%s14976_s0 + $0x7a] sm:$0xff]  ;;  %v140_v60 = vld [vmem:[%s14976_s0 + $0x82] sm:$0xff]  ;;  %v141_v3 = vld [vmem:[%s14976_s0 + $0x8a] sm:$0xff] }
  0x17   :  { %v1115_v57 = vld [vmem:[%s14976_s0 + $0x5c] sm:$0xff]  ;;  %v68_v62 = vld [vmem:[%s14976_s0 + $0x88] sm:$0xff]  ;;  %v69_v5 = vld [vmem:[%s14976_s0 + $0x90] sm:$0xff] }
  0x18   :  { %v9952_v58 = vld [vmem:[%s14976_s0 + $0x9c] sm:$0xff]  ;;  %v1116_v63 = vld [vmem:[%s14976_s0 + $0x64] sm:$0xff]  ;;  %v9992_v6 = vld [vmem:[%s14976_s0 + $0xac] sm:$0xff] }
  0x19   :  { %8923 = vmatmul.msk.f32.gmra.mxu3 %vm198_vm1, %v9857_v38  ;;  %v9973_v0 = vld [vmem:[%s14976_s0 + $0xa4] sm:$0xff]  ;;  %v142_v9 = vld [vmem:[%s14976_s0 + $0x92] sm:$0xff] }
  0x1a   :  { %v70_v11 = vld [vmem:[%s14976_s0 + $0x98] sm:$0xff] }
  0x1b   :  { %8695 = vmatmul.msk.f32.gmra.mxu0 %vm198_vm1, %v127_v12  ;;  %v10011_v12 = vld [vmem:[%s14976_s0 + $0xb4] sm:$0xff] }
  0x1c   :  { %8769 = vmatmul.msk.f32.gmra.mxu1 %vm198_vm1, %v55_v13  ;;  %8836 = vmatmul.msk.f32.gmra.mxu2 %vm198_vm1, %v122_v14 }
  0x21   :  { %8924 = vmatmul.msk.f32.gmra.mxu3 %vm198_vm1, %v9876_v42 }
  0x23   :  { %8696 = vmatmul.msk.f32.gmra.mxu0 %vm198_vm1, %v128_v15  ;;  %v143_v15 = vld [vmem:[%s14976_s0 + $0x9a] sm:$0xff] }
  0x24   :  { %8770 = vmatmul.msk.f32.gmra.mxu1 %vm198_vm1, %v56_v16  ;;  %8839 = vmatmul.msk.f32.vlgmr.msrb.gmra.mxu2 %vm198_vm1, %v1104_v17  ;;  %v71_v17 = vld [vmem:[%s14976_s0 + $0xa0] sm:$0xff] }
  0x29   :  { %8925 = vmatmul.msk.f32.gmra.mxu3 %vm198_vm1, %v9895_v46 }
  0x2b   :  { %8697 = vmatmul.msk.f32.gmra.mxu0 %vm198_vm1, %v129_v18  ;;  %v10030_v18 = vld [vmem:[%s14976_s0 + $0xbc] sm:$0xff] }
  0x2c   :  { %8771 = vmatmul.msk.f32.gmra.mxu1 %vm198_vm1, %v57_v19  ;;  %8840 = vmatmul.msk.f32.gmra.mxu2 %vm198_vm1, %v1105_v20 }
  0x31   :  { %8926 = vmatmul.msk.f32.gmra.mxu3 %vm198_vm1, %v9914_v50 }
  0x33   :  { %8698 = vmatmul.msk.f32.gmra.mxu0 %vm198_vm1, %v130_v21  ;;  %v144_v21 = vld [vmem:[%s14976_s0 + $0xa2] sm:$0xff] }
  0x34   :  { %8772 = vmatmul.msk.f32.gmra.mxu1 %vm198_vm1, %v58_v22  ;;  %8841 = vmatmul.msk.f32.gmra.mxu2 %vm198_vm1, %v1106_v23  ;;  %v72_v23 = vld [vmem:[%s14976_s0 + $0xa8] sm:$0xff] }
  0x39   :  { %8927 = vmatmul.msk.f32.gmra.mxu3 %vm198_vm1, %v9933_v54 }
  0x3b   :  { %8699 = vmatmul.msk.f32.gmra.mxu0 %vm198_vm1, %v131_v24  ;;  %v10051_v24 = vld [vmem:[%s14976_s0 + $0xc4] sm:$0xff] }
  0x3c   :  { %8773 = vmatmul.msk.f32.gmra.mxu1 %vm198_vm1, %v59_v25  ;;  %8842 = vmatmul.msk.f32.gmra.mxu2 %vm198_vm1, %v1107_v26 }
  0x41   :  { %8928 = vmatmul.msk.f32.gmra.mxu3 %vm198_vm1, %v9952_v58 }
  0x43   :  { %8700 = vmatmul.msk.f32.gmra.mxu0 %vm198_vm1, %v132_v27  ;;  %v145_v27 = vld [vmem:[%s14976_s0 + $0xaa] sm:$0xff] }
  0x44   :  { %8774 = vmatmul.msk.f32.gmra.mxu1 %vm198_vm1, %v60_v28  ;;  %8843 = vmatmul.msk.f32.gmra.mxu2 %vm198_vm1, %v1108_v29  ;;  %v73_v29 = vld [vmem:[%s14976_s0 + $0xb0] sm:$0xff] }
  0x49   :  { %8929 = vmatmul.msk.f32.gmra.mxu3 %vm198_vm1, %v9973_v0 }
  0x4b   :  { %8701 = vmatmul.msk.f32.gmra.mxu0 %vm198_vm1, %v133_v30  ;;  %v10072_v30 = vld [vmem:[%s14976_s0 + $0xcc] sm:$0xff] }
  0x4c   :  { %8775 = vmatmul.msk.f32.gmra.mxu1 %vm198_vm1, %v61_v31  ;;  %8844 = vmatmul.msk.f32.gmra.mxu2 %vm198_vm1, %v1109_v32 }
  0x51   :  { %8930 = vmatmul.msk.f32.gmra.mxu3 %vm198_vm1, %v9992_v6 }
  0x53   :  { %8702 = vmatmul.msk.f32.gmra.mxu0 %vm198_vm1, %v134_v35  ;;  %v146_v35 = vld [vmem:[%s14976_s0 + $0xb2] sm:$0xff] }
  0x54   :  { %8776 = vmatmul.msk.f32.gmra.mxu1 %vm198_vm1, %v62_v36  ;;  %8845 = vmatmul.msk.f32.gmra.mxu2 %vm198_vm1, %v1110_v37  ;;  %v74_v37 = vld [vmem:[%s14976_s0 + $0xb8] sm:$0xff] }
  0x59   :  { %8931 = vmatmul.msk.f32.gmra.mxu3 %vm198_vm1, %v10011_v12 }
  0x5b   :  { %8703 = vmatmul.msk.f32.gmra.mxu0 %vm198_vm1, %v135_v39 }
  0x5c   :  { %8777 = vmatmul.msk.f32.gmra.mxu1 %vm198_vm1, %v63_v40  ;;  %8846 = vmatmul.msk.f32.gmra.mxu2 %vm198_vm1, %v1111_v41 }
  0x61   :  { %8932 = vmatmul.msk.f32.gmra.mxu3 %vm198_vm1, %v10030_v18 }
  0x63   :  { %8704 = vmatmul.msk.f32.gmra.mxu0 %vm198_vm1, %v136_v43  ;;  %v147_v43 = vld [vmem:[%s14976_s0 + $0xba] sm:$0xff] }
  0x64   :  { %8778 = vmatmul.msk.f32.gmra.mxu1 %vm198_vm1, %v64_v44  ;;  %8847 = vmatmul.msk.f32.gmra.mxu2 %vm198_vm1, %v1112_v45  ;;  %v75_v45 = vld [vmem:[%s14976_s0 + $0xc0] sm:$0xff] }
  0x69   :  { %8933 = vmatmul.msk.f32.gmra.mxu3 %vm198_vm1, %v10051_v24 }
  0x6b   :  { %8705 = vmatmul.msk.f32.gmra.mxu0 %vm198_vm1, %v137_v47 }
  0x6c   :  { %8779 = vmatmul.msk.f32.gmra.mxu1 %vm198_vm1, %v65_v48  ;;  %8848 = vmatmul.msk.f32.gmra.mxu2 %vm198_vm1, %v1113_v49 }
  0x71   :  { %8934 = vmatmul.msk.f32.gmra.mxu3 %vm198_vm1, %v10072_v30 }
  0x73   :  { %8706 = vmatmul.msk.f32.gmra.mxu0 %vm198_vm1, %v138_v51  ;;  %v148_v51 = vld [vmem:[%s14976_s0 + $0xc2] sm:$0xff] }
  0x74   :  { %8780 = vmatmul.msk.f32.gmra.mxu1 %vm198_vm1, %v66_v52  ;;  %8849 = vmatmul.msk.f32.gmra.mxu2 %vm198_vm1, %v1114_v53  ;;  %v76_v53 = vld [vmem:[%s14976_s0 + $0xc8] sm:$0xff] }
  0x7b   :  { %8707 = vmatmul.msk.f32.gmra.mxu0 %vm198_vm1, %v139_v55 }
  0x7c   :  { %8781 = vmatmul.msk.f32.gmra.mxu1 %vm198_vm1, %v67_v56  ;;  %8850 = vmatmul.msk.f32.gmra.mxu2 %vm198_vm1, %v1115_v57 }
  0x80   :  { %v9956_v59 = vpop.f32.mrf.mxu0 }
  0x81   :  { %v891_v61 = vpop.f32.mrf.mxu1 }
  0x83   :  { %8708 = vmatmul.msk.f32.gmra.mxu0 %vm198_vm1, %v140_v60  ;;  %v149_v60 = vld [vmem:[%s14976_s0 + $0xca] sm:$0xff] }
  0x84   :  { %8782 = vmatmul.msk.f32.gmra.mxu1 %vm198_vm1, %v68_v62  ;;  %8851 = vmatmul.msk.f32.gmra.mxu2 %vm198_vm1, %v1116_v63  ;;  %v77_v62 = vld [vmem:[%s14976_s0 + $0xd0] sm:$0xff] }
  0x85   :  { %v10156_v63 = vld [vmem:[%s14976_s0 + $0xec] sm:$0xff] }
  0x87   :  { %v9977_v1 = vpop.f32.mrf.mxu2 }
  0x88   :  { %v439_v2 = vpop.f32.mrf.mxu0 }
  0x89   :  { %v894_v4 = vpop.f32.mrf.mxu1  ;;  %v892_v31 = vadd.f32 %v891_v61, %v439_v2 }
  0x8b   :  { %8709 = vmatmul.msk.f32.gmra.mxu0 %vm198_vm1, %v141_v3 }
  0x8c   :  { %8783 = vmatmul.msk.f32.gmra.mxu1 %vm198_vm1, %v69_v5  ;;  %8852 = vmatmul.msk.f32.gmra.mxu2 %vm198_vm1, %v9836_v34  ;;  %v150_v5 = vld [vmem:[%s14976_s0 + $0xd2] sm:$0xff] }
  0x8f   :  { %v9996_v7 = vpop.f32.mrf.mxu2 }
  0x90   :  { %v442_v8 = vpop.f32.mrf.mxu0 }
  0x91   :  { %v897_v10 = vpop.f32.mrf.mxu1  ;;  %v895_v39 = vadd.f32 %v894_v4, %v442_v8 }
  0x93   :  { %8710 = vmatmul.msk.f32.gmra.mxu0 %vm198_vm1, %v142_v9 }
  0x94   :  { %8784 = vmatmul.msk.f32.gmra.mxu1 %vm198_vm1, %v70_v11  ;;  %8853 = vmatmul.msk.f32.gmra.mxu2 %vm198_vm1, %v9857_v38  ;;  %v10093_v38 = vld [vmem:[%s14976_s0 + $0xd4] sm:$0xff]  ;;  %v2039_v9 = vpop.f32.mrf.mxu3 }
  0x95   :  { %8935 = vmatmul.msk.f32.gmra.mxu3 %vm198_vm1, %v10093_v38 }
  0x97   :  { %v10015_v13 = vpop.f32.mrf.mxu2 }
  0x98   :  { %v445_v14 = vpop.f32.mrf.mxu0 }
  0x99   :  { %v900_v16 = vpop.f32.mrf.mxu1  ;;  %v898_v47 = vadd.f32 %v897_v10, %v445_v14  ;;  %v10178_v10 = vld [vmem:[%s14976_s0 + $0xf4] sm:$0xff] }
  0x9b   :  { %8711 = vmatmul.msk.f32.gmra.mxu0 %vm198_vm1, %v143_v15 }
  0x9c   :  { %8785 = vmatmul.msk.f32.gmra.mxu1 %vm198_vm1, %v71_v17  ;;  %8854 = vmatmul.msk.f32.gmra.mxu2 %vm198_vm1, %v9876_v42  ;;  %v151_v17 = vld [vmem:[%s14976_s0 + $0xda] sm:$0xff] }
  0x9f   :  { %v10034_v19 = vpop.f32.mrf.mxu2 }
  0xa0   :  { %v448_v20 = vpop.f32.mrf.mxu0 }
  0xa1   :  { %v10039_v22 = vpop.f32.mrf.mxu1  ;;  %v901_v55 = vadd.f32 %v900_v16, %v448_v20  ;;  %v79_v20 = vld [vmem:[%s14976_s0 + $0xe0] sm:$0xff] }
  0xa3   :  { %8712 = vmatmul.msk.f32.gmra.mxu0 %vm198_vm1, %v144_v21  ;;  %v2042_v21 = vpop.f32.mrf.mxu3 }
  0xa4   :  { %8786 = vmatmul.msk.f32.gmra.mxu1 %vm198_vm1, %v72_v23  ;;  %8855 = vmatmul.msk.f32.gmra.mxu2 %vm198_vm1, %v9895_v46  ;;  %v10114_v46 = vld [vmem:[%s14976_s0 + $0xdc] sm:$0xff] }
  0xa5   :  { %8936 = vmatmul.msk.f32.gmra.mxu3 %vm198_vm1, %v10114_v46 }
  0xa7   :  { %v10055_v25 = vpop.f32.mrf.mxu2 }
  0xa8   :  { %v451_v26 = vpop.f32.mrf.mxu0 }
  0xa9   :  { %v10060_v28 = vpop.f32.mrf.mxu1 }
  0xab   :  { %8713 = vmatmul.msk.f32.gmra.mxu0 %vm198_vm1, %v145_v27 }
  0xac   :  { %8787 = vmatmul.msk.f32.gmra.mxu1 %vm198_vm1, %v73_v29  ;;  %8856 = vmatmul.msk.f32.gmra.mxu2 %vm198_vm1, %v9914_v50  ;;  %v152_v29 = vld [vmem:[%s14976_s0 + $0xe2] sm:$0xff] }
  0xaf   :  { %v1417_v32 = vpop.f32.mrf.mxu2 }
  0xb0   :  { %v10076_v33 = vadd.f32 %v1417_v32, %v892_v31  ;;  %v454_v34 = vpop.f32.mrf.mxu0  ;;  %v80_v31 = vld [vmem:[%s14976_s0 + $0xe8] sm:$0xff]  ;;  %v2045_v32 = vpop.f32.mrf.mxu3 }
  0xb1   :  { %v10081_v36 = vpop.f32.mrf.mxu1  ;;  %v907_v11 = vadd.f32 %v10060_v28, %v454_v34  ;;  %v10226_v34 = vld [vmem:[%s14976_s0 + $0x104] sm:$0xff] }
  0xb3   :  { %8714 = vmatmul.msk.f32.gmra.mxu0 %vm198_vm1, %v146_v35 }
  0xb4   :  { %8788 = vmatmul.msk.f32.gmra.mxu1 %vm198_vm1, %v74_v37  ;;  %8857 = vmatmul.msk.f32.gmra.mxu2 %vm198_vm1, %v9933_v54  ;;  %v10135_v54 = vld [vmem:[%s14976_s0 + $0xe4] sm:$0xff] }
  0xb5   :  { %8937 = vmatmul.msk.f32.gmra.mxu3 %vm198_vm1, %v10135_v54 }
  0xb7   :  { %v1420_v40 = vpop.f32.mrf.mxu2 }
  0xb8   :  { %v10097_v41 = vadd.f32 %v1420_v40, %v895_v39  ;;  %v457_v42 = vpop.f32.mrf.mxu0  ;;  %v153_v40 = vld [vmem:[%s14976_s0 + $0xea] sm:$0xff] }
  0xb9   :  { %v10102_v44 = vpop.f32.mrf.mxu1  ;;  %v910_v23 = vadd.f32 %v10081_v36, %v457_v42  ;;  %v81_v42 = vld [vmem:[%s14976_s0 + $0xf0] sm:$0xff] }
  0xbb   :  { %8715 = vmatmul.msk.f32.gmra.mxu0 %vm198_vm1, %v147_v43  ;;  %v2048_v43 = vpop.f32.mrf.mxu3 }
  0xbc   :  { %8789 = vmatmul.msk.f32.gmra.mxu1 %vm198_vm1, %v75_v45  ;;  %8858 = vmatmul.msk.f32.gmra.mxu2 %vm198_vm1, %v9952_v58 }
  0xbd   :  { %8938 = vmatmul.msk.f32.gmra.mxu3 %vm198_vm1, %v10156_v63 }
  0xbf   :  { %v1423_v48 = vpop.f32.mrf.mxu2 }
  0xc0   :  { %v10118_v49 = vadd.f32 %v1423_v48, %v898_v47  ;;  %v460_v50 = vpop.f32.mrf.mxu0 }
  0xc1   :  { %v10123_v52 = vpop.f32.mrf.mxu1  ;;  %v913_v35 = vadd.f32 %v10102_v44, %v460_v50  ;;  %v10250_v44 = vld [vmem:[%s14976_s0 + $0x10c] sm:$0xff] }
  0xc3   :  { %8716 = vmatmul.msk.f32.gmra.mxu0 %vm198_vm1, %v148_v51  ;;  %v154_v51 = vld [vmem:[%s14976_s0 + $0xf2] sm:$0xff] }
  0xc4   :  { %8790 = vmatmul.msk.f32.gmra.mxu1 %vm198_vm1, %v76_v53  ;;  %8859 = vmatmul.msk.f32.gmra.mxu2 %vm198_vm1, %v9973_v0  ;;  %v904_v0 = vadd.f32 %v10039_v22, %v451_v26  ;;  %v10202_v22 = vld [vmem:[%s14976_s0 + $0xfc] sm:$0xff] }
  0xc5   :  { %8939 = vmatmul.msk.f32.gmra.mxu3 %vm198_vm1, %v10178_v10 }
  0xc7   :  { %v1426_v56 = vpop.f32.mrf.mxu2 }
  0xc8   :  { %v10139_v57 = vadd.f32 %v1426_v56, %v901_v55  ;;  %v463_v58 = vpop.f32.mrf.mxu0  ;;  %v2051_v55 = vpop.f32.mrf.mxu3 }
  0xc9   :  { %v10144_v61 = vpop.f32.mrf.mxu1  ;;  %v916_v45 = vadd.f32 %v10123_v52, %v463_v58  ;;  %v10274_v52 = vld [vmem:[%s14976_s0 + $0x114] sm:$0xff] }
  0xcb   :  { %8717 = vmatmul.msk.f32.gmra.mxu0 %vm198_vm1, %v149_v60 }
  0xcc   :  { %8791 = vmatmul.msk.f32.gmra.mxu1 %vm198_vm1, %v77_v62  ;;  %8860 = vmatmul.msk.f32.gmra.mxu2 %vm198_vm1, %v9992_v6  ;;  %v78_v6 = vld [vmem:[%s14976_s0 + $0xd8] sm:$0xff] }
  0xcd   :  { %8940 = vmatmul.msk.f32.gmra.mxu3 %vm198_vm1, %v10202_v22 }
  0xcf   :  { %v1429_v2 = vpop.f32.mrf.mxu2 }
  0xd0   :  { %v10161_v3 = vadd.f32 %v1429_v2, %v904_v0  ;;  %v466_v4 = vpop.f32.mrf.mxu0  ;;  %v155_v2 = vld [vmem:[%s14976_s0 + $0xfa] sm:$0xff] }
  0xd1   :  { %v10166_v8 = vpop.f32.mrf.mxu1  ;;  %v919_v58 = vadd.f32 %v10144_v61, %v466_v4  ;;  %v10298_v61 = vld [vmem:[%s14976_s0 + $0x11c] sm:$0xff] }
  0xd3   :  { %8718 = vmatmul.msk.f32.gmra.mxu0 %vm198_vm1, %v150_v5 }
  0xd4   :  { %8792 = vmatmul.msk.f32.gmra.mxu1 %vm198_vm1, %v78_v6  ;;  %8861 = vmatmul.msk.f32.gmra.mxu2 %vm198_vm1, %v10011_v12  ;;  %v2054_v6 = vpop.f32.mrf.mxu3 }
  0xd5   :  { %8941 = vmatmul.msk.f32.gmra.mxu3 %vm198_vm1, %v10226_v34 }
  0xd7   :  { %v1432_v14 = vpop.f32.mrf.mxu2 }
  0xd8   :  { %v10183_v15 = vadd.f32 %v1432_v14, %v907_v11  ;;  %v10185_v16 = vpop.f32.mrf.mxu0 }
  0xd9   :  { %v10190_v12 = vpop.f32.mrf.mxu1  ;;  %v922_v4 = vadd.f32 %v10166_v8, %v10185_v16  ;;  %v10323_v8 = vld [vmem:[%s14976_s0 + $0x124] sm:$0xff] }
  0xdb   :  { %8719 = vmatmul.msk.f32.gmra.mxu0 %vm198_vm1, %v151_v17 }
  0xdc   :  { %8793 = vmatmul.msk.f32.gmra.mxu1 %vm198_vm1, %v79_v20  ;;  %8862 = vmatmul.msk.f32.gmra.mxu2 %vm198_vm1, %v10030_v18  ;;  %v156_v20 = vld [vmem:[%s14976_s0 + $0x102] sm:$0xff] }
  0xdd   :  { %8942 = vmatmul.msk.f32.gmra.mxu3 %vm198_vm1, %v10250_v44 }
  0xdf   :  { %v1435_v26 = vpop.f32.mrf.mxu2 }
  0xe0   :  { %v10207_v27 = vadd.f32 %v1435_v26, %v910_v23  ;;  %v10209_v28 = vpop.f32.mrf.mxu0  ;;  %v2057_v23 = vpop.f32.mrf.mxu3 }
  0xe1   :  { %v10214_v18 = vpop.f32.mrf.mxu1  ;;  %v925_v16 = vadd.f32 %v10190_v12, %v10209_v28  ;;  %v10348_v12 = vld [vmem:[%s14976_s0 + $0x12c] sm:$0xff] }
  0xe3   :  { %8720 = vmatmul.msk.f32.gmra.mxu0 %vm198_vm1, %v152_v29 }
  0xe4   :  { %8794 = vmatmul.msk.f32.gmra.mxu1 %vm198_vm1, %v80_v31  ;;  %8863 = vmatmul.msk.f32.gmra.mxu2 %vm198_vm1, %v10051_v24 }
  0xe5   :  { %8943 = vmatmul.msk.f32.gmra.mxu3 %vm198_vm1, %v10274_v52 }
  0xe7   :  { %v1438_v36 = vpop.f32.mrf.mxu2 }
  0xe8   :  { %v10231_v37 = vadd.f32 %v1438_v36, %v913_v35  ;;  %v10233_v39 = vpop.f32.mrf.mxu0  ;;  %v157_v35 = vld [vmem:[%s14976_s0 + $0x10a] sm:$0xff] }
  0xe9   :  { %v10238_v24 = vpop.f32.mrf.mxu1  ;;  %v85_v36 = vld [vmem:[%s14976_s0 + $0x110] sm:$0xff]  ;;  %v928_v28 = vadd.f32 %v10214_v18, %v10233_v39 }
  0xea   :  { %v10373_v18 = vld [vmem:[%s14976_s0 + $0x134] sm:$0xff] }
  0xeb   :  { %8721 = vmatmul.msk.f32.gmra.mxu0 %vm198_vm1, %v153_v40  ;;  %v2060_v40 = vpop.f32.mrf.mxu3 }
  0xec   :  { %8795 = vmatmul.msk.f32.gmra.mxu1 %vm198_vm1, %v81_v42  ;;  %8864 = vmatmul.msk.f32.gmra.mxu2 %vm198_vm1, %v10072_v30  ;;  %v82_v30 = vld [vmem:[%s14976_s0 + $0xf8] sm:$0xff] }
  0xed   :  { %8944 = vmatmul.msk.f32.gmra.mxu3 %vm198_vm1, %v10298_v61 }
  0xef   :  { %v1441_v47 = vpop.f32.mrf.mxu2 }
  0xf0   :  { %v1639_v48 = vadd.f32 %v1441_v47, %v916_v45  ;;  %v10255_v50 = vpop.f32.mrf.mxu0 }
  0xf1   :  { %v10260_v53 = vpop.f32.mrf.mxu1  ;;  %v931_v39 = vadd.f32 %v10238_v24, %v10255_v50  ;;  %v10398_v24 = vld [vmem:[%s14976_s0 + $0x13c] sm:$0xff] }
  0xf2   :  { %v10265_v56 = vadd.f32 %v2039_v9, %v1639_v48  ;;  %v158_v48 = vld [vmem:[%s14976_s0 + $0x112] sm:$0xff] }
  0xf3   :  { %8722 = vmatmul.msk.f32.gmra.mxu0 %vm198_vm1, %v154_v51  ;;  %v86_v51 = vld [vmem:[%s14976_s0 + $0x118] sm:$0xff] }
  0xf4   :  { %8796 = vmatmul.msk.f32.gmra.mxu1 %vm198_vm1, %v82_v30  ;;  %8865 = vmatmul.msk.f32.gmra.mxu2 %vm198_vm1, %v10093_v38  ;;  %v83_v38 = vld [vmem:[%s14976_s0 + $0x100] sm:$0xff]  ;;  %v2063_v30 = vpop.f32.mrf.mxu3 }
  0xf5   :  { %8945 = vmatmul.msk.f32.gmra.mxu3 %vm198_vm1, %v10323_v8 }
  0xf7   :  { %v1444_v60 = vpop.f32.mrf.mxu2 }
  0xf8   :  { %v1640_v62 = vadd.f32 %v1444_v60, %v919_v58  ;;  %v10279_v0 = vpop.f32.mrf.mxu0 }
  0xf9   :  { %v10284_v5 = vpop.f32.mrf.mxu1  ;;  %v934_v50 = vadd.f32 %v10260_v53, %v10279_v0  ;;  %v10423_v53 = vld [vmem:[%s14976_s0 + $0x144] sm:$0xff] }
  0xfa   :  { %v10289_v9 = vadd.f32 %v2042_v21, %v1640_v62  ;;  %v84_v21 = vld [vmem:[%s14976_s0 + $0x108] sm:$0xff] }
  0xfb   :  { %8723 = vmatmul.msk.f32.gmra.mxu0 %vm198_vm1, %v155_v2  ;;  %v159_v2 = vld [vmem:[%s14976_s0 + $0x11a] sm:$0xff] }
  0xfc   :  { %8797 = vmatmul.msk.f32.gmra.mxu1 %vm198_vm1, %v83_v38  ;;  %8866 = vmatmul.msk.f32.gmra.mxu2 %vm198_vm1, %v10114_v46  ;;  %v87_v38 = vld [vmem:[%s14976_s0 + $0x120] sm:$0xff] }
  0xfd   :  { %8946 = vmatmul.msk.f32.gmra.mxu3 %vm198_vm1, %v10348_v12 }
  0xff   :  { %v1447_v11 = vpop.f32.mrf.mxu2 }
 0x100   :  { %v1641_v14 = vadd.f32 %v1447_v11, %v922_v4  ;;  %v10304_v17 = vpop.f32.mrf.mxu0  ;;  %v2066_v4 = vpop.f32.mrf.mxu3 }
 0x101   :  { %v10309_v46 = vpop.f32.mrf.mxu1  ;;  %v937_v0 = vadd.f32 %v10284_v5, %v10304_v17  ;;  %v10448_v5 = vld [vmem:[%s14976_s0 + $0x14c] sm:$0xff] }
 0x102   :  { %v10314_v26 = vadd.f32 %v2045_v32, %v1641_v14 }
 0x103   :  { %8724 = vmatmul.msk.f32.gmra.mxu0 %vm198_vm1, %v156_v20 }
 0x104   :  { %8798 = vmatmul.msk.f32.gmra.mxu1 %vm198_vm1, %v84_v21  ;;  %8867 = vmatmul.msk.f32.gmra.mxu2 %vm198_vm1, %v10135_v54  ;;  %v160_v21 = vld [vmem:[%s14976_s0 + $0x122] sm:$0xff] }
 0x105   :  { %8947 = vmatmul.msk.f32.gmra.mxu3 %vm198_vm1, %v10373_v18 }
 0x107   :  { %v1450_v29 = vpop.f32.mrf.mxu2 }
 0x108   :  { %v1642_v31 = vadd.f32 %v1450_v29, %v925_v16  ;;  %v10329_v32 = vpop.f32.mrf.mxu0  ;;  %v88_v16 = vld [vmem:[%s14976_s0 + $0x128] sm:$0xff]  ;;  %v2069_v29 = vpop.f32.mrf.mxu3 }
 0x109   :  { %v10334_v54 = vpop.f32.mrf.mxu1  ;;  %v940_v17 = vadd.f32 %v10309_v46, %v10329_v32  ;;  %v10473_v46 = vld [vmem:[%s14976_s0 + $0x154] sm:$0xff] }
 0x10a   :  { %v10339_v42 = vadd.f32 %v2048_v43, %v1642_v31 }
 0x10b   :  { %8725 = vmatmul.msk.f32.gmra.mxu0 %vm198_vm1, %v157_v35 }
 0x10c   :  { %8799 = vmatmul.msk.f32.gmra.mxu1 %vm198_vm1, %v85_v36  ;;  %8868 = vmatmul.msk.f32.gmra.mxu2 %vm198_vm1, %v10156_v63 }
 0x10d   :  { %8948 = vmatmul.msk.f32.gmra.mxu3 %vm198_vm1, %v10398_v24 }
 0x10f   :  { %v1453_v43 = vpop.f32.mrf.mxu2 }
 0x110   :  { %v1643_v45 = vadd.f32 %v1453_v43, %v928_v28  ;;  %v10354_v47 = vpop.f32.mrf.mxu0  ;;  %v161_v28 = vld [vmem:[%s14976_s0 + $0x12a] sm:$0xff] }
 0x111   :  { %v10359_v63 = vpop.f32.mrf.mxu1  ;;  %v89_v43 = vld [vmem:[%s14976_s0 + $0x130] sm:$0xff]  ;;  %v943_v32 = vadd.f32 %v10334_v54, %v10354_v47  ;;  %v10498_v54 = vld [vmem:[%s14976_s0 + $0x15c] sm:$0xff] }
 0x112   :  { %v10364_v58 = vadd.f32 %v2051_v55, %v1643_v45  ;;  %v2072_v45 = vpop.f32.mrf.mxu3 }
 0x113   :  { %8726 = vmatmul.msk.f32.gmra.mxu0 %vm198_vm1, %v158_v48 }
 0x114   :  { %8800 = vmatmul.msk.f32.gmra.mxu1 %vm198_vm1, %v86_v51  ;;  %8869 = vmatmul.msk.f32.gmra.mxu2 %vm198_vm1, %v10178_v10 }
 0x115   :  { %8949 = vmatmul.msk.f32.gmra.mxu3 %vm198_vm1, %v10423_v53 }
 0x117   :  { %v1456_v55 = vpop.f32.mrf.mxu2 }
 0x118   :  { %v1644_v60 = vadd.f32 %v1456_v55, %v931_v39  ;;  %v10379_v62 = vpop.f32.mrf.mxu0  ;;  %v162_v55 = vld [vmem:[%s14976_s0 + $0x132] sm:$0xff] }
 0x119   :  { %v10384_v10 = vpop.f32.mrf.mxu1  ;;  %v946_v47 = vadd.f32 %v10359_v63, %v10379_v62  ;;  %v10523_v63 = vld [vmem:[%s14976_s0 + $0x164] sm:$0xff] }
 0x11a   :  { %v10389_v11 = vadd.f32 %v2054_v6, %v1644_v60  ;;  %v90_v60 = vld [vmem:[%s14976_s0 + $0x138] sm:$0xff] }
 0x11b   :  { %8727 = vmatmul.msk.f32.gmra.mxu0 %vm198_vm1, %v159_v2  ;;  %v2075_v2 = vpop.f32.mrf.mxu3 }
 0x11c   :  { %8801 = vmatmul.msk.f32.gmra.mxu1 %vm198_vm1, %v87_v38  ;;  %8870 = vmatmul.msk.f32.gmra.mxu2 %vm198_vm1, %v10202_v22 }
 0x11d   :  { %8950 = vmatmul.msk.f32.gmra.mxu3 %vm198_vm1, %v10448_v5 }
 0x11f   :  { %v1459_v6 = vpop.f32.mrf.mxu2 }
 0x120   :  { %v1645_v14 = vadd.f32 %v1459_v6, %v934_v50  ;;  %v10404_v20 = vpop.f32.mrf.mxu0 }
 0x121   :  { %v10409_v22 = vpop.f32.mrf.mxu1  ;;  %v949_v62 = vadd.f32 %v10384_v10, %v10404_v20  ;;  %v10548_v10 = vld [vmem:[%s14976_s0 + $0x16c] sm:$0xff] }
 0x122   :  { %v10414_v31 = vadd.f32 %v2057_v23, %v1645_v14  ;;  %v163_v14 = vld [vmem:[%s14976_s0 + $0x13a] sm:$0xff] }
 0x123   :  { %8728 = vmatmul.msk.f32.gmra.mxu0 %vm198_vm1, %v160_v21  ;;  %v91_v21 = vld [vmem:[%s14976_s0 + $0x140] sm:$0xff] }
 0x124   :  { %8802 = vmatmul.msk.f32.gmra.mxu1 %vm198_vm1, %v88_v16  ;;  %8871 = vmatmul.msk.f32.gmra.mxu2 %vm198_vm1, %v10226_v34  ;;  %v2078_v16 = vpop.f32.mrf.mxu3 }
 0x125   :  { %8951 = vmatmul.msk.f32.gmra.mxu3 %vm198_vm1, %v10473_v46 }
 0x127   :  { %v1462_v23 = vpop.f32.mrf.mxu2 }
 0x128   :  { %v1646_v35 = vadd.f32 %v1462_v23, %v937_v0  ;;  %v10429_v36 = vpop.f32.mrf.mxu0 }
 0x129   :  { %v10434_v34 = vpop.f32.mrf.mxu1  ;;  %v952_v20 = vadd.f32 %v10409_v22, %v10429_v36  ;;  %v10573_v22 = vld [vmem:[%s14976_s0 + $0x174] sm:$0xff] }
 0x12a   :  { %v10439_v48 = vadd.f32 %v2060_v40, %v1646_v35 }
 0x12b   :  { %8729 = vmatmul.msk.f32.gmra.mxu0 %vm198_vm1, %v161_v28  ;;  %v164_v28 = vld [vmem:[%s14976_s0 + $0x142] sm:$0xff] }
 0x12c   :  { %8803 = vmatmul.msk.f32.gmra.mxu1 %vm198_vm1, %v89_v43  ;;  %8872 = vmatmul.msk.f32.gmra.mxu2 %vm198_vm1, %v10250_v44  ;;  %v92_v43 = vld [vmem:[%s14976_s0 + $0x148] sm:$0xff] }
 0x12d   :  { %8952 = vmatmul.msk.f32.gmra.mxu3 %vm198_vm1, %v10498_v54 }
 0x12f   :  { %v1465_v40 = vpop.f32.mrf.mxu2 }
 0x130   :  { %v1647_v51 = vadd.f32 %v1465_v40, %v940_v17  ;;  %v10454_v39 = vpop.f32.mrf.mxu0  ;;  %v2081_v17 = vpop.f32.mrf.mxu3 }
 0x131   :  { %v10459_v44 = vpop.f32.mrf.mxu1  ;;  %v955_v36 = vadd.f32 %v10434_v34, %v10454_v39  ;;  %v10598_v34 = vld [vmem:[%s14976_s0 + $0x17c] sm:$0xff] }
 0x132   :  { %v10464_v38 = vadd.f32 %v2063_v30, %v1647_v51 }
 0x133   :  { %8730 = vmatmul.msk.f32.gmra.mxu0 %vm198_vm1, %v162_v55 }
 0x134   :  { %8804 = vmatmul.msk.f32.gmra.mxu1 %vm198_vm1, %v90_v60  ;;  %8873 = vmatmul.msk.f32.gmra.mxu2 %vm198_vm1, %v10274_v52  ;;  %v165_v60 = vld [vmem:[%s14976_s0 + $0x14a] sm:$0xff] }
 0x135   :  { %8953 = vmatmul.msk.f32.gmra.mxu3 %vm198_vm1, %v10523_v63 }
 0x137   :  { %v1468_v30 = vpop.f32.mrf.mxu2 }
 0x138   :  { %v1648_v50 = vadd.f32 %v1468_v30, %v943_v32  ;;  %v10479_v6 = vpop.f32.mrf.mxu0  ;;  %v93_v32 = vld [vmem:[%s14976_s0 + $0x150] sm:$0xff]  ;;  %v2084_v30 = vpop.f32.mrf.mxu3 }
 0x139   :  { %v10484_v52 = vpop.f32.mrf.mxu1  ;;  %v958_v39 = vadd.f32 %v10459_v44, %v10479_v6  ;;  %v10623_v44 = vld [vmem:[%s14976_s0 + $0x184] sm:$0xff] }
 0x13a   :  { %v10489_v0 = vadd.f32 %v2066_v4, %v1648_v50 }
 0x13b   :  { %8731 = vmatmul.msk.f32.gmra.mxu0 %vm198_vm1, %v163_v14 }
 0x13c   :  { %8805 = vmatmul.msk.f32.gmra.mxu1 %vm198_vm1, %v91_v21  ;;  %8874 = vmatmul.msk.f32.gmra.mxu2 %vm198_vm1, %v10298_v61 }
 0x13d   :  { %8954 = vmatmul.msk.f32.gmra.mxu3 %vm198_vm1, %v10548_v10 }
 0x13f   :  { %v1471_v4 = vpop.f32.mrf.mxu2 }
 0x140   :  { %v1649_v23 = vadd.f32 %v1471_v4, %v946_v47  ;;  %v10504_v35 = vpop.f32.mrf.mxu0  ;;  %v166_v47 = vld [vmem:[%s14976_s0 + $0x152] sm:$0xff] }
 0x141   :  { %v10509_v61 = vpop.f32.mrf.mxu1  ;;  %v94_v4 = vld [vmem:[%s14976_s0 + $0x158] sm:$0xff]  ;;  %v961_v6 = vadd.f32 %v10484_v52, %v10504_v35  ;;  %v10648_v52 = vld [vmem:[%s14976_s0 + $0x18c] sm:$0xff] }
 0x142   :  { %v10514_v40 = vadd.f32 %v2069_v29, %v1649_v23  ;;  %v2087_v23 = vpop.f32.mrf.mxu3 }
 0x143   :  { %8732 = vmatmul.msk.f32.gmra.mxu0 %vm198_vm1, %v164_v28 }
 0x144   :  { %8806 = vmatmul.msk.f32.gmra.mxu1 %vm198_vm1, %v92_v43  ;;  %8875 = vmatmul.msk.f32.gmra.mxu2 %vm198_vm1, %v10323_v8 }
 0x145   :  { %8955 = vmatmul.msk.f32.gmra.mxu3 %vm198_vm1, %v10573_v22 }
 0x147   :  { %v1474_v29 = vpop.f32.mrf.mxu2 }
 0x148   :  { %v1650_v51 = vadd.f32 %v1474_v29, %v949_v62  ;;  %v10529_v55 = vpop.f32.mrf.mxu0  ;;  %v167_v29 = vld [vmem:[%s14976_s0 + $0x15a] sm:$0xff] }
 0x149   :  { %v10534_v8 = vpop.f32.mrf.mxu1  ;;  %v964_v35 = vadd.f32 %v10509_v61, %v10529_v55  ;;  %v10673_v61 = vld [vmem:[%s14976_s0 + $0x194] sm:$0xff] }
 0x14a   :  { %v10539_v50 = vadd.f32 %v2072_v45, %v1650_v51  ;;  %v95_v51 = vld [vmem:[%s14976_s0 + $0x160] sm:$0xff] }
 0x14b   :  { %8733 = vmatmul.msk.f32.gmra.mxu0 %vm198_vm1, %v165_v60  ;;  %v2090_v60 = vpop.f32.mrf.mxu3 }
 0x14c   :  { %8807 = vmatmul.msk.f32.gmra.mxu1 %vm198_vm1, %v93_v32  ;;  %8876 = vmatmul.msk.f32.gmra.mxu2 %vm198_vm1, %v10348_v12 }
 0x14d   :  { %8956 = vmatmul.msk.f32.gmra.mxu3 %vm198_vm1, %v10598_v34 }
 0x14f   :  { %v1477_v45 = vpop.f32.mrf.mxu2 }
 0x150   :  { %v1651_v14 = vadd.f32 %v1477_v45, %v952_v20  ;;  %v10554_v21 = vpop.f32.mrf.mxu0 }
 0x151   :  { %v10559_v12 = vpop.f32.mrf.mxu1  ;;  %v967_v55 = vadd.f32 %v10534_v8, %v10554_v21  ;;  %v10698_v8 = vld [vmem:[%s14976_s0 + $0x19c] sm:$0xff] }
 0x152   :  { %v10564_v28 = vadd.f32 %v2075_v2, %v1651_v14  ;;  %v168_v14 = vld [vmem:[%s14976_s0 + $0x162] sm:$0xff] }
 0x153   :  { %8734 = vmatmul.msk.f32.gmra.mxu0 %vm198_vm1, %v166_v47  ;;  %v96_v47 = vld [vmem:[%s14976_s0 + $0x168] sm:$0xff] }
 0x154   :  { %8808 = vmatmul.msk.f32.gmra.mxu1 %vm198_vm1, %v94_v4  ;;  %8877 = vmatmul.msk.f32.gmra.mxu2 %vm198_vm1, %v10373_v18  ;;  %v2093_v4 = vpop.f32.mrf.mxu3 }
 0x155   :  { %8957 = vmatmul.msk.f32.gmra.mxu3 %vm198_vm1, %v10623_v44 }
 0x157   :  { %v1480_v2 = vpop.f32.mrf.mxu2 }
 0x158   :  { %v1652_v43 = vadd.f32 %v1480_v2, %v955_v36  ;;  %v10579_v62 = vpop.f32.mrf.mxu0 }
 0x159   :  { %v10584_v18 = vpop.f32.mrf.mxu1  ;;  %v970_v21 = vadd.f32 %v10559_v12, %v10579_v62  ;;  %v10723_v12 = vld [vmem:[%s14976_s0 + $0x1a4] sm:$0xff] }
 0x15a   :  { %v10589_v32 = vadd.f32 %v2078_v16, %v1652_v43 }
 0x15b   :  { %8735 = vmatmul.msk.f32.gmra.mxu0 %vm198_vm1, %v167_v29  ;;  %v169_v29 = vld [vmem:[%s14976_s0 + $0x16a] sm:$0xff] }
 0x15c   :  { %8809 = vmatmul.msk.f32.gmra.mxu1 %vm198_vm1, %v95_v51  ;;  %8878 = vmatmul.msk.f32.gmra.mxu2 %vm198_vm1, %v10398_v24  ;;  %v97_v51 = vld [vmem:[%s14976_s0 + $0x170] sm:$0xff] }
 0x15d   :  { %8958 = vmatmul.msk.f32.gmra.mxu3 %vm198_vm1, %v10648_v52 }
 0x15f   :  { %v1483_v16 = vpop.f32.mrf.mxu2 }
 0x160   :  { %v1653_v20 = vadd.f32 %v1483_v16, %v958_v39  ;;  %v10604_v45 = vpop.f32.mrf.mxu0  ;;  %v2096_v39 = vpop.f32.mrf.mxu3 }
 0x161   :  { %v10609_v24 = vpop.f32.mrf.mxu1  ;;  %v973_v62 = vadd.f32 %v10584_v18, %v10604_v45  ;;  %v10748_v18 = vld [vmem:[%s14976_s0 + $0x1ac] sm:$0xff] }
 0x162   :  { %v10614_v36 = vadd.f32 %v2081_v17, %v1653_v20 }
 0x163   :  { %8736 = vmatmul.msk.f32.gmra.mxu0 %vm198_vm1, %v168_v14 }
 0x164   :  { %8810 = vmatmul.msk.f32.gmra.mxu1 %vm198_vm1, %v96_v47  ;;  %8879 = vmatmul.msk.f32.gmra.mxu2 %vm198_vm1, %v10423_v53  ;;  %v170_v47 = vld [vmem:[%s14976_s0 + $0x172] sm:$0xff] }
 0x165   :  { %8959 = vmatmul.msk.f32.gmra.mxu3 %vm198_vm1, %v10673_v61 }
 0x167   :  { %v1486_v17 = vpop.f32.mrf.mxu2 }
 0x168   :  { %v1654_v2 = vadd.f32 %v1486_v17, %v961_v6  ;;  %v10629_v43 = vpop.f32.mrf.mxu0  ;;  %v98_v6 = vld [vmem:[%s14976_s0 + $0x178] sm:$0xff]  ;;  %v2099_v17 = vpop.f32.mrf.mxu3 }
 0x169   :  { %v10634_v53 = vpop.f32.mrf.mxu1  ;;  %v976_v45 = vadd.f32 %v10609_v24, %v10629_v43  ;;  %v10773_v24 = vld [vmem:[%s14976_s0 + $0x1b4] sm:$0xff] }
 0x16a   :  { %v10639_v16 = vadd.f32 %v2084_v30, %v1654_v2 }
 0x16b   :  { %8737 = vmatmul.msk.f32.gmra.mxu0 %vm198_vm1, %v169_v29 }
 0x16c   :  { %8811 = vmatmul.msk.f32.gmra.mxu1 %vm198_vm1, %v97_v51  ;;  %8880 = vmatmul.msk.f32.gmra.mxu2 %vm198_vm1, %v10448_v5 }
 0x16d   :  { %8960 = vmatmul.msk.f32.gmra.mxu3 %vm198_vm1, %v10698_v8 }
 0x16f   :  { %v1489_v30 = vpop.f32.mrf.mxu2 }
 0x170   :  { %v1655_v20 = vadd.f32 %v1489_v30, %v964_v35  ;;  %v10654_v14 = vpop.f32.mrf.mxu0  ;;  %v171_v35 = vld [vmem:[%s14976_s0 + $0x17a] sm:$0xff] }
 0x171   :  { %v10659_v5 = vpop.f32.mrf.mxu1  ;;  %v99_v30 = vld [vmem:[%s14976_s0 + $0x180] sm:$0xff]  ;;  %v979_v43 = vadd.f32 %v10634_v53, %v10654_v14 }
 0x172   :  { %v10664_v2 = vadd.f32 %v2087_v23, %v1655_v20  ;;  %v2102_v20 = vpop.f32.mrf.mxu3  ;;  %v10798_v53 = vld [vmem:[%s14976_s0 + $0x1bc] sm:$0xff] }
 0x173   :  { %8738 = vmatmul.msk.f32.gmra.mxu0 %vm198_vm1, %v170_v47 }
 0x174   :  { %8812 = vmatmul.msk.f32.gmra.mxu1 %vm198_vm1, %v98_v6  ;;  %8881 = vmatmul.msk.f32.gmra.mxu2 %vm198_vm1, %v10473_v46 }
 0x175   :  { %8961 = vmatmul.msk.f32.gmra.mxu3 %vm198_vm1, %v10723_v12 }
 0x177   :  { %v1492_v23 = vpop.f32.mrf.mxu2 }
 0x178   :  { %v1656_v29 = vadd.f32 %v1492_v23, %v967_v55  ;;  %v10679_v51 = vpop.f32.mrf.mxu0  ;;  %v172_v23 = vld [vmem:[%s14976_s0 + $0x182] sm:$0xff] }
 0x179   :  { %v10684_v46 = vpop.f32.mrf.mxu1  ;;  %v982_v14 = vadd.f32 %v10659_v5, %v10679_v51  ;;  %v10823_v5 = vld [vmem:[%s14976_s0 + $0x1c4] sm:$0xff] }
 0x17a   :  { %v10689_v47 = vadd.f32 %v2090_v60, %v1656_v29  ;;  %v100_v29 = vld [vmem:[%s14976_s0 + $0x188] sm:$0xff] }
 0x17b   :  { %8739 = vmatmul.msk.f32.gmra.mxu0 %vm198_vm1, %v171_v35  ;;  %v2105_v35 = vpop.f32.mrf.mxu3 }
 0x17c   :  { %8813 = vmatmul.msk.f32.gmra.mxu1 %vm198_vm1, %v99_v30  ;;  %8882 = vmatmul.msk.f32.gmra.mxu2 %vm198_vm1, %v10498_v54 }
 0x17d   :  { %8962 = vmatmul.msk.f32.gmra.mxu3 %vm198_vm1, %v10748_v18 }
 0x17f   :  { %v1495_v60 = vpop.f32.mrf.mxu2 }
 0x180   :  { %v1657_v6 = vadd.f32 %v1495_v60, %v970_v21  ;;  %v10704_v55 = vpop.f32.mrf.mxu0 }
 0x181   :  { %v10709_v54 = vpop.f32.mrf.mxu1  ;;  %v985_v51 = vadd.f32 %v10684_v46, %v10704_v55  ;;  %v10848_v46 = vld [vmem:[%s14976_s0 + $0x1cc] sm:$0xff] }
 0x182   :  { %v10714_v30 = vadd.f32 %v2093_v4, %v1657_v6  ;;  %v173_v6 = vld [vmem:[%s14976_s0 + $0x18a] sm:$0xff] }
 0x183   :  { %8740 = vmatmul.msk.f32.gmra.mxu0 %vm198_vm1, %v172_v23  ;;  %v101_v23 = vld [vmem:[%s14976_s0 + $0x190] sm:$0xff] }
 0x184   :  { %14999 = vst [vmem:[#allocation8_spill] sm:$0xff] %v10714_v30  ;;  %8814 = vmatmul.msk.f32.gmra.mxu1 %vm198_vm1, %v100_v29  ;;  %8883 = vmatmul.msk.f32.gmra.mxu2 %vm198_vm1, %v10523_v63  ;;  %v2108_v29 = vpop.f32.mrf.mxu3 }
 0x185   :  { %8963 = vmatmul.msk.f32.gmra.mxu3 %vm198_vm1, %v10773_v24 }
 0x187   :  { %v1498_v4 = vpop.f32.mrf.mxu2 }
 0x188   :  { %v1658_v21 = vadd.f32 %v1498_v4, %v973_v62  ;;  %v10729_v60 = vpop.f32.mrf.mxu0 }
 0x189   :  { %v10734_v63 = vpop.f32.mrf.mxu1  ;;  %v988_v55 = vadd.f32 %v10709_v54, %v10729_v60  ;;  %v10873_v54 = vld [vmem:[%s14976_s0 + $0x1d4] sm:$0xff] }
 0x18a   :  { %v10739_v30 = vadd.f32 %v2096_v39, %v1658_v21  ;;  %v174_v21 = vld [vmem:[%s14976_s0 + $0x192] sm:$0xff] }
 0x18b   :  { %8741 = vmatmul.msk.f32.gmra.mxu0 %vm198_vm1, %v173_v6  ;;  %v102_v6 = vld [vmem:[%s14976_s0 + $0x198] sm:$0xff] }
 0x18c   :  { %15000 = vst [vmem:[#allocation9_spill] sm:$0xff] %v10739_v30  ;;  %8815 = vmatmul.msk.f32.gmra.mxu1 %vm198_vm1, %v101_v23  ;;  %8884 = vmatmul.msk.f32.gmra.mxu2 %vm198_vm1, %v10548_v10  ;;  %v2111_v23 = vpop.f32.mrf.mxu3 }
 0x18d   :  { %8964 = vmatmul.msk.f32.gmra.mxu3 %vm198_vm1, %v10798_v53 }
 0x18f   :  { %v1501_v39 = vpop.f32.mrf.mxu2 }
 0x190   :  { %v1659_v62 = vadd.f32 %v1501_v39, %v976_v45  ;;  %v10754_v4 = vpop.f32.mrf.mxu0 }
 0x191   :  { %v10759_v10 = vpop.f32.mrf.mxu1  ;;  %v991_v60 = vadd.f32 %v10734_v63, %v10754_v4  ;;  %v10898_v63 = vld [vmem:[%s14976_s0 + $0x1dc] sm:$0xff] }
 0x192   :  { %v10764_v30 = vadd.f32 %v2099_v17, %v1659_v62  ;;  %v175_v62 = vld [vmem:[%s14976_s0 + $0x19a] sm:$0xff] }
 0x193   :  { %8742 = vmatmul.msk.f32.gmra.mxu0 %vm198_vm1, %v174_v21  ;;  %v103_v21 = vld [vmem:[%s14976_s0 + $0x1a0] sm:$0xff] }
 0x194   :  { %15001 = vst [vmem:[#allocation10_spill] sm:$0xff] %v10764_v30  ;;  %8816 = vmatmul.msk.f32.gmra.mxu1 %vm198_vm1, %v102_v6  ;;  %8885 = vmatmul.msk.f32.gmra.mxu2 %vm198_vm1, %v10573_v22  ;;  %v2114_v6 = vpop.f32.mrf.mxu3 }
 0x195   :  { %8965 = vmatmul.msk.f32.gmra.mxu3 %vm198_vm1, %v10823_v5 }
 0x197   :  { %v1504_v17 = vpop.f32.mrf.mxu2 }
 0x198   :  { %v1660_v45 = vadd.f32 %v1504_v17, %v979_v43  ;;  %v10779_v39 = vpop.f32.mrf.mxu0 }
 0x199   :  { %v10784_v22 = vpop.f32.mrf.mxu1  ;;  %v994_v4 = vadd.f32 %v10759_v10, %v10779_v39  ;;  %v10923_v10 = vld [vmem:[%s14976_s0 + $0x1e4] sm:$0xff] }
 0x19a   :  { %v10789_v30 = vadd.f32 %v2102_v20, %v1660_v45  ;;  %v176_v45 = vld [vmem:[%s14976_s0 + $0x1a2] sm:$0xff] }
 0x19b   :  { %8743 = vmatmul.msk.f32.gmra.mxu0 %vm198_vm1, %v175_v62  ;;  %v104_v62 = vld [vmem:[%s14976_s0 + $0x1a8] sm:$0xff] }
 0x19c   :  { %15002 = vst [vmem:[#allocation11_spill] sm:$0xff] %v10789_v30  ;;  %8817 = vmatmul.msk.f32.gmra.mxu1 %vm198_vm1, %v103_v21  ;;  %8886 = vmatmul.msk.f32.gmra.mxu2 %vm198_vm1, %v10598_v34  ;;  %v2117_v21 = vpop.f32.mrf.mxu3 }
 0x19d   :  { %8966 = vmatmul.msk.f32.gmra.mxu3 %vm198_vm1, %v10848_v46 }
 0x19f   :  { %v1507_v20 = vpop.f32.mrf.mxu2 }
 0x1a0   :  { %v1661_v43 = vadd.f32 %v1507_v20, %v982_v14  ;;  %v10804_v17 = vpop.f32.mrf.mxu0 }
 0x1a1   :  { %v10809_v34 = vpop.f32.mrf.mxu1  ;;  %v997_v39 = vadd.f32 %v10784_v22, %v10804_v17  ;;  %v10948_v22 = vld [vmem:[%s14976_s0 + $0x1ec] sm:$0xff] }
 0x1a2   :  { %v10814_v30 = vadd.f32 %v2105_v35, %v1661_v43  ;;  %v177_v43 = vld [vmem:[%s14976_s0 + $0x1aa] sm:$0xff] }
 0x1a3   :  { %8744 = vmatmul.msk.f32.gmra.mxu0 %vm198_vm1, %v176_v45  ;;  %v105_v45 = vld [vmem:[%s14976_s0 + $0x1b0] sm:$0xff] }
 0x1a4   :  { %15003 = vst [vmem:[#allocation12_spill] sm:$0xff] %v10814_v30  ;;  %8818 = vmatmul.msk.f32.gmra.mxu1 %vm198_vm1, %v104_v62  ;;  %8887 = vmatmul.msk.f32.gmra.mxu2 %vm198_vm1, %v10623_v44  ;;  %v2120_v62 = vpop.f32.mrf.mxu3 }
 0x1a5   :  { %8967 = vmatmul.msk.f32.gmra.mxu3 %vm198_vm1, %v10873_v54 }
 0x1a7   :  { %v1510_v35 = vpop.f32.mrf.mxu2 }
 0x1a8   :  { %v1662_v14 = vadd.f32 %v1510_v35, %v985_v51  ;;  %v10829_v20 = vpop.f32.mrf.mxu0 }
 0x1a9   :  { %v10834_v44 = vpop.f32.mrf.mxu1  ;;  %v1000_v17 = vadd.f32 %v10809_v34, %v10829_v20  ;;  %v10973_v34 = vld [vmem:[%s14976_s0 + $0x1f4] sm:$0xff] }
 0x1aa   :  { %v10839_v30 = vadd.f32 %v2108_v29, %v1662_v14  ;;  %v178_v14 = vld [vmem:[%s14976_s0 + $0x1b2] sm:$0xff] }
 0x1ab   :  { %8745 = vmatmul.msk.f32.gmra.mxu0 %vm198_vm1, %v177_v43  ;;  %v106_v43 = vld [vmem:[%s14976_s0 + $0x1b8] sm:$0xff] }
 0x1ac   :  { %15004 = vst [vmem:[#allocation13_spill] sm:$0xff] %v10839_v30  ;;  %8819 = vmatmul.msk.f32.gmra.mxu1 %vm198_vm1, %v105_v45  ;;  %8888 = vmatmul.msk.f32.gmra.mxu2 %vm198_vm1, %v10648_v52  ;;  %v2123_v45 = vpop.f32.mrf.mxu3 }
 0x1ad   :  { %8968 = vmatmul.msk.f32.gmra.mxu3 %vm198_vm1, %v10898_v63 }
 0x1af   :  { %v1513_v29 = vpop.f32.mrf.mxu2 }
 0x1b0   :  { %v1663_v51 = vadd.f32 %v1513_v29, %v988_v55  ;;  %v10854_v35 = vpop.f32.mrf.mxu0 }
 0x1b1   :  { %v10859_v52 = vpop.f32.mrf.mxu1  ;;  %v1003_v20 = vadd.f32 %v10834_v44, %v10854_v35  ;;  %v10998_v44 = vld [vmem:[%s14976_s0 + $0x1fc] sm:$0xff] }
 0x1b2   :  { %v10864_v30 = vadd.f32 %v2111_v23, %v1663_v51  ;;  %v179_v51 = vld [vmem:[%s14976_s0 + $0x1ba] sm:$0xff] }
 0x1b3   :  { %8746 = vmatmul.msk.f32.gmra.mxu0 %vm198_vm1, %v178_v14  ;;  %v107_v14 = vld [vmem:[%s14976_s0 + $0x1c0] sm:$0xff] }
 0x1b4   :  { %15005 = vst [vmem:[#allocation14_spill] sm:$0xff] %v10864_v30  ;;  %8820 = vmatmul.msk.f32.gmra.mxu1 %vm198_vm1, %v106_v43  ;;  %8889 = vmatmul.msk.f32.gmra.mxu2 %vm198_vm1, %v10673_v61  ;;  %v2126_v43 = vpop.f32.mrf.mxu3 }
 0x1b5   :  { %8969 = vmatmul.msk.f32.gmra.mxu3 %vm198_vm1, %v10923_v10 }
 0x1b7   :  { %v1516_v23 = vpop.f32.mrf.mxu2 }
 0x1b8   :  { %v1664_v55 = vadd.f32 %v1516_v23, %v991_v60  ;;  %v10879_v29 = vpop.f32.mrf.mxu0 }
 0x1b9   :  { %v10884_v61 = vpop.f32.mrf.mxu1  ;;  %v1006_v35 = vadd.f32 %v10859_v52, %v10879_v29  ;;  %v11023_v52 = vld [vmem:[%s14976_s0 + $0x204] sm:$0xff] }
 0x1ba   :  { %v10889_v30 = vadd.f32 %v2114_v6, %v1664_v55  ;;  %v180_v55 = vld [vmem:[%s14976_s0 + $0x1c2] sm:$0xff] }
 0x1bb   :  { %8747 = vmatmul.msk.f32.gmra.mxu0 %vm198_vm1, %v179_v51  ;;  %v108_v51 = vld [vmem:[%s14976_s0 + $0x1c8] sm:$0xff] }
 0x1bc   :  { %15006 = vst [vmem:[#allocation15_spill] sm:$0xff] %v10889_v30  ;;  %8821 = vmatmul.msk.f32.gmra.mxu1 %vm198_vm1, %v107_v14  ;;  %8890 = vmatmul.msk.f32.gmra.mxu2 %vm198_vm1, %v10698_v8  ;;  %v2129_v14 = vpop.f32.mrf.mxu3 }
 0x1bd   :  { %8970 = vmatmul.msk.f32.gmra.mxu3 %vm198_vm1, %v10948_v22 }
 0x1bf   :  { %v1519_v6 = vpop.f32.mrf.mxu2 }
 0x1c0   :  { %v1665_v60 = vadd.f32 %v1519_v6, %v994_v4  ;;  %v10904_v23 = vpop.f32.mrf.mxu0 }
 0x1c1   :  { %v10909_v8 = vpop.f32.mrf.mxu1  ;;  %v1009_v29 = vadd.f32 %v10884_v61, %v10904_v23  ;;  %v11048_v61 = vld [vmem:[%s14976_s0 + $0x20c] sm:$0xff] }
 0x1c2   :  { %v10914_v30 = vadd.f32 %v2117_v21, %v1665_v60  ;;  %v181_v60 = vld [vmem:[%s14976_s0 + $0x1ca] sm:$0xff] }
 0x1c3   :  { %8748 = vmatmul.msk.f32.gmra.mxu0 %vm198_vm1, %v180_v55  ;;  %v109_v55 = vld [vmem:[%s14976_s0 + $0x1d0] sm:$0xff] }
 0x1c4   :  { %15007 = vst [vmem:[#allocation16_spill] sm:$0xff] %v10914_v30  ;;  %8822 = vmatmul.msk.f32.gmra.mxu1 %vm198_vm1, %v108_v51  ;;  %8891 = vmatmul.msk.f32.gmra.mxu2 %vm198_vm1, %v10723_v12  ;;  %v2132_v51 = vpop.f32.mrf.mxu3 }
 0x1c5   :  { %8971 = vmatmul.msk.f32.gmra.mxu3 %vm198_vm1, %v10973_v34 }
 0x1c7   :  { %v1522_v21 = vpop.f32.mrf.mxu2 }
 0x1c8   :  { %v1666_v4 = vadd.f32 %v1522_v21, %v997_v39  ;;  %v10929_v6 = vpop.f32.mrf.mxu0 }
 0x1c9   :  { %v10934_v12 = vpop.f32.mrf.mxu1  ;;  %v1012_v23 = vadd.f32 %v10909_v8, %v10929_v6  ;;  %v11073_v8 = vld [vmem:[%s14976_s0 + $0x214] sm:$0xff] }
 0x1ca   :  { %v10939_v30 = vadd.f32 %v2120_v62, %v1666_v4  ;;  %v182_v4 = vld [vmem:[%s14976_s0 + $0x1d2] sm:$0xff] }
 0x1cb   :  { %8749 = vmatmul.msk.f32.gmra.mxu0 %vm198_vm1, %v181_v60  ;;  %v110_v60 = vld [vmem:[%s14976_s0 + $0x1d8] sm:$0xff] }
 0x1cc   :  { %15008 = vst [vmem:[#allocation17_spill] sm:$0xff] %v10939_v30  ;;  %8823 = vmatmul.msk.f32.gmra.mxu1 %vm198_vm1, %v109_v55  ;;  %8892 = vmatmul.msk.f32.gmra.mxu2 %vm198_vm1, %v10748_v18  ;;  %v2135_v55 = vpop.f32.mrf.mxu3 }
 0x1cd   :  { %8972 = vmatmul.msk.f32.gmra.mxu3 %vm198_vm1, %v10998_v44 }
 0x1cf   :  { %v1525_v62 = vpop.f32.mrf.mxu2 }
 0x1d0   :  { %v1667_v39 = vadd.f32 %v1525_v62, %v1000_v17  ;;  %v10954_v21 = vpop.f32.mrf.mxu0 }
 0x1d1   :  { %v10959_v18 = vpop.f32.mrf.mxu1  ;;  %v1015_v6 = vadd.f32 %v10934_v12, %v10954_v21  ;;  %v11098_v12 = vld [vmem:[%s14976_s0 + $0x21c] sm:$0xff] }
 0x1d2   :  { %v10964_v30 = vadd.f32 %v2123_v45, %v1667_v39  ;;  %v183_v39 = vld [vmem:[%s14976_s0 + $0x1da] sm:$0xff] }
 0x1d3   :  { %8750 = vmatmul.msk.f32.gmra.mxu0 %vm198_vm1, %v182_v4  ;;  %v111_v4 = vld [vmem:[%s14976_s0 + $0x1e0] sm:$0xff] }
 0x1d4   :  { %15009 = vst [vmem:[#allocation18_spill] sm:$0xff] %v10964_v30  ;;  %8824 = vmatmul.msk.f32.gmra.mxu1 %vm198_vm1, %v110_v60  ;;  %8893 = vmatmul.msk.f32.gmra.mxu2 %vm198_vm1, %v10773_v24  ;;  %v2138_v60 = vpop.f32.mrf.mxu3 }
 0x1d5   :  { %8973 = vmatmul.msk.f32.gmra.mxu3 %vm198_vm1, %v11023_v52 }
 0x1d7   :  { %v1528_v45 = vpop.f32.mrf.mxu2 }
 0x1d8   :  { %v1668_v17 = vadd.f32 %v1528_v45, %v1003_v20  ;;  %v10979_v62 = vpop.f32.mrf.mxu0 }
 0x1d9   :  { %v10984_v24 = vpop.f32.mrf.mxu1  ;;  %v1018_v21 = vadd.f32 %v10959_v18, %v10979_v62  ;;  %v11123_v18 = vld [vmem:[%s14976_s0 + $0x224] sm:$0xff] }
 0x1da   :  { %v10989_v30 = vadd.f32 %v2126_v43, %v1668_v17  ;;  %v184_v17 = vld [vmem:[%s14976_s0 + $0x1e2] sm:$0xff] }
 0x1db   :  { %8751 = vmatmul.msk.f32.gmra.mxu0 %vm198_vm1, %v183_v39  ;;  %v112_v39 = vld [vmem:[%s14976_s0 + $0x1e8] sm:$0xff] }
 0x1dc   :  { %15010 = vst [vmem:[#allocation19_spill] sm:$0xff] %v10989_v30  ;;  %8825 = vmatmul.msk.f32.gmra.mxu1 %vm198_vm1, %v111_v4  ;;  %8894 = vmatmul.msk.f32.gmra.mxu2 %vm198_vm1, %v10798_v53  ;;  %v2141_v4 = vpop.f32.mrf.mxu3 }
 0x1dd   :  { %8974 = vmatmul.msk.f32.gmra.mxu3 %vm198_vm1, %v11048_v61 }
 0x1df   :  { %v1531_v43 = vpop.f32.mrf.mxu2 }
 0x1e0   :  { %v1669_v20 = vadd.f32 %v1531_v43, %v1006_v35  ;;  %v11004_v45 = vpop.f32.mrf.mxu0 }
 0x1e1   :  { %v11009_v53 = vpop.f32.mrf.mxu1  ;;  %v1021_v62 = vadd.f32 %v10984_v24, %v11004_v45  ;;  %v11148_v24 = vld [vmem:[%s14976_s0 + $0x22c] sm:$0xff] }
 0x1e2   :  { %v11014_v30 = vadd.f32 %v2129_v14, %v1669_v20  ;;  %v185_v20 = vld [vmem:[%s14976_s0 + $0x1ea] sm:$0xff] }
 0x1e3   :  { %8752 = vmatmul.msk.f32.gmra.mxu0 %vm198_vm1, %v184_v17  ;;  %v113_v17 = vld [vmem:[%s14976_s0 + $0x1f0] sm:$0xff] }
 0x1e4   :  { %15011 = vst [vmem:[#allocation20_spill] sm:$0xff] %v11014_v30  ;;  %8826 = vmatmul.msk.f32.gmra.mxu1 %vm198_vm1, %v112_v39  ;;  %8895 = vmatmul.msk.f32.gmra.mxu2 %vm198_vm1, %v10823_v5  ;;  %v2144_v39 = vpop.f32.mrf.mxu3 }
 0x1e5   :  { %8975 = vmatmul.msk.f32.gmra.mxu3 %vm198_vm1, %v11073_v8 }
 0x1e7   :  { %v1534_v14 = vpop.f32.mrf.mxu2 }
 0x1e8   :  { %v1670_v35 = vadd.f32 %v1534_v14, %v1009_v29  ;;  %v11029_v43 = vpop.f32.mrf.mxu0 }
 0x1e9   :  { %v11034_v5 = vpop.f32.mrf.mxu1  ;;  %v1024_v45 = vadd.f32 %v11009_v53, %v11029_v43  ;;  %v11173_v53 = vld [vmem:[%s14976_s0 + $0x234] sm:$0xff] }
 0x1ea   :  { %v11039_v30 = vadd.f32 %v2132_v51, %v1670_v35  ;;  %v186_v35 = vld [vmem:[%s14976_s0 + $0x1f2] sm:$0xff] }
 0x1eb   :  { %8753 = vmatmul.msk.f32.gmra.mxu0 %vm198_vm1, %v185_v20  ;;  %v114_v20 = vld [vmem:[%s14976_s0 + $0x1f8] sm:$0xff] }
 0x1ec   :  { %15012 = vst [vmem:[#allocation21_spill] sm:$0xff] %v11039_v30  ;;  %8827 = vmatmul.msk.f32.gmra.mxu1 %vm198_vm1, %v113_v17  ;;  %8896 = vmatmul.msk.f32.gmra.mxu2 %vm198_vm1, %v10848_v46  ;;  %v2147_v17 = vpop.f32.mrf.mxu3 }
 0x1ed   :  { %8976 = vmatmul.msk.f32.gmra.mxu3 %vm198_vm1, %v11098_v12 }
 0x1ef   :  { %v1537_v51 = vpop.f32.mrf.mxu2 }
 0x1f0   :  { %v1671_v29 = vadd.f32 %v1537_v51, %v1012_v23  ;;  %v11054_v14 = vpop.f32.mrf.mxu0 }
 0x1f1   :  { %v11059_v46 = vpop.f32.mrf.mxu1  ;;  %v1027_v43 = vadd.f32 %v11034_v5, %v11054_v14  ;;  %v1769_v5 = vld [vmem:[%s14976_s0 + $0x23c] sm:$0xff] }
 0x1f2   :  { %v11064_v30 = vadd.f32 %v2135_v55, %v1671_v29  ;;  %v187_v29 = vld [vmem:[%s14976_s0 + $0x1fa] sm:$0xff] }
 0x1f3   :  { %8754 = vmatmul.msk.f32.gmra.mxu0 %vm198_vm1, %v186_v35  ;;  %v115_v35 = vld [vmem:[%s14976_s0 + $0x200] sm:$0xff] }
 0x1f4   :  { %15013 = vst [vmem:[#allocation22_spill] sm:$0xff] %v11064_v30  ;;  %8828 = vmatmul.msk.f32.gmra.mxu1 %vm198_vm1, %v114_v20  ;;  %8897 = vmatmul.msk.f32.gmra.mxu2 %vm198_vm1, %v10873_v54  ;;  %v2150_v20 = vpop.f32.mrf.mxu3 }
 0x1f5   :  { %8977 = vmatmul.msk.f32.gmra.mxu3 %vm198_vm1, %v11123_v18 }
 0x1f7   :  { %v1540_v55 = vpop.f32.mrf.mxu2 }
 0x1f8   :  { %v1672_v23 = vadd.f32 %v1540_v55, %v1015_v6  ;;  %v11079_v51 = vpop.f32.mrf.mxu0 }
 0x1f9   :  { %v11084_v54 = vpop.f32.mrf.mxu1  ;;  %v1030_v14 = vadd.f32 %v11059_v46, %v11079_v51  ;;  %v1770_v46 = vld [vmem:[%s14976_s0 + $0x244] sm:$0xff] }
 0x1fa   :  { %v11089_v30 = vadd.f32 %v2138_v60, %v1672_v23  ;;  %v188_v23 = vld [vmem:[%s14976_s0 + $0x202] sm:$0xff] }
 0x1fb   :  { %8755 = vmatmul.msk.f32.gmra.mxu0 %vm198_vm1, %v187_v29  ;;  %v116_v29 = vld [vmem:[%s14976_s0 + $0x208] sm:$0xff] }
 0x1fc   :  { %15014 = vst [vmem:[#allocation23_spill] sm:$0xff] %v11089_v30  ;;  %8829 = vmatmul.msk.f32.gmra.mxu1 %vm198_vm1, %v115_v35  ;;  %8898 = vmatmul.msk.f32.gmra.mxu2 %vm198_vm1, %v10898_v63  ;;  %v2153_v35 = vpop.f32.mrf.mxu3 }
 0x1fd   :  { %8978 = vmatmul.msk.f32.gmra.mxu3 %vm198_vm1, %v11148_v24 }
 0x1ff   :  { %v1543_v60 = vpop.f32.mrf.mxu2 }
 0x200   :  { %v1673_v6 = vadd.f32 %v1543_v60, %v1018_v21  ;;  %v11104_v55 = vpop.f32.mrf.mxu0 }
 0x201   :  { %v11109_v63 = vpop.f32.mrf.mxu1  ;;  %v1033_v51 = vadd.f32 %v11084_v54, %v11104_v55  ;;  %v8985_v54 = vld [vmem:[%s14977_s1 + $0x10] sm:$0xf] }
 0x202   :  { %v11114_v30 = vadd.f32 %v2141_v4, %v1673_v6  ;;  %v189_v6 = vld [vmem:[%s14976_s0 + $0x20a] sm:$0xff]  ;;  %8986 = vmatpush.msk.msra.mxu0 %vm415_vm0, %v8985_v54 }
 0x203   :  { %8756 = vmatmul.msk.f32.gmra.mxu0 %vm198_vm1, %v188_v23  ;;  %v117_v23 = vld [vmem:[%s14976_s0 + $0x210] sm:$0xff] }
 0x204   :  { %15015 = vst [vmem:[#allocation24_spill] sm:$0xff] %v11114_v30  ;;  %8830 = vmatmul.msk.f32.gmra.mxu1 %vm198_vm1, %v116_v29  ;;  %8899 = vmatmul.msk.f32.gmra.mxu2 %vm198_vm1, %v10923_v10  ;;  %v2156_v29 = vpop.f32.mrf.mxu3  ;;  %v1771_v55 = vld [vmem:[%s14976_s0 + $0x24c] sm:$0xff] }
 0x205   :  { %8979 = vmatmul.msk.f32.gmra.mxu3 %vm198_vm1, %v11173_v53 }
 0x207   :  { %v1546_v4 = vpop.f32.mrf.mxu2 }
 0x208   :  { %v1674_v21 = vadd.f32 %v1546_v4, %v1021_v62  ;;  %v11129_v60 = vpop.f32.mrf.mxu0 }
 0x209   :  { %v11134_v10 = vpop.f32.mrf.mxu1 }
 0x20a   :  { %v11139_v30 = vadd.f32 %v2144_v39, %v1674_v21  ;;  %v190_v21 = vld [vmem:[%s14976_s0 + $0x212] sm:$0xff] }
 0x20b   :  { %8757 = vmatmul.msk.f32.gmra.mxu0 %vm198_vm1, %v189_v6  ;;  %v118_v6 = vld [vmem:[%s14976_s0 + $0x218] sm:$0xff] }
 0x20c   :  { %15016 = vst [vmem:[#allocation25_spill] sm:$0xff] %v11139_v30  ;;  %8831 = vmatmul.msk.f32.gmra.mxu1 %vm198_vm1, %v117_v23  ;;  %8900 = vmatmul.msk.f32.gmra.mxu2 %vm198_vm1, %v10948_v22  ;;  %v2159_v23 = vpop.f32.mrf.mxu3 }
 0x20d   :  { %8980 = vmatmul.msk.f32.gmra.mxu3 %vm198_vm1, %v1769_v5 }
 0x20f   :  { %v1549_v39 = vpop.f32.mrf.mxu2 }
 0x210   :  { %v1675_v62 = vadd.f32 %v1549_v39, %v1024_v45  ;;  %v11154_v4 = vpop.f32.mrf.mxu0 }
 0x211   :  { %v11159_v22 = vpop.f32.mrf.mxu1 }
 0x212   :  { %v11164_v30 = vadd.f32 %v2147_v17, %v1675_v62  ;;  %v191_v62 = vld [vmem:[%s14976_s0 + $0x21a] sm:$0xff] }
 0x213   :  { %8758 = vmatmul.msk.f32.gmra.mxu0 %vm198_vm1, %v190_v21  ;;  %v1702_v21 = vld [vmem:[%s14976_s0 + $0x24] sm:$0xff] }
 0x214   :  { %15017 = vst [vmem:[#allocation26_spill] sm:$0xff] %v11164_v30  ;;  %8832 = vmatmul.msk.f32.gmra.mxu1 %vm198_vm1, %v118_v6  ;;  %8901 = vmatmul.msk.f32.gmra.mxu2 %vm198_vm1, %v10973_v34  ;;  %v2162_v6 = vpop.f32.mrf.mxu3 }
 0x215   :  { %8981 = vmatmul.msk.f32.gmra.mxu3 %vm198_vm1, %v1770_v46 }
 0x217   :  { %v1552_v17 = vpop.f32.mrf.mxu2 }
 0x218   :  { %v1676_v45 = vadd.f32 %v1552_v17, %v1027_v43  ;;  %v11179_v39 = vpop.f32.mrf.mxu0 }
 0x219   :  { %v11184_v34 = vpop.f32.mrf.mxu1 }
 0x21a   :  { %v11189_v30 = vadd.f32 %v2150_v20, %v1676_v45  ;;  %v192_v45 = vld [vmem:[%s14976_s0 + $0x222] sm:$0xff] }
 0x21b   :  { %8759 = vmatmul.msk.f32.gmra.mxu0 %vm198_vm1, %v191_v62  ;;  %v1703_v62 = vld [vmem:[%s14976_s0 + $0x2c] sm:$0xff] }
 0x21c   :  { %15018 = vst [vmem:[#allocation27_spill] sm:$0xff] %v11189_v30  ;;  %8902 = vmatmul.msk.f32.gmra.mxu2 %vm198_vm1, %v10998_v44  ;;  %8913 = vmatmul.msk.f32.vlgmr.msrb.gmra.mxu1 %vm198_vm1, %v1702_v21  ;;  %v2165_v21 = vpop.f32.mrf.mxu3 }
 0x21d   :  { %8982 = vmatmul.msk.f32.gmra.mxu3 %vm198_vm1, %v1771_v55 }
 0x21f   :  { %v1555_v43 = vpop.f32.mrf.mxu2 }
 0x220   :  { %v1677_v17 = vadd.f32 %v1555_v43, %v1030_v14  ;;  %v11201_v20 = vpop.f32.mrf.mxu0  ;;  %v193_v43 = vld [vmem:[%s14976_s0 + $0x22a] sm:$0xff] }
 0x221   :  { %v11206_v44 = vpop.f32.mrf.mxu1 }
 0x222   :  { %v11211_v30 = vadd.f32 %v2153_v35, %v1677_v17  ;;  %v1704_v17 = vld [vmem:[%s14976_s0 + $0x34] sm:$0xff] }
 0x223   :  { %8760 = vmatmul.msk.f32.gmra.mxu0 %vm198_vm1, %v192_v45 }
 0x224   :  { %8903 = vmatmul.msk.f32.gmra.mxu2 %vm198_vm1, %v11023_v52  ;;  %8914 = vmatmul.msk.f32.gmra.mxu1 %vm198_vm1, %v1703_v62  ;;  %v11233_v45 = vpop.f32.mrf.mxu3 }
 0x227   :  { %v1558_v5 = vpop.f32.mrf.mxu2 }
 0x228   :  { %v1678_v14 = vadd.f32 %v1558_v5, %v1033_v51  ;;  %v11223_v35 = vpop.f32.mrf.mxu0 }
 0x229   :  { %v11228_v52 = vpop.f32.mrf.mxu1 }
 0x22a   :  { %v11235_v62 = vadd.f32 %v2156_v29, %v1678_v14  ;;  %v1036_v29 = vadd.f32 %v11109_v63, %v11129_v60  ;;  %v1772_v63 = vld [vmem:[%s14976_s0 + $0x254] sm:$0xff]  ;;  %v1039_v60 = vadd.f32 %v11134_v10, %v11154_v4  ;;  %v1773_v10 = vld [vmem:[%s14976_s0 + $0x25c] sm:$0xf]  ;;  %v1042_v4 = vadd.f32 %v11159_v22, %v11179_v39 }
 0x22b   :  { %8761 = vmatmul.msk.f32.gmra.mxu0 %vm198_vm1, %v193_v43  ;;  %v1705_v43 = vld [vmem:[%s14976_s0 + $0x3c] sm:$0xff]  ;;  %8983 = vmatmul.msk.f32.gmra.mxu3 %vm198_vm1, %v1772_v63  ;;  %v9059_v22 = vld [vmem:[%s14977_s1 + $0x14] sm:$0xf]  ;;  %v9133_v39 = vld [vmem:[%s14977_s1 + $0x18] sm:$0xf] }
 0x22c   :  { %15019 = vst [vmem:[#allocation28_spill] sm:$0xff] %v11235_v62  ;;  %8904 = vmatmul.msk.f32.gmra.mxu2 %vm198_vm1, %v11048_v61  ;;  %8915 = vmatmul.msk.f32.gmra.mxu1 %vm198_vm1, %v1704_v17  ;;  %v194_v61 = vld [vmem:[%s14976_s0 + $0x232] sm:$0xff]  ;;  %v11261_v17 = vpop.f32.mrf.mxu3 }
 0x22d   :  { %9060 = vmatpush.msk.msra.mxu1 %vm415_vm0, %v9059_v22  ;;  %9134 = vmatpush.msk.msra.mxu2 %vm415_vm0, %v9133_v39  ;;  %v1708_v22 = vld [vmem:[%s14976_s0 + $0x54] sm:$0xff] }
 0x22f   :  { %v1561_v46 = vpop.f32.mrf.mxu2 }
 0x230   :  { %v1679_v51 = vadd.f32 %v1561_v46, %v1036_v29  ;;  %v11251_v5 = vpop.f32.mrf.mxu0  ;;  %v195_v46 = vld [vmem:[%s14976_s0 + $0x23a] sm:$0xf] }
 0x231   :  { %v11256_v14 = vpop.f32.mrf.mxu1 }
 0x232   :  { %v11263_v54 = vadd.f32 %v2159_v23, %v1679_v51  ;;  %v1706_v51 = vld [vmem:[%s14976_s0 + $0x44] sm:$0xff] }
 0x233   :  { %8762 = vmatmul.msk.f32.gmra.mxu0 %vm198_vm1, %v194_v61  ;;  %8984 = vmatmul.msk.f32.gmra.mxu3 %vm198_vm1, %v1773_v10  ;;  %v4094_v10 = vld [vmem:[%s14976_s0 + $0x4a] sm:$0xff] }
 0x234   :  { %15020 = vst [vmem:[#allocation29_spill] sm:$0xff] %v11263_v54  ;;  %8905 = vmatmul.msk.f32.gmra.mxu2 %vm198_vm1, %v11073_v8  ;;  %8916 = vmatmul.msk.f32.gmra.mxu1 %vm198_vm1, %v1705_v43  ;;  %v11285_v61 = vpop.f32.mrf.mxu3 }
 0x237   :  { %v1564_v55 = vpop.f32.mrf.mxu2 }
 0x238   :  { %v1680_v29 = vadd.f32 %v1564_v55, %v1039_v60  ;;  %v11275_v23 = vpop.f32.mrf.mxu0  ;;  %v51_v55 = vld [vmem:[%s14976_s0] sm:$0xff] }
 0x239   :  { %v11280_v8 = vpop.f32.mrf.mxu1 }
 0x23a   :  { %v11287_v43 = vadd.f32 %v2162_v6, %v1680_v29  ;;  %v1707_v29 = vld [vmem:[%s14976_s0 + $0x4c] sm:$0xff] }
 0x23b   :  { %8763 = vmatmul.msk.f32.gmra.mxu0 %vm198_vm1, %v195_v46 }
 0x23c   :  { %15021 = vst [vmem:[#allocation30_spill] sm:$0xff] %v11287_v43  ;;  %8906 = vmatmul.msk.f32.gmra.mxu2 %vm198_vm1, %v11098_v12  ;;  %8917 = vmatmul.msk.f32.gmra.mxu1 %vm198_vm1, %v1706_v51  ;;  %v11309_v46 = vpop.f32.mrf.mxu3 }
 0x23f   :  { %v1567_v63 = vpop.f32.mrf.mxu2 }
 0x240   :  { %v1681_v60 = vadd.f32 %v1567_v63, %v1042_v4  ;;  %v11299_v6 = vpop.f32.mrf.mxu0  ;;  %v1045_v4 = vadd.f32 %v11184_v34, %v11201_v20  ;;  %v4095_v34 = vld [vmem:[%s14976_s0 + $0x52] sm:$0xff]  ;;  %v1048_v20 = vadd.f32 %v11206_v44, %v11223_v35  ;;  %v4096_v44 = vld [vmem:[%s14976_s0 + $0x5a] sm:$0xff]  ;;  %v1051_v35 = vadd.f32 %v11228_v52, %v11251_v5  ;;  %v1710_v52 = vld [vmem:[%s14976_s0 + $0x64] sm:$0xff] }
 0x241   :  { %v11304_v12 = vpop.f32.mrf.mxu1 }
 0x242   :  { %v11311_v51 = vadd.f32 %v2165_v21, %v1681_v60  ;;  %v9207_v21 = vld [vmem:[%s14977_s1 + $0x1c] sm:$0xf] }
 0x243   :  { %8765 = vmatmul.msk.f32.vlgmr.msrb.gmra.mxu0 %vm198_vm1, %v51_v55  ;;  %9208 = vmatpush.msk.msrb.mxu3 %vm415_vm0, %v9207_v21  ;;  %v2300_v55 = vld [vmem:[%s14976_s0 + $0x26] sm:$0xff] }
 0x244   :  { %15022 = vst [vmem:[#allocation31_spill] sm:$0xff] %v11311_v51  ;;  %8907 = vmatmul.msk.f32.gmra.mxu2 %vm198_vm1, %v11123_v18  ;;  %8918 = vmatmul.msk.f32.gmra.mxu1 %vm198_vm1, %v1707_v29  ;;  %v2180_v39 = vpop.f32.mrf.mxu3 }
 0x245   :  { %9209 = vmatmul.msk.f32.vlgmr.msrb.gmra.mxu3 %vm198_vm1, %v4094_v10 }
 0x247   :  { %v1570_v18 = vpop.f32.mrf.mxu2 }
 0x248   :  { %v1682_v63 = vadd.f32 %v1570_v18, %v1045_v4  ;;  %v11335_v60 = vpop.f32.mrf.mxu0  ;;  %v2301_v18 = vld [vmem:[%s14976_s0 + $0x2e] sm:$0xff] }
 0x249   :  { %v11340_v29 = vpop.f32.mrf.mxu1 }
 0x24a   :  { %v11346_v21 = vadd.f32 %v11233_v45, %v1682_v63  ;;  %v1709_v63 = vld [vmem:[%s14976_s0 + $0x5c] sm:$0xff] }
 0x24b   :  { %8987 = vmatmul.msk.f32.vlgmr.msra.gmra.mxu0 %vm198_vm1, %v2300_v55 }
 0x24c   :  { %15023 = vst [vmem:[#allocation32_spill] sm:$0xff] %v11346_v21  ;;  %8908 = vmatmul.msk.f32.gmra.mxu2 %vm198_vm1, %v11148_v24  ;;  %8919 = vmatmul.msk.f32.gmra.mxu1 %vm198_vm1, %v1708_v22  ;;  %v2183_v55 = vpop.f32.mrf.mxu3 }
 0x24d   :  { %9210 = vmatmul.msk.f32.gmra.mxu3 %vm198_vm1, %v4095_v34 }
 0x24f   :  { %v1573_v10 = vpop.f32.mrf.mxu2 }
 0x250   :  { %v1683_v4 = vadd.f32 %v1573_v10, %v1048_v20  ;;  %v11358_v45 = vpop.f32.mrf.mxu0  ;;  %v2302_v10 = vld [vmem:[%s14976_s0 + $0x36] sm:$0xff] }
 0x251   :  { %v11363_v24 = vpop.f32.mrf.mxu1 }
 0x252   :  { %v11369_v22 = vadd.f32 %v11261_v17, %v1683_v4  ;;  %v1175_v4 = vld [vmem:[%s14976_s0 + $0x23c] sm:$0xf] }
 0x253   :  { %8988 = vmatmul.msk.f32.gmra.mxu0 %vm198_vm1, %v2301_v18 }
 0x254   :  { %15024 = vst [vmem:[#allocation33_spill] sm:$0xff] %v11369_v22  ;;  %8909 = vmatmul.msk.f32.gmra.mxu2 %vm198_vm1, %v11173_v53  ;;  %8920 = vmatmul.msk.f32.gmra.mxu1 %vm198_vm1, %v1709_v63  ;;  %v2186_v5 = vpop.f32.mrf.mxu3  ;;  %v4097_v63 = vld [vmem:[%s14976_s0 + $0x62] sm:$0xff] }
 0x255   :  { %9211 = vmatmul.msk.f32.gmra.mxu3 %vm198_vm1, %v4096_v44  ;;  %v1054_v44 = vadd.f32 %v11256_v14, %v11275_v23  ;;  %v11419_v14 = vld [vmem:[%s14976_s0 + $0x48] sm:$0xff] }
 0x257   :  { %v1576_v34 = vpop.f32.mrf.mxu2 }
 0x258   :  { %v1684_v20 = vadd.f32 %v1576_v34, %v1051_v35  ;;  %v11381_v17 = vpop.f32.mrf.mxu0 }
 0x259   :  { %v11386_v53 = vpop.f32.mrf.mxu1 }
 0x25a   :  { %v11395_v18 = vadd.f32 %v11285_v61, %v1684_v20  ;;  %v2303_v61 = vld [vmem:[%s14976_s0 + $0x3e] sm:$0xff] }
 0x25b   :  { %8989 = vmatmul.msk.f32.gmra.mxu0 %vm198_vm1, %v2302_v10  ;;  %v2898_v10 = vld [vmem:[%s14976_s0 + $0x28] sm:$0xff] }
 0x25c   :  { %15025 = vst [vmem:[#allocation34_spill] sm:$0xff] %v11395_v18  ;;  %8910 = vmatmul.msk.f32.gmra.mxu2 %vm198_vm1, %v1175_v4  ;;  %8921 = vmatmul.msk.f32.gmra.mxu1 %vm198_vm1, %v1710_v52  ;;  %v2189_v23 = vpop.f32.mrf.mxu3  ;;  %v4098_v52 = vld [vmem:[%s14976_s0 + $0x6a] sm:$0xff] }
 0x25d   :  { %9212 = vmatmul.msk.f32.gmra.mxu3 %vm198_vm1, %v4097_v63  ;;  %v1057_v63 = vadd.f32 %v11280_v8, %v11299_v6  ;;  %v3497_v8 = vld [vmem:[%s14976_s0 + $0x50] sm:$0xff] }
 0x25f   :  { %v1579_v35 = vpop.f32.mrf.mxu2 }
 0x260   :  { %v1685_v34 = vadd.f32 %v1579_v35, %v1054_v44  ;;  %v11406_v22 = vpop.f32.mrf.mxu0 }
 0x261   :  { %v11411_v20 = vpop.f32.mrf.mxu1 }
 0x262   :  { %v11422_v4 = vadd.f32 %v11309_v46, %v1685_v34  ;;  %v2304_v34 = vld [vmem:[%s14976_s0 + $0x46] sm:$0xff] }
 0x263   :  { %8990 = vmatmul.msk.f32.gmra.mxu0 %vm198_vm1, %v2303_v61 }
 0x264   :  { %15026 = vst [vmem:[#allocation35_spill] sm:$0xff] %v11422_v4  ;;  %9061 = vmatmul.msk.f32.vlgmr.msra.gmra.mxu1 %vm198_vm1, %v2898_v10  ;;  %9135 = vmatmul.msk.f32.vlgmr.msra.gmra.mxu2 %vm198_vm1, %v11419_v14  ;;  %v2899_v10 = vld [vmem:[%s14976_s0 + $0x30] sm:$0xff]  ;;  %v2192_v6 = vpop.f32.mrf.mxu3 }
 0x265   :  { %9213 = vmatmul.msk.f32.gmra.mxu3 %vm198_vm1, %v4098_v52 }
 0x267   :  { %v1582_v44 = vpop.f32.mrf.mxu2 }
 0x268   :  { %v1686_v35 = vadd.f32 %v1582_v44, %v1057_v63  ;;  %v11434_v46 = vpop.f32.mrf.mxu0  ;;  %v4099_v63 = vld [vmem:[%s14976_s0 + $0x72] sm:$0xff]  ;;  %v1060_v44 = vadd.f32 %v11304_v12, %v11335_v60 }
 0x269   :  { %v11439_v61 = vpop.f32.mrf.mxu1  ;;  %v3498_v12 = vld [vmem:[%s14976_s0 + $0x58] sm:$0xff] }
 0x26a   :  { %v11447_v52 = vadd.f32 %v2180_v39, %v1686_v35  ;;  %v2305_v39 = vld [vmem:[%s14976_s0 + $0x4e] sm:$0xff] }
 0x26b   :  { %8991 = vmatmul.msk.f32.gmra.mxu0 %vm198_vm1, %v2304_v34  ;;  %v2900_v34 = vld [vmem:[%s14976_s0 + $0x38] sm:$0xff] }
 0x26c   :  { %15027 = vst [vmem:[#allocation36_spill] sm:$0xff] %v11447_v52  ;;  %9062 = vmatmul.msk.f32.gmra.mxu1 %vm198_vm1, %v2899_v10  ;;  %9136 = vmatmul.msk.f32.gmra.mxu2 %vm198_vm1, %v3497_v8  ;;  %v2195_v60 = vpop.f32.mrf.mxu3 }
 0x26d   :  { %9214 = vmatmul.msk.f32.gmra.mxu3 %vm198_vm1, %v4099_v63  ;;  %v1063_v63 = vadd.f32 %v11340_v29, %v11358_v45  ;;  %v3499_v29 = vld [vmem:[%s14976_s0 + $0x60] sm:$0xff] }
 0x26f   :  { %v1585_v4 = vpop.f32.mrf.mxu2 }
 0x270   :  { %v1687_v18 = vadd.f32 %v1585_v4, %v1060_v44  ;;  %v11458_v21 = vpop.f32.mrf.mxu0  ;;  %v4100_v4 = vld [vmem:[%s14976_s0 + $0x7a] sm:$0xff] }
 0x271   :  { %v11463_v35 = vpop.f32.mrf.mxu1 }
 0x272   :  { %v11471_v10 = vadd.f32 %v2183_v55, %v1687_v18  ;;  %v2306_v55 = vld [vmem:[%s14976_s0 + $0x56] sm:$0xff] }
 0x273   :  { %8992 = vmatmul.msk.f32.gmra.mxu0 %vm198_vm1, %v2305_v39  ;;  %v2901_v39 = vld [vmem:[%s14976_s0 + $0x40] sm:$0xff] }
 0x274   :  { %15028 = vst [vmem:[#allocation37_spill] sm:$0xff] %v11471_v10  ;;  %9063 = vmatmul.msk.f32.gmra.mxu1 %vm198_vm1, %v2900_v34  ;;  %9137 = vmatmul.msk.f32.gmra.mxu2 %vm198_vm1, %v3498_v12  ;;  %v2198_v45 = vpop.f32.mrf.mxu3 }
 0x275   :  { %9215 = vmatmul.msk.f32.gmra.mxu3 %vm198_vm1, %v4100_v4  ;;  %v4101_v4 = vld [vmem:[%s14976_s0 + $0x82] sm:$0xff] }
 0x277   :  { %v1588_v44 = vpop.f32.mrf.mxu2 }
 0x278   :  { %v1688_v52 = vadd.f32 %v1588_v44, %v1063_v63  ;;  %v11482_v51 = vpop.f32.mrf.mxu0  ;;  %v1066_v63 = vadd.f32 %v11363_v24, %v11381_v17  ;;  %v4102_v24 = vld [vmem:[%s14976_s0 + $0x8a] sm:$0xff]  ;;  %v1069_v17 = vadd.f32 %v11386_v53, %v11406_v22  ;;  %v4103_v22 = vld [vmem:[%s14976_s0 + $0x92] sm:$0xff]  ;;  %v1072_v53 = vadd.f32 %v11411_v20, %v11434_v46  ;;  %v4104_v20 = vld [vmem:[%s14976_s0 + $0x9a] sm:$0xff] }
 0x279   :  { %v11487_v18 = vpop.f32.mrf.mxu1  ;;  %v1075_v46 = vadd.f32 %v11439_v61, %v11458_v21  ;;  %v4105_v21 = vld [vmem:[%s14976_s0 + $0xa2] sm:$0xff]  ;;  %v1078_v61 = vadd.f32 %v11463_v35, %v11482_v51  ;;  %v4106_v51 = vld [vmem:[%s14976_s0 + $0xaa] sm:$0xff] }
 0x27a   :  { %v11495_v34 = vadd.f32 %v2186_v5, %v1688_v52  ;;  %v2307_v5 = vld [vmem:[%s14976_s0 + $0x5e] sm:$0xff] }
 0x27b   :  { %8993 = vmatmul.msk.f32.gmra.mxu0 %vm198_vm1, %v2306_v55  ;;  %v3500_v55 = vld [vmem:[%s14976_s0 + $0x68] sm:$0xff] }
 0x27c   :  { %15029 = vst [vmem:[#allocation38_spill] sm:$0xff] %v11495_v34  ;;  %9064 = vmatmul.msk.f32.gmra.mxu1 %vm198_vm1, %v2901_v39  ;;  %9138 = vmatmul.msk.f32.gmra.mxu2 %vm198_vm1, %v3499_v29  ;;  %v2201_v39 = vpop.f32.mrf.mxu3 }
 0x27d   :  { %9216 = vmatmul.msk.f32.gmra.mxu3 %vm198_vm1, %v4101_v4 }
 0x27f   :  { %v1591_v44 = vpop.f32.mrf.mxu2 }
 0x280   :  { %v1689_v10 = vadd.f32 %v1591_v44, %v1066_v63  ;;  %v11506_v43 = vpop.f32.mrf.mxu0  ;;  %v3501_v44 = vld [vmem:[%s14976_s0 + $0x70] sm:$0xff] }
 0x281   :  { %v11511_v52 = vpop.f32.mrf.mxu1  ;;  %v1081_v35 = vadd.f32 %v11487_v18, %v11506_v43  ;;  %v4107_v43 = vld [vmem:[%s14976_s0 + $0xb2] sm:$0xff] }
 0x282   :  { %v11516_v34 = vadd.f32 %v2189_v23, %v1689_v10  ;;  %v2308_v10 = vld [vmem:[%s14976_s0 + $0x66] sm:$0xff] }
 0x283   :  { %8994 = vmatmul.msk.f32.gmra.mxu0 %vm198_vm1, %v2307_v5 }
 0x284   :  { %15030 = vst [vmem:[#allocation39_spill] sm:$0xff] %v11516_v34  ;;  %9065 = vmatmul.msk.f32.gmra.mxu1 %vm198_vm1, %v11419_v14  ;;  %9139 = vmatmul.msk.f32.gmra.mxu2 %vm198_vm1, %v3500_v55  ;;  %v2204_v5 = vpop.f32.mrf.mxu3 }
 0x285   :  { %9217 = vmatmul.msk.f32.gmra.mxu3 %vm198_vm1, %v4102_v24 }
 0x287   :  { %v1594_v4 = vpop.f32.mrf.mxu2 }
 0x288   :  { %v1690_v63 = vadd.f32 %v1594_v4, %v1069_v17  ;;  %v11528_v23 = vpop.f32.mrf.mxu0 }
 0x289   :  { %v11533_v14 = vpop.f32.mrf.mxu1  ;;  %v1084_v18 = vadd.f32 %v11511_v52, %v11528_v23  ;;  %v4108_v52 = vld [vmem:[%s14976_s0 + $0xba] sm:$0xff] }
 0x28a   :  { %v11538_v34 = vadd.f32 %v2192_v6, %v1690_v63  ;;  %v2309_v6 = vld [vmem:[%s14976_s0 + $0x6e] sm:$0xff]  ;;  %v3502_v63 = vld [vmem:[%s14976_s0 + $0x78] sm:$0xff] }
 0x28b   :  { %8995 = vmatmul.msk.f32.gmra.mxu0 %vm198_vm1, %v2308_v10 }
 0x28c   :  { %15031 = vst [vmem:[#allocation40_spill] sm:$0xff] %v11538_v34  ;;  %9066 = vmatmul.msk.f32.gmra.mxu1 %vm198_vm1, %v3497_v8  ;;  %9140 = vmatmul.msk.f32.gmra.mxu2 %vm198_vm1, %v3501_v44  ;;  %v2207_v10 = vpop.f32.mrf.mxu3 }
 0x28d   :  { %9218 = vmatmul.msk.f32.gmra.mxu3 %vm198_vm1, %v4103_v22 }
 0x28f   :  { %v1597_v24 = vpop.f32.mrf.mxu2 }
 0x290   :  { %v1691_v17 = vadd.f32 %v1597_v24, %v1072_v53  ;;  %v11549_v4 = vpop.f32.mrf.mxu0 }
 0x291   :  { %v11554_v8 = vpop.f32.mrf.mxu1  ;;  %v1087_v23 = vadd.f32 %v11533_v14, %v11549_v4  ;;  %v4109_v14 = vld [vmem:[%s14976_s0 + $0xc2] sm:$0xff] }
 0x292   :  { %v11559_v34 = vadd.f32 %v2195_v60, %v1691_v17  ;;  %v2310_v60 = vld [vmem:[%s14976_s0 + $0x76] sm:$0xff]  ;;  %v3503_v17 = vld [vmem:[%s14976_s0 + $0x80] sm:$0xff] }
 0x293   :  { %8996 = vmatmul.msk.f32.gmra.mxu0 %vm198_vm1, %v2309_v6 }
 0x294   :  { %15032 = vst [vmem:[#allocation41_spill] sm:$0xff] %v11559_v34  ;;  %9067 = vmatmul.msk.f32.gmra.mxu1 %vm198_vm1, %v3498_v12  ;;  %9141 = vmatmul.msk.f32.gmra.mxu2 %vm198_vm1, %v3502_v63  ;;  %v2210_v6 = vpop.f32.mrf.mxu3 }
 0x295   :  { %9219 = vmatmul.msk.f32.gmra.mxu3 %vm198_vm1, %v4104_v20 }
 0x297   :  { %v1600_v22 = vpop.f32.mrf.mxu2 }
 0x298   :  { %v1692_v53 = vadd.f32 %v1600_v22, %v1075_v46  ;;  %v11570_v24 = vpop.f32.mrf.mxu0 }
 0x299   :  { %v11575_v12 = vpop.f32.mrf.mxu1  ;;  %v1090_v4 = vadd.f32 %v11554_v8, %v11570_v24  ;;  %v4110_v8 = vld [vmem:[%s14976_s0 + $0xca] sm:$0xff] }
 0x29a   :  { %v11580_v34 = vadd.f32 %v2198_v45, %v1692_v53  ;;  %v2311_v45 = vld [vmem:[%s14976_s0 + $0x7e] sm:$0xff]  ;;  %v3504_v53 = vld [vmem:[%s14976_s0 + $0x88] sm:$0xff] }
 0x29b   :  { %8997 = vmatmul.msk.f32.gmra.mxu0 %vm198_vm1, %v2310_v60 }
 0x29c   :  { %15033 = vst [vmem:[#allocation42_spill] sm:$0xff] %v11580_v34  ;;  %9068 = vmatmul.msk.f32.gmra.mxu1 %vm198_vm1, %v3499_v29  ;;  %9142 = vmatmul.msk.f32.gmra.mxu2 %vm198_vm1, %v3503_v17  ;;  %v2213_v60 = vpop.f32.mrf.mxu3 }
 0x29d   :  { %9220 = vmatmul.msk.f32.gmra.mxu3 %vm198_vm1, %v4105_v21 }
 0x29f   :  { %v1603_v20 = vpop.f32.mrf.mxu2 }
 0x2a0   :  { %v1693_v46 = vadd.f32 %v1603_v20, %v1078_v61  ;;  %v11591_v22 = vpop.f32.mrf.mxu0 }
 0x2a1   :  { %v11596_v29 = vpop.f32.mrf.mxu1  ;;  %v1093_v24 = vadd.f32 %v9977_v1, %v11591_v22  ;;  %v4111_v1 = vld [vmem:[%s14976_s0 + $0xd2] sm:$0xff] }
 0x2a2   :  { %v11601_v34 = vadd.f32 %v2201_v39, %v1693_v46  ;;  %v2312_v39 = vld [vmem:[%s14976_s0 + $0x86] sm:$0xff]  ;;  %v3505_v46 = vld [vmem:[%s14976_s0 + $0x90] sm:$0xff] }
 0x2a3   :  { %8998 = vmatmul.msk.f32.gmra.mxu0 %vm198_vm1, %v2311_v45 }
 0x2a4   :  { %15034 = vst [vmem:[#allocation43_spill] sm:$0xff] %v11601_v34  ;;  %9069 = vmatmul.msk.f32.gmra.mxu1 %vm198_vm1, %v3500_v55  ;;  %9143 = vmatmul.msk.f32.gmra.mxu2 %vm198_vm1, %v3504_v53  ;;  %v2216_v45 = vpop.f32.mrf.mxu3 }
 0x2a5   :  { %9221 = vmatmul.msk.f32.gmra.mxu3 %vm198_vm1, %v4106_v51 }
 0x2a7   :  { %v1606_v21 = vpop.f32.mrf.mxu2 }
 0x2a8   :  { %v1694_v61 = vadd.f32 %v1606_v21, %v1081_v35  ;;  %v11612_v20 = vpop.f32.mrf.mxu0 }
 0x2a9   :  { %v11617_v55 = vpop.f32.mrf.mxu1  ;;  %v1096_v22 = vadd.f32 %v9996_v7, %v11612_v20  ;;  %v4112_v7 = vld [vmem:[%s14976_s0 + $0xda] sm:$0xff] }
 0x2aa   :  { %v11622_v34 = vadd.f32 %v2204_v5, %v1694_v61  ;;  %v2313_v5 = vld [vmem:[%s14976_s0 + $0x8e] sm:$0xff]  ;;  %v3506_v61 = vld [vmem:[%s14976_s0 + $0x98] sm:$0xff] }
 0x2ab   :  { %8999 = vmatmul.msk.f32.gmra.mxu0 %vm198_vm1, %v2312_v39 }
 0x2ac   :  { %15035 = vst [vmem:[#allocation44_spill] sm:$0xff] %v11622_v34  ;;  %9070 = vmatmul.msk.f32.gmra.mxu1 %vm198_vm1, %v3501_v44  ;;  %9144 = vmatmul.msk.f32.gmra.mxu2 %vm198_vm1, %v3505_v46  ;;  %v2219_v39 = vpop.f32.mrf.mxu3 }
 0x2ad   :  { %9222 = vmatmul.msk.f32.gmra.mxu3 %vm198_vm1, %v4107_v43 }
 0x2af   :  { %v1609_v51 = vpop.f32.mrf.mxu2 }
 0x2b0   :  { %v1695_v35 = vadd.f32 %v1609_v51, %v1084_v18  ;;  %v11633_v21 = vpop.f32.mrf.mxu0 }
 0x2b1   :  { %v11638_v44 = vpop.f32.mrf.mxu1  ;;  %v1099_v20 = vadd.f32 %v10015_v13, %v11633_v21 }
 0x2b2   :  { %v11643_v34 = vadd.f32 %v2207_v10, %v1695_v35  ;;  %v2314_v10 = vld [vmem:[%s14976_s0 + $0x96] sm:$0xff]  ;;  %v3507_v35 = vld [vmem:[%s14976_s0 + $0xa0] sm:$0xff] }
 0x2b3   :  { %9000 = vmatmul.msk.f32.gmra.mxu0 %vm198_vm1, %v2313_v5 }
 0x2b4   :  { %15036 = vst [vmem:[#allocation45_spill] sm:$0xff] %v11643_v34  ;;  %9071 = vmatmul.msk.f32.gmra.mxu1 %vm198_vm1, %v3502_v63  ;;  %9145 = vmatmul.msk.f32.gmra.mxu2 %vm198_vm1, %v3506_v61  ;;  %v2222_v5 = vpop.f32.mrf.mxu3 }
 0x2b5   :  { %9223 = vmatmul.msk.f32.gmra.mxu3 %vm198_vm1, %v4108_v52 }
 0x2b7   :  { %v1612_v43 = vpop.f32.mrf.mxu2 }
 0x2b8   :  { %v1696_v18 = vadd.f32 %v1612_v43, %v1087_v23  ;;  %v11654_v51 = vpop.f32.mrf.mxu0 }
 0x2b9   :  { %v11659_v63 = vpop.f32.mrf.mxu1 }
 0x2ba   :  { %v11664_v34 = vadd.f32 %v2210_v6, %v1696_v18  ;;  %v2315_v6 = vld [vmem:[%s14976_s0 + $0x9e] sm:$0xff] }
 0x2bb   :  { %9001 = vmatmul.msk.f32.gmra.mxu0 %vm198_vm1, %v2314_v10 }
 0x2bc   :  { %15037 = vst [vmem:[#allocation46_spill] sm:$0xff] %v11664_v34  ;;  %9072 = vmatmul.msk.f32.gmra.mxu1 %vm198_vm1, %v3503_v17  ;;  %9146 = vmatmul.msk.f32.gmra.mxu2 %vm198_vm1, %v3507_v35  ;;  %v11683_v17 = vld [vmem:[%s14976_s0 + $0xa8] sm:$0xff]  ;;  %v2225_v10 = vpop.f32.mrf.mxu3 }
 0x2bd   :  { %9224 = vmatmul.msk.f32.gmra.mxu3 %vm198_vm1, %v4109_v14 }
 0x2bf   :  { %v1615_v52 = vpop.f32.mrf.mxu2 }
 0x2c0   :  { %v1697_v23 = vadd.f32 %v1615_v52, %v1090_v4  ;;  %v888_v43 = vpop.f32.mrf.mxu0  ;;  %v2316_v52 = vld [vmem:[%s14976_s0 + $0xa6] sm:$0xff] }
 0x2c1   :  { %v11678_v18 = vpop.f32.mrf.mxu1  ;;  %v889_v13 = vadd.f32 %v888_v43, %v9956_v59 }
 0x2c2   :  { %v11685_v34 = vadd.f32 %v2213_v60, %v1697_v23  ;;  %v11705_v23 = vld [vmem:[%s14976_s0 + $0xb0] sm:$0xff] }
 0x2c3   :  { %9002 = vmatmul.msk.f32.gmra.mxu0 %vm198_vm1, %v2315_v6 }
 0x2c4   :  { %15038 = vst [vmem:[#allocation47_spill] sm:$0xff] %v11685_v34  ;;  %9073 = vmatmul.msk.f32.gmra.mxu1 %vm198_vm1, %v3504_v53  ;;  %9147 = vmatmul.msk.f32.gmra.mxu2 %vm198_vm1, %v11683_v17 }
 0x2c5   :  { %9225 = vmatmul.msk.f32.gmra.mxu3 %vm198_vm1, %v4110_v8 }
 0x2c7   :  { %v1618_v14 = vpop.f32.mrf.mxu2 }
 0x2c8   :  { %v1698_v4 = vadd.f32 %v1618_v14, %v1093_v24  ;;  %v2610_v60 = vpop.f32.mrf.mxu0  ;;  %v4404_v6 = vpop.f32.mrf.mxu3  ;;  %v2317_v14 = vld [vmem:[%s14976_s0 + $0xae] sm:$0xff] }
 0x2c9   :  { %v11700_v53 = vpop.f32.mrf.mxu1 }
 0x2ca   :  { %v11707_v34 = vadd.f32 %v2216_v45, %v1698_v4  ;;  %v11727_v4 = vld [vmem:[%s14976_s0 + $0xb8] sm:$0xff] }
 0x2cb   :  { %9003 = vmatmul.msk.f32.gmra.mxu0 %vm198_vm1, %v2316_v52 }
 0x2cc   :  { %15039 = vst [vmem:[#allocation48_spill] sm:$0xff] %v11707_v34  ;;  %9074 = vmatmul.msk.f32.gmra.mxu1 %vm198_vm1, %v3505_v46  ;;  %9148 = vmatmul.msk.f32.gmra.mxu2 %vm198_vm1, %v11705_v23 }
 0x2cd   :  { %9226 = vmatmul.msk.f32.gmra.mxu3 %vm198_vm1, %v4111_v1 }
 0x2cf   :  { %v1621_v8 = vpop.f32.mrf.mxu2 }
 0x2d0   :  { %v1699_v24 = vadd.f32 %v1621_v8, %v1096_v22  ;;  %v2613_v45 = vpop.f32.mrf.mxu0  ;;  %v11729_v52 = vpop.f32.mrf.mxu3  ;;  %v2318_v8 = vld [vmem:[%s14976_s0 + $0xb6] sm:$0xff] }
 0x2d1   :  { %v11722_v46 = vpop.f32.mrf.mxu1 }
 0x2d2   :  { %v11731_v34 = vadd.f32 %v2219_v39, %v1699_v24  ;;  %v11751_v24 = vld [vmem:[%s14976_s0 + $0xc0] sm:$0xff] }
 0x2d3   :  { %9004 = vmatmul.msk.f32.gmra.mxu0 %vm198_vm1, %v2317_v14 }
 0x2d4   :  { %15040 = vst [vmem:[#allocation49_spill] sm:$0xff] %v11731_v34  ;;  %9075 = vmatmul.msk.f32.gmra.mxu1 %vm198_vm1, %v3506_v61  ;;  %9149 = vmatmul.msk.f32.gmra.mxu2 %vm198_vm1, %v11727_v4 }
 0x2d5   :  { %9227 = vmatmul.msk.f32.gmra.mxu3 %vm198_vm1, %v4112_v7  ;;  %v4113_v7 = vld [vmem:[%s14976_s0 + $0xe2] sm:$0xff] }
 0x2d7   :  { %v1624_v1 = vpop.f32.mrf.mxu2 }
 0x2d8   :  { %v1700_v22 = vadd.f32 %v1624_v1, %v1099_v20  ;;  %v2616_v39 = vpop.f32.mrf.mxu0  ;;  %v11753_v14 = vpop.f32.mrf.mxu3  ;;  %v1102_v20 = vadd.f32 %v10034_v19, %v11654_v51  ;;  %v1630_v1 = vadd.f32 %v10055_v25, %v889_v13  ;;  %v4114_v13 = vld [vmem:[%s14976_s0 + $0xea] sm:$0xff] }
 0x2d9   :  { %v11746_v61 = vpop.f32.mrf.mxu1 }
 0x2da   :  { %v11756_v21 = vadd.f32 %v2222_v5, %v1700_v22  ;;  %v2228_v19 = vadd.f32 %v11575_v12, %v1630_v1 }
 0x2db   :  { %9005 = vmatmul.msk.f32.gmra.mxu0 %vm198_vm1, %v2318_v8  ;;  %v11775_v8 = vld [vmem:[%s14976_s0 + $0xc8] sm:$0xff] }
 0x2dc   :  { %15041 = vst [vmem:[#allocation50_spill] sm:$0xff] %v11756_v21  ;;  %9076 = vmatmul.msk.f32.gmra.mxu1 %vm198_vm1, %v3507_v35  ;;  %9150 = vmatmul.msk.f32.gmra.mxu2 %vm198_vm1, %v11751_v24  ;;  %v2319_v35 = vld [vmem:[%s14976_s0 + $0xbe] sm:$0xff]  ;;  %v2826_v51 = vadd.f32 %v2610_v60, %v2228_v19  ;;  %v2320_v60 = vld [vmem:[%s14976_s0 + $0xc6] sm:$0xff]  ;;  %v4115_v19 = vld [vmem:[%s14976_s0 + $0xf2] sm:$0xff] }
 0x2dd   :  { %9228 = vmatmul.msk.f32.gmra.mxu3 %vm198_vm1, %v4113_v7 }
 0x2df   :  { %v1627_v59 = vpop.f32.mrf.mxu2 }
 0x2e0   :  { %v1701_v5 = vadd.f32 %v1627_v59, %v1102_v20  ;;  %v2619_v43 = vpop.f32.mrf.mxu0  ;;  %v11777_v21 = vpop.f32.mrf.mxu3 }
 0x2e1   :  { %v3208_v22 = vpop.f32.mrf.mxu1 }
 0x2e2   :  { %v11780_v25 = vadd.f32 %v2225_v10, %v1701_v5  ;;  %v3424_v7 = vadd.f32 %v3208_v22, %v2826_v51  ;;  %v2229_v5 = vadd.f32 %v11596_v29, %v10076_v33 }
 0x2e3   :  { %9006 = vmatmul.msk.f32.gmra.mxu0 %vm198_vm1, %v2319_v35 }
 0x2e4   :  { %15042 = vst [vmem:[#allocation51_spill] sm:$0xff] %v11780_v25  ;;  %9077 = vmatmul.msk.f32.gmra.mxu1 %vm198_vm1, %v11683_v17  ;;  %9151 = vmatmul.msk.f32.gmra.mxu2 %vm198_vm1, %v11775_v8  ;;  %v11797_v17 = vld [vmem:[%s14976_s0 + $0xd0] sm:$0xff]  ;;  %v2827_v22 = vadd.f32 %v2613_v45, %v2229_v5 }
 0x2e5   :  { %9229 = vmatmul.msk.f32.gmra.mxu3 %vm198_vm1, %v4114_v13 }
 0x2e7   :  { %v3806_v20 = vpop.f32.mrf.mxu2 }
 0x2e8   :  { %v4022_v12 = vadd.f32 %v3806_v20, %v3424_v7  ;;  %v2622_v10 = vpop.f32.mrf.mxu0  ;;  %v11799_v59 = vpop.f32.mrf.mxu3  ;;  %v2230_v20 = vadd.f32 %v11617_v55, %v10097_v41 }
 0x2e9   :  { %v3211_v1 = vpop.f32.mrf.mxu1 }
 0x2ea   :  { %v11803_v35 = vadd.f32 %v4404_v6, %v4022_v12  ;;  %v3425_v51 = vadd.f32 %v3211_v1, %v2827_v22  ;;  %v2321_v6 = vld [vmem:[%s14976_s0 + $0xce] sm:$0xff]  ;;  %v4116_v1 = vld [vmem:[%s14976_s0 + $0xfa] sm:$0xff] }
 0x2eb   :  { %9007 = vmatmul.msk.f32.gmra.mxu0 %vm198_vm1, %v2320_v60  ;;  %v2828_v60 = vadd.f32 %v2616_v39, %v2230_v20  ;;  %v2322_v39 = vld [vmem:[%s14976_s0 + $0xd6] sm:$0xff] }
 0x2ec   :  { %9078 = vmatmul.msk.f32.gmra.mxu1 %vm198_vm1, %v11705_v23  ;;  %9152 = vmatmul.msk.f32.gmra.mxu2 %vm198_vm1, %v11797_v17  ;;  %v11820_v23 = vld [vmem:[%s14976_s0 + $0xd8] sm:$0xff] }
 0x2ed   :  { %9230 = vmatmul.msk.f32.gmra.mxu3 %vm198_vm1, %v4115_v19 }
 0x2ef   :  { %v3809_v13 = vpop.f32.mrf.mxu2 }
 0x2f0   :  { %v4023_v33 = vadd.f32 %v3809_v13, %v3425_v51  ;;  %v2625_v29 = vpop.f32.mrf.mxu0  ;;  %v11822_v7 = vpop.f32.mrf.mxu3  ;;  %v2231_v51 = vadd.f32 %v11638_v44, %v10118_v49 }
 0x2f1   :  { %v3214_v45 = vpop.f32.mrf.mxu1 }
 0x2f2   :  { %v11827_v12 = vadd.f32 %v11729_v52, %v4023_v33  ;;  %v3426_v5 = vadd.f32 %v3214_v45, %v2828_v60  ;;  %v2829_v33 = vadd.f32 %v2619_v43, %v2231_v51  ;;  %v2323_v43 = vld [vmem:[%s14976_s0 + $0xde] sm:$0xff] }
 0x2f3   :  { %9008 = vmatmul.msk.f32.gmra.mxu0 %vm198_vm1, %v2321_v6  ;;  %v4117_v6 = vld [vmem:[%s14976_s0 + $0x102] sm:$0xff] }
 0x2f4   :  { %9079 = vmatmul.msk.f32.gmra.mxu1 %vm198_vm1, %v11727_v4  ;;  %9153 = vmatmul.msk.f32.gmra.mxu2 %vm198_vm1, %v11820_v23  ;;  %v11844_v4 = vld [vmem:[%s14976_s0 + $0xe0] sm:$0xff] }
 0x2f5   :  { %9231 = vmatmul.msk.f32.gmra.mxu3 %vm198_vm1, %v4116_v1  ;;  %v2232_v1 = vadd.f32 %v11659_v63, %v10139_v57 }
 0x2f7   :  { %v3812_v41 = vpop.f32.mrf.mxu2 }
 0x2f8   :  { %v4024_v55 = vadd.f32 %v3812_v41, %v3426_v5  ;;  %v2628_v52 = vpop.f32.mrf.mxu0  ;;  %v11846_v19 = vpop.f32.mrf.mxu3  ;;  %v2830_v41 = vadd.f32 %v2622_v10, %v2232_v1  ;;  %v2324_v10 = vld [vmem:[%s14976_s0 + $0xe6] sm:$0xff]  ;;  %v2234_v1 = vadd.f32 %v11700_v53, %v10183_v15 }
 0x2f9   :  { %v3217_v22 = vpop.f32.mrf.mxu1 }
 0x2fa   :  { %v11851_v13 = vadd.f32 %v11753_v14, %v4024_v55  ;;  %v3427_v45 = vadd.f32 %v3217_v22, %v2829_v33  ;;  %v4118_v55 = vld [vmem:[%s14976_s0 + $0x10a] sm:$0xff]  ;;  %v2233_v33 = vadd.f32 %v11678_v18, %v10161_v3 }
 0x2fb   :  { %9009 = vmatmul.msk.f32.gmra.mxu0 %vm198_vm1, %v2322_v39 }
 0x2fc   :  { %9080 = vmatmul.msk.f32.gmra.mxu1 %vm198_vm1, %v11751_v24  ;;  %9154 = vmatmul.msk.f32.gmra.mxu2 %vm198_vm1, %v11844_v4  ;;  %v11868_v24 = vld [vmem:[%s14976_s0 + $0xe8] sm:$0xff] }
 0x2fd   :  { %9232 = vmatmul.msk.f32.gmra.mxu3 %vm198_vm1, %v4117_v6 }
 0x2ff   :  { %v3815_v49 = vpop.f32.mrf.mxu2 }
 0x300   :  { %v4025_v44 = vadd.f32 %v3815_v49, %v3427_v45  ;;  %v2631_v14 = vpop.f32.mrf.mxu0  ;;  %v11870_v60 = vpop.f32.mrf.mxu3  ;;  %v2831_v45 = vadd.f32 %v2625_v29, %v2233_v33  ;;  %v4119_v49 = vld [vmem:[%s14976_s0 + $0x112] sm:$0xff] }
 0x301   :  { %v3220_v20 = vpop.f32.mrf.mxu1  ;;  %v2325_v29 = vld [vmem:[%s14976_s0 + $0xee] sm:$0xff] }
 0x302   :  { %v11875_v5 = vadd.f32 %v11777_v21, %v4025_v44  ;;  %v3428_v39 = vadd.f32 %v3220_v20, %v2830_v41 }
 0x303   :  { %9010 = vmatmul.msk.f32.gmra.mxu0 %vm198_vm1, %v2323_v43 }
 0x304   :  { %9081 = vmatmul.msk.f32.gmra.mxu1 %vm198_vm1, %v11775_v8  ;;  %9155 = vmatmul.msk.f32.gmra.mxu2 %vm198_vm1, %v11868_v24  ;;  %v11892_v8 = vld [vmem:[%s14976_s0 + $0xf0] sm:$0xff] }
 0x305   :  { %9233 = vmatmul.msk.f32.gmra.mxu3 %vm198_vm1, %v4118_v55  ;;  %v2832_v55 = vadd.f32 %v2628_v52, %v2234_v1  ;;  %v2326_v52 = vld [vmem:[%s14976_s0 + $0xf6] sm:$0xff] }
 0x307   :  { %v3818_v57 = vpop.f32.mrf.mxu2 }
 0x308   :  { %v4026_v63 = vadd.f32 %v3818_v57, %v3428_v39  ;;  %v2634_v21 = vpop.f32.mrf.mxu0  ;;  %v11894_v51 = vpop.f32.mrf.mxu3  ;;  %v4120_v39 = vld [vmem:[%s14976_s0 + $0x11a] sm:$0xff] }
 0x309   :  { %v3223_v22 = vpop.f32.mrf.mxu1 }
 0x30a   :  { %v11899_v6 = vadd.f32 %v11799_v59, %v4026_v63  ;;  %v3429_v44 = vadd.f32 %v3223_v22, %v2831_v45  ;;  %v2235_v22 = vadd.f32 %v11722_v46, %v10207_v27 }
 0x30b   :  { %9011 = vmatmul.msk.f32.gmra.mxu0 %vm198_vm1, %v2324_v10 }
 0x30c   :  { %9082 = vmatmul.msk.f32.gmra.mxu1 %vm198_vm1, %v11797_v17  ;;  %9156 = vmatmul.msk.f32.gmra.mxu2 %vm198_vm1, %v11892_v8  ;;  %v11916_v17 = vld [vmem:[%s14976_s0 + $0xf8] sm:$0xff]  ;;  %v2833_v45 = vadd.f32 %v2631_v14, %v2235_v22 }
 0x30d   :  { %9234 = vmatmul.msk.f32.gmra.mxu3 %vm198_vm1, %v4119_v49  ;;  %v4121_v49 = vld [vmem:[%s14976_s0 + $0x122] sm:$0xff] }
 0x30e   :  { %v2327_v14 = vld [vmem:[%s14976_s0 + $0xfe] sm:$0xff] }
 0x30f   :  { %v3821_v3 = vpop.f32.mrf.mxu2 }
 0x310   :  { %v4027_v18 = vadd.f32 %v3821_v3, %v3429_v44  ;;  %v2637_v59 = vpop.f32.mrf.mxu0  ;;  %v11918_v20 = vpop.f32.mrf.mxu3 }
 0x311   :  { %v3226_v43 = vpop.f32.mrf.mxu1 }
 0x312   :  { %v11923_v41 = vadd.f32 %v11822_v7, %v4027_v18  ;;  %v3430_v57 = vadd.f32 %v3226_v43, %v2832_v55  ;;  %v4122_v55 = vld [vmem:[%s14976_s0 + $0x12a] sm:$0xff] }
 0x313   :  { %9012 = vmatmul.msk.f32.gmra.mxu0 %vm198_vm1, %v2325_v29  ;;  %v2236_v29 = vadd.f32 %v11746_v61, %v10231_v37 }
 0x314   :  { %9083 = vmatmul.msk.f32.gmra.mxu1 %vm198_vm1, %v11820_v23  ;;  %9157 = vmatmul.msk.f32.gmra.mxu2 %vm198_vm1, %v11916_v17  ;;  %v11940_v23 = vld [vmem:[%s14976_s0 + $0x100] sm:$0xff] }
 0x315   :  { %9235 = vmatmul.msk.f32.gmra.mxu3 %vm198_vm1, %v4120_v39  ;;  %v2834_v1 = vadd.f32 %v2634_v21, %v2236_v29  ;;  %v2328_v21 = vld [vmem:[%s14976_s0 + $0x106] sm:$0xff] }
 0x317   :  { %v3824_v15 = vpop.f32.mrf.mxu2 }
 0x318   :  { %v4028_v53 = vadd.f32 %v3824_v15, %v3430_v57  ;;  %v2640_v7 = vpop.f32.mrf.mxu0  ;;  %v11942_v10 = vpop.f32.mrf.mxu3 }
 0x319   :  { %v3229_v63 = vpop.f32.mrf.mxu1 }
 0x31a   :  { %v11947_v33 = vadd.f32 %v11846_v19, %v4028_v53  ;;  %v3431_v44 = vadd.f32 %v3229_v63, %v2833_v45  ;;  %v4123_v63 = vld [vmem:[%s14976_s0 + $0x132] sm:$0xff] }
 0x31b   :  { %9013 = vmatmul.msk.f32.gmra.mxu0 %vm198_vm1, %v2326_v52  ;;  %v2835_v52 = vadd.f32 %v2637_v59, %v10265_v56  ;;  %v2329_v56 = vld [vmem:[%s14976_s0 + $0x10e] sm:$0xff] }
 0x31c   :  { %9084 = vmatmul.msk.f32.gmra.mxu1 %vm198_vm1, %v11844_v4  ;;  %9158 = vmatmul.msk.f32.gmra.mxu2 %vm198_vm1, %v11940_v23  ;;  %v11964_v4 = vld [vmem:[%s14976_s0 + $0x108] sm:$0xff] }
 0x31d   :  { %9236 = vmatmul.msk.f32.gmra.mxu3 %vm198_vm1, %v4121_v49 }
 0x31f   :  { %v3827_v27 = vpop.f32.mrf.mxu2 }
 0x320   :  { %v4029_v46 = vadd.f32 %v3827_v27, %v3431_v44  ;;  %v2643_v19 = vpop.f32.mrf.mxu0  ;;  %v4437_v18 = vpop.f32.mrf.mxu3 }
 0x321   :  { %v3232_v3 = vpop.f32.mrf.mxu1 }
 0x322   :  { %v11969_v43 = vadd.f32 %v11870_v60, %v4029_v46  ;;  %v3432_v39 = vadd.f32 %v3232_v3, %v2834_v1  ;;  %v2836_v46 = vadd.f32 %v2640_v7, %v10289_v9  ;;  %v2330_v9 = vld [vmem:[%s14976_s0 + $0x116] sm:$0xff] }
 0x323   :  { %9014 = vmatmul.msk.f32.gmra.mxu0 %vm198_vm1, %v2327_v14  ;;  %v4124_v14 = vld [vmem:[%s14976_s0 + $0x13a] sm:$0xff] }
 0x324   :  { %9085 = vmatmul.msk.f32.gmra.mxu1 %vm198_vm1, %v11868_v24  ;;  %9159 = vmatmul.msk.f32.gmra.mxu2 %vm198_vm1, %v11964_v4  ;;  %v11986_v24 = vld [vmem:[%s14976_s0 + $0x110] sm:$0xff] }
 0x325   :  { %9237 = vmatmul.msk.f32.gmra.mxu3 %vm198_vm1, %v4122_v55 }
 0x327   :  { %v3830_v37 = vpop.f32.mrf.mxu2 }
 0x328   :  { %v4030_v61 = vadd.f32 %v3830_v37, %v3432_v39  ;;  %v2646_v60 = vpop.f32.mrf.mxu0  ;;  %v4440_v15 = vpop.f32.mrf.mxu3  ;;  %v2837_v37 = vadd.f32 %v2643_v19, %v10314_v26  ;;  %v2331_v26 = vld [vmem:[%s14976_s0 + $0x11e] sm:$0xff] }
 0x329   :  { %v3235_v57 = vpop.f32.mrf.mxu1 }
 0x32a   :  { %v11989_v53 = vadd.f32 %v11894_v51, %v4030_v61  ;;  %v3433_v22 = vadd.f32 %v3235_v57, %v2835_v52  ;;  %v4125_v61 = vld [vmem:[%s14976_s0 + $0x142] sm:$0xff] }
 0x32b   :  { %9015 = vmatmul.msk.f32.gmra.mxu0 %vm198_vm1, %v2328_v21 }
 0x32c   :  { %9086 = vmatmul.msk.f32.gmra.mxu1 %vm198_vm1, %v11892_v8  ;;  %9160 = vmatmul.msk.f32.gmra.mxu2 %vm198_vm1, %v11986_v24  ;;  %v12007_v8 = vld [vmem:[%s14976_s0 + $0x118] sm:$0xff] }
 0x32d   :  { %9238 = vmatmul.msk.f32.gmra.mxu3 %vm198_vm1, %v4123_v63 }
 0x32f   :  { %v3833_v45 = vpop.f32.mrf.mxu2 }
 0x330   :  { %v4031_v51 = vadd.f32 %v3833_v45, %v3433_v22  ;;  %v2649_v49 = vpop.f32.mrf.mxu0  ;;  %v4443_v44 = vpop.f32.mrf.mxu3  ;;  %v2838_v45 = vadd.f32 %v2646_v60, %v10339_v42  ;;  %v2332_v42 = vld [vmem:[%s14976_s0 + $0x126] sm:$0xff] }
 0x331   :  { %v3238_v59 = vpop.f32.mrf.mxu1 }
 0x332   :  { %v12010_v27 = vadd.f32 %v11918_v20, %v4031_v51  ;;  %v3434_v3 = vadd.f32 %v3238_v59, %v2836_v46  ;;  %v4126_v51 = vld [vmem:[%s14976_s0 + $0x14a] sm:$0xff] }
 0x333   :  { %9016 = vmatmul.msk.f32.gmra.mxu0 %vm198_vm1, %v2329_v56 }
 0x334   :  { %9087 = vmatmul.msk.f32.gmra.mxu1 %vm198_vm1, %v11916_v17  ;;  %9161 = vmatmul.msk.f32.gmra.mxu2 %vm198_vm1, %v12007_v8  ;;  %v12028_v17 = vld [vmem:[%s14976_s0 + $0x120] sm:$0xff] }
 0x335   :  { %9239 = vmatmul.msk.f32.gmra.mxu3 %vm198_vm1, %v4124_v14 }
 0x337   :  { %v3836_v29 = vpop.f32.mrf.mxu2 }
 0x338   :  { %v4032_v20 = vadd.f32 %v3836_v29, %v3434_v3  ;;  %v2652_v1 = vpop.f32.mrf.mxu0  ;;  %v4446_v55 = vpop.f32.mrf.mxu3  ;;  %v2839_v29 = vadd.f32 %v2649_v49, %v10364_v58  ;;  %v2333_v58 = vld [vmem:[%s14976_s0 + $0x12e] sm:$0xff] }
 0x339   :  { %v3241_v7 = vpop.f32.mrf.mxu1 }
 0x33a   :  { %v12031_v39 = vadd.f32 %v11942_v10, %v4032_v20  ;;  %v3435_v21 = vadd.f32 %v3241_v7, %v2837_v37  ;;  %v4127_v20 = vld [vmem:[%s14976_s0 + $0x152] sm:$0xff] }
 0x33b   :  { %9017 = vmatmul.msk.f32.gmra.mxu0 %vm198_vm1, %v2330_v9 }
 0x33c   :  { %9088 = vmatmul.msk.f32.gmra.mxu1 %vm198_vm1, %v11940_v23  ;;  %9162 = vmatmul.msk.f32.gmra.mxu2 %vm198_vm1, %v12028_v17  ;;  %v12049_v23 = vld [vmem:[%s14976_s0 + $0x128] sm:$0xff] }
 0x33d   :  { %9240 = vmatmul.msk.f32.gmra.mxu3 %vm198_vm1, %v4125_v61 }
 0x33f   :  { %v3839_v57 = vpop.f32.mrf.mxu2 }
 0x340   :  { %v4033_v10 = vadd.f32 %v3839_v57, %v3435_v21  ;;  %v2655_v52 = vpop.f32.mrf.mxu0  ;;  %v4449_v63 = vpop.f32.mrf.mxu3  ;;  %v2840_v57 = vadd.f32 %v2652_v1, %v10389_v11  ;;  %v2334_v11 = vld [vmem:[%s14976_s0 + $0x136] sm:$0xff] }
 0x341   :  { %v3244_v19 = vpop.f32.mrf.mxu1 }
 0x342   :  { %v12051_v22 = vadd.f32 %v4437_v18, %v4033_v10  ;;  %v3436_v56 = vadd.f32 %v3244_v19, %v2838_v45  ;;  %v4128_v10 = vld [vmem:[%s14976_s0 + $0x15a] sm:$0xff] }
 0x343   :  { %9018 = vmatmul.msk.f32.gmra.mxu0 %vm198_vm1, %v2331_v26 }
 0x344   :  { %9089 = vmatmul.msk.f32.gmra.mxu1 %vm198_vm1, %v11964_v4  ;;  %9163 = vmatmul.msk.f32.gmra.mxu2 %vm198_vm1, %v12049_v23  ;;  %v12069_v4 = vld [vmem:[%s14976_s0 + $0x130] sm:$0xff] }
 0x345   :  { %9241 = vmatmul.msk.f32.gmra.mxu3 %vm198_vm1, %v4126_v51 }
 0x347   :  { %v3842_v59 = vpop.f32.mrf.mxu2 }
 0x348   :  { %v4034_v18 = vadd.f32 %v3842_v59, %v3436_v56  ;;  %v2658_v46 = vpop.f32.mrf.mxu0  ;;  %v4452_v14 = vpop.f32.mrf.mxu3  ;;  %v2841_v59 = vadd.f32 %v2655_v52, %v10414_v31  ;;  %v2335_v31 = vld [vmem:[%s14976_s0 + $0x13e] sm:$0xff] }
 0x349   :  { %v3247_v60 = vpop.f32.mrf.mxu1 }
 0x34a   :  { %v12071_v3 = vadd.f32 %v4440_v15, %v4034_v18  ;;  %v3437_v9 = vadd.f32 %v3247_v60, %v2839_v29  ;;  %v4129_v18 = vld [vmem:[%s14976_s0 + $0x162] sm:$0xff] }
 0x34b   :  { %9019 = vmatmul.msk.f32.gmra.mxu0 %vm198_vm1, %v2332_v42 }
 0x34c   :  { %9090 = vmatmul.msk.f32.gmra.mxu1 %vm198_vm1, %v11986_v24  ;;  %9164 = vmatmul.msk.f32.gmra.mxu2 %vm198_vm1, %v12069_v4  ;;  %v12089_v24 = vld [vmem:[%s14976_s0 + $0x138] sm:$0xff] }
 0x34d   :  { %9242 = vmatmul.msk.f32.gmra.mxu3 %vm198_vm1, %v4127_v20 }
 0x34f   :  { %v3845_v7 = vpop.f32.mrf.mxu2 }
 0x350   :  { %v4035_v15 = vadd.f32 %v3845_v7, %v3437_v9  ;;  %v2661_v37 = vpop.f32.mrf.mxu0  ;;  %v4455_v61 = vpop.f32.mrf.mxu3  ;;  %v2842_v7 = vadd.f32 %v2658_v46, %v10439_v48  ;;  %v2336_v48 = vld [vmem:[%s14976_s0 + $0x146] sm:$0xff] }
 0x351   :  { %v3250_v49 = vpop.f32.mrf.mxu1 }
 0x352   :  { %v12091_v21 = vadd.f32 %v4443_v44, %v4035_v15  ;;  %v3438_v26 = vadd.f32 %v3250_v49, %v2840_v57  ;;  %v4130_v15 = vld [vmem:[%s14976_s0 + $0x16a] sm:$0xff] }
 0x353   :  { %9020 = vmatmul.msk.f32.gmra.mxu0 %vm198_vm1, %v2333_v58 }
 0x354   :  { %9091 = vmatmul.msk.f32.gmra.mxu1 %vm198_vm1, %v12007_v8  ;;  %9165 = vmatmul.msk.f32.gmra.mxu2 %vm198_vm1, %v12089_v24  ;;  %v12109_v8 = vld [vmem:[%s14976_s0 + $0x140] sm:$0xff] }
 0x355   :  { %9243 = vmatmul.msk.f32.gmra.mxu3 %vm198_vm1, %v4128_v10 }
 0x357   :  { %v3848_v19 = vpop.f32.mrf.mxu2 }
 0x358   :  { %v4036_v44 = vadd.f32 %v3848_v19, %v3438_v26  ;;  %v2664_v45 = vpop.f32.mrf.mxu0  ;;  %v4458_v51 = vpop.f32.mrf.mxu3  ;;  %v2843_v19 = vadd.f32 %v2661_v37, %v10464_v38  ;;  %v2337_v38 = vld [vmem:[%s14976_s0 + $0x14e] sm:$0xff] }
 0x359   :  { %v3253_v1 = vpop.f32.mrf.mxu1 }
 0x35a   :  { %v12111_v56 = vadd.f32 %v4446_v55, %v4036_v44  ;;  %v3439_v42 = vadd.f32 %v3253_v1, %v2841_v59  ;;  %v4131_v44 = vld [vmem:[%s14976_s0 + $0x172] sm:$0xff] }
 0x35b   :  { %9021 = vmatmul.msk.f32.gmra.mxu0 %vm198_vm1, %v2334_v11 }
 0x35c   :  { %9092 = vmatmul.msk.f32.gmra.mxu1 %vm198_vm1, %v12028_v17  ;;  %9166 = vmatmul.msk.f32.gmra.mxu2 %vm198_vm1, %v12109_v8  ;;  %v12129_v17 = vld [vmem:[%s14976_s0 + $0x148] sm:$0xff] }
 0x35d   :  { %9244 = vmatmul.msk.f32.gmra.mxu3 %vm198_vm1, %v4129_v18 }
 0x35f   :  { %v3851_v60 = vpop.f32.mrf.mxu2 }
 0x360   :  { %v4037_v55 = vadd.f32 %v3851_v60, %v3439_v42  ;;  %v2667_v29 = vpop.f32.mrf.mxu0  ;;  %v4461_v20 = vpop.f32.mrf.mxu3  ;;  %v2844_v60 = vadd.f32 %v2664_v45, %v10489_v0  ;;  %v2338_v0 = vld [vmem:[%s14976_s0 + $0x156] sm:$0xff] }
 0x361   :  { %v3256_v52 = vpop.f32.mrf.mxu1 }
 0x362   :  { %v12131_v9 = vadd.f32 %v4449_v63, %v4037_v55  ;;  %v3440_v58 = vadd.f32 %v3256_v52, %v2842_v7  ;;  %v4132_v55 = vld [vmem:[%s14976_s0 + $0x17a] sm:$0xff] }
 0x363   :  { %9022 = vmatmul.msk.f32.gmra.mxu0 %vm198_vm1, %v2335_v31 }
 0x364   :  { %9093 = vmatmul.msk.f32.gmra.mxu1 %vm198_vm1, %v12049_v23  ;;  %9167 = vmatmul.msk.f32.gmra.mxu2 %vm198_vm1, %v12129_v17  ;;  %v12149_v23 = vld [vmem:[%s14976_s0 + $0x150] sm:$0xff] }
 0x365   :  { %9245 = vmatmul.msk.f32.gmra.mxu3 %vm198_vm1, %v4130_v15 }
 0x367   :  { %v3854_v49 = vpop.f32.mrf.mxu2 }
 0x368   :  { %v4038_v63 = vadd.f32 %v3854_v49, %v3440_v58  ;;  %v2670_v57 = vpop.f32.mrf.mxu0  ;;  %v4464_v10 = vpop.f32.mrf.mxu3  ;;  %v2845_v49 = vadd.f32 %v2667_v29, %v10514_v40  ;;  %v2339_v40 = vld [vmem:[%s14976_s0 + $0x15e] sm:$0xff] }
 0x369   :  { %v3259_v46 = vpop.f32.mrf.mxu1 }
 0x36a   :  { %v12151_v26 = vadd.f32 %v4452_v14, %v4038_v63  ;;  %v3441_v11 = vadd.f32 %v3259_v46, %v2843_v19  ;;  %v4133_v63 = vld [vmem:[%s14976_s0 + $0x182] sm:$0xff] }
 0x36b   :  { %9023 = vmatmul.msk.f32.gmra.mxu0 %vm198_vm1, %v2336_v48 }
 0x36c   :  { %9094 = vmatmul.msk.f32.gmra.mxu1 %vm198_vm1, %v12069_v4  ;;  %9168 = vmatmul.msk.f32.gmra.mxu2 %vm198_vm1, %v12149_v23  ;;  %v12169_v4 = vld [vmem:[%s14976_s0 + $0x158] sm:$0xff] }
 0x36d   :  { %9246 = vmatmul.msk.f32.gmra.mxu3 %vm198_vm1, %v4131_v44 }
 0x36f   :  { %v3857_v1 = vpop.f32.mrf.mxu2 }
 0x370   :  { %v4039_v14 = vadd.f32 %v3857_v1, %v3441_v11  ;;  %v2673_v59 = vpop.f32.mrf.mxu0  ;;  %v4467_v18 = vpop.f32.mrf.mxu3  ;;  %v2846_v1 = vadd.f32 %v2670_v57, %v10539_v50  ;;  %v2340_v50 = vld [vmem:[%s14976_s0 + $0x166] sm:$0xff] }
 0x371   :  { %v3262_v37 = vpop.f32.mrf.mxu1 }
 0x372   :  { %v12171_v42 = vadd.f32 %v4455_v61, %v4039_v14  ;;  %v3442_v31 = vadd.f32 %v3262_v37, %v2844_v60  ;;  %v4134_v14 = vld [vmem:[%s14976_s0 + $0x18a] sm:$0xff] }
 0x373   :  { %9024 = vmatmul.msk.f32.gmra.mxu0 %vm198_vm1, %v2337_v38 }
 0x374   :  { %9095 = vmatmul.msk.f32.gmra.mxu1 %vm198_vm1, %v12089_v24  ;;  %9169 = vmatmul.msk.f32.gmra.mxu2 %vm198_vm1, %v12169_v4  ;;  %v12189_v24 = vld [vmem:[%s14976_s0 + $0x160] sm:$0xff] }
 0x375   :  { %9247 = vmatmul.msk.f32.gmra.mxu3 %vm198_vm1, %v4132_v55 }
 0x377   :  { %v3860_v52 = vpop.f32.mrf.mxu2 }
 0x378   :  { %v4040_v61 = vadd.f32 %v3860_v52, %v3442_v31  ;;  %v2676_v7 = vpop.f32.mrf.mxu0  ;;  %v4470_v15 = vpop.f32.mrf.mxu3  ;;  %v2847_v52 = vadd.f32 %v2673_v59, %v10564_v28  ;;  %v2341_v28 = vld [vmem:[%s14976_s0 + $0x16e] sm:$0xff] }
 0x379   :  { %v3265_v45 = vpop.f32.mrf.mxu1 }
 0x37a   :  { %v12191_v58 = vadd.f32 %v4458_v51, %v4040_v61  ;;  %v3443_v48 = vadd.f32 %v3265_v45, %v2845_v49  ;;  %v4135_v61 = vld [vmem:[%s14976_s0 + $0x192] sm:$0xff] }
 0x37b   :  { %9025 = vmatmul.msk.f32.gmra.mxu0 %vm198_vm1, %v2338_v0 }
 0x37c   :  { %9096 = vmatmul.msk.f32.gmra.mxu1 %vm198_vm1, %v12109_v8  ;;  %9170 = vmatmul.msk.f32.gmra.mxu2 %vm198_vm1, %v12189_v24  ;;  %v12209_v8 = vld [vmem:[%s14976_s0 + $0x168] sm:$0xff] }
 0x37d   :  { %9248 = vmatmul.msk.f32.gmra.mxu3 %vm198_vm1, %v4133_v63 }
 0x37f   :  { %v3863_v46 = vpop.f32.mrf.mxu2 }
 0x380   :  { %v4041_v51 = vadd.f32 %v3863_v46, %v3443_v48  ;;  %v2679_v19 = vpop.f32.mrf.mxu0  ;;  %v4473_v44 = vpop.f32.mrf.mxu3  ;;  %v2848_v46 = vadd.f32 %v2676_v7, %v10589_v32  ;;  %v2342_v32 = vld [vmem:[%s14976_s0 + $0x176] sm:$0xff] }
 0x381   :  { %v3268_v29 = vpop.f32.mrf.mxu1 }
 0x382   :  { %v12211_v11 = vadd.f32 %v4461_v20, %v4041_v51  ;;  %v3444_v38 = vadd.f32 %v3268_v29, %v2846_v1  ;;  %v4136_v51 = vld [vmem:[%s14976_s0 + $0x19a] sm:$0xff] }
 0x383   :  { %9026 = vmatmul.msk.f32.gmra.mxu0 %vm198_vm1, %v2339_v40 }
 0x384   :  { %9097 = vmatmul.msk.f32.gmra.mxu1 %vm198_vm1, %v12129_v17  ;;  %9171 = vmatmul.msk.f32.gmra.mxu2 %vm198_vm1, %v12209_v8  ;;  %v12229_v17 = vld [vmem:[%s14976_s0 + $0x170] sm:$0xff] }
 0x385   :  { %9249 = vmatmul.msk.f32.gmra.mxu3 %vm198_vm1, %v4134_v14 }
 0x387   :  { %v3866_v37 = vpop.f32.mrf.mxu2 }
 0x388   :  { %v4042_v20 = vadd.f32 %v3866_v37, %v3444_v38  ;;  %v2682_v60 = vpop.f32.mrf.mxu0  ;;  %v4476_v55 = vpop.f32.mrf.mxu3  ;;  %v2849_v37 = vadd.f32 %v2679_v19, %v10614_v36  ;;  %v2343_v36 = vld [vmem:[%s14976_s0 + $0x17e] sm:$0xff] }
 0x389   :  { %v3271_v57 = vpop.f32.mrf.mxu1 }
 0x38a   :  { %v12231_v31 = vadd.f32 %v4464_v10, %v4042_v20  ;;  %v3445_v0 = vadd.f32 %v3271_v57, %v2847_v52  ;;  %v4137_v20 = vld [vmem:[%s14976_s0 + $0x1a2] sm:$0xff] }
 0x38b   :  { %9027 = vmatmul.msk.f32.gmra.mxu0 %vm198_vm1, %v2340_v50 }
 0x38c   :  { %9098 = vmatmul.msk.f32.gmra.mxu1 %vm198_vm1, %v12149_v23  ;;  %9172 = vmatmul.msk.f32.gmra.mxu2 %vm198_vm1, %v12229_v17  ;;  %v12249_v23 = vld [vmem:[%s14976_s0 + $0x178] sm:$0xff] }
 0x38d   :  { %9250 = vmatmul.msk.f32.gmra.mxu3 %vm198_vm1, %v4135_v61 }
 0x38f   :  { %v3869_v45 = vpop.f32.mrf.mxu2 }
 0x390   :  { %v4043_v10 = vadd.f32 %v3869_v45, %v3445_v0  ;;  %v2685_v49 = vpop.f32.mrf.mxu0  ;;  %v4479_v63 = vpop.f32.mrf.mxu3  ;;  %v2850_v45 = vadd.f32 %v2682_v60, %v10639_v16  ;;  %v2344_v16 = vld [vmem:[%s14976_s0 + $0x186] sm:$0xff] }
 0x391   :  { %v3274_v59 = vpop.f32.mrf.mxu1 }
 0x392   :  { %v12251_v48 = vadd.f32 %v4467_v18, %v4043_v10  ;;  %v3446_v40 = vadd.f32 %v3274_v59, %v2848_v46  ;;  %v4138_v10 = vld [vmem:[%s14976_s0 + $0x1aa] sm:$0xff] }
 0x393   :  { %9028 = vmatmul.msk.f32.gmra.mxu0 %vm198_vm1, %v2341_v28 }
 0x394   :  { %9099 = vmatmul.msk.f32.gmra.mxu1 %vm198_vm1, %v12169_v4  ;;  %9173 = vmatmul.msk.f32.gmra.mxu2 %vm198_vm1, %v12249_v23  ;;  %v12269_v4 = vld [vmem:[%s14976_s0 + $0x180] sm:$0xff] }
 0x395   :  { %9251 = vmatmul.msk.f32.gmra.mxu3 %vm198_vm1, %v4136_v51 }
 0x397   :  { %v3872_v29 = vpop.f32.mrf.mxu2 }
 0x398   :  { %v4044_v18 = vadd.f32 %v3872_v29, %v3446_v40  ;;  %v2688_v1 = vpop.f32.mrf.mxu0  ;;  %v4482_v14 = vpop.f32.mrf.mxu3  ;;  %v2851_v29 = vadd.f32 %v2685_v49, %v10664_v2  ;;  %v2345_v2 = vld [vmem:[%s14976_s0 + $0x18e] sm:$0xff] }
 0x399   :  { %v3277_v7 = vpop.f32.mrf.mxu1 }
 0x39a   :  { %v12271_v38 = vadd.f32 %v4470_v15, %v4044_v18  ;;  %v3447_v50 = vadd.f32 %v3277_v7, %v2849_v37  ;;  %v4139_v18 = vld [vmem:[%s14976_s0 + $0x1b2] sm:$0xff] }
 0x39b   :  { %9029 = vmatmul.msk.f32.gmra.mxu0 %vm198_vm1, %v2342_v32 }
 0x39c   :  { %9100 = vmatmul.msk.f32.gmra.mxu1 %vm198_vm1, %v12189_v24  ;;  %9174 = vmatmul.msk.f32.gmra.mxu2 %vm198_vm1, %v12269_v4  ;;  %v12289_v24 = vld [vmem:[%s14976_s0 + $0x188] sm:$0xff] }
 0x39d   :  { %9252 = vmatmul.msk.f32.gmra.mxu3 %vm198_vm1, %v4137_v20 }
 0x39f   :  { %v3875_v57 = vpop.f32.mrf.mxu2 }
 0x3a0   :  { %v4045_v15 = vadd.f32 %v3875_v57, %v3447_v50  ;;  %v2691_v52 = vpop.f32.mrf.mxu0  ;;  %v4485_v61 = vpop.f32.mrf.mxu3  ;;  %v2852_v57 = vadd.f32 %v2688_v1, %v10689_v47  ;;  %v2346_v47 = vld [vmem:[%s14976_s0 + $0x196] sm:$0xff] }
 0x3a1   :  { %v3280_v19 = vpop.f32.mrf.mxu1 }
 0x3a2   :  { %v12291_v0 = vadd.f32 %v4473_v44, %v4045_v15  ;;  %v3448_v28 = vadd.f32 %v3280_v19, %v2850_v45  ;;  %v4140_v15 = vld [vmem:[%s14976_s0 + $0x1ba] sm:$0xff] }
 0x3a3   :  { %9030 = vmatmul.msk.f32.gmra.mxu0 %vm198_vm1, %v2343_v36 }
 0x3a4   :  { %9101 = vmatmul.msk.f32.gmra.mxu1 %vm198_vm1, %v12209_v8  ;;  %9175 = vmatmul.msk.f32.gmra.mxu2 %vm198_vm1, %v12289_v24  ;;  %v12309_v8 = vld [vmem:[%s14976_s0 + $0x190] sm:$0xff] }
 0x3a5   :  { %9253 = vmatmul.msk.f32.gmra.mxu3 %vm198_vm1, %v4138_v10 }
 0x3a7   :  { %v3878_v59 = vpop.f32.mrf.mxu2 }
 0x3a8   :  { %v4046_v44 = vadd.f32 %v3878_v59, %v3448_v28  ;;  %v2694_v46 = vpop.f32.mrf.mxu0  ;;  %v4488_v51 = vpop.f32.mrf.mxu3  ;;  %v15043_v59 = vld [vmem:[#allocation8_spill] sm:$0xff] }
 0x3a9   :  { %v3283_v60 = vpop.f32.mrf.mxu1 }
 0x3aa   :  { %v12311_v40 = vadd.f32 %v4476_v55, %v4046_v44  ;;  %v3449_v32 = vadd.f32 %v3283_v60, %v2851_v29  ;;  %v2853_v44 = vadd.f32 %v2691_v52, %v15043_v59  ;;  %v2347_v52 = vld [vmem:[%s14976_s0 + $0x19e] sm:$0xff] }
 0x3ab   :  { %9031 = vmatmul.msk.f32.gmra.mxu0 %vm198_vm1, %v2344_v16  ;;  %v4141_v16 = vld [vmem:[%s14976_s0 + $0x1c2] sm:$0xff] }
 0x3ac   :  { %9102 = vmatmul.msk.f32.gmra.mxu1 %vm198_vm1, %v12229_v17  ;;  %9176 = vmatmul.msk.f32.gmra.mxu2 %vm198_vm1, %v12309_v8  ;;  %v12329_v17 = vld [vmem:[%s14976_s0 + $0x198] sm:$0xff]  ;;  %v15045_v59 = vld [vmem:[#allocation10_spill] sm:$0xff] }
 0x3ad   :  { %9254 = vmatmul.msk.f32.gmra.mxu3 %vm198_vm1, %v4139_v18 }
 0x3af   :  { %v3881_v7 = vpop.f32.mrf.mxu2 }
 0x3b0   :  { %v4047_v55 = vadd.f32 %v3881_v7, %v3449_v32  ;;  %v2697_v37 = vpop.f32.mrf.mxu0  ;;  %v4491_v20 = vpop.f32.mrf.mxu3 }
 0x3b1   :  { %v3286_v49 = vpop.f32.mrf.mxu1 }
 0x3b2   :  { %v12331_v50 = vadd.f32 %v4479_v63, %v4047_v55  ;;  %v3450_v36 = vadd.f32 %v3286_v49, %v2852_v57  ;;  %v4142_v57 = vld [vmem:[%s14976_s0 + $0x1ca] sm:$0xff] }
 0x3b3   :  { %9032 = vmatmul.msk.f32.gmra.mxu0 %vm198_vm1, %v2345_v2  ;;  %v15044_v2 = vld [vmem:[#allocation9_spill] sm:$0xff] }
 0x3b4   :  { %9103 = vmatmul.msk.f32.gmra.mxu1 %vm198_vm1, %v12249_v23  ;;  %9177 = vmatmul.msk.f32.gmra.mxu2 %vm198_vm1, %v12329_v17  ;;  %v12349_v23 = vld [vmem:[%s14976_s0 + $0x1a0] sm:$0xff]  ;;  %v2854_v49 = vadd.f32 %v2694_v46, %v15044_v2 }
 0x3b5   :  { %9255 = vmatmul.msk.f32.gmra.mxu3 %vm198_vm1, %v4140_v15  ;;  %v2348_v46 = vld [vmem:[%s14976_s0 + $0x1a6] sm:$0xff] }
 0x3b7   :  { %v3884_v19 = vpop.f32.mrf.mxu2 }
 0x3b8   :  { %v4048_v63 = vadd.f32 %v3884_v19, %v3450_v36  ;;  %v2700_v45 = vpop.f32.mrf.mxu0  ;;  %v4494_v10 = vpop.f32.mrf.mxu3 }
 0x3b9   :  { %v3289_v1 = vpop.f32.mrf.mxu1 }
 0x3ba   :  { %v12351_v28 = vadd.f32 %v4482_v14, %v4048_v63  ;;  %v3451_v60 = vadd.f32 %v3289_v1, %v2853_v44  ;;  %v2855_v44 = vadd.f32 %v2697_v37, %v15045_v59  ;;  %v2349_v37 = vld [vmem:[%s14976_s0 + $0x1ae] sm:$0xff] }
 0x3bb   :  { %9033 = vmatmul.msk.f32.gmra.mxu0 %vm198_vm1, %v2346_v47 }
 0x3bc   :  { %9104 = vmatmul.msk.f32.gmra.mxu1 %vm198_vm1, %v12269_v4  ;;  %9178 = vmatmul.msk.f32.gmra.mxu2 %vm198_vm1, %v12349_v23  ;;  %v12369_v4 = vld [vmem:[%s14976_s0 + $0x1a8] sm:$0xff] }
 0x3bd   :  { %9256 = vmatmul.msk.f32.gmra.mxu3 %vm198_vm1, %v4141_v16  ;;  %v4143_v16 = vld [vmem:[%s14976_s0 + $0x1d2] sm:$0xff] }
 0x3bf   :  { %v3887_v29 = vpop.f32.mrf.mxu2 }
 0x3c0   :  { %v4049_v14 = vadd.f32 %v3887_v29, %v3451_v60  ;;  %v2703_v18 = vpop.f32.mrf.mxu0  ;;  %v4497_v7 = vpop.f32.mrf.mxu3 }
 0x3c1   :  { %v3292_v32 = vpop.f32.mrf.mxu1 }
 0x3c2   :  { %v12371_v55 = vadd.f32 %v4485_v61, %v4049_v14  ;;  %v3452_v15 = vadd.f32 %v3292_v32, %v2854_v49  ;;  %v15046_v49 = vld [vmem:[#allocation11_spill] sm:$0xff] }
 0x3c3   :  { %9034 = vmatmul.msk.f32.gmra.mxu0 %vm198_vm1, %v2347_v52 }
 0x3c4   :  { %9105 = vmatmul.msk.f32.gmra.mxu1 %vm198_vm1, %v12289_v24  ;;  %9179 = vmatmul.msk.f32.gmra.mxu2 %vm198_vm1, %v12369_v4  ;;  %v12389_v24 = vld [vmem:[%s14976_s0 + $0x1b0] sm:$0xff] }
 0x3c5   :  { %9257 = vmatmul.msk.f32.gmra.mxu3 %vm198_vm1, %v4142_v57  ;;  %v2856_v57 = vadd.f32 %v2700_v45, %v15046_v49  ;;  %v2350_v45 = vld [vmem:[%s14976_s0 + $0x1b6] sm:$0xff] }
 0x3c7   :  { %v3890_v36 = vpop.f32.mrf.mxu2 }
 0x3c8   :  { %v4050_v61 = vadd.f32 %v3890_v36, %v3452_v15  ;;  %v2706_v19 = vpop.f32.mrf.mxu0  ;;  %v4500_v47 = vpop.f32.mrf.mxu3  ;;  %v4144_v15 = vld [vmem:[%s14976_s0 + $0x1da] sm:$0xff] }
 0x3c9   :  { %v3295_v63 = vpop.f32.mrf.mxu1 }
 0x3ca   :  { %v12391_v1 = vadd.f32 %v4488_v51, %v4050_v61  ;;  %v3453_v60 = vadd.f32 %v3295_v63, %v2855_v44  ;;  %v15047_v44 = vld [vmem:[#allocation12_spill] sm:$0xff] }
 0x3cb   :  { %9035 = vmatmul.msk.f32.gmra.mxu0 %vm198_vm1, %v2348_v46 }
 0x3cc   :  { %9106 = vmatmul.msk.f32.gmra.mxu1 %vm198_vm1, %v12309_v8  ;;  %9180 = vmatmul.msk.f32.gmra.mxu2 %vm198_vm1, %v12389_v24  ;;  %v12409_v8 = vld [vmem:[%s14976_s0 + $0x1b8] sm:$0xff] }
 0x3cd   :  { %9258 = vmatmul.msk.f32.gmra.mxu3 %vm198_vm1, %v4143_v16  ;;  %v2857_v16 = vadd.f32 %v2703_v18, %v15047_v44  ;;  %v2351_v18 = vld [vmem:[%s14976_s0 + $0x1be] sm:$0xff] }
 0x3cf   :  { %v3893_v29 = vpop.f32.mrf.mxu2 }
 0x3d0   :  { %v4051_v51 = vadd.f32 %v3893_v29, %v3453_v60  ;;  %v2709_v14 = vpop.f32.mrf.mxu0  ;;  %v4503_v2 = vpop.f32.mrf.mxu3  ;;  %v4145_v60 = vld [vmem:[%s14976_s0 + $0x1e2] sm:$0xff] }
 0x3d1   :  { %v3298_v52 = vpop.f32.mrf.mxu1 }
 0x3d2   :  { %v12411_v32 = vadd.f32 %v4491_v20, %v4051_v51  ;;  %v3454_v36 = vadd.f32 %v3298_v52, %v2856_v57 }
 0x3d3   :  { %9036 = vmatmul.msk.f32.gmra.mxu0 %vm198_vm1, %v2349_v37 }
 0x3d4   :  { %9107 = vmatmul.msk.f32.gmra.mxu1 %vm198_vm1, %v12329_v17  ;;  %9181 = vmatmul.msk.f32.gmra.mxu2 %vm198_vm1, %v12409_v8  ;;  %v12429_v17 = vld [vmem:[%s14976_s0 + $0x1c0] sm:$0xff] }
 0x3d5   :  { %9259 = vmatmul.msk.f32.gmra.mxu3 %vm198_vm1, %v4144_v15  ;;  %v15048_v15 = vld [vmem:[#allocation13_spill] sm:$0xff] }
 0x3d7   :  { %v3896_v20 = vpop.f32.mrf.mxu2 }
 0x3d8   :  { %v4052_v61 = vadd.f32 %v3896_v20, %v3454_v36  ;;  %v2712_v46 = vpop.f32.mrf.mxu0  ;;  %v4506_v29 = vpop.f32.mrf.mxu3  ;;  %v2858_v36 = vadd.f32 %v2706_v19, %v15048_v15  ;;  %v4146_v20 = vld [vmem:[%s14976_s0 + $0x1ea] sm:$0xff] }
 0x3d9   :  { %v3301_v63 = vpop.f32.mrf.mxu1  ;;  %v2352_v19 = vld [vmem:[%s14976_s0 + $0x1c6] sm:$0xff] }
 0x3da   :  { %v12431_v59 = vadd.f32 %v4494_v10, %v4052_v61  ;;  %v3455_v51 = vadd.f32 %v3301_v63, %v2857_v16 }
 0x3db   :  { %9037 = vmatmul.msk.f32.gmra.mxu0 %vm198_vm1, %v2350_v45 }
 0x3dc   :  { %9108 = vmatmul.msk.f32.gmra.mxu1 %vm198_vm1, %v12349_v23  ;;  %9182 = vmatmul.msk.f32.gmra.mxu2 %vm198_vm1, %v12429_v17  ;;  %v12449_v23 = vld [vmem:[%s14976_s0 + $0x1c8] sm:$0xff] }
 0x3dd   :  { %9260 = vmatmul.msk.f32.gmra.mxu3 %vm198_vm1, %v4145_v60 }
 0x3df   :  { %v3899_v10 = vpop.f32.mrf.mxu2 }
 0x3e0   :  { %v4053_v37 = vadd.f32 %v3899_v10, %v3455_v51  ;;  %v2715_v52 = vpop.f32.mrf.mxu0  ;;  %v15049_v51 = vld [vmem:[#allocation14_spill] sm:$0xff] }
 0x3e1   :  { %v3304_v49 = vpop.f32.mrf.mxu1  ;;  %v2859_v10 = vadd.f32 %v2709_v14, %v15049_v51  ;;  %v2353_v14 = vld [vmem:[%s14976_s0 + $0x1ce] sm:$0xff] }
 0x3e2   :  { %v12451_v57 = vadd.f32 %v4497_v7, %v4053_v37  ;;  %v3456_v61 = vadd.f32 %v3304_v49, %v2858_v36  ;;  %v4509_v7 = vpop.f32.mrf.mxu3  ;;  %v4147_v37 = vld [vmem:[%s14976_s0 + $0x1f2] sm:$0xff] }
 0x3e3   :  { %9038 = vmatmul.msk.f32.gmra.mxu0 %vm198_vm1, %v2351_v18 }
 0x3e4   :  { %9109 = vmatmul.msk.f32.gmra.mxu1 %vm198_vm1, %v12369_v4  ;;  %9183 = vmatmul.msk.f32.gmra.mxu2 %vm198_vm1, %v12449_v23  ;;  %v12469_v4 = vld [vmem:[%s14976_s0 + $0x1d0] sm:$0xff] }
 0x3e5   :  { %9261 = vmatmul.msk.f32.gmra.mxu3 %vm198_vm1, %v4146_v20 }
 0x3e7   :  { %v3902_v45 = vpop.f32.mrf.mxu2 }
 0x3e8   :  { %v4054_v63 = vadd.f32 %v3902_v45, %v3456_v61  ;;  %v2718_v44 = vpop.f32.mrf.mxu0  ;;  %v15050_v45 = vld [vmem:[#allocation15_spill] sm:$0xff] }
 0x3e9   :  { %v3307_v16 = vpop.f32.mrf.mxu1 }
 0x3ea   :  { %v12471_v60 = vadd.f32 %v4500_v47, %v4054_v63  ;;  %v3457_v18 = vadd.f32 %v3307_v16, %v2859_v10  ;;  %v4512_v20 = vpop.f32.mrf.mxu3  ;;  %v2860_v63 = vadd.f32 %v2712_v46, %v15050_v45  ;;  %v2354_v46 = vld [vmem:[%s14976_s0 + $0x1d6] sm:$0xff] }
 0x3eb   :  { %9039 = vmatmul.msk.f32.gmra.mxu0 %vm198_vm1, %v2352_v19  ;;  %v4148_v19 = vld [vmem:[%s14976_s0 + $0x1fa] sm:$0xff] }
 0x3ec   :  { %9110 = vmatmul.msk.f32.gmra.mxu1 %vm198_vm1, %v12389_v24  ;;  %9184 = vmatmul.msk.f32.gmra.mxu2 %vm198_vm1, %v12469_v4  ;;  %v12489_v24 = vld [vmem:[%s14976_s0 + $0x1d8] sm:$0xff] }
 0x3ed   :  { %9262 = vmatmul.msk.f32.gmra.mxu3 %vm198_vm1, %v4147_v37 }
 0x3ef   :  { %v3905_v49 = vpop.f32.mrf.mxu2 }
 0x3f0   :  { %v4055_v47 = vadd.f32 %v3905_v49, %v3457_v18  ;;  %v2721_v15 = vpop.f32.mrf.mxu0 }
 0x3f1   :  { %v3310_v36 = vpop.f32.mrf.mxu1 }
 0x3f2   :  { %v12491_v61 = vadd.f32 %v4503_v2, %v4055_v47  ;;  %v3458_v16 = vadd.f32 %v3310_v36, %v2860_v63  ;;  %v4515_v49 = vpop.f32.mrf.mxu3  ;;  %v15051_v47 = vld [vmem:[#allocation16_spill] sm:$0xff]  ;;  %v4149_v36 = vld [vmem:[%s14976_s0 + $0x202] sm:$0xff] }
 0x3f3   :  { %9040 = vmatmul.msk.f32.gmra.mxu0 %vm198_vm1, %v2353_v14  ;;  %v2861_v14 = vadd.f32 %v2715_v52, %v15051_v47  ;;  %v2355_v52 = vld [vmem:[%s14976_s0 + $0x1de] sm:$0xff] }
 0x3f4   :  { %9111 = vmatmul.msk.f32.gmra.mxu1 %vm198_vm1, %v12409_v8  ;;  %9185 = vmatmul.msk.f32.gmra.mxu2 %vm198_vm1, %v12489_v24  ;;  %v12509_v8 = vld [vmem:[%s14976_s0 + $0x1e0] sm:$0xff] }
 0x3f5   :  { %9263 = vmatmul.msk.f32.gmra.mxu3 %vm198_vm1, %v4148_v19 }
 0x3f7   :  { %v3908_v51 = vpop.f32.mrf.mxu2 }
 0x3f8   :  { %v4056_v2 = vadd.f32 %v3908_v51, %v3458_v16  ;;  %v2724_v10 = vpop.f32.mrf.mxu0 }
 0x3f9   :  { %v3313_v37 = vpop.f32.mrf.mxu1 }
 0x3fa   :  { %v12511_v18 = vadd.f32 %v4506_v29, %v4056_v2  ;;  %v3459_v45 = vadd.f32 %v3313_v37, %v2861_v14  ;;  %v15052_v2 = vld [vmem:[#allocation17_spill] sm:$0xff]  ;;  %v4150_v37 = vld [vmem:[%s14976_s0 + $0x20a] sm:$0xff]  ;;  %v4518_v47 = vpop.f32.mrf.mxu3 }
 0x3fb   :  { %9041 = vmatmul.msk.f32.gmra.mxu0 %vm198_vm1, %v2354_v46  ;;  %v2862_v46 = vadd.f32 %v2718_v44, %v15052_v2  ;;  %v2356_v44 = vld [vmem:[%s14976_s0 + $0x1e6] sm:$0xff]  ;;  %v4151_v2 = vld [vmem:[%s14976_s0 + $0x212] sm:$0xff] }
 0x3fc   :  { %9112 = vmatmul.msk.f32.gmra.mxu1 %vm198_vm1, %v12429_v17  ;;  %9186 = vmatmul.msk.f32.gmra.mxu2 %vm198_vm1, %v12509_v8  ;;  %v12529_v17 = vld [vmem:[%s14976_s0 + $0x1e8] sm:$0xff] }
 0x3fd   :  { %9264 = vmatmul.msk.f32.gmra.mxu3 %vm198_vm1, %v4149_v36 }
 0x3ff   :  { %v3911_v29 = vpop.f32.mrf.mxu2 }
 0x400   :  { %v4057_v63 = vadd.f32 %v3911_v29, %v3459_v45  ;;  %v2727_v19 = vpop.f32.mrf.mxu0 }
 0x401   :  { %v3316_v16 = vpop.f32.mrf.mxu1 }
 0x402   :  { %v12531_v51 = vadd.f32 %v4509_v7, %v4057_v63  ;;  %v3460_v14 = vadd.f32 %v3316_v16, %v2862_v46 }
 0x403   :  { %9042 = vmatmul.msk.f32.gmra.mxu0 %vm198_vm1, %v2355_v52  ;;  %v15053_v52 = vld [vmem:[#allocation18_spill] sm:$0xff] }
 0x404   :  { %9113 = vmatmul.msk.f32.gmra.mxu1 %vm198_vm1, %v12449_v23  ;;  %9187 = vmatmul.msk.f32.gmra.mxu2 %vm198_vm1, %v12529_v17  ;;  %v12549_v23 = vld [vmem:[%s14976_s0 + $0x1f0] sm:$0xff]  ;;  %v2863_v16 = vadd.f32 %v2721_v15, %v15053_v52 }
 0x405   :  { %9265 = vmatmul.msk.f32.gmra.mxu3 %vm198_vm1, %v4150_v37  ;;  %v2357_v15 = vld [vmem:[%s14976_s0 + $0x1ee] sm:$0xff] }
 0x407   :  { %v3914_v7 = vpop.f32.mrf.mxu2 }
 0x408   :  { %v4058_v36 = vadd.f32 %v3914_v7, %v3460_v14  ;;  %v2730_v45 = vpop.f32.mrf.mxu0 }
 0x409   :  { %v3319_v29 = vpop.f32.mrf.mxu1 }
 0x40a   :  { %v12551_v63 = vadd.f32 %v4512_v20, %v4058_v36  ;;  %v3461_v46 = vadd.f32 %v3319_v29, %v2863_v16  ;;  %v4521_v20 = vpop.f32.mrf.mxu3  ;;  %v15054_v29 = vld [vmem:[#allocation19_spill] sm:$0xff]  ;;  %v4152_v16 = vld [vmem:[%s14976_s0 + $0x21a] sm:$0xff] }
 0x40b   :  { %9043 = vmatmul.msk.f32.gmra.mxu0 %vm198_vm1, %v2356_v44  ;;  %v2864_v52 = vadd.f32 %v2724_v10, %v15054_v29  ;;  %v2358_v10 = vld [vmem:[%s14976_s0 + $0x1f6] sm:$0xff] }
 0x40c   :  { %9114 = vmatmul.msk.f32.gmra.mxu1 %vm198_vm1, %v12469_v4  ;;  %9188 = vmatmul.msk.f32.gmra.mxu2 %vm198_vm1, %v12549_v23  ;;  %v12569_v4 = vld [vmem:[%s14976_s0 + $0x1f8] sm:$0xff] }
 0x40d   :  { %9266 = vmatmul.msk.f32.gmra.mxu3 %vm198_vm1, %v4151_v2 }
 0x40f   :  { %v3917_v37 = vpop.f32.mrf.mxu2 }
 0x410   :  { %v4059_v14 = vadd.f32 %v3917_v37, %v3461_v46  ;;  %v2733_v7 = vpop.f32.mrf.mxu0 }
 0x411   :  { %v3322_v36 = vpop.f32.mrf.mxu1 }
 0x412   :  { %v12571_v44 = vadd.f32 %v4515_v49, %v4059_v14  ;;  %v3462_v2 = vadd.f32 %v3322_v36, %v2864_v52  ;;  %v4524_v36 = vpop.f32.mrf.mxu3  ;;  %v15055_v52 = vld [vmem:[#allocation20_spill] sm:$0xff] }
 0x413   :  { %9044 = vmatmul.msk.f32.gmra.mxu0 %vm198_vm1, %v2357_v15  ;;  %v12592_v15 = vld [vmem:[%s14976_s0 + $0x200] sm:$0xff] }
 0x414   :  { %9115 = vmatmul.msk.f32.gmra.mxu1 %vm198_vm1, %v12489_v24  ;;  %9189 = vmatmul.msk.f32.gmra.mxu2 %vm198_vm1, %v12569_v4  ;;  %v9281_v24 = vld [vmem:[%s14977_s1 + $0x20] sm:$0xf] }
 0x415   :  { %9267 = vmatmul.msk.f32.gmra.mxu3 %vm198_vm1, %v4152_v16  ;;  %9282 = vmatpush.msk.msrb.mxu0 %vm415_vm0, %v9281_v24  ;;  %v2865_v16 = vadd.f32 %v2727_v19, %v15055_v52  ;;  %v2359_v19 = vld [vmem:[%s14976_s0 + $0x1fe] sm:$0xff] }
 0x417   :  { %v3920_v46 = vpop.f32.mrf.mxu2 }
 0x418   :  { %v4060_v49 = vadd.f32 %v3920_v46, %v3462_v2  ;;  %v2736_v37 = vpop.f32.mrf.mxu0  ;;  %v4153_v2 = vld [vmem:[%s14976_s0 + $0x222] sm:$0xff] }
 0x419   :  { %v3325_v14 = vpop.f32.mrf.mxu1 }
 0x41a   :  { %v12595_v29 = vadd.f32 %v4518_v47, %v4060_v49  ;;  %v3463_v46 = vadd.f32 %v3325_v14, %v2865_v16  ;;  %v4527_v14 = vpop.f32.mrf.mxu3  ;;  %v15056_v16 = vld [vmem:[#allocation21_spill] sm:$0xff] }
 0x41b   :  { %9045 = vmatmul.msk.f32.gmra.mxu0 %vm198_vm1, %v2358_v10 }
 0x41c   :  { %9116 = vmatmul.msk.f32.gmra.mxu1 %vm198_vm1, %v12509_v8  ;;  %9190 = vmatmul.msk.f32.gmra.mxu2 %vm198_vm1, %v12592_v15  ;;  %v12613_v8 = vld [vmem:[%s14976_s0 + $0x208] sm:$0xff] }
 0x41d   :  { %9268 = vmatmul.msk.f32.gmra.mxu3 %vm198_vm1, %v4153_v2  ;;  %v2866_v2 = vadd.f32 %v2730_v45, %v15056_v16  ;;  %v2360_v45 = vld [vmem:[%s14976_s0 + $0x206] sm:$0xff] }
 0x41f   :  { %v3923_v24 = vpop.f32.mrf.mxu2 }
 0x420   :  { %v4061_v47 = vadd.f32 %v3923_v24, %v3463_v46  ;;  %v2739_v49 = vpop.f32.mrf.mxu0  ;;  %v4154_v46 = vld [vmem:[%s14976_s0 + $0x22a] sm:$0xff] }
 0x421   :  { %v3328_v10 = vpop.f32.mrf.mxu1 }
 0x422   :  { %v12615_v52 = vadd.f32 %v4521_v20, %v4061_v47  ;;  %v3464_v24 = vadd.f32 %v3328_v10, %v2866_v2  ;;  %v15057_v10 = vld [vmem:[#allocation22_spill] sm:$0xff] }
 0x423   :  { %9046 = vmatmul.msk.f32.gmra.mxu0 %vm198_vm1, %v2359_v19  ;;  %v2867_v2 = vadd.f32 %v2733_v7, %v15057_v10  ;;  %v2361_v7 = vld [vmem:[%s14976_s0 + $0x20e] sm:$0xff] }
 0x424   :  { %9117 = vmatmul.msk.f32.gmra.mxu1 %vm198_vm1, %v12529_v17  ;;  %9191 = vmatmul.msk.f32.gmra.mxu2 %vm198_vm1, %v12613_v8  ;;  %v12633_v17 = vld [vmem:[%s14976_s0 + $0x210] sm:$0xff] }
 0x425   :  { %9269 = vmatmul.msk.f32.gmra.mxu3 %vm198_vm1, %v4154_v46  ;;  %v4155_v46 = vld [vmem:[%s14976_s0 + $0x232] sm:$0xff] }
 0x427   :  { %v3926_v20 = vpop.f32.mrf.mxu2 }
 0x428   :  { %v4062_v47 = vadd.f32 %v3926_v20, %v3464_v24  ;;  %v2742_v25 = vpop.f32.mrf.mxu0  ;;  %v4530_v24 = vpop.f32.mrf.mxu3 }
 0x429   :  { %v3331_v19 = vpop.f32.mrf.mxu1 }
 0x42a   :  { %v12635_v16 = vadd.f32 %v4524_v36, %v4062_v47  ;;  %v3465_v20 = vadd.f32 %v3331_v19, %v2867_v2  ;;  %v15058_v19 = vld [vmem:[#allocation23_spill] sm:$0xff] }
 0x42b   :  { %9047 = vmatmul.msk.f32.gmra.mxu0 %vm198_vm1, %v2360_v45  ;;  %v2868_v2 = vadd.f32 %v2736_v37, %v15058_v19  ;;  %v2362_v37 = vld [vmem:[%s14976_s0 + $0x216] sm:$0xff] }
 0x42c   :  { %9118 = vmatmul.msk.f32.gmra.mxu1 %vm198_vm1, %v12549_v23  ;;  %9192 = vmatmul.msk.f32.gmra.mxu2 %vm198_vm1, %v12633_v17  ;;  %v12653_v23 = vld [vmem:[%s14976_s0 + $0x218] sm:$0xff] }
 0x42d   :  { %9270 = vmatmul.msk.f32.gmra.mxu3 %vm198_vm1, %v4155_v46  ;;  %v4156_v46 = vld [vmem:[%s14976_s0 + $0x23a] sm:$0xff] }
 0x42f   :  { %v3929_v36 = vpop.f32.mrf.mxu2 }
 0x430   :  { %v4063_v47 = vadd.f32 %v3929_v36, %v3465_v20  ;;  %v2745_v34 = vpop.f32.mrf.mxu0 }
 0x431   :  { %v3334_v45 = vpop.f32.mrf.mxu1 }
 0x432   :  { %v12655_v10 = vadd.f32 %v4527_v14, %v4063_v47  ;;  %v3466_v20 = vadd.f32 %v3334_v45, %v2868_v2  ;;  %v4533_v14 = vpop.f32.mrf.mxu3  ;;  %v15060_v45 = vld [vmem:[#allocation24_spill] sm:$0xff] }
 0x433   :  { %9048 = vmatmul.msk.f32.gmra.mxu0 %vm198_vm1, %v2361_v7  ;;  %v2869_v2 = vadd.f32 %v2739_v49, %v15060_v45  ;;  %v2363_v49 = vld [vmem:[%s14976_s0 + $0x21e] sm:$0xff] }
 0x434   :  { %9119 = vmatmul.msk.f32.gmra.mxu1 %vm198_vm1, %v12569_v4  ;;  %9193 = vmatmul.msk.f32.gmra.mxu2 %vm198_vm1, %v12653_v23  ;;  %v12673_v4 = vld [vmem:[%s14976_s0 + $0x220] sm:$0xff] }
 0x435   :  { %9271 = vmatmul.msk.f32.gmra.mxu3 %vm198_vm1, %v4156_v46  ;;  %v4157_v46 = vld [vmem:[%s14976_s0 + $0x242] sm:$0xff] }
 0x437   :  { %v3932_v36 = vpop.f32.mrf.mxu2 }
 0x438   :  { %v4064_v47 = vadd.f32 %v3932_v36, %v3466_v20  ;;  %v2748_v54 = vpop.f32.mrf.mxu0 }
 0x439   :  { %v3337_v7 = vpop.f32.mrf.mxu1 }
 0x43a   :  { %v12675_v19 = vadd.f32 %v4530_v24, %v4064_v47  ;;  %v3467_v20 = vadd.f32 %v3337_v7, %v2869_v2  ;;  %v4536_v45 = vpop.f32.mrf.mxu3  ;;  %v15061_v7 = vld [vmem:[#allocation25_spill] sm:$0xff] }
 0x43b   :  { %9049 = vmatmul.msk.f32.gmra.mxu0 %vm198_vm1, %v2362_v37  ;;  %v2870_v2 = vadd.f32 %v2742_v25, %v15061_v7  ;;  %v2364_v25 = vld [vmem:[%s14976_s0 + $0x226] sm:$0xff] }
 0x43c   :  { %15059 = vst [vmem:[#allocation8_spill] sm:$0xff] %v12675_v19  ;;  %9120 = vmatmul.msk.f32.gmra.mxu1 %vm198_vm1, %v12592_v15  ;;  %9194 = vmatmul.msk.f32.gmra.mxu2 %vm198_vm1, %v12673_v4  ;;  %v3556_v15 = vld [vmem:[%s14976_s0 + $0x228] sm:$0xff] }
 0x43d   :  { %9272 = vmatmul.msk.f32.gmra.mxu3 %vm198_vm1, %v4157_v46  ;;  %v4158_v46 = vld [vmem:[%s14976_s0 + $0x24a] sm:$0xff]  ;;  %v15062_v7 = vld [vmem:[#allocation26_spill] sm:$0xff] }
 0x43f   :  { %v3935_v36 = vpop.f32.mrf.mxu2 }
 0x440   :  { %v4065_v24 = vadd.f32 %v3935_v36, %v3467_v20  ;;  %v2751_v47 = vpop.f32.mrf.mxu0 }
 0x441   :  { %v3340_v37 = vpop.f32.mrf.mxu1 }
 0x442   :  { %v12693_v62 = vadd.f32 %v4533_v14, %v4065_v24  ;;  %v3468_v20 = vadd.f32 %v3340_v37, %v2870_v2  ;;  %v4539_v37 = vpop.f32.mrf.mxu3  ;;  %v2871_v2 = vadd.f32 %v2745_v34, %v15062_v7  ;;  %v2365_v34 = vld [vmem:[%s14976_s0 + $0x22e] sm:$0xff] }
 0x443   :  { %9050 = vmatmul.msk.f32.gmra.mxu0 %vm198_vm1, %v2363_v49 }
 0x444   :  { %9121 = vmatmul.msk.f32.gmra.mxu1 %vm198_vm1, %v12613_v8  ;;  %9195 = vmatmul.msk.f32.gmra.mxu2 %vm198_vm1, %v3556_v15  ;;  %v3557_v8 = vld [vmem:[%s14976_s0 + $0x230] sm:$0xff] }
 0x445   :  { %9273 = vmatmul.msk.f32.gmra.mxu3 %vm198_vm1, %v4158_v46  ;;  %v4159_v46 = vld [vmem:[%s14976_s0 + $0x252] sm:$0xff] }
 0x447   :  { %v3938_v36 = vpop.f32.mrf.mxu2 }
 0x448   :  { %v4066_v19 = vadd.f32 %v3938_v36, %v3468_v20  ;;  %v12704_v14 = vpop.f32.mrf.mxu0 }
 0x449   :  { %v3343_v24 = vpop.f32.mrf.mxu1 }
 0x44a   :  { %v12712_v49 = vadd.f32 %v4536_v45, %v4066_v19  ;;  %v3469_v20 = vadd.f32 %v3343_v24, %v2871_v2  ;;  %v15064_v24 = vld [vmem:[#allocation27_spill] sm:$0xff] }
 0x44b   :  { %9051 = vmatmul.msk.f32.gmra.mxu0 %vm198_vm1, %v2364_v25  ;;  %v2872_v2 = vadd.f32 %v2748_v54, %v15064_v24  ;;  %v2366_v54 = vld [vmem:[%s14976_s0 + $0x236] sm:$0xff] }
 0x44c   :  { %9122 = vmatmul.msk.f32.gmra.mxu1 %vm198_vm1, %v12633_v17  ;;  %9196 = vmatmul.msk.f32.gmra.mxu2 %vm198_vm1, %v3557_v8  ;;  %v3558_v17 = vld [vmem:[%s14976_s0 + $0x238] sm:$0xff] }
 0x44d   :  { %9274 = vmatmul.msk.f32.gmra.mxu3 %vm198_vm1, %v4159_v46  ;;  %v4160_v46 = vld [vmem:[%s14976_s0 + $0x25a] sm:$0xff] }
 0x44f   :  { %v3941_v36 = vpop.f32.mrf.mxu2 }
 0x450   :  { %v4067_v19 = vadd.f32 %v3941_v36, %v3469_v20  ;;  %v12723_v45 = vpop.f32.mrf.mxu0  ;;  %v4542_v20 = vpop.f32.mrf.mxu3 }
 0x451   :  { %15063 = vst [vmem:[#allocation9_spill] sm:$0xff] %v12723_v45  ;;  %v3346_v25 = vpop.f32.mrf.mxu1 }
 0x452   :  { %v12731_v7 = vadd.f32 %v4539_v37, %v4067_v19  ;;  %v3470_v36 = vadd.f32 %v3346_v25, %v2872_v2  ;;  %v2873_v25 = vadd.f32 %v2751_v47, %v11211_v30  ;;  %v2367_v30 = vld [vmem:[%s14976_s0 + $0x23e] sm:$0xff] }
 0x453   :  { %9052 = vmatmul.msk.f32.gmra.mxu0 %vm198_vm1, %v2365_v34 }
 0x454   :  { %9123 = vmatmul.msk.f32.gmra.mxu1 %vm198_vm1, %v12653_v23  ;;  %9197 = vmatmul.msk.f32.gmra.mxu2 %vm198_vm1, %v3558_v17  ;;  %v3559_v23 = vld [vmem:[%s14976_s0 + $0x240] sm:$0xff] }
 0x455   :  { %9275 = vmatmul.msk.f32.gmra.mxu3 %vm198_vm1, %v4160_v46 }
 0x457   :  { %v3944_v45 = vpop.f32.mrf.mxu2 }
 0x458   :  { %v4068_v37 = vadd.f32 %v3944_v45, %v3470_v36  ;;  %v12742_v19 = vpop.f32.mrf.mxu0  ;;  %v4161_v45 = vld [vmem:[%s14976_s0 + $0x262] sm:$0xff] }
 0x459   :  { %v3349_v24 = vpop.f32.mrf.mxu1 }
 0x45a   :  { %v12750_v34 = vadd.f32 %v4542_v20, %v4068_v37  ;;  %v3471_v2 = vadd.f32 %v3349_v24, %v2873_v25  ;;  %v4545_v20 = vpop.f32.mrf.mxu3  ;;  %v2368_v25 = vld [vmem:[%s14976_s0 + $0x246] sm:$0xff] }
 0x45b   :  { %9053 = vmatmul.msk.f32.gmra.mxu0 %vm198_vm1, %v2366_v54  ;;  %v4162_v54 = vld [vmem:[%s14976_s0 + $0x26a] sm:$0xff] }
 0x45c   :  { %9124 = vmatmul.msk.f32.gmra.mxu1 %vm198_vm1, %v12673_v4  ;;  %9198 = vmatmul.msk.f32.gmra.mxu2 %vm198_vm1, %v3559_v23  ;;  %v3560_v4 = vld [vmem:[%s14976_s0 + $0x248] sm:$0xff] }
 0x45d   :  { %9276 = vmatmul.msk.f32.gmra.mxu3 %vm198_vm1, %v4161_v45  ;;  %v3561_v45 = vld [vmem:[%s14976_s0 + $0x250] sm:$0xff] }
 0x45f   :  { %v3947_v46 = vpop.f32.mrf.mxu2 }
 0x460   :  { %v4069_v36 = vadd.f32 %v3947_v46, %v3471_v2  ;;  %v12761_v37 = vpop.f32.mrf.mxu0  ;;  %v2369_v46 = vld [vmem:[%s14976_s0 + $0x24e] sm:$0xff] }
 0x462   :  { %v12769_v47 = vadd.f32 %v4545_v20, %v4069_v36  ;;  %v3562_v20 = vld [vmem:[%s14976_s0 + $0x258] sm:$0xff] }
 0x463   :  { %9054 = vmatmul.msk.f32.gmra.mxu0 %vm198_vm1, %v2367_v30  ;;  %v2370_v30 = vld [vmem:[%s14976_s0 + $0x256] sm:$0xff] }
 0x464   :  { %9125 = vmatmul.msk.f32.gmra.mxu1 %vm198_vm1, %v3556_v15  ;;  %9199 = vmatmul.msk.f32.gmra.mxu2 %vm198_vm1, %v3560_v4  ;;  %v4163_v15 = vld [vmem:[%s14976_s0 + $0x272] sm:$0xff] }
 0x465   :  { %9277 = vmatmul.msk.f32.gmra.mxu3 %vm198_vm1, %v4162_v54  ;;  %v3563_v54 = vld [vmem:[%s14976_s0 + $0x260] sm:$0xff] }
 0x468   :  { %v12778_v24 = vpop.f32.mrf.mxu0 }
 0x46b   :  { %9055 = vmatmul.msk.f32.gmra.mxu0 %vm198_vm1, %v2368_v25 }
 0x46c   :  { %9126 = vmatmul.msk.f32.gmra.mxu1 %vm198_vm1, %v3557_v8  ;;  %9200 = vmatmul.msk.f32.gmra.mxu2 %vm198_vm1, %v3561_v45  ;;  %v4164_v8 = vld [vmem:[%s14976_s0 + $0x27a] sm:$0xff] }
 0x46d   :  { %9278 = vmatmul.msk.f32.gmra.mxu3 %vm198_vm1, %v4163_v15  ;;  %v2371_v15 = vld [vmem:[%s14976_s0 + $0x25e] sm:$0xf] }
 0x470   :  { %v12793_v2 = vpop.f32.mrf.mxu0 }
 0x473   :  { %9056 = vmatmul.msk.f32.gmra.mxu0 %vm198_vm1, %v2369_v46  ;;  %v3564_v46 = vld [vmem:[%s14976_s0 + $0x268] sm:$0xff] }
 0x474   :  { %9127 = vmatmul.msk.f32.gmra.mxu1 %vm198_vm1, %v3558_v17  ;;  %9201 = vmatmul.msk.f32.gmra.mxu2 %vm198_vm1, %v3562_v20  ;;  %v4165_v17 = vld [vmem:[%s14976_s0 + $0x282] sm:$0xf] }
 0x475   :  { %9279 = vmatmul.msk.f32.gmra.mxu3 %vm198_vm1, %v4164_v8  ;;  %v4692_v8 = vld [vmem:[%s14976_s0 + $0x4c] sm:$0xff] }
 0x478   :  { %v12808_v36 = vpop.f32.mrf.mxu0 }
 0x47b   :  { %9057 = vmatmul.msk.f32.gmra.mxu0 %vm198_vm1, %v2370_v30  ;;  %v3565_v30 = vld [vmem:[%s14976_s0 + $0x270] sm:$0xff] }
 0x47c   :  { %9128 = vmatmul.msk.f32.gmra.mxu1 %vm198_vm1, %v3559_v23  ;;  %9202 = vmatmul.msk.f32.gmra.mxu2 %vm198_vm1, %v3563_v54 }
 0x47d   :  { %9280 = vmatmul.msk.f32.gmra.mxu3 %vm198_vm1, %v4165_v17  ;;  %v3566_v17 = vld [vmem:[%s14976_s0 + $0x278] sm:$0xff] }
 0x480   :  { %v12823_v25 = vpop.f32.mrf.mxu0 }
 0x481   :  { %15065 = vst [vmem:[#allocation10_spill] sm:$0xff] %v12823_v25 }
 0x483   :  { %9058 = vmatmul.msk.f32.gmra.mxu0 %vm198_vm1, %v2371_v15 }
 0x484   :  { %9129 = vmatmul.msk.f32.gmra.mxu1 %vm198_vm1, %v3560_v4  ;;  %9203 = vmatmul.msk.f32.gmra.mxu2 %vm198_vm1, %v3564_v46  ;;  %v4693_v4 = vld [vmem:[%s14976_s0 + $0x54] sm:$0xff]  ;;  %v2969_v46 = vld [vmem:[%s14976_s0 + $0x260] sm:$0xf] }
 0x488   :  { %v12834_v23 = vpop.f32.mrf.mxu0 }
 0x489   :  { %15066 = vst [vmem:[#allocation11_spill] sm:$0xff] %v12834_v23  ;;  %v4709_v23 = vld [vmem:[%s14976_s0 + $0xd4] sm:$0xff] }
 0x48b   :  { %9283 = vmatmul.msk.f32.vlgmr.msrb.gmra.mxu0 %vm198_vm1, %v4692_v8  ;;  %v3567_v8 = vld [vmem:[%s14976_s0 + $0x280] sm:$0xf] }
 0x48c   :  { %9130 = vmatmul.msk.f32.gmra.mxu1 %vm198_vm1, %v3561_v45  ;;  %9204 = vmatmul.msk.f32.gmra.mxu2 %vm198_vm1, %v3565_v30  ;;  %v4694_v45 = vld [vmem:[%s14976_s0 + $0x5c] sm:$0xff]  ;;  %v4695_v30 = vld [vmem:[%s14976_s0 + $0x64] sm:$0xff] }
 0x490   :  { %v12845_v54 = vpop.f32.mrf.mxu0 }
 0x491   :  { %15067 = vst [vmem:[#allocation12_spill] sm:$0xff] %v12845_v54 }
 0x493   :  { %9284 = vmatmul.msk.f32.gmra.mxu0 %vm198_vm1, %v4693_v4 }
 0x494   :  { %9131 = vmatmul.msk.f32.gmra.mxu1 %vm198_vm1, %v3562_v20  ;;  %9205 = vmatmul.msk.f32.gmra.mxu2 %vm198_vm1, %v3566_v17  ;;  %v4696_v17 = vld [vmem:[%s14976_s0 + $0x6c] sm:$0xff] }
 0x498   :  { %v12856_v15 = vpop.f32.mrf.mxu0 }
 0x499   :  { %15068 = vst [vmem:[#allocation13_spill] sm:$0xff] %v12856_v15 }
 0x49b   :  { %9285 = vmatmul.msk.f32.gmra.mxu0 %vm198_vm1, %v4694_v45 }
 0x49c   :  { %9132 = vmatmul.msk.f32.gmra.mxu1 %vm198_vm1, %v2969_v46  ;;  %9206 = vmatmul.msk.f32.gmra.mxu2 %vm198_vm1, %v3567_v8  ;;  %v4697_v46 = vld [vmem:[%s14976_s0 + $0x74] sm:$0xff] }
 0x4a0   :  { %v12870_v20 = vpop.f32.mrf.mxu0 }
 0x4a1   :  { %15069 = vst [vmem:[#allocation14_spill] sm:$0xff] %v12870_v20 }
 0x4a3   :  { %9286 = vmatmul.msk.f32.gmra.mxu0 %vm198_vm1, %v4695_v30  ;;  %v4698_v30 = vld [vmem:[%s14976_s0 + $0x7c] sm:$0xff] }
 0x4a8   :  { %v12876_v4 = vpop.f32.mrf.mxu0 }
 0x4a9   :  { %15070 = vst [vmem:[#allocation15_spill] sm:$0xff] %v12876_v4 }
 0x4ab   :  { %9287 = vmatmul.msk.f32.gmra.mxu0 %vm198_vm1, %v4696_v17  ;;  %v4699_v17 = vld [vmem:[%s14976_s0 + $0x84] sm:$0xff] }
 0x4b0   :  { %v12882_v45 = vpop.f32.mrf.mxu0 }
 0x4b1   :  { %15071 = vst [vmem:[#allocation16_spill] sm:$0xff] %v12882_v45 }
 0x4b3   :  { %9288 = vmatmul.msk.f32.gmra.mxu0 %vm198_vm1, %v4697_v46  ;;  %v4700_v46 = vld [vmem:[%s14976_s0 + $0x8c] sm:$0xff] }
 0x4b8   :  { %v12888_v8 = vpop.f32.mrf.mxu0 }
 0x4b9   :  { %15072 = vst [vmem:[#allocation17_spill] sm:$0xff] %v12888_v8 }
 0x4bb   :  { %9289 = vmatmul.msk.f32.gmra.mxu0 %vm198_vm1, %v4698_v30  ;;  %v4701_v30 = vld [vmem:[%s14976_s0 + $0x94] sm:$0xff] }
 0x4c0   :  { %v12894_v4 = vpop.f32.mrf.mxu0 }
 0x4c1   :  { %15073 = vst [vmem:[#allocation18_spill] sm:$0xff] %v12894_v4 }
 0x4c3   :  { %9290 = vmatmul.msk.f32.gmra.mxu0 %vm198_vm1, %v4699_v17  ;;  %v4702_v17 = vld [vmem:[%s14976_s0 + $0x9c] sm:$0xff] }
 0x4c8   :  { %v12900_v45 = vpop.f32.mrf.mxu0 }
 0x4c9   :  { %15074 = vst [vmem:[#allocation19_spill] sm:$0xff] %v12900_v45 }
 0x4cb   :  { %9291 = vmatmul.msk.f32.gmra.mxu0 %vm198_vm1, %v4700_v46  ;;  %v4703_v46 = vld [vmem:[%s14976_s0 + $0xa4] sm:$0xff] }
 0x4d0   :  { %v12906_v8 = vpop.f32.mrf.mxu0 }
 0x4d1   :  { %15075 = vst [vmem:[#allocation20_spill] sm:$0xff] %v12906_v8 }
 0x4d3   :  { %9292 = vmatmul.msk.f32.gmra.mxu0 %vm198_vm1, %v4701_v30  ;;  %v4704_v30 = vld [vmem:[%s14976_s0 + $0xac] sm:$0xff] }
 0x4d8   :  { %v12912_v4 = vpop.f32.mrf.mxu0 }
 0x4d9   :  { %15076 = vst [vmem:[#allocation21_spill] sm:$0xff] %v12912_v4 }
 0x4db   :  { %9293 = vmatmul.msk.f32.gmra.mxu0 %vm198_vm1, %v4702_v17  ;;  %v4705_v17 = vld [vmem:[%s14976_s0 + $0xb4] sm:$0xff] }
 0x4e0   :  { %v12918_v45 = vpop.f32.mrf.mxu0 }
 0x4e1   :  { %15077 = vst [vmem:[#allocation22_spill] sm:$0xff] %v12918_v45 }
 0x4e3   :  { %9294 = vmatmul.msk.f32.gmra.mxu0 %vm198_vm1, %v4703_v46  ;;  %v4706_v46 = vld [vmem:[%s14976_s0 + $0xbc] sm:$0xff] }
 0x4e8   :  { %v12924_v8 = vpop.f32.mrf.mxu0 }
 0x4e9   :  { %15078 = vst [vmem:[#allocation23_spill] sm:$0xff] %v12924_v8 }
 0x4eb   :  { %9295 = vmatmul.msk.f32.gmra.mxu0 %vm198_vm1, %v4704_v30  ;;  %v4707_v30 = vld [vmem:[%s14976_s0 + $0xc4] sm:$0xff] }
 0x4f0   :  { %v12930_v4 = vpop.f32.mrf.mxu0 }
 0x4f1   :  { %15079 = vst [vmem:[#allocation24_spill] sm:$0xff] %v12930_v4  ;;  %v4708_v4 = vld [vmem:[%s14976_s0 + $0xcc] sm:$0xff] }
 0x4f3   :  { %9296 = vmatmul.msk.f32.gmra.mxu0 %vm198_vm1, %v4705_v17  ;;  %v12951_v17 = vld [vmem:[%s14978_s2] ss:$0 sm:$0xff] }
 0x4f8   :  { %v12936_v45 = vpop.f32.mrf.mxu0 }
 0x4f9   :  { %15080 = vst [vmem:[#allocation25_spill] sm:$0xff] %v12936_v45 }
 0x4fb   :  { %9297 = vmatmul.msk.f32.gmra.mxu0 %vm198_vm1, %v4706_v46 }
 0x500   :  { %v12942_v8 = vpop.f32.mrf.mxu0 }
 0x501   :  { %15081 = vst [vmem:[#allocation26_spill] sm:$0xff] %v12942_v8  ;;  %v12960_v8 = vld [vmem:[%s14979_s3] ss:$0 sm:$0xff] }
 0x503   :  { %9298 = vmatmul.msk.f32.gmra.mxu0 %vm198_vm1, %v4707_v30 }
 0x508   :  { %v5002_v45 = vpop.f32.mrf.mxu0 }
 0x509   :  { %v5218_v46 = vadd.f32 %v5002_v45, %v11803_v35 }
 0x50b   :  { %v5294_v20 = vmul.f32 %v12951_v17, %v5218_v46  ;;  %9299 = vmatmul.msk.f32.gmra.mxu0 %vm198_vm1, %v4708_v4 }
 0x50d   :  { %v5370_v30 = vadd.f32 %v12960_v8, %v5294_v20  ;;  %v4710_v20 = vld [vmem:[%s14976_s0 + $0xdc] sm:$0xff] }
 0x50f   :  { %v5442_v15 = vmax.f32 %v5370_v30, 0.0 }
 0x510   :  { %v5005_v54 = vpop.f32.mrf.mxu0 }
 0x511   :  { %5515 = vst.msk [vmem:[#allocation2] sm:$0xff] %vm5514_vm2, %v5442_v15  ;;  %v5219_v35 = vadd.f32 %v5005_v54, %v11827_v12 }
 0x513   :  { %v5295_v45 = vmul.f32 %v12951_v17, %v5219_v35  ;;  %9300 = vmatmul.msk.f32.gmra.mxu0 %vm198_vm1, %v4709_v23  ;;  %v4711_v35 = vld [vmem:[%s14976_s0 + $0xe4] sm:$0xff] }
 0x515   :  { %v5371_v46 = vadd.f32 %v12960_v8, %v5295_v45 }
 0x517   :  { %v5443_v4 = vmax.f32 %v5371_v46, 0.0 }
 0x518   :  { %v5008_v25 = vpop.f32.mrf.mxu0 }
 0x519   :  { %5516 = vst.msk [vmem:[#allocation2 + $0x8] sm:$0xff] %vm5514_vm2, %v5443_v4  ;;  %v5220_v30 = vadd.f32 %v5008_v25, %v11851_v13 }
 0x51b   :  { %v5296_v15 = vmul.f32 %v12951_v17, %v5220_v30  ;;  %9301 = vmatmul.msk.f32.gmra.mxu0 %vm198_vm1, %v4710_v20  ;;  %v4712_v20 = vld [vmem:[%s14976_s0 + $0xec] sm:$0xff] }
 0x51d   :  { %v5372_v12 = vadd.f32 %v12960_v8, %v5296_v15 }
 0x51f   :  { %v5444_v54 = vmax.f32 %v5372_v12, 0.0 }
 0x520   :  { %v5011_v23 = vpop.f32.mrf.mxu0 }
 0x521   :  { %5517 = vst.msk [vmem:[#allocation2 + $0x10] sm:$0xff] %vm5514_vm2, %v5444_v54  ;;  %v5221_v45 = vadd.f32 %v5011_v23, %v11875_v5  ;;  %v4713_v23 = vld [vmem:[%s14976_s0 + $0xf4] sm:$0xff] }
 0x523   :  { %v5297_v46 = vmul.f32 %v12951_v17, %v5221_v45  ;;  %9302 = vmatmul.msk.f32.gmra.mxu0 %vm198_vm1, %v4711_v35 }
 0x525   :  { %v5373_v13 = vadd.f32 %v12960_v8, %v5297_v46 }
 0x527   :  { %v5445_v25 = vmax.f32 %v5373_v13, 0.0 }
 0x528   :  { %v5014_v4 = vpop.f32.mrf.mxu0 }
 0x529   :  { %5518 = vst.msk [vmem:[#allocation2 + $0x18] sm:$0xff] %vm5514_vm2, %v5445_v25  ;;  %v5222_v30 = vadd.f32 %v5014_v4, %v11899_v6  ;;  %v4714_v25 = vld [vmem:[%s14976_s0 + $0xfc] sm:$0xff] }
 0x52b   :  { %v5298_v15 = vmul.f32 %v12951_v17, %v5222_v30  ;;  %9303 = vmatmul.msk.f32.gmra.mxu0 %vm198_vm1, %v4712_v20 }
 0x52d   :  { %v5374_v5 = vadd.f32 %v12960_v8, %v5298_v15 }
 0x52f   :  { %v5446_v12 = vmax.f32 %v5374_v5, 0.0  ;;  %v4715_v5 = vld [vmem:[%s14976_s0 + $0x104] sm:$0xff] }
 0x530   :  { %v5017_v54 = vpop.f32.mrf.mxu0 }
 0x531   :  { %5519 = vst.msk [vmem:[#allocation2 + $0x20] sm:$0xff] %vm5514_vm2, %v5446_v12  ;;  %v5223_v35 = vadd.f32 %v5017_v54, %v11923_v41 }
 0x533   :  { %v5299_v45 = vmul.f32 %v12951_v17, %v5223_v35  ;;  %9304 = vmatmul.msk.f32.gmra.mxu0 %vm198_vm1, %v4713_v23 }
 0x535   :  { %v5375_v6 = vadd.f32 %v12960_v8, %v5299_v45  ;;  %v4716_v45 = vld [vmem:[%s14976_s0 + $0x10c] sm:$0xff] }
 0x537   :  { %v5447_v46 = vmax.f32 %v5375_v6, 0.0 }
 0x538   :  { %v5020_v13 = vpop.f32.mrf.mxu0 }
 0x539   :  { %5520 = vst.msk [vmem:[#allocation2 + $0x28] sm:$0xff] %vm5514_vm2, %v5447_v46  ;;  %v5224_v4 = vadd.f32 %v5020_v13, %v11947_v33 }
 0x53b   :  { %v5300_v20 = vmul.f32 %v12951_v17, %v5224_v4  ;;  %9305 = vmatmul.msk.f32.gmra.mxu0 %vm198_vm1, %v4714_v25  ;;  %v4717_v4 = vld [vmem:[%s14976_s0 + $0x114] sm:$0xff] }
 0x53d   :  { %v5376_v41 = vadd.f32 %v12960_v8, %v5300_v20 }
 0x53f   :  { %v5448_v30 = vmax.f32 %v5376_v41, 0.0 }
 0x540   :  { %v5023_v15 = vpop.f32.mrf.mxu0 }
 0x541   :  { %5521 = vst.msk [vmem:[#allocation2 + $0x30] sm:$0xff] %vm5514_vm2, %v5448_v30  ;;  %v5225_v12 = vadd.f32 %v5023_v15, %v11969_v43 }
 0x543   :  { %v5301_v54 = vmul.f32 %v12951_v17, %v5225_v12  ;;  %9306 = vmatmul.msk.f32.gmra.mxu0 %vm198_vm1, %v4715_v5  ;;  %v4718_v5 = vld [vmem:[%s14976_s0 + $0x11c] sm:$0xff] }
 0x545   :  { %v5377_v33 = vadd.f32 %v12960_v8, %v5301_v54 }
 0x547   :  { %v5449_v23 = vmax.f32 %v5377_v33, 0.0 }
 0x548   :  { %v5026_v35 = vpop.f32.mrf.mxu0 }
 0x549   :  { %5522 = vst.msk [vmem:[#allocation2 + $0x38] sm:$0xff] %vm5514_vm2, %v5449_v23  ;;  %v5226_v6 = vadd.f32 %v5026_v35, %v11989_v53  ;;  %v4719_v35 = vld [vmem:[%s14976_s0 + $0x124] sm:$0xff] }
 0x54b   :  { %v5302_v46 = vmul.f32 %v12951_v17, %v5226_v6  ;;  %9307 = vmatmul.msk.f32.gmra.mxu0 %vm198_vm1, %v4716_v45 }
 0x54d   :  { %v5378_v43 = vadd.f32 %v12960_v8, %v5302_v46 }
 0x54f   :  { %v5450_v13 = vmax.f32 %v5378_v43, 0.0 }
 0x550   :  { %v5029_v25 = vpop.f32.mrf.mxu0 }
 0x551   :  { %5523 = vst.msk [vmem:[#allocation2 + $0x40] sm:$0xff] %vm5514_vm2, %v5450_v13  ;;  %v5227_v20 = vadd.f32 %v5029_v25, %v12010_v27  ;;  %v4720_v13 = vld [vmem:[%s14976_s0 + $0x12c] sm:$0xff] }
 0x553   :  { %v5303_v41 = vmul.f32 %v12951_v17, %v5227_v20  ;;  %9308 = vmatmul.msk.f32.gmra.mxu0 %vm198_vm1, %v4717_v4 }
 0x555   :  { %v5379_v53 = vadd.f32 %v12960_v8, %v5303_v41 }
 0x557   :  { %v5451_v30 = vmax.f32 %v5379_v53, 0.0  ;;  %v4721_v53 = vld [vmem:[%s14976_s0 + $0x134] sm:$0xff] }
 0x558   :  { %v5032_v15 = vpop.f32.mrf.mxu0 }
 0x559   :  { %5524 = vst.msk [vmem:[#allocation2 + $0x48] sm:$0xff] %vm5514_vm2, %v5451_v30  ;;  %v5228_v12 = vadd.f32 %v5032_v15, %v12031_v39 }
 0x55b   :  { %v5304_v54 = vmul.f32 %v12951_v17, %v5228_v12  ;;  %9309 = vmatmul.msk.f32.gmra.mxu0 %vm198_vm1, %v4718_v5 }
 0x55d   :  { %v5380_v27 = vadd.f32 %v12960_v8, %v5304_v54  ;;  %v4722_v54 = vld [vmem:[%s14976_s0 + $0x13c] sm:$0xff] }
 0x55f   :  { %v5452_v33 = vmax.f32 %v5380_v27, 0.0 }
 0x560   :  { %v5035_v23 = vpop.f32.mrf.mxu0 }
 0x561   :  { %5525 = vst.msk [vmem:[#allocation2 + $0x50] sm:$0xff] %vm5514_vm2, %v5452_v33  ;;  %v5229_v45 = vadd.f32 %v5035_v23, %v12051_v22 }
 0x563   :  { %v5305_v6 = vmul.f32 %v12951_v17, %v5229_v45  ;;  %9310 = vmatmul.msk.f32.gmra.mxu0 %vm198_vm1, %v4719_v35  ;;  %v4723_v45 = vld [vmem:[%s14976_s0 + $0x144] sm:$0xff] }
 0x565   :  { %v5381_v39 = vadd.f32 %v12960_v8, %v5305_v6 }
 0x567   :  { %v5453_v46 = vmax.f32 %v5381_v39, 0.0 }
 0x568   :  { %v5038_v43 = vpop.f32.mrf.mxu0 }
 0x569   :  { %5526 = vst.msk [vmem:[#allocation2 + $0x58] sm:$0xff] %vm5514_vm2, %v5453_v46  ;;  %v5230_v25 = vadd.f32 %v5038_v43, %v12071_v3 }
 0x56b   :  { %v5306_v4 = vmul.f32 %v12951_v17, %v5230_v25  ;;  %9311 = vmatmul.msk.f32.gmra.mxu0 %vm198_vm1, %v4720_v13  ;;  %v4724_v13 = vld [vmem:[%s14976_s0 + $0x14c] sm:$0xff] }
 0x56d   :  { %v5382_v22 = vadd.f32 %v12960_v8, %v5306_v4 }
 0x56f   :  { %v5454_v20 = vmax.f32 %v5382_v22, 0.0 }
 0x570   :  { %v5041_v41 = vpop.f32.mrf.mxu0 }
 0x571   :  { %5527 = vst.msk [vmem:[#allocation2 + $0x60] sm:$0xff] %vm5514_vm2, %v5454_v20  ;;  %v5231_v30 = vadd.f32 %v5041_v41, %v12091_v21  ;;  %v4725_v41 = vld [vmem:[%s14976_s0 + $0x154] sm:$0xff] }
 0x573   :  { %v5307_v15 = vmul.f32 %v12951_v17, %v5231_v30  ;;  %9312 = vmatmul.msk.f32.gmra.mxu0 %vm198_vm1, %v4721_v53 }
 0x575   :  { %v5383_v3 = vadd.f32 %v12960_v8, %v5307_v15 }
 0x577   :  { %v5455_v5 = vmax.f32 %v5383_v3, 0.0 }
 0x578   :  { %v5044_v12 = vpop.f32.mrf.mxu0 }
 0x579   :  { %5528 = vst.msk [vmem:[#allocation2 + $0x68] sm:$0xff] %vm5514_vm2, %v5455_v5  ;;  %v5232_v27 = vadd.f32 %v5044_v12, %v12111_v56  ;;  %v4726_v5 = vld [vmem:[%s14976_s0 + $0x15c] sm:$0xff] }
 0x57b   :  { %v5308_v33 = vmul.f32 %v12951_v17, %v5232_v27  ;;  %9313 = vmatmul.msk.f32.gmra.mxu0 %vm198_vm1, %v4722_v54 }
 0x57d   :  { %v5384_v21 = vadd.f32 %v12960_v8, %v5308_v33 }
 0x57f   :  { %v5456_v23 = vmax.f32 %v5384_v21, 0.0  ;;  %v4727_v21 = vld [vmem:[%s14976_s0 + $0x164] sm:$0xff] }
 0x580   :  { %v5047_v35 = vpop.f32.mrf.mxu0 }
 0x581   :  { %5529 = vst.msk [vmem:[#allocation2 + $0x70] sm:$0xff] %vm5514_vm2, %v5456_v23  ;;  %v5233_v6 = vadd.f32 %v5047_v35, %v12131_v9 }
 0x583   :  { %v5309_v39 = vmul.f32 %v12951_v17, %v5233_v6  ;;  %9314 = vmatmul.msk.f32.gmra.mxu0 %vm198_vm1, %v4723_v45 }
 0x585   :  { %v5385_v56 = vadd.f32 %v12960_v8, %v5309_v39  ;;  %v4728_v39 = vld [vmem:[%s14976_s0 + $0x16c] sm:$0xff] }
 0x587   :  { %v5457_v46 = vmax.f32 %v5385_v56, 0.0 }
 0x588   :  { %v5050_v43 = vpop.f32.mrf.mxu0 }
 0x589   :  { %5530 = vst.msk [vmem:[#allocation2 + $0x78] sm:$0xff] %vm5514_vm2, %v5457_v46  ;;  %v5234_v25 = vadd.f32 %v5050_v43, %v12151_v26 }
 0x58b   :  { %v5310_v4 = vmul.f32 %v12951_v17, %v5234_v25  ;;  %9315 = vmatmul.msk.f32.gmra.mxu0 %vm198_vm1, %v4724_v13  ;;  %v4729_v25 = vld [vmem:[%s14976_s0 + $0x174] sm:$0xff] }
 0x58d   :  { %v5386_v9 = vadd.f32 %v12960_v8, %v5310_v4 }
 0x58f   :  { %v5458_v22 = vmax.f32 %v5386_v9, 0.0 }
 0x590   :  { %v5053_v20 = vpop.f32.mrf.mxu0 }
 0x591   :  { %5531 = vst.msk [vmem:[#allocation2 + $0x80] sm:$0xff] %vm5514_vm2, %v5458_v22  ;;  %v5235_v53 = vadd.f32 %v5053_v20, %v12171_v42  ;;  %v5603_v22 = vld [vmem:[#allocation2 + $0x78] sm:$0xff] }
 0x593   :  { %v5311_v30 = vmul.f32 %v12951_v17, %v5235_v53  ;;  %9316 = vmatmul.msk.f32.gmra.mxu0 %vm198_vm1, %v4725_v41 }
 0x595   :  { %v5387_v26 = vadd.f32 %v12960_v8, %v5311_v30 }
 0x597   :  { %v5459_v15 = vmax.f32 %v5387_v26, 0.0  ;;  %v4730_v26 = vld [vmem:[%s14976_s0 + $0x17c] sm:$0xff] }
 0x598   :  { %v5056_v3 = vpop.f32.mrf.mxu0  ;;  %v5670_v20 = vld [vmem:[#allocation2 + $0x7a] sm:$0xff] }
 0x599   :  { %5532 = vst.msk [vmem:[#allocation2 + $0x88] sm:$0xff] %vm5514_vm2, %v5459_v15  ;;  %v5236_v12 = vadd.f32 %v5056_v3, %v12191_v58  ;;  %v5669_v15 = vld [vmem:[#allocation2 + $0x72] sm:$0xff] }
 0x59b   :  { %v5312_v54 = vmul.f32 %v12951_v17, %v5236_v12  ;;  %9317 = vmatmul.msk.f32.gmra.mxu0 %vm198_vm1, %v4726_v5 }
 0x59d   :  { %v5388_v42 = vadd.f32 %v12960_v8, %v5312_v54 }
 0x59f   :  { %v5460_v27 = vmax.f32 %v5388_v42, 0.0 }
 0x5a0   :  { %v5059_v33 = vpop.f32.mrf.mxu0 }
 0x5a1   :  { %5533 = vst.msk [vmem:[#allocation2 + $0x90] sm:$0xff] %vm5514_vm2, %v5460_v27  ;;  %v5237_v23 = vadd.f32 %v5059_v33, %v12211_v11  ;;  %v5737_v27 = vmax.f32 %v5603_v22, %v5670_v20  ;;  %v5666_v22 = vld [vmem:[#allocation2 + $0x5a] sm:$0xff] }
 0x5a2   :  { %v5600_v20 = vld [vmem:[#allocation2 + $0x60] sm:$0xff] }
 0x5a3   :  { %v5313_v35 = vmul.f32 %v12951_v17, %v5237_v23  ;;  %9318 = vmatmul.msk.f32.gmra.mxu0 %vm198_vm1, %v4727_v21  ;;  %v5602_v21 = vld [vmem:[#allocation2 + $0x70] sm:$0xff] }
 0x5a5   :  { %v5389_v58 = vadd.f32 %v12960_v8, %v5313_v35  ;;  %v5668_v35 = vld [vmem:[#allocation2 + $0x6a] sm:$0xff] }
 0x5a7   :  { %v5461_v45 = vmax.f32 %v5389_v58, 0.0  ;;  %v5801_v58 = vld [vmem:[#allocation2 + $0x84] sm:$0xff] }
 0x5a8   :  { %v5062_v6 = vpop.f32.mrf.mxu0  ;;  %v5802_v3 = vld [vmem:[#allocation2 + $0x8c] sm:$0xff] }
 0x5a9   :  { %5534 = vst.msk [vmem:[#allocation2 + $0x98] sm:$0xff] %vm5514_vm2, %v5461_v45  ;;  %v5238_v56 = vadd.f32 %v5062_v6, %v12231_v31  ;;  %v5869_v54 = vld [vmem:[#allocation2 + $0x8e] sm:$0xff]  ;;  %v5868_v45 = vld [vmem:[#allocation2 + $0x86] sm:$0xff] }
 0x5ab   :  { %v5314_v46 = vmul.f32 %v12951_v17, %v5238_v56  ;;  %9319 = vmatmul.msk.f32.gmra.mxu0 %vm198_vm1, %v4728_v39  ;;  %v5736_v56 = vmax.f32 %v5602_v21, %v5669_v15  ;;  %v5599_v15 = vld [vmem:[#allocation2 + $0x58] sm:$0xff] }
 0x5ad   :  { %v5390_v11 = vadd.f32 %v12960_v8, %v5314_v46  ;;  %v5601_v46 = vld [vmem:[#allocation2 + $0x68] sm:$0xff] }
 0x5af   :  { %v5462_v43 = vmax.f32 %v5390_v11, 0.0  ;;  %v5936_v11 = vmax.f32 %v5802_v3, %v5869_v54  ;;  %v5665_v3 = vld [vmem:[#allocation2 + $0x52] sm:$0xff]  ;;  %v4731_v54 = vld [vmem:[%s14976_s0 + $0x184] sm:$0xff] }
 0x5b0   :  { %v5065_v13 = vpop.f32.mrf.mxu0  ;;  %v5803_v41 = vld [vmem:[#allocation2 + $0x94] sm:$0xff] }
 0x5b1   :  { %5535 = vst.msk [vmem:[#allocation2 + $0xa0] sm:$0xff] %vm5514_vm2, %v5462_v43  ;;  %v5239_v4 = vadd.f32 %v5065_v13, %v12251_v48  ;;  %v5870_v53 = vld [vmem:[#allocation2 + $0x96] sm:$0xff]  ;;  %v5667_v43 = vld [vmem:[#allocation2 + $0x62] sm:$0xff] }
 0x5b2   :  { %v5937_v23 = vmax.f32 %v5803_v41, %v5870_v53  ;;  %v5800_v13 = vld [vmem:[#allocation2 + $0x7c] sm:$0xff]  ;;  %v5799_v41 = vld [vmem:[#allocation2 + $0x74] sm:$0xff] }
 0x5b3   :  { %v5315_v9 = vmul.f32 %v12951_v17, %v5239_v4  ;;  %9320 = vmatmul.msk.f32.gmra.mxu0 %vm198_vm1, %v4729_v25  ;;  %v5867_v25 = vld [vmem:[#allocation2 + $0x7e] sm:$0xff]  ;;  %v5866_v53 = vld [vmem:[#allocation2 + $0x76] sm:$0xff] }
 0x5b4   :  { %v6004_v4 = vmax.f32 %v5736_v56, %v5937_v23  ;;  %v5864_v56 = vld [vmem:[#allocation2 + $0x66] sm:$0xff] }
 0x5b5   :  { %v5391_v31 = vadd.f32 %v12960_v8, %v5315_v9  ;;  %v5735_v9 = vmax.f32 %v5601_v46, %v5668_v35  ;;  %v5598_v35 = vld [vmem:[#allocation2 + $0x50] sm:$0xff] }
 0x5b7   :  { %v5463_v30 = vmax.f32 %v5391_v31, 0.0  ;;  %v5935_v31 = vmax.f32 %v5801_v58, %v5868_v45  ;;  %v5933_v58 = vmax.f32 %v5799_v41, %v5866_v53  ;;  %v5732_v45 = vmax.f32 %v5598_v35, %v5665_v3  ;;  %v5596_v41 = vld [vmem:[#allocation2 + $0x40] sm:$0xff]  ;;  %v5795_v53 = vld [vmem:[#allocation2 + $0x54] sm:$0xff] }
 0x5b8   :  { %v5068_v5 = vpop.f32.mrf.mxu0  ;;  %v5804_v12 = vld [vmem:[#allocation2 + $0x9c] sm:$0xff] }
 0x5b9   :  { %v5871_v48 = vld [vmem:[#allocation2 + $0x9e] sm:$0xff]  ;;  %5536 = vst.msk [vmem:[#allocation2 + $0xa8] sm:$0xff] %vm5514_vm2, %v5463_v30  ;;  %v5240_v42 = vadd.f32 %v5068_v5, %v12271_v38  ;;  %v5734_v5 = vmax.f32 %v5600_v20, %v5667_v43  ;;  %v5597_v43 = vld [vmem:[#allocation2 + $0x48] sm:$0xff] }
 0x5ba   :  { %v5938_v33 = vmax.f32 %v5804_v12, %v5871_v48  ;;  %v5934_v12 = vmax.f32 %v5800_v13, %v5867_v25  ;;  %v5663_v25 = vld [vmem:[#allocation2 + $0x42] sm:$0xff]  ;;  %v5662_v20 = vld [vmem:[#allocation2 + $0x3a] sm:$0xff] }
 0x5bb   :  { %v5316_v6 = vmul.f32 %v12951_v17, %v5240_v42  ;;  %9321 = vmatmul.msk.f32.gmra.mxu0 %vm198_vm1, %v4730_v26  ;;  %v6003_v26 = vmax.f32 %v5735_v9, %v5936_v11  ;;  %v5733_v42 = vmax.f32 %v5599_v15, %v5666_v22  ;;  %v6002_v23 = vmax.f32 %v5734_v5, %v5935_v31 }
 0x5bc   :  { %v6005_v39 = vmax.f32 %v5737_v27, %v5938_v33  ;;  %v5798_v27 = vld [vmem:[#allocation2 + $0x6c] sm:$0xff]  ;;  %v6000_v9 = vmax.f32 %v5732_v45, %v5933_v58  ;;  %v5730_v15 = vmax.f32 %v5596_v41, %v5663_v25  ;;  %v5592_v41 = vld [vmem:[#allocation2 + $0x20] sm:$0xff] }
 0x5bd   :  { %v5392_v38 = vadd.f32 %v12960_v8, %v5316_v6  ;;  %v5865_v33 = vld [vmem:[#allocation2 + $0x6e] sm:$0xff]  ;;  %v6001_v11 = vmax.f32 %v5733_v42, %v5934_v12  ;;  %v5595_v12 = vld [vmem:[#allocation2 + $0x38] sm:$0xff]  ;;  %v4732_v42 = vld [vmem:[%s14976_s0 + $0x18c] sm:$0xff] }
 0x5be   :  { %6262 = vmatpush.msrb.mxu1 %v6005_v39  ;;  %v5664_v6 = vld [vmem:[#allocation2 + $0x4a] sm:$0xff]  ;;  %v5932_v13 = vmax.f32 %v5798_v27, %v5865_v33  ;;  %v5729_v27 = vmax.f32 %v5595_v12, %v5662_v20  ;;  %v5658_v20 = vld [vmem:[#allocation2 + $0x1a] sm:$0xff] }
 0x5bf   :  { %v5464_v30 = vmax.f32 %v5392_v38, 0.0  ;;  %v5797_v39 = vld [vmem:[#allocation2 + $0x64] sm:$0xff]  ;;  %v5796_v38 = vld [vmem:[#allocation2 + $0x5c] sm:$0xff]  ;;  %v5731_v31 = vmax.f32 %v5597_v43, %v5664_v6  ;;  %v5794_v33 = vld [vmem:[#allocation2 + $0x4c] sm:$0xff] }
 0x5c0   :  { %6263 = vmatpush.msrb.mxu1 %v6004_v4  ;;  %v5071_v48 = vpop.f32.mrf.mxu0  ;;  %v5863_v4 = vld [vmem:[#allocation2 + $0x5e] sm:$0xff]  ;;  %v5931_v22 = vmax.f32 %v5797_v39, %v5864_v56  ;;  %v5594_v58 = vld [vmem:[#allocation2 + $0x30] sm:$0xff] }
 0x5c1   :  { %5537 = vst.msk [vmem:[#allocation2 + $0xb0] sm:$0xff] %vm5514_vm2, %v5464_v30  ;;  %v5241_v21 = vadd.f32 %v5071_v48, %v12291_v0  ;;  %v5862_v30 = vld [vmem:[#allocation2 + $0x56] sm:$0xff]  ;;  %v5999_v5 = vmax.f32 %v5731_v31, %v5932_v13  ;;  %v5930_v3 = vmax.f32 %v5796_v38, %v5863_v4  ;;  %v5660_v39 = vld [vmem:[#allocation2 + $0x2a] sm:$0xff]  ;;  %v5659_v38 = vld [vmem:[#allocation2 + $0x22] sm:$0xff] }
 0x5c2   :  { %6264 = vmatpush.msrb.mxu1 %v6003_v26  ;;  %v5661_v48 = vld [vmem:[#allocation2 + $0x32] sm:$0xff]  ;;  %v5998_v35 = vmax.f32 %v5730_v15, %v5931_v22  ;;  %v5929_v45 = vmax.f32 %v5795_v53, %v5862_v30  ;;  %v5793_v56 = vld [vmem:[#allocation2 + $0x44] sm:$0xff]  ;;  %v5792_v4 = vld [vmem:[#allocation2 + $0x3c] sm:$0xff]  ;;  %v5726_v15 = vmax.f32 %v5592_v41, %v5659_v38 }
 0x5c3   :  { %v5317_v46 = vmul.f32 %v12951_v17, %v5241_v21  ;;  %9322 = vmatmul.msk.f32.gmra.mxu0 %vm198_vm1, %v4731_v54  ;;  %v5861_v21 = vld [vmem:[#allocation2 + $0x4e] sm:$0xff]  ;;  %v5728_v6 = vmax.f32 %v5594_v58, %v5661_v48  ;;  %v5997_v43 = vmax.f32 %v5729_v27, %v5930_v3  ;;  %v5858_v30 = vld [vmem:[#allocation2 + $0x36] sm:$0xff]  ;;  %v5655_v38 = vld [vmem:[#allocation2 + $0x2] sm:$0xff] }
 0x5c4   :  { %6265 = vmatpush.msrb.mxu1 %v6002_v23  ;;  %v5593_v13 = vld [vmem:[#allocation2 + $0x28] sm:$0xff]  ;;  %v5928_v25 = vmax.f32 %v5794_v33, %v5861_v21  ;;  %v5791_v53 = vld [vmem:[#allocation2 + $0x34] sm:$0xff] }
 0x5c5   :  { %v5393_v0 = vadd.f32 %v12960_v8, %v5317_v46  ;;  %v5860_v46 = vld [vmem:[#allocation2 + $0x46] sm:$0xff]  ;;  %v5727_v31 = vmax.f32 %v5593_v13, %v5660_v39  ;;  %v5591_v12 = vld [vmem:[#allocation2 + $0x18] sm:$0xff]  ;;  %v5857_v21 = vld [vmem:[#allocation2 + $0x2e] sm:$0xff] }
 0x5c6   :  { %6266 = vmatpush.msrb.mxu1 %v6001_v11  ;;  %v5927_v22 = vmax.f32 %v5793_v56, %v5860_v46  ;;  %v5657_v48 = vld [vmem:[#allocation2 + $0x12] sm:$0xff]  ;;  %v5725_v27 = vmax.f32 %v5591_v12, %v5658_v20  ;;  %v5656_v39 = vld [vmem:[#allocation2 + $0xa] sm:$0xff] }
 0x5c7   :  { %v5465_v26 = vmax.f32 %v5393_v0, 0.0  ;;  %v5859_v0 = vld [vmem:[#allocation2 + $0x3e] sm:$0xff]  ;;  %v5790_v33 = vld [vmem:[#allocation2 + $0x2c] sm:$0xff] }
 0x5c8   :  { %6267 = vmatpush.msrb.mxu1 %v6000_v9  ;;  %v5074_v54 = vpop.f32.mrf.mxu0  ;;  %v5996_v9 = vmax.f32 %v5728_v6, %v5929_v45  ;;  %v5926_v3 = vmax.f32 %v5792_v4, %v5859_v0  ;;  %v5590_v58 = vld [vmem:[#allocation2 + $0x10] sm:$0xff]  ;;  %v5925_v45 = vmax.f32 %v5791_v53, %v5858_v30  ;;  %v5789_v56 = vld [vmem:[#allocation2 + $0x24] sm:$0xff]  ;;  %v5924_v13 = vmax.f32 %v5790_v33, %v5857_v21 }
 0x5c9   :  { %5538 = vst.msk [vmem:[#allocation2 + $0xb8] sm:$0xff] %vm5514_vm2, %v5465_v26  ;;  %v5242_v23 = vadd.f32 %v5074_v54, %v12311_v40  ;;  %v5724_v6 = vmax.f32 %v5590_v58, %v5657_v48  ;;  %v5856_v46 = vld [vmem:[#allocation2 + $0x26] sm:$0xff]  ;;  %v4734_v53 = vld [vmem:[%s14976_s0 + $0x19c] sm:$0xff]  ;;  %v4735_v48 = vld [vmem:[%s14976_s0 + $0x1a4] sm:$0xff] }
 0x5ca   :  { %6268 = vmatpush.msrb.mxu1 %v5999_v5  ;;  %v5995_v5 = vmax.f32 %v5727_v31, %v5928_v25  ;;  %v5589_v25 = vld [vmem:[#allocation2 + $0x8] sm:$0xff] }
 0x5cb   :  { %v5318_v11 = vmul.f32 %v12951_v17, %v5242_v23  ;;  %9323 = vmatmul.msk.f32.gmra.mxu0 %vm198_vm1, %v4732_v42  ;;  %v4733_v42 = vld [vmem:[%s14976_s0 + $0x194] sm:$0xff]  ;;  %v5723_v0 = vmax.f32 %v5589_v25, %v5656_v39  ;;  %v4736_v21 = vld [vmem:[%s14976_s0 + $0x1ac] sm:$0xff] }
 0x5cc   :  { %6269 = vmatpush.msrb.mxu1 %v5998_v35  ;;  %v5994_v35 = vmax.f32 %v5726_v15, %v5927_v22 }
 0x5cd   :  { %v5394_v40 = vadd.f32 %v12960_v8, %v5318_v11  ;;  %v5991_v22 = vmax.f32 %v5723_v0, %v5924_v13 }
 0x5ce   :  { %6270 = vmatpush.msrb.mxu1 %v5997_v43  ;;  %v5993_v43 = vmax.f32 %v5725_v27, %v5926_v3 }
 0x5cf   :  { %v5466_v26 = vmax.f32 %v5394_v40, 0.0  ;;  %v5923_v40 = vmax.f32 %v5789_v56, %v5856_v46 }
 0x5d0   :  { %6271 = vmatpush.msrb.mxu1 %v5996_v9  ;;  %v5077_v54 = vpop.f32.mrf.mxu0  ;;  %v5588_v9 = vld [vmem:[#allocation2] sm:$0xff] }
 0x5d1   :  { %5539 = vst.msk [vmem:[#allocation2 + $0xc0] sm:$0xff] %vm5514_vm2, %v5466_v26  ;;  %v5243_v23 = vadd.f32 %v5077_v54, %v12331_v50  ;;  %v5992_v50 = vmax.f32 %v5724_v6, %v5925_v45  ;;  %v5722_v20 = vmax.f32 %v5588_v9, %v5655_v38  ;;  %v4737_v6 = vld [vmem:[%s14976_s0 + $0x1b4] sm:$0xff] }
 0x5d2   :  { %6272 = vmatpush.msrb.mxu1 %v5995_v5 }
 0x5d3   :  { %v5319_v11 = vmul.f32 %v12951_v17, %v5243_v23  ;;  %9324 = vmatmul.msk.f32.gmra.mxu0 %vm198_vm1, %v4733_v42  ;;  %v5990_v26 = vmax.f32 %v5722_v20, %v5923_v40 }
 0x5d4   :  { %6273 = vmatpush.msrb.mxu1 %v5994_v35 }
 0x5d5   :  { %v5395_v4 = vadd.f32 %v12960_v8, %v5319_v11 }
 0x5d6   :  { %6274 = vmatpush.msrb.mxu1 %v5993_v43  ;;  %v4738_v43 = vld [vmem:[%s14976_s0 + $0x1bc] sm:$0xff] }
 0x5d7   :  { %v5467_v31 = vmax.f32 %v5395_v4, 0.0 }
 0x5d8   :  { %6275 = vmatpush.msrb.mxu1 %v5992_v50  ;;  %v5080_v41 = vpop.f32.mrf.mxu0  ;;  %v4739_v50 = vld [vmem:[%s14976_s0 + $0x1c4] sm:$0xff] }
 0x5d9   :  { %5540 = vst.msk [vmem:[#allocation2 + $0xc8] sm:$0xff] %vm5514_vm2, %v5467_v31  ;;  %v5244_v30 = vadd.f32 %v5080_v41, %v12351_v28  ;;  %v13215_v31 = vpop.f32.mrf.mxu2  ;;  %v4740_v41 = vld [vmem:[%s14976_s0 + $0x1cc] sm:$0xff] }
 0x5da   :  { %6276 = vmatpush.msrb.mxu1 %v5991_v22 }
 0x5db   :  { %v5320_v5 = vmul.f32 %v12951_v17, %v5244_v30  ;;  %9325 = vmatmul.msk.f32.gmra.mxu0 %vm198_vm1, %v4734_v53 }
 0x5dc   :  { %6277 = vmatpush.msrb.mxu1 %v5990_v26 }
 0x5dd   :  { %v5396_v15 = vadd.f32 %v12960_v8, %v5320_v5 }
 0x5df   :  { %v5468_v12 = vmax.f32 %v5396_v15, 0.0 }
 0x5e0   :  { %v5083_v3 = vpop.f32.mrf.mxu0 }
 0x5e1   :  { %5541 = vst.msk [vmem:[#allocation2 + $0xd0] sm:$0xff] %vm5514_vm2, %v5468_v12  ;;  %v5245_v54 = vadd.f32 %v5083_v3, %v12371_v55  ;;  %v13227_v15 = vpop.f32.mrf.mxu2  ;;  %v4741_v3 = vld [vmem:[%s14976_s0 + $0x1d4] sm:$0xff] }
 0x5e3   :  { %v5321_v28 = vmul.f32 %v12951_v17, %v5245_v54  ;;  %9326 = vmatmul.msk.f32.gmra.mxu0 %vm198_vm1, %v4735_v48 }
 0x5e5   :  { %v5397_v42 = vadd.f32 %v12960_v8, %v5321_v28 }
 0x5e7   :  { %v5469_v27 = vmax.f32 %v5397_v42, 0.0 }
 0x5e8   :  { %v5086_v33 = vpop.f32.mrf.mxu0 }
 0x5e9   :  { %5542 = vst.msk [vmem:[#allocation2 + $0xd8] sm:$0xff] %vm5514_vm2, %v5469_v27  ;;  %v5246_v23 = vadd.f32 %v5086_v33, %v12391_v1  ;;  %v4742_v33 = vld [vmem:[%s14976_s0 + $0x1dc] sm:$0xff] }
 0x5eb   :  { %v5322_v35 = vmul.f32 %v12951_v17, %v5246_v23  ;;  %9327 = vmatmul.msk.f32.gmra.mxu0 %vm198_vm1, %v4736_v21  ;;  %v13244_v23 = vpop.f32.mrf.mxu2 }
 0x5ed   :  { %v5398_v55 = vadd.f32 %v12960_v8, %v5322_v35 }
 0x5ef   :  { %v5470_v58 = vmax.f32 %v5398_v55, 0.0 }
 0x5f0   :  { %v5089_v45 = vpop.f32.mrf.mxu0 }
 0x5f1   :  { %5543 = vst.msk [vmem:[#allocation2 + $0xe0] sm:$0xff] %vm5514_vm2, %v5470_v58  ;;  %v5247_v39 = vadd.f32 %v5089_v45, %v12411_v32  ;;  %v4743_v45 = vld [vmem:[%s14976_s0 + $0x1e4] sm:$0xff] }
 0x5f3   :  { %v5323_v56 = vmul.f32 %v12951_v17, %v5247_v39  ;;  %9328 = vmatmul.msk.f32.gmra.mxu0 %vm198_vm1, %v4737_v6 }
 0x5f5   :  { %v5399_v1 = vadd.f32 %v12960_v8, %v5323_v56  ;;  %v13258_v56 = vpop.f32.mrf.mxu2 }
 0x5f7   :  { %v5471_v46 = vmax.f32 %v5399_v1, 0.0 }
 0x5f8   :  { %v5092_v11 = vpop.f32.mrf.mxu0 }
 0x5f9   :  { %5544 = vst.msk [vmem:[#allocation2 + $0xe8] sm:$0xff] %vm5514_vm2, %v5471_v46  ;;  %v5248_v13 = vadd.f32 %v5092_v11, %v12431_v59  ;;  %v13212_v59 = vpop.f32.mrf.mxu1 }
 0x5fb   :  { %v5324_v25 = vmul.f32 %v12951_v17, %v5248_v13  ;;  %9329 = vmatmul.msk.f32.gmra.mxu0 %vm198_vm1, %v4738_v43  ;;  %v4744_v43 = vld [vmem:[%s14976_s0 + $0x1ec] sm:$0xff] }
 0x5fd   :  { %v5400_v32 = vadd.f32 %v12960_v8, %v5324_v25 }
 0x5ff   :  { %v5472_v38 = vmax.f32 %v5400_v32, 0.0 }
 0x600   :  { %v5095_v4 = vpop.f32.mrf.mxu0 }
 0x601   :  { %5545 = vst.msk [vmem:[#allocation2 + $0xf0] sm:$0xff] %vm5514_vm2, %v5472_v38  ;;  %v5249_v0 = vadd.f32 %v5095_v4, %v12451_v57  ;;  %v13225_v26 = vpop.f32.mrf.mxu1  ;;  %v13271_v38 = vpop.f32.mrf.mxu2 }
 0x603   :  { %v5325_v40 = vmul.f32 %v12951_v17, %v5249_v0  ;;  %9330 = vmatmul.msk.f32.gmra.mxu0 %vm198_vm1, %v4739_v50  ;;  %v4745_v0 = vld [vmem:[%s14976_s0 + $0x1f4] sm:$0xff] }
 0x605   :  { %v5401_v9 = vadd.f32 %v12960_v8, %v5325_v40 }
 0x607   :  { %v5473_v22 = vmax.f32 %v5401_v9, 0.0 }
 0x608   :  { %v5098_v20 = vpop.f32.mrf.mxu0 }
 0x609   :  { %5546 = vst.msk [vmem:[#allocation2 + $0xf8] sm:$0xff] %vm5514_vm2, %v5473_v22  ;;  %v5250_v57 = vadd.f32 %v5098_v20, %v12471_v60  ;;  %v13237_v42 = vpop.f32.mrf.mxu1 }
 0x60b   :  { %v5326_v53 = vmul.f32 %v12951_v17, %v5250_v57  ;;  %9331 = vmatmul.msk.f32.gmra.mxu0 %vm198_vm1, %v4740_v41 }
 0x60d   :  { %v5402_v30 = vadd.f32 %v12960_v8, %v5326_v53 }
 0x60f   :  { %v5474_v5 = vmax.f32 %v5402_v30, 0.0 }
 0x610   :  { %v5101_v12 = vpop.f32.mrf.mxu0  ;;  %v5619_v20 = vld [vmem:[#allocation2 + $0xf8] sm:$0xff] }
 0x611   :  { %5547 = vst.msk [vmem:[#allocation2 + $0x100] sm:$0xff] %vm5514_vm2, %v5474_v5  ;;  %v5251_v60 = vadd.f32 %v5101_v12, %v12491_v61  ;;  %v13254_v39 = vpop.f32.mrf.mxu1  ;;  %v4746_v5 = vld [vmem:[%s14976_s0 + $0x1fc] sm:$0xff] }
 0x612   :  { %v5685_v12 = vld [vmem:[#allocation2 + $0xf2] sm:$0xff] }
 0x613   :  { %v5327_v48 = vmul.f32 %v12951_v17, %v5251_v60  ;;  %9332 = vmatmul.msk.f32.gmra.mxu0 %vm198_vm1, %v4741_v3 }
 0x615   :  { %v5403_v54 = vadd.f32 %v12960_v8, %v5327_v48 }
 0x617   :  { %v5475_v28 = vmax.f32 %v5403_v54, 0.0 }
 0x618   :  { %v5104_v27 = vpop.f32.mrf.mxu0  ;;  %v5686_v41 = vld [vmem:[#allocation2 + $0xfa] sm:$0xff] }
 0x619   :  { %5548 = vst.msk [vmem:[#allocation2 + $0x108] sm:$0xff] %vm5514_vm2, %v5475_v28  ;;  %v5252_v21 = vadd.f32 %v5104_v27, %v12511_v18  ;;  %v13268_v25 = vpop.f32.mrf.mxu1 }
 0x61b   :  { %v5328_v61 = vmul.f32 %v12951_v17, %v5252_v21  ;;  %9333 = vmatmul.msk.f32.gmra.mxu0 %vm198_vm1, %v4742_v33  ;;  %v5753_v33 = vmax.f32 %v5619_v20, %v5686_v41 }
 0x61d   :  { %v5404_v35 = vadd.f32 %v12960_v8, %v5328_v61  ;;  %v5618_v61 = vld [vmem:[#allocation2 + $0xf0] sm:$0xff] }
 0x61f   :  { %v5476_v55 = vmax.f32 %v5404_v35, 0.0 }
 0x620   :  { %v5107_v58 = vpop.f32.mrf.mxu0 }
 0x621   :  { %5549 = vst.msk [vmem:[#allocation2 + $0x110] sm:$0xff] %vm5514_vm2, %v5476_v55  ;;  %v5253_v6 = vadd.f32 %v5107_v58, %v12531_v51  ;;  %v13281_v22 = vpop.f32.mrf.mxu1  ;;  %v5684_v55 = vld [vmem:[#allocation2 + $0xea] sm:$0xff] }
 0x622   :  { %v5817_v58 = vld [vmem:[#allocation2 + $0x104] sm:$0xff] }
 0x623   :  { %v5329_v18 = vmul.f32 %v12951_v17, %v5253_v6  ;;  %9334 = vmatmul.msk.f32.gmra.mxu0 %vm198_vm1, %v4743_v45  ;;  %v5884_v45 = vld [vmem:[#allocation2 + $0x106] sm:$0xff] }
 0x625   :  { %v5405_v1 = vadd.f32 %v12960_v8, %v5329_v18 }
 0x627   :  { %v5477_v46 = vmax.f32 %v5405_v1, 0.0  ;;  %v5752_v1 = vmax.f32 %v5618_v61, %v5685_v12 }
 0x628   :  { %v5110_v11 = vpop.f32.mrf.mxu0  ;;  %v5818_v3 = vld [vmem:[#allocation2 + $0x10c] sm:$0xff] }
 0x629   :  { %5550 = vst.msk [vmem:[#allocation2 + $0x118] sm:$0xff] %vm5514_vm2, %v5477_v46  ;;  %v5254_v51 = vadd.f32 %v5110_v11, %v12551_v63  ;;  %v5885_v28 = vld [vmem:[#allocation2 + $0x10e] sm:$0xff]  ;;  %v13293_v12 = vpop.f32.mrf.mxu1 }
 0x62a   :  { %v5617_v46 = vld [vmem:[#allocation2 + $0xe8] sm:$0xff]  ;;  %v5952_v11 = vmax.f32 %v5818_v3, %v5885_v28 }
 0x62b   :  { %v5330_v13 = vmul.f32 %v12951_v17, %v5254_v51  ;;  %9335 = vmatmul.msk.f32.gmra.mxu0 %vm198_vm1, %v4744_v43  ;;  %v5683_v43 = vld [vmem:[#allocation2 + $0xe2] sm:$0xff] }
 0x62c   :  { %v5816_v51 = vld [vmem:[#allocation2 + $0xfc] sm:$0xff] }
 0x62d   :  { %v5406_v32 = vadd.f32 %v12960_v8, %v5330_v13  ;;  %v5883_v13 = vld [vmem:[#allocation2 + $0xfe] sm:$0xff] }
 0x62f   :  { %v5478_v4 = vmax.f32 %v5406_v32, 0.0 }
 0x630   :  { %v5113_v50 = vpop.f32.mrf.mxu0  ;;  %v5819_v57 = vld [vmem:[#allocation2 + $0x114] sm:$0xff] }
 0x631   :  { %5551 = vst.msk [vmem:[#allocation2 + $0x120] sm:$0xff] %vm5514_vm2, %v5478_v4  ;;  %v5255_v63 = vadd.f32 %v5113_v50, %v12571_v44  ;;  %v5886_v53 = vld [vmem:[#allocation2 + $0x116] sm:$0xff]  ;;  %v13286_v44 = vpop.f32.mrf.mxu2  ;;  %v5751_v4 = vmax.f32 %v5617_v46, %v5684_v55  ;;  %v5951_v50 = vmax.f32 %v5817_v58, %v5884_v45  ;;  %v5680_v55 = vld [vmem:[#allocation2 + $0xca] sm:$0xff] }
 0x632   :  { %v5953_v35 = vmax.f32 %v5819_v57, %v5886_v53  ;;  %v5615_v53 = vld [vmem:[#allocation2 + $0xd8] sm:$0xff]  ;;  %v5813_v58 = vld [vmem:[#allocation2 + $0xe4] sm:$0xff] }
 0x633   :  { %v5331_v40 = vmul.f32 %v12951_v17, %v5255_v63  ;;  %9336 = vmatmul.msk.f32.gmra.mxu0 %vm198_vm1, %v4745_v0  ;;  %v5682_v0 = vld [vmem:[#allocation2 + $0xda] sm:$0xff]  ;;  %v6019_v41 = vmax.f32 %v5751_v4, %v5952_v11  ;;  %v5880_v45 = vld [vmem:[#allocation2 + $0xe6] sm:$0xff] }
 0x634   :  { %v6020_v32 = vmax.f32 %v5752_v1, %v5953_v35  ;;  %v5616_v63 = vld [vmem:[#allocation2 + $0xe0] sm:$0xff]  ;;  %v5613_v1 = vld [vmem:[#allocation2 + $0xc8] sm:$0xff] }
 0x635   :  { %v5407_v9 = vadd.f32 %v12960_v8, %v5331_v40  ;;  %v5815_v40 = vld [vmem:[#allocation2 + $0xf4] sm:$0xff]  ;;  %v5750_v57 = vmax.f32 %v5616_v63, %v5683_v43  ;;  %v5679_v11 = vld [vmem:[#allocation2 + $0xc2] sm:$0xff] }
 0x636   :  { %v5879_v43 = vld [vmem:[#allocation2 + $0xde] sm:$0xff]  ;;  %v5878_v63 = vld [vmem:[#allocation2 + $0xd6] sm:$0xff] }
 0x637   :  { %v5479_v30 = vmax.f32 %v5407_v9, 0.0  ;;  %v5882_v9 = vld [vmem:[#allocation2 + $0xf6] sm:$0xff] }
 0x638   :  { %v5116_v60 = vpop.f32.mrf.mxu0  ;;  %v5820_v48 = vld [vmem:[#allocation2 + $0x11c] sm:$0xff] }
 0x639   :  { %v5887_v54 = vld [vmem:[#allocation2 + $0x11e] sm:$0xff]  ;;  %5552 = vst.msk [vmem:[#allocation2 + $0x128] sm:$0xff] %vm5514_vm2, %v5479_v30  ;;  %v5256_v27 = vadd.f32 %v5116_v60, %v12595_v29  ;;  %v5950_v30 = vmax.f32 %v5816_v51, %v5883_v13  ;;  %v5749_v60 = vmax.f32 %v5615_v53, %v5682_v0  ;;  %v13300_v61 = vpop.f32.mrf.mxu2  ;;  %v13307_v51 = vld [vmem:[%s14979_s3] ss:$0 sm:$0xff] }
 0x63a   :  { %v5954_v21 = vmax.f32 %v5820_v48, %v5887_v54  ;;  %v5814_v48 = vld [vmem:[#allocation2 + $0xec] sm:$0xff]  ;;  %v5678_v4 = vld [vmem:[#allocation2 + $0xba] sm:$0xff] }
 0x63b   :  { %v5332_v6 = vmul.f32 %v12951_v17, %v5256_v27  ;;  %9337 = vmatmul.msk.f32.gmra.mxu0 %vm198_vm1, %v4746_v5  ;;  %v5681_v5 = vld [vmem:[#allocation2 + $0xd2] sm:$0xff]  ;;  %v6018_v27 = vmax.f32 %v5750_v57, %v5951_v50  ;;  %v5612_v50 = vld [vmem:[#allocation2 + $0xc0] sm:$0xff] }
 0x63c   :  { %v6021_v18 = vmax.f32 %v5753_v33, %v5954_v21  ;;  %v5881_v54 = vld [vmem:[#allocation2 + $0xee] sm:$0xff]  ;;  %v5949_v21 = vmax.f32 %v5815_v40, %v5882_v9 }
 0x63d   :  { %v5408_v29 = vadd.f32 %v12960_v8, %v5332_v6  ;;  %v4747_v8 = vld [vmem:[%s14976_s0 + $0x204] sm:$0xff]  ;;  %v5614_v33 = vld [vmem:[#allocation2 + $0xd0] sm:$0xff]  ;;  %v5948_v46 = vmax.f32 %v5814_v48, %v5881_v54 }
 0x63e   :  { %6354 = vmatpush.msrb.mxu2 %v6021_v18  ;;  %v5748_v35 = vmax.f32 %v5614_v33, %v5681_v5  ;;  %v6017_v18 = vmax.f32 %v5749_v60, %v5950_v30  ;;  %v5811_v0 = vld [vmem:[#allocation2 + $0xd4] sm:$0xff]  ;;  %v4748_v5 = vld [vmem:[%s14976_s0 + $0x20c] sm:$0xff]  ;;  %v13315_v33 = vpop.f32.mrf.mxu1 }
 0x63f   :  { %v5480_v20 = vmax.f32 %v5408_v29, 0.0  ;;  %v5677_v53 = vld [vmem:[#allocation2 + $0xb2] sm:$0xff] }
 0x640   :  { %6355 = vmatpush.msrb.mxu2 %v6020_v32  ;;  %v5119_v3 = vpop.f32.mrf.mxu0  ;;  %v6016_v29 = vmax.f32 %v5748_v35, %v5949_v21  ;;  %v5747_v32 = vmax.f32 %v5613_v1, %v5680_v55  ;;  %v5877_v60 = vld [vmem:[#allocation2 + $0xce] sm:$0xff]  ;;  %v5809_v55 = vld [vmem:[#allocation2 + $0xc4] sm:$0xff] }
 0x641   :  { %5553 = vst.msk [vmem:[#allocation2 + $0x130] sm:$0xff] %vm5514_vm2, %v5480_v20  ;;  %v5257_v28 = vadd.f32 %v5119_v3, %v12615_v52  ;;  %v5812_v52 = vld [vmem:[#allocation2 + $0xdc] sm:$0xff]  ;;  %v5746_v20 = vmax.f32 %v5612_v50, %v5679_v11  ;;  %v5676_v35 = vld [vmem:[#allocation2 + $0xaa] sm:$0xff] }
 0x642   :  { %6356 = vmatpush.msrb.mxu2 %v6019_v41  ;;  %v6015_v9 = vmax.f32 %v5747_v32, %v5948_v46  ;;  %v5611_v41 = vld [vmem:[#allocation2 + $0xb8] sm:$0xff]  ;;  %v5946_v57 = vmax.f32 %v5812_v52, %v5879_v43  ;;  %v13324_v46 = vpop.f32.mrf.mxu2  ;;  %v5675_v11 = vld [vmem:[#allocation2 + $0xa2] sm:$0xff] }
 0x643   :  { %v5333_v6 = vmul.f32 %v12951_v17, %v5257_v28  ;;  %9338 = vmatmul.msk.f32.gmra.mxu0 %vm198_vm1, %v4747_v8  ;;  %v5947_v17 = vmax.f32 %v5813_v58, %v5880_v45  ;;  %v5745_v3 = vmax.f32 %v5611_v41, %v5678_v4  ;;  %v5810_v8 = vld [vmem:[#allocation2 + $0xcc] sm:$0xff]  ;;  %v13320_v45 = vld [vmem:[%s14978_s2] ss:$0 sm:$0xff]  ;;  %v5808_v52 = vld [vmem:[#allocation2 + $0xbc] sm:$0xff] }
 0x644   :  { %6357 = vmatpush.msrb.mxu2 %v6018_v27  ;;  %v5610_v28 = vld [vmem:[#allocation2 + $0xb0] sm:$0xff]  ;;  %v5945_v27 = vmax.f32 %v5811_v0, %v5878_v63  ;;  %v5876_v58 = vld [vmem:[#allocation2 + $0xc6] sm:$0xff]  ;;  %v5944_v1 = vmax.f32 %v5810_v8, %v5877_v60  ;;  %v5875_v43 = vld [vmem:[#allocation2 + $0xbe] sm:$0xff] }
 0x645   :  { %v5409_v13 = vadd.f32 %v13307_v51, %v5333_v6  ;;  %v6014_v54 = vmax.f32 %v5746_v20, %v5947_v17  ;;  %v5744_v21 = vmax.f32 %v5610_v28, %v5677_v53  ;;  %v5943_v17 = vmax.f32 %v5809_v55, %v5876_v58  ;;  %v5674_v4 = vld [vmem:[#allocation2 + $0x9a] sm:$0xff]  ;;  %v5673_v53 = vld [vmem:[#allocation2 + $0x92] sm:$0xff]  ;;  %v5805_v55 = vld [vmem:[#allocation2 + $0xa4] sm:$0xff] }
 0x646   :  { %6358 = vmatpush.msrb.mxu2 %v6017_v18  ;;  %v5609_v18 = vld [vmem:[#allocation2 + $0xa8] sm:$0xff]  ;;  %v5608_v50 = vld [vmem:[#allocation2 + $0xa0] sm:$0xff]  ;;  %v5807_v0 = vld [vmem:[#allocation2 + $0xb4] sm:$0xff] }
 0x647   :  { %v5481_v40 = vmax.f32 %v5409_v13, 0.0  ;;  %v5743_v32 = vmax.f32 %v5609_v18, %v5676_v35  ;;  %v5874_v63 = vld [vmem:[#allocation2 + $0xb6] sm:$0xff]  ;;  %v5742_v20 = vmax.f32 %v5608_v50, %v5675_v11  ;;  %v5806_v8 = vld [vmem:[#allocation2 + $0xac] sm:$0xff] }
 0x648   :  { %6359 = vmatpush.msrb.mxu2 %v6016_v29  ;;  %v5122_v30 = vpop.f32.mrf.mxu0  ;;  %v6012_v29 = vmax.f32 %v5744_v21, %v5945_v27  ;;  %v5607_v41 = vld [vmem:[#allocation2 + $0x98] sm:$0xff]  ;;  %v5873_v60 = vld [vmem:[#allocation2 + $0xae] sm:$0xff]  ;;  %v5941_v27 = vmax.f32 %v5807_v0, %v5874_v63  ;;  %v5872_v58 = vld [vmem:[#allocation2 + $0xa6] sm:$0xff] }
 0x649   :  { %5554 = vst.msk [vmem:[#allocation2 + $0x138] sm:$0xff] %vm5514_vm2, %v5481_v40  ;;  %v5258_v48 = vadd.f32 %v5122_v30, %v12635_v16  ;;  %v6013_v16 = vmax.f32 %v5745_v3, %v5946_v57  ;;  %v5942_v57 = vmax.f32 %v5808_v52, %v5875_v43  ;;  %v5741_v3 = vmax.f32 %v5607_v41, %v5674_v4  ;;  %v5606_v28 = vld [vmem:[#allocation2 + $0x90] sm:$0xff]  ;;  %v5605_v11 = vld [vmem:[#allocation2 + $0x88] sm:$0xff]  ;;  %v5604_v4 = vld [vmem:[#allocation2 + $0x80] sm:$0xff] }
 0x64a   :  { %6360 = vmatpush.msrb.mxu2 %v6015_v9  ;;  %v6011_v9 = vmax.f32 %v5743_v32, %v5944_v1  ;;  %v5740_v21 = vmax.f32 %v5606_v28, %v5673_v53  ;;  %v5672_v35 = vld [vmem:[#allocation2 + $0x8a] sm:$0xff]  ;;  %v5940_v18 = vmax.f32 %v5806_v8, %v5873_v60  ;;  %v13334_v1 = vpop.f32.mrf.mxu1  ;;  %v5671_v52 = vld [vmem:[#allocation2 + $0x82] sm:$0xff]  ;;  %v5939_v32 = vmax.f32 %v5805_v55, %v5872_v58 }
 0x64b   :  { %v5334_v6 = vmul.f32 %v13320_v45, %v5258_v48  ;;  %9339 = vmatmul.msk.f32.gmra.mxu0 %vm198_vm1, %v4748_v5  ;;  %v4749_v5 = vld [vmem:[%s14976_s0 + $0x214] sm:$0xff]  ;;  %v5738_v63 = vmax.f32 %v5604_v4, %v5671_v52 }
 0x64c   :  { %6361 = vmatpush.msrb.mxu2 %v6014_v54  ;;  %v6010_v54 = vmax.f32 %v5742_v20, %v5943_v17  ;;  %v13339_v17 = vpop.f32.mrf.mxu2  ;;  %v15082_v20 = vld [vmem:[#allocation8_spill] sm:$0xff] }
 0x64d   :  { %v5410_v13 = vadd.f32 %v13307_v51, %v5334_v6 }
 0x64e   :  { %6362 = vmatpush.msrb.mxu2 %v6013_v16  ;;  %v6009_v16 = vmax.f32 %v5741_v3, %v5942_v57  ;;  %v6006_v57 = vmax.f32 %v5738_v63, %v5939_v32  ;;  %v6058_v32 = vld [vmem:[%s14983_s7 + $0x8] sm:$0xff] }
 0x64f   :  { %v5482_v40 = vmax.f32 %v5410_v13, 0.0  ;;  %v6008_v13 = vmax.f32 %v5740_v21, %v5941_v27 }
 0x650   :  { %6363 = vmatpush.msrb.mxu2 %v6012_v29  ;;  %v5125_v30 = vpop.f32.mrf.mxu0  ;;  %v5739_v29 = vmax.f32 %v5605_v11, %v5672_v35 }
 0x651   :  { %5555 = vst.msk [vmem:[#allocation2 + $0x140] sm:$0xff] %vm5514_vm2, %v5482_v40  ;;  %v5259_v48 = vadd.f32 %v5125_v30, %v12655_v10  ;;  %v13336_v10 = vpop.f32.mrf.mxu3 }
 0x652   :  { %6364 = vmatpush.msrb.mxu2 %v6011_v9  ;;  %v6007_v0 = vmax.f32 %v5739_v29, %v5940_v18  ;;  %v4750_v9 = vld [vmem:[%s14976_s0 + $0x21c] sm:$0xff]  ;;  %v4753_v29 = vld [vmem:[%s14976_s0 + $0x234] sm:$0xff] }
 0x653   :  { %v5335_v6 = vmul.f32 %v13320_v45, %v5259_v48  ;;  %9340 = vmatmul.msk.f32.gmra.mxu0 %vm198_vm1, %v4749_v5  ;;  %v13349_v5 = vpop.f32.mrf.mxu1 }
 0x654   :  { %6365 = vmatpush.msrb.mxu2 %v6010_v54  ;;  %v13353_v60 = vpop.f32.mrf.mxu2  ;;  %v4751_v54 = vld [vmem:[%s14976_s0 + $0x224] sm:$0xff] }
 0x655   :  { %v5411_v43 = vadd.f32 %v13307_v51, %v5335_v6  ;;  %v4752_v6 = vld [vmem:[%s14976_s0 + $0x22c] sm:$0xff] }
 0x656   :  { %6366 = vmatpush.msrb.mxu2 %v6009_v16 }
 0x657   :  { %v5483_v50 = vmax.f32 %v5411_v43, 0.0 }
 0x658   :  { %6367 = vmatpush.msrb.mxu2 %v6008_v13  ;;  %v5128_v40 = vpop.f32.mrf.mxu0 }
 0x659   :  { %5556 = vst.msk [vmem:[#allocation2 + $0x148] sm:$0xff] %vm5514_vm2, %v5483_v50  ;;  %v5260_v41 = vadd.f32 %v5128_v40, %v15082_v20  ;;  %v13351_v3 = vpop.f32.mrf.mxu3  ;;  %v6057_v40 = vld [vmem:[%s14983_s7] sm:$0xff] }
 0x65a   :  { %6368 = vmatpush.msrb.mxu2 %v6007_v0  ;;  %6278 = vmatmul.f32.vlgmr.msrb.gmra.mxu1 %v6057_v40 }
 0x65b   :  { %v5336_v53 = vmul.f32 %v13320_v45, %v5260_v41  ;;  %9341 = vmatmul.msk.f32.gmra.mxu0 %vm198_vm1, %v4750_v9  ;;  %v13363_v55 = vpop.f32.mrf.mxu1  ;;  %v4754_v41 = vld [vmem:[%s14976_s0 + $0x23c] sm:$0xff] }
 0x65c   :  { %6369 = vmatpush.msrb.mxu2 %v6006_v57  ;;  %v13372_v18 = vpop.f32.mrf.mxu2  ;;  %v6063_v57 = vld [vmem:[%s14983_s7 + $0x30] sm:$0xff] }
 0x65d   :  { %v5412_v30 = vadd.f32 %v13307_v51, %v5336_v53  ;;  %6370 = vmatmul.f32.vlgmr.msrb.gmra.mxu2 %v6058_v32 }
 0x65f   :  { %v5484_v8 = vmax.f32 %v5412_v30, 0.0 }
 0x660   :  { %v5131_v48 = vpop.f32.mrf.mxu0 }
 0x661   :  { %5557 = vst.msk [vmem:[#allocation2 + $0x150] sm:$0xff] %vm5514_vm2, %v5484_v8  ;;  %v5261_v28 = vadd.f32 %v5131_v48, %v12693_v62  ;;  %v13368_v16 = vpop.f32.mrf.mxu3  ;;  %v6062_v48 = vld [vmem:[%s14983_s7 + $0x28] sm:$0xff] }
 0x662   :  { %6281 = vmatmul.f32.gmra.mxu1 %v6062_v48  ;;  %v6072_v48 = vld [vmem:[%s14983_s7 + $0x78] sm:$0xff] }
 0x663   :  { %v5337_v27 = vmul.f32 %v13320_v45, %v5261_v28  ;;  %9342 = vmatmul.msk.f32.gmra.mxu0 %vm198_vm1, %v4751_v54  ;;  %v13385_v4 = vpop.f32.mrf.mxu1 }
 0x664   :  { %v13391_v63 = vpop.f32.mrf.mxu2 }
 0x665   :  { %v5413_v21 = vadd.f32 %v13307_v51, %v5337_v27  ;;  %6373 = vmatmul.f32.gmra.mxu2 %v6063_v57 }
 0x667   :  { %v5485_v35 = vmax.f32 %v5413_v21, 0.0  ;;  %v15083_v21 = vld [vmem:[#allocation28_spill] sm:$0xff] }
 0x668   :  { %v5134_v58 = vpop.f32.mrf.mxu0 }
 0x669   :  { %5558 = vst.msk [vmem:[#allocation2 + $0x158] sm:$0xff] %vm5514_vm2, %v5485_v35  ;;  %v5262_v62 = vadd.f32 %v5134_v58, %v12712_v49  ;;  %v13387_v50 = vpop.f32.mrf.mxu3 }
 0x66b   :  { %v5338_v11 = vmul.f32 %v13320_v45, %v5262_v62  ;;  %9343 = vmatmul.msk.f32.gmra.mxu0 %vm198_vm1, %v4752_v6  ;;  %v13407_v8 = vpop.f32.mrf.mxu1  ;;  %v4755_v6 = vld [vmem:[%s14976_s0 + $0x244] sm:$0xff]  ;;  %v6068_v62 = vld [vmem:[%s14983_s7 + $0x58] sm:$0xff] }
 0x66c   :  { %v13415_v27 = vpop.f32.mrf.mxu2 }
 0x66d   :  { %v5414_v52 = vadd.f32 %v13307_v51, %v5338_v11  ;;  %6376 = vmatmul.f32.gmra.mxu2 %v6068_v62  ;;  %v6078_v62 = vld [vmem:[%s14983_s7 + $0xa8] sm:$0xff] }
 0x66f   :  { %v5486_v43 = vmax.f32 %v5414_v52, 0.0 }
 0x670   :  { %v5137_v13 = vpop.f32.mrf.mxu0 }
 0x671   :  { %5559 = vst.msk [vmem:[#allocation2 + $0x160] sm:$0xff] %vm5514_vm2, %v5486_v43  ;;  %v5263_v49 = vadd.f32 %v5137_v13, %v12731_v7  ;;  %v13412_v54 = vpop.f32.mrf.mxu3  ;;  %v6067_v13 = vld [vmem:[%s14983_s7 + $0x50] sm:$0xff] }
 0x672   :  { %6284 = vmatmul.f32.gmra.mxu1 %v6067_v13  ;;  %v6077_v13 = vld [vmem:[%s14983_s7 + $0xa0] sm:$0xff] }
 0x673   :  { %v5339_v0 = vmul.f32 %v13320_v45, %v5263_v49  ;;  %9344 = vmatmul.msk.f32.gmra.mxu0 %vm198_vm1, %v4753_v29  ;;  %v13435_v32 = vpop.f32.mrf.mxu1  ;;  %v15085_v49 = vld [vmem:[#allocation9_spill] sm:$0xff] }
 0x675   :  { %v5415_v9 = vadd.f32 %v13307_v51, %v5339_v0 }
 0x677   :  { %v5487_v20 = vmax.f32 %v5415_v9, 0.0  ;;  %v13442_v9 = vpop.f32.mrf.mxu2 }
 0x678   :  { %v5140_v7 = vpop.f32.mrf.mxu0 }
 0x679   :  { %5560 = vst.msk [vmem:[#allocation2 + $0x168] sm:$0xff] %vm5514_vm2, %v5487_v20  ;;  %v5264_v53 = vadd.f32 %v5140_v7, %v12750_v34  ;;  %v2874_v34 = vadd.f32 %v12704_v14, %v15083_v21  ;;  %v13440_v40 = vpop.f32.mrf.mxu3  ;;  %v4756_v7 = vld [vmem:[%s14976_s0 + $0x24c] sm:$0xff]  ;;  %v15086_v21 = vld [vmem:[#allocation30_spill] sm:$0xff] }
 0x67a   :  { %6287 = vmatmul.f32.gmra.mxu1 %v6072_v48 }
 0x67b   :  { %v5340_v30 = vmul.f32 %v13320_v45, %v5264_v53  ;;  %9345 = vmatmul.msk.f32.gmra.mxu0 %vm198_vm1, %v4754_v41  ;;  %v3472_v11 = vadd.f32 %v13212_v59, %v2874_v34  ;;  %v15084_v59 = vld [vmem:[#allocation29_spill] sm:$0xff] }
 0x67c   :  { %v2875_v0 = vadd.f32 %v15085_v49, %v15084_v59  ;;  %v6073_v41 = vld [vmem:[%s14983_s7 + $0x80] sm:$0xff] }
 0x67d   :  { %v5416_v28 = vadd.f32 %v13307_v51, %v5340_v30  ;;  %v4070_v43 = vadd.f32 %v13215_v31, %v3472_v11  ;;  %6379 = vmatmul.f32.gmra.mxu2 %v6073_v41 }
 0x67e   :  { %v3473_v57 = vadd.f32 %v13225_v26, %v2875_v0  ;;  %v2876_v26 = vadd.f32 %v12742_v19, %v15086_v21 }
 0x67f   :  { %v5488_v35 = vmax.f32 %v5416_v28, 0.0 }
 0x680   :  { %v5143_v58 = vpop.f32.mrf.mxu0  ;;  %v3474_v11 = vadd.f32 %v13237_v42, %v2876_v26  ;;  %v4759_v26 = vld [vmem:[%s14976_s0 + $0x264] sm:$0xff] }
 0x681   :  { %5561 = vst.msk [vmem:[#allocation2 + $0x170] sm:$0xff] %vm5514_vm2, %v5488_v35  ;;  %v5265_v52 = vadd.f32 %v5143_v58, %v12769_v47  ;;  %v4668_v47 = vadd.f32 %v13336_v10, %v4070_v43  ;;  %v4071_v10 = vadd.f32 %v13227_v15, %v3473_v57  ;;  %v13462_v58 = vpop.f32.mrf.mxu1 }
 0x682   :  { %v4072_v43 = vadd.f32 %v13244_v23, %v3474_v11  ;;  %6290 = vmatmul.f32.gmra.mxu1 %v6077_v13  ;;  %v4758_v23 = vld [vmem:[%s14976_s0 + $0x25c] sm:$0xff] }
 0x683   :  { %v5341_v14 = vmul.f32 %v13320_v45, %v5265_v52  ;;  %9346 = vmatmul.msk.f32.gmra.mxu0 %vm198_vm1, %v4755_v6  ;;  %v4669_v34 = vadd.f32 %v13351_v3, %v4071_v10  ;;  %v4757_v6 = vld [vmem:[%s14976_s0 + $0x254] sm:$0xff]  ;;  %v13471_v52 = vpop.f32.mrf.mxu3  ;;  %v13474_v3 = vpop.f32.mrf.mxu2 }
 0x684   :  { %v4670_v49 = vadd.f32 %v13368_v16, %v4072_v43  ;;  %v15089_v43 = vld [vmem:[#allocation33_spill] sm:$0xff] }
 0x685   :  { %v5417_v29 = vadd.f32 %v13307_v51, %v5341_v14  ;;  %6382 = vmatmul.f32.gmra.mxu2 %v6078_v62  ;;  %v6087_v62 = vld [vmem:[%s14983_s7 + $0xf0] sm:$0xff] }
 0x687   :  { %v5489_v31 = vmax.f32 %v5417_v29, 0.0  ;;  %v15087_v29 = vld [vmem:[#allocation31_spill] sm:$0xff] }
 0x688   :  { %v5146_v20 = vpop.f32.mrf.mxu0  ;;  %v2877_v59 = vadd.f32 %v12761_v37, %v15087_v29  ;;  %v4760_v29 = vld [vmem:[%s14976_s0 + $0x26c] sm:$0xff] }
 0x689   :  { %5562 = vst.msk [vmem:[#allocation2 + $0x178] sm:$0xff] %vm5514_vm2, %v5489_v31  ;;  %v5266_v53 = vadd.f32 %v5146_v20, %v4668_v47  ;;  %v6083_v31 = vld [vmem:[%s14983_s7 + $0xd0] sm:$0xff]  ;;  %v13494_v41 = vpop.f32.mrf.mxu1 }
 0x68a   :  { %v3475_v20 = vadd.f32 %v13254_v39, %v2877_v59  ;;  %v6082_v39 = vld [vmem:[%s14983_s7 + $0xc8] sm:$0xff]  ;;  %v6093_v59 = vld [vmem:[%s14983_s7 + $0x120] sm:$0xff] }
 0x68b   :  { %v5342_v30 = vmul.f32 %v13320_v45, %v5266_v53  ;;  %9347 = vmatmul.msk.f32.gmra.mxu0 %vm198_vm1, %v4756_v7  ;;  %v13497_v16 = vpop.f32.mrf.mxu3  ;;  %v13501_v53 = vpop.f32.mrf.mxu2  ;;  %6293 = vmatmul.f32.gmra.mxu1 %v6082_v39 }
 0x68c   :  { %v4073_v37 = vadd.f32 %v13258_v56, %v3475_v20 }
 0x68d   :  { %v5418_v28 = vadd.f32 %v13307_v51, %v5342_v30  ;;  %6385 = vmatmul.f32.gmra.mxu2 %v6083_v31  ;;  %v15088_v30 = vld [vmem:[#allocation32_spill] sm:$0xff] }
 0x68e   :  { %v2878_v48 = vadd.f32 %v12778_v24, %v15088_v30  ;;  %v4671_v56 = vadd.f32 %v13387_v50, %v4073_v37  ;;  %v6098_v30 = vld [vmem:[%s14983_s7 + $0x148] sm:$0xff] }
 0x68f   :  { %v5490_v35 = vmax.f32 %v5418_v28, 0.0 }
 0x690   :  { %v5149_v15 = vpop.f32.mrf.mxu0 }
 0x691   :  { %5563 = vst.msk [vmem:[#allocation2 + $0x180] sm:$0xff] %vm5514_vm2, %v5490_v35  ;;  %v5267_v19 = vadd.f32 %v5149_v15, %v4669_v34  ;;  %v6088_v34 = vld [vmem:[%s14983_s7 + $0xf8] sm:$0xff]  ;;  %v3476_v35 = vadd.f32 %v13268_v25, %v2878_v48 }
 0x693   :  { %v5343_v14 = vmul.f32 %v13320_v45, %v5267_v19  ;;  %9348 = vmatmul.msk.f32.gmra.mxu0 %vm198_vm1, %v4757_v6  ;;  %v4074_v24 = vadd.f32 %v13271_v38, %v3476_v35  ;;  %v13521_v6 = vpop.f32.mrf.mxu1  ;;  %v13526_v11 = vpop.f32.mrf.mxu3  ;;  %6296 = vmatmul.f32.gmra.mxu1 %v6087_v62  ;;  %v2879_v38 = vadd.f32 %v12793_v2, %v15089_v43  ;;  %v15092_v35 = vld [vmem:[#allocation10_spill] sm:$0xff] }
 0x694   :  { %v13529_v19 = vpop.f32.mrf.mxu2  ;;  %v4762_v43 = vld [vmem:[%s14976_s0 + $0x27c] sm:$0xff] }
 0x695   :  { %v5419_v42 = vadd.f32 %v13307_v51, %v5343_v14  ;;  %6388 = vmatmul.f32.gmra.mxu2 %v6088_v34  ;;  %v4672_v14 = vadd.f32 %v13412_v54, %v4074_v24  ;;  %v5701_v24 = vld [vmem:[#allocation2 + $0x172] sm:$0xff] }
 0x697   :  { %v5491_v0 = vmax.f32 %v5419_v42, 0.0 }
 0x698   :  { %v5152_v47 = vpop.f32.mrf.mxu0  ;;  %v5702_v34 = vld [vmem:[#allocation2 + $0x17a] sm:$0xff] }
 0x699   :  { %5564 = vst.msk [vmem:[#allocation2 + $0x188] sm:$0xff] %vm5514_vm2, %v5491_v0  ;;  %v5268_v7 = vadd.f32 %v5152_v47, %v4670_v49  ;;  %v3477_v49 = vadd.f32 %v13281_v22, %v2879_v38  ;;  %v6092_v47 = vld [vmem:[%s14983_s7 + $0x118] sm:$0xff]  ;;  %v15090_v22 = vld [vmem:[#allocation34_spill] sm:$0xff] }
 0x69a   :  { %v2880_v20 = vadd.f32 %v12808_v36, %v15090_v22  ;;  %v5700_v22 = vld [vmem:[#allocation2 + $0x16a] sm:$0xff] }
 0x69b   :  { %v5344_v57 = vmul.f32 %v13320_v45, %v5268_v7  ;;  %9349 = vmatmul.msk.f32.gmra.mxu0 %vm198_vm1, %v4758_v23  ;;  %v4075_v2 = vadd.f32 %v13286_v44, %v3477_v49  ;;  %6299 = vmatmul.f32.gmra.mxu1 %v6092_v47  ;;  %v13549_v31 = vpop.f32.mrf.mxu1  ;;  %v13554_v37 = vpop.f32.mrf.mxu3 }
 0x69c   :  { %v3478_v48 = vadd.f32 %v13293_v12, %v2880_v20  ;;  %v15091_v12 = vld [vmem:[#allocation35_spill] sm:$0xff] }
 0x69d   :  { %v5420_v10 = vadd.f32 %v13307_v51, %v5344_v57  ;;  %6391 = vmatmul.f32.gmra.mxu2 %v6093_v59  ;;  %v4673_v7 = vadd.f32 %v13440_v40, %v4075_v2  ;;  %v13556_v57 = vpop.f32.mrf.mxu2  ;;  %v6103_v2 = vld [vmem:[%s14983_s7 + $0x170] sm:$0xff] }
 0x69e   :  { %v4076_v40 = vadd.f32 %v13300_v61, %v3478_v48 }
 0x69f   :  { %v5492_v28 = vmax.f32 %v5420_v10, 0.0  ;;  %v4761_v10 = vld [vmem:[%s14976_s0 + $0x274] sm:$0xff] }
 0x6a0   :  { %v5155_v21 = vpop.f32.mrf.mxu0  ;;  %v4674_v61 = vadd.f32 %v13471_v52, %v4076_v40 }
 0x6a1   :  { %5565 = vst.msk [vmem:[#allocation2 + $0x190] sm:$0xff] %vm5514_vm2, %v5492_v28  ;;  %v5269_v15 = vadd.f32 %v5155_v21, %v4671_v56  ;;  %v6097_v28 = vld [vmem:[%s14983_s7 + $0x140] sm:$0xff] }
 0x6a3   :  { %v5345_v50 = vmul.f32 %v13320_v45, %v5269_v15  ;;  %9350 = vmatmul.msk.f32.gmra.mxu0 %vm198_vm1, %v4759_v26  ;;  %v5635_v26 = vld [vmem:[#allocation2 + $0x178] sm:$0xff]  ;;  %6302 = vmatmul.f32.gmra.mxu1 %v6097_v28  ;;  %v2881_v15 = vadd.f32 %v15092_v35, %v15091_v12  ;;  %v13585_v52 = vpop.f32.mrf.mxu3 }
 0x6a4   :  { %v5769_v59 = vmax.f32 %v5635_v26, %v5702_v34  ;;  %v5899_v26 = vld [vmem:[#allocation2 + $0x17e] sm:$0xff] }
 0x6a5   :  { %v5421_v25 = vadd.f32 %v13307_v51, %v5345_v50  ;;  %6394 = vmatmul.f32.gmra.mxu2 %v6098_v30  ;;  %v13589_v20 = vpop.f32.mrf.mxu2 }
 0x6a7   :  { %v5493_v13 = vmax.f32 %v5421_v25, 0.0 }
 0x6a8   :  { %v5158_v42 = vpop.f32.mrf.mxu0  ;;  %v5834_v38 = vld [vmem:[#allocation2 + $0x18c] sm:$0xff] }
 0x6a9   :  { %5566 = vst.msk [vmem:[#allocation2 + $0x198] sm:$0xff] %vm5514_vm2, %v5493_v13  ;;  %v5270_v0 = vadd.f32 %v5158_v42, %v4672_v14  ;;  %v5901_v14 = vld [vmem:[#allocation2 + $0x18e] sm:$0xff]  ;;  %v3479_v13 = vadd.f32 %v13315_v33, %v2881_v15  ;;  %v13580_v42 = vpop.f32.mrf.mxu1  ;;  %v5698_v15 = vld [vmem:[#allocation2 + $0x15a] sm:$0xff] }
 0x6aa   :  { %v5968_v40 = vmax.f32 %v5834_v38, %v5901_v14  ;;  %v5898_v38 = vld [vmem:[#allocation2 + $0x176] sm:$0xff] }
 0x6ab   :  { %v5346_v54 = vmul.f32 %v13320_v45, %v5270_v0  ;;  %9351 = vmatmul.msk.f32.gmra.mxu0 %vm198_vm1, %v4760_v29  ;;  %v4077_v33 = vadd.f32 %v13324_v46, %v3479_v13  ;;  %v6102_v46 = vld [vmem:[%s14983_s7 + $0x168] sm:$0xff] }
 0x6ac   :  { %6305 = vmatmul.f32.gmra.mxu1 %v6102_v46  ;;  %v5629_v46 = vld [vmem:[#allocation2 + $0x148] sm:$0xff] }
 0x6ad   :  { %v5422_v23 = vadd.f32 %v13307_v51, %v5346_v54  ;;  %6397 = vmatmul.f32.gmra.mxu2 %v6103_v2  ;;  %v5830_v2 = vld [vmem:[#allocation2 + $0x16c] sm:$0xff] }
 0x6af   :  { %v5494_v44 = vmax.f32 %v5422_v23, 0.0 }
 0x6b0   :  { %v5161_v39 = vpop.f32.mrf.mxu0  ;;  %v5835_v50 = vld [vmem:[#allocation2 + $0x194] sm:$0xff] }
 0x6b1   :  { %5567 = vst.msk [vmem:[#allocation2 + $0x1a0] sm:$0xff] %vm5514_vm2, %v5494_v44  ;;  %v5271_v36 = vadd.f32 %v5161_v39, %v4673_v7  ;;  %v5902_v62 = vld [vmem:[#allocation2 + $0x196] sm:$0xff]  ;;  %v5833_v44 = vld [vmem:[#allocation2 + $0x184] sm:$0xff] }
 0x6b2   :  { %v5969_v23 = vmax.f32 %v5835_v50, %v5902_v62  ;;  %v5634_v7 = vld [vmem:[#allocation2 + $0x170] sm:$0xff]  ;;  %v5900_v39 = vld [vmem:[#allocation2 + $0x186] sm:$0xff] }
 0x6b3   :  { %v5347_v56 = vmul.f32 %v13320_v45, %v5271_v36  ;;  %9352 = vmatmul.msk.f32.gmra.mxu0 %vm198_vm1, %v4761_v10  ;;  %v5768_v48 = vmax.f32 %v5634_v7, %v5701_v24  ;;  %v5633_v36 = vld [vmem:[#allocation2 + $0x168] sm:$0xff]  ;;  %v5967_v35 = vmax.f32 %v5833_v44, %v5900_v39  ;;  %v5630_v39 = vld [vmem:[#allocation2 + $0x150] sm:$0xff] }
 0x6b4   :  { %v5767_v28 = vmax.f32 %v5633_v36, %v5700_v22  ;;  %v15093_v50 = vld [vmem:[#allocation36_spill] sm:$0xff]  ;;  %v15094_v62 = vld [vmem:[#allocation11_spill] sm:$0xff] }
 0x6b5   :  { %v5423_v21 = vadd.f32 %v13307_v51, %v5347_v56  ;;  %v5699_v56 = vld [vmem:[#allocation2 + $0x162] sm:$0xff]  ;;  %v6036_v12 = vmax.f32 %v5768_v48, %v5969_v23  ;;  %v2882_v24 = vadd.f32 %v15094_v62, %v15093_v50  ;;  %v4763_v23 = vld [vmem:[%s14976_s0 + $0x284] sm:$0xf]  ;;  %v13609_v48 = vpop.f32.mrf.mxu1 }
 0x6b6   :  { %v6035_v13 = vmax.f32 %v5767_v28, %v5968_v40  ;;  %v5829_v40 = vld [vmem:[#allocation2 + $0x164] sm:$0xff]  ;;  %v13611_v28 = vpop.f32.mrf.mxu3 }
 0x6b7   :  { %v5495_v25 = vmax.f32 %v5423_v21, 0.0  ;;  %v5832_v21 = vld [vmem:[#allocation2 + $0x17c] sm:$0xff]  ;;  %v6107_v62 = vld [vmem:[%s14983_s7 + $0x190] sm:$0xff] }
 0x6b8   :  { %v5164_v29 = vpop.f32.mrf.mxu0  ;;  %v5836_v49 = vld [vmem:[#allocation2 + $0x19c] sm:$0xff]  ;;  %6308 = vmatmul.f32.gmra.mxu1 %v6107_v62 }
 0x6b9   :  { %v5903_v0 = vld [vmem:[#allocation2 + $0x19e] sm:$0xff]  ;;  %5568 = vst.msk [vmem:[#allocation2 + $0x1a8] sm:$0xff] %vm5514_vm2, %v5495_v25  ;;  %v5272_v54 = vadd.f32 %v5164_v29, %v4674_v61  ;;  %v4675_v61 = vadd.f32 %v13497_v16, %v4077_v33  ;;  %v5897_v16 = vld [vmem:[#allocation2 + $0x16e] sm:$0xff] }
 0x6ba   :  { %v5970_v47 = vmax.f32 %v5836_v49, %v5903_v0  ;;  %v5632_v25 = vld [vmem:[#allocation2 + $0x160] sm:$0xff]  ;;  %v5966_v49 = vmax.f32 %v5832_v21, %v5899_v26  ;;  %v5697_v0 = vld [vmem:[#allocation2 + $0x152] sm:$0xff] }
 0x6bb   :  { %v5348_v10 = vmul.f32 %v13320_v45, %v5272_v54  ;;  %9353 = vmatmul.msk.f32.gmra.mxu0 %vm198_vm1, %v4762_v43  ;;  %v5831_v43 = vld [vmem:[#allocation2 + $0x174] sm:$0xff]  ;;  %v5766_v29 = vmax.f32 %v5632_v25, %v5699_v56  ;;  %v3480_v54 = vadd.f32 %v13334_v1, %v2882_v24  ;;  %v5764_v36 = vmax.f32 %v5630_v39, %v5697_v0  ;;  %v5896_v56 = vld [vmem:[#allocation2 + $0x166] sm:$0xff]  ;;  %v5895_v50 = vld [vmem:[#allocation2 + $0x15e] sm:$0xff] }
 0x6bc   :  { %v6037_v30 = vmax.f32 %v5769_v59, %v5970_v47  ;;  %v5631_v59 = vld [vmem:[#allocation2 + $0x158] sm:$0xff]  ;;  %v6108_v33 = vld [vmem:[%s14983_s7 + $0x198] sm:$0xff]  ;;  %v5963_v25 = vmax.f32 %v5829_v40, %v5896_v56 }
 0x6bd   :  { %v5424_v34 = vadd.f32 %v13307_v51, %v5348_v10  ;;  %v5765_v22 = vmax.f32 %v5631_v59, %v5698_v15  ;;  %v6034_v44 = vmax.f32 %v5766_v29, %v5967_v35  ;;  %v5965_v10 = vmax.f32 %v5831_v43, %v5898_v38  ;;  %6400 = vmatmul.f32.gmra.mxu2 %v6108_v33  ;;  %v13615_v35 = vpop.f32.mrf.mxu2  ;;  %v5694_v43 = vld [vmem:[#allocation2 + $0x13a] sm:$0xff]  ;;  %v15095_v38 = vld [vmem:[#allocation37_spill] sm:$0xff]  ;;  %v5692_v40 = vld [vmem:[#allocation2 + $0x12a] sm:$0xff]  ;;  %v13631_v62 = vpop.f32.mrf.mxu1 }
 0x6be   :  { %6446 = vmatpush.msra.mxu3 %v6037_v30  ;;  %v5696_v30 = vld [vmem:[#allocation2 + $0x14a] sm:$0xff]  ;;  %v4078_v1 = vadd.f32 %v13339_v17, %v3480_v54  ;;  %v5828_v17 = vld [vmem:[#allocation2 + $0x15c] sm:$0xff] }
 0x6bf   :  { %v5496_v14 = vmax.f32 %v5424_v34, 0.0  ;;  %v6033_v26 = vmax.f32 %v5765_v22, %v5966_v49  ;;  %v5964_v34 = vmax.f32 %v5830_v2, %v5897_v16  ;;  %v5763_v15 = vmax.f32 %v5629_v46, %v5696_v30  ;;  %v5628_v59 = vld [vmem:[#allocation2 + $0x140] sm:$0xff]  ;;  %v5827_v49 = vld [vmem:[#allocation2 + $0x154] sm:$0xff]  ;;  %v5826_v39 = vld [vmem:[#allocation2 + $0x14c] sm:$0xff] }
 0x6c0   :  { %6447 = vmatpush.msra.mxu3 %v6036_v12  ;;  %v5167_v47 = vpop.f32.mrf.mxu0  ;;  %v5695_v12 = vld [vmem:[#allocation2 + $0x142] sm:$0xff]  ;;  %v4676_v29 = vadd.f32 %v13526_v11, %v4078_v1  ;;  %v5894_v0 = vld [vmem:[#allocation2 + $0x156] sm:$0xff]  ;;  %v5962_v22 = vmax.f32 %v5828_v17, %v5895_v50 }
 0x6c1   :  { %5569 = vst.msk [vmem:[#allocation2 + $0x1b0] sm:$0xff] %vm5514_vm2, %v5496_v14  ;;  %v5273_v7 = vadd.f32 %v5167_v47, %v4675_v61  ;;  %v6032_v61 = vmax.f32 %v5764_v36, %v5965_v10  ;;  %v15096_v14 = vld [vmem:[#allocation12_spill] sm:$0xff]  ;;  %v6031_v54 = vmax.f32 %v5763_v15, %v5964_v34  ;;  %v5762_v47 = vmax.f32 %v5628_v59, %v5695_v12  ;;  %v5693_v16 = vld [vmem:[#allocation2 + $0x132] sm:$0xff]  ;;  %v5691_v50 = vld [vmem:[#allocation2 + $0x122] sm:$0xff] }
 0x6c2   :  { %6448 = vmatpush.msra.mxu3 %v6035_v13  ;;  %v2883_v13 = vadd.f32 %v15096_v14, %v15095_v38  ;;  %v5893_v10 = vld [vmem:[#allocation2 + $0x14e] sm:$0xff]  ;;  %v6113_v11 = vld [vmem:[%s14983_s7 + $0x1c0] sm:$0xff]  ;;  %v5961_v36 = vmax.f32 %v5827_v49, %v5894_v0 }
 0x6c3   :  { %v5349_v21 = vmul.f32 %v13320_v45, %v5273_v7  ;;  %9354 = vmatmul.msk.f32.gmra.mxu0 %vm198_vm1, %v4763_v23  ;;  %v5627_v23 = vld [vmem:[#allocation2 + $0x138] sm:$0xff]  ;;  %v6030_v1 = vmax.f32 %v5762_v47, %v5963_v25  ;;  %v5625_v15 = vld [vmem:[#allocation2 + $0x128] sm:$0xff]  ;;  %v5960_v17 = vmax.f32 %v5826_v39, %v5893_v10  ;;  %v5624_v47 = vld [vmem:[#allocation2 + $0x120] sm:$0xff] }
 0x6c4   :  { %6449 = vmatpush.msra.mxu3 %v6034_v44  ;;  %v3481_v33 = vadd.f32 %v13349_v5, %v2883_v13  ;;  %v5761_v44 = vmax.f32 %v5627_v23, %v5694_v43  ;;  %v5825_v5 = vld [vmem:[#allocation2 + $0x144] sm:$0xff]  ;;  %v13636_v43 = vpop.f32.mrf.mxu3  ;;  %v15097_v59 = vld [vmem:[#allocation38_spill] sm:$0xff]  ;;  %v15098_v49 = vld [vmem:[#allocation13_spill] sm:$0xff] }
 0x6c5   :  { %v5425_v24 = vadd.f32 %v13307_v51, %v5349_v21  ;;  %6403 = vmatmul.f32.gmra.mxu2 %v6113_v11  ;;  %v5626_v21 = vld [vmem:[#allocation2 + $0x130] sm:$0xff]  ;;  %v5891_v25 = vld [vmem:[#allocation2 + $0x13e] sm:$0xff]  ;;  %v2884_v0 = vadd.f32 %v15098_v49, %v15097_v59 }
 0x6c6   :  { %6450 = vmatpush.msra.mxu3 %v6033_v26  ;;  %v4079_v56 = vadd.f32 %v13353_v60, %v3481_v33  ;;  %v5892_v26 = vld [vmem:[#allocation2 + $0x146] sm:$0xff]  ;;  %v6029_v34 = vmax.f32 %v5761_v44, %v5962_v22  ;;  %v5760_v12 = vmax.f32 %v5626_v21, %v5693_v16  ;;  %v6112_v60 = vld [vmem:[%s14983_s7 + $0x1b8] sm:$0xff]  ;;  %v5623_v44 = vld [vmem:[#allocation2 + $0x118] sm:$0xff] }
 0x6c7   :  { %v5497_v2 = vmax.f32 %v5425_v24, 0.0  ;;  %v5759_v24 = vmax.f32 %v5625_v15, %v5692_v40  ;;  %v5959_v13 = vmax.f32 %v5825_v5, %v5892_v26  ;;  %6311 = vmatmul.f32.gmra.mxu1 %v6112_v60  ;;  %v5823_v23 = vld [vmem:[#allocation2 + $0x134] sm:$0xff]  ;;  %v3482_v11 = vadd.f32 %v13363_v55, %v2884_v0  ;;  %v5688_v26 = vld [vmem:[#allocation2 + $0x10a] sm:$0xff]  ;;  %v5687_v60 = vld [vmem:[#allocation2 + $0x102] sm:$0xff]  ;;  %v13657_v0 = vpop.f32.mrf.mxu1 }
 0x6c8   :  { %6451 = vmatpush.msra.mxu3 %v6032_v61  ;;  %v5170_v7 = vpop.f32.mrf.mxu0  ;;  %v5824_v61 = vld [vmem:[#allocation2 + $0x13c] sm:$0xff]  ;;  %v6028_v14 = vmax.f32 %v5760_v12, %v5961_v36  ;;  %v5689_v10 = vld [vmem:[#allocation2 + $0x112] sm:$0xff]  ;;  %v5821_v55 = vld [vmem:[#allocation2 + $0x124] sm:$0xff] }
 0x6c9   :  { %5570 = vst.msk [vmem:[#allocation2 + $0x1b8] sm:$0xff] %vm5514_vm2, %v5497_v2  ;;  %v5274_v30 = vadd.f32 %v5170_v7, %v4676_v29  ;;  %v5690_v29 = vld [vmem:[#allocation2 + $0x11a] sm:$0xff]  ;;  %v4677_v2 = vadd.f32 %v13554_v37, %v4079_v56  ;;  %v6027_v33 = vmax.f32 %v5759_v24, %v5960_v17  ;;  %v5758_v7 = vmax.f32 %v5624_v47, %v5691_v50  ;;  %v5822_v36 = vld [vmem:[#allocation2 + $0x12c] sm:$0xff] }
 0x6ca   :  { %6452 = vmatpush.msra.mxu3 %v6031_v54  ;;  %v13642_v54 = vpop.f32.mrf.mxu2  ;;  %v5890_v22 = vld [vmem:[#allocation2 + $0x136] sm:$0xff]  ;;  %v5958_v39 = vmax.f32 %v5824_v61, %v5891_v25  ;;  %v5889_v40 = vld [vmem:[#allocation2 + $0x12e] sm:$0xff]  ;;  %v6118_v37 = vld [vmem:[%s14983_s7 + $0x1e8] sm:$0xff] }
 0x6cb   :  { %v5350_v46 = vmul.f32 %v13320_v45, %v5274_v30  ;;  %v6026_v21 = vmax.f32 %v5758_v7, %v5959_v13  ;;  %v5957_v5 = vmax.f32 %v5823_v23, %v5890_v22  ;;  %v5888_v12 = vld [vmem:[#allocation2 + $0x126] sm:$0xff]  ;;  %v5956_v61 = vmax.f32 %v5822_v36, %v5889_v40  ;;  %v15100_v59 = vld [vmem:[#allocation14_spill] sm:$0xff] }
 0x6cc   :  { %6453 = vmatpush.msra.mxu3 %v6030_v1  ;;  %v5757_v1 = vmax.f32 %v5623_v44, %v5690_v29  ;;  %v5621_v24 = vld [vmem:[#allocation2 + $0x108] sm:$0xff]  ;;  %v5955_v13 = vmax.f32 %v5821_v55, %v5888_v12  ;;  %v4587_v23 = vpop.f32.mrf.mxu3  ;;  %v6122_v40 = vld [vmem:[%s14983_s7 + $0x208] sm:$0xff] }
 0x6cd   :  { %v5426_v38 = vadd.f32 %v13307_v51, %v5350_v46  ;;  %6406 = vmatmul.f32.gmra.mxu2 %v6118_v37  ;;  %v4080_v46 = vadd.f32 %v13372_v18, %v3482_v11  ;;  %v5755_v25 = vmax.f32 %v5621_v24, %v5688_v26  ;;  %v15099_v29 = vld [vmem:[#allocation39_spill] sm:$0xff]  ;;  %v15101_v37 = vld [vmem:[#allocation40_spill] sm:$0xff] }
 0x6ce   :  { %6454 = vmatpush.msra.mxu3 %v6029_v34  ;;  %v5622_v34 = vld [vmem:[#allocation2 + $0x110] sm:$0xff]  ;;  %v6025_v17 = vmax.f32 %v5757_v1, %v5958_v39  ;;  %v2885_v49 = vadd.f32 %v15100_v59, %v15099_v29  ;;  %v6123_v39 = vld [vmem:[%s14983_s7 + $0x210] sm:$0xff] }
 0x6cf   :  { %v5498_v16 = vmax.f32 %v5426_v38, 0.0  ;;  %v5756_v50 = vmax.f32 %v5622_v34, %v5689_v10  ;;  %v6117_v38 = vld [vmem:[%s14983_s7 + $0x1e0] sm:$0xff]  ;;  %v4678_v47 = vadd.f32 %v13585_v52, %v4080_v46  ;;  %v6059_v52 = vld [vmem:[%s14983_s7 + $0x10] sm:$0xff]  ;;  %v13679_v46 = vpop.f32.mrf.mxu1  ;;  %v6128_v34 = vld [vmem:[%s14983_s7 + $0x238] sm:$0xff] }
 0x6d0   :  { %6455 = vmatpush.msra.mxu3 %v6028_v14  ;;  %v5173_v30 = vpop.f32.mrf.mxu0  ;;  %6314 = vmatmul.f32.gmra.mxu1 %v6117_v38  ;;  %v3483_v10 = vadd.f32 %v13385_v4, %v2885_v49  ;;  %v6127_v24 = vld [vmem:[%s14983_s7 + $0x230] sm:$0xff]  ;;  %v6069_v49 = vld [vmem:[%s14983_s7 + $0x60] sm:$0xff] }
 0x6d1   :  { %5571 = vst.msk [vmem:[#allocation2 + $0x1c0] sm:$0xff] %vm5514_vm2, %v5498_v16  ;;  %v5275_v56 = vadd.f32 %v5173_v30, %v4677_v2  ;;  %v6024_v18 = vmax.f32 %v5756_v50, %v5957_v5  ;;  %v5620_v2 = vld [vmem:[#allocation2 + $0x100] sm:$0xff]  ;;  %v6023_v16 = vmax.f32 %v5755_v25, %v5956_v61  ;;  %v15103_v25 = vld [vmem:[#allocation41_spill] sm:$0xff] }
 0x6d2   :  { %6456 = vmatpush.msra.mxu3 %v6027_v33  ;;  %v5754_v33 = vmax.f32 %v5620_v2, %v5687_v60  ;;  %v13660_v7 = vpop.f32.mrf.mxu2  ;;  %v4081_v1 = vadd.f32 %v13391_v63, %v3483_v10  ;;  %v15104_v60 = vld [vmem:[#allocation16_spill] sm:$0xff] }
 0x6d3   :  { %v5351_v15 = vmul.f32 %v13320_v45, %v5275_v56  ;;  %v15102_v56 = vld [vmem:[#allocation15_spill] sm:$0xff]  ;;  %v2887_v38 = vadd.f32 %v15104_v60, %v15103_v25 }
 0x6d4   :  { %6457 = vmatpush.msra.mxu3 %v6026_v21  ;;  %v6022_v30 = vmax.f32 %v5754_v33, %v5955_v13  ;;  %v2886_v21 = vadd.f32 %v15102_v56, %v15101_v37  ;;  %v4679_v5 = vadd.f32 %v13611_v28, %v4081_v1  ;;  %v4590_v12 = vpop.f32.mrf.mxu3  ;;  %v6133_v13 = vld [vmem:[%s14983_s7 + $0x260] sm:$0xff] }
 0x6d5   :  { %v5427_v14 = vadd.f32 %v13307_v51, %v5351_v15  ;;  %6409 = vmatmul.f32.gmra.mxu2 %v6123_v39  ;;  %v6064_v15 = vld [vmem:[%s14983_s7 + $0x38] sm:$0xff]  ;;  %v3485_v29 = vadd.f32 %v13435_v32, %v2887_v38  ;;  %v6142_v38 = vld [vmem:[%s14983_s7 + $0x2a8] sm:$0xff] }
 0x6d6   :  { %6458 = vmatpush.msra.mxu3 %v6025_v17  ;;  %v3484_v55 = vadd.f32 %v13407_v8, %v2886_v21  ;;  %v13699_v8 = vld [vmem:[%s14979_s3] ss:$0 sm:$0xff]  ;;  %v6132_v32 = vld [vmem:[%s14983_s7 + $0x258] sm:$0xff] }
 0x6d7   :  { %v5499_v22 = vmax.f32 %v5427_v14, 0.0  ;;  %v13713_v2 = vpop.f32.mrf.mxu1  ;;  %v15106_v39 = vld [vmem:[#allocation17_spill] sm:$0xff] }
 0x6d8   :  { %6459 = vmatpush.msra.mxu3 %v6024_v18  ;;  %v5176_v44 = vpop.f32.mrf.mxu0  ;;  %6317 = vmatmul.f32.gmra.mxu1 %v6122_v40  ;;  %v4082_v17 = vadd.f32 %v13415_v27, %v3484_v55 }
 0x6d9   :  { %5572 = vst.msk [vmem:[#allocation2 + $0x1c8] sm:$0xff] %vm5514_vm2, %v5499_v22  ;;  %v5276_v11 = vadd.f32 %v5176_v44, %v4678_v47  ;;  %v15105_v44 = vld [vmem:[#allocation42_spill] sm:$0xff] }
 0x6da   :  { %6460 = vmatpush.msra.mxu3 %v6023_v16  ;;  %v13689_v28 = vpop.f32.mrf.mxu2  ;;  %v4680_v27 = vadd.f32 %v13636_v43, %v4082_v17  ;;  %v4083_v43 = vadd.f32 %v13442_v9, %v3485_v29  ;;  %v2888_v10 = vadd.f32 %v15106_v39, %v15105_v44  ;;  %v6143_v17 = vld [vmem:[%s14983_s7 + $0x2b0] sm:$0xff] }
 0x6db   :  { %v5352_v36 = vmul.f32 %v13320_v45, %v5276_v11 }
 0x6dc   :  { %6461 = vmatpush.msra.mxu3 %v6022_v30  ;;  %v4593_v47 = vpop.f32.mrf.mxu3  ;;  %v4681_v11 = vadd.f32 %v4587_v23, %v4083_v43  ;;  %v3486_v9 = vadd.f32 %v13462_v58, %v2888_v10  ;;  %v13737_v23 = vld [vmem:[%s14978_s2] ss:$0 sm:$0xff]  ;;  %v6147_v10 = vld [vmem:[%s14983_s7 + $0x2d0] sm:$0xff] }
 0x6dd   :  { %6462 = vmatmul.f32.vlgmr.msra.gmra.mxu3 %v6059_v52  ;;  %v5428_v4 = vadd.f32 %v13307_v51, %v5352_v36  ;;  %6412 = vmatmul.f32.gmra.mxu2 %v6128_v34  ;;  %v6074_v36 = vld [vmem:[%s14983_s7 + $0x88] sm:$0xff]  ;;  %v6137_v58 = vld [vmem:[%s14983_s7 + $0x280] sm:$0xff] }
 0x6df   :  { %v5500_v26 = vmax.f32 %v5428_v4, 0.0  ;;  %v6279_v40 = vpop.f32.mrf.mxu1  ;;  %v4084_v4 = vadd.f32 %v13474_v3, %v3486_v9  ;;  %v15107_v3 = vld [vmem:[#allocation43_spill] sm:$0xff] }
 0x6e0   :  { %v5179_v63 = vpop.f32.mrf.mxu0  ;;  %6320 = vmatmul.f32.gmra.mxu1 %v6127_v24 }
 0x6e1   :  { %5573 = vst.msk [vmem:[#allocation2 + $0x1d0] sm:$0xff] %vm5514_vm2, %v5500_v26  ;;  %v5277_v51 = vadd.f32 %v5179_v63, %v4679_v5  ;;  %v15108_v63 = vld [vmem:[#allocation18_spill] sm:$0xff]  ;;  %v4682_v55 = vadd.f32 %v4590_v12, %v4084_v4 }
 0x6e2   :  { %v13717_v16 = vpop.f32.mrf.mxu2  ;;  %v2889_v34 = vadd.f32 %v15108_v63, %v15107_v3  ;;  %v6152_v3 = vld [vmem:[%s14983_s7 + $0x2f8] sm:$0xff] }
 0x6e3   :  { %v5353_v50 = vmul.f32 %v13320_v45, %v5277_v51 }
 0x6e4   :  { %v4596_v21 = vpop.f32.mrf.mxu3 }
 0x6e5   :  { %6465 = vmatmul.f32.gmra.mxu3 %v6064_v15  ;;  %v5429_v61 = vadd.f32 %v13699_v8, %v5353_v50  ;;  %6415 = vmatmul.f32.gmra.mxu2 %v6133_v13  ;;  %v3487_v50 = vadd.f32 %v13494_v41, %v2889_v34  ;;  %v15113_v34 = vld [vmem:[#allocation46_spill] sm:$0xff] }
 0x6e7   :  { %v5501_v14 = vmax.f32 %v5429_v61, 0.0  ;;  %v6079_v61 = vld [vmem:[%s14983_s7 + $0xb0] sm:$0xff]  ;;  %v13756_v25 = vpop.f32.mrf.mxu1  ;;  %v4085_v12 = vadd.f32 %v13501_v53, %v3487_v50  ;;  %v6148_v53 = vld [vmem:[%s14983_s7 + $0x2d8] sm:$0xff] }
 0x6e8   :  { %v5182_v18 = vpop.f32.mrf.mxu0  ;;  %6323 = vmatmul.f32.gmra.mxu1 %v6132_v32 }
 0x6e9   :  { %5574 = vst.msk [vmem:[#allocation2 + $0x1d8] sm:$0xff] %vm5514_vm2, %v5501_v14  ;;  %v5278_v59 = vadd.f32 %v5182_v18, %v4680_v27  ;;  %v15109_v14 = vld [vmem:[#allocation44_spill] sm:$0xff]  ;;  %v15110_v18 = vld [vmem:[#allocation19_spill] sm:$0xff]  ;;  %v4683_v29 = vadd.f32 %v4593_v47, %v4085_v12 }
 0x6ea   :  { %v6371_v56 = vpop.f32.mrf.mxu2  ;;  %v2890_v13 = vadd.f32 %v15110_v18, %v15109_v14  ;;  %v6094_v12 = vld [vmem:[%s14983_s7 + $0x128] sm:$0xff]  ;;  %v6157_v18 = vld [vmem:[%s14983_s7 + $0x320] sm:$0xff] }
 0x6eb   :  { %v5354_v22 = vmul.f32 %v13320_v45, %v5278_v59  ;;  %v6138_v45 = vld [vmem:[%s14983_s7 + $0x288] sm:$0xff]  ;;  %v13744_v26 = vadd.f32 %v6371_v56, %v6279_v40 }
 0x6ec   :  { %v4599_v59 = vpop.f32.mrf.mxu3 }
 0x6ed   :  { %6468 = vmatmul.f32.gmra.mxu3 %v6069_v49  ;;  %v5430_v33 = vadd.f32 %v13699_v8, %v5354_v22  ;;  %6418 = vmatmul.f32.gmra.mxu2 %v6138_v45  ;;  %v3488_v22 = vadd.f32 %v13521_v6, %v2890_v13 }
 0x6ef   :  { %v5502_v30 = vmax.f32 %v5430_v33, 0.0  ;;  %v6084_v33 = vld [vmem:[%s14983_s7 + $0xd8] sm:$0xff]  ;;  %v13776_v44 = vpop.f32.mrf.mxu1  ;;  %v4086_v47 = vadd.f32 %v13529_v19, %v3488_v22  ;;  %v6153_v19 = vld [vmem:[%s14983_s7 + $0x300] sm:$0xff] }
 0x6f0   :  { %v5185_v52 = vpop.f32.mrf.mxu0  ;;  %6326 = vmatmul.f32.gmra.mxu1 %v6137_v58  ;;  %v6089_v58 = vld [vmem:[%s14983_s7 + $0x100] sm:$0xff] }
 0x6f1   :  { %5575 = vst.msk [vmem:[#allocation2 + $0x1e0] sm:$0xff] %vm5514_vm2, %v5502_v30  ;;  %v5279_v1 = vadd.f32 %v5185_v52, %v4681_v11  ;;  %v15111_v30 = vld [vmem:[#allocation45_spill] sm:$0xff]  ;;  %v15112_v52 = vld [vmem:[#allocation20_spill] sm:$0xff]  ;;  %v4684_v9 = vadd.f32 %v4596_v21, %v4086_v47 }
 0x6f2   :  { %v13763_v27 = vpop.f32.mrf.mxu2  ;;  %v2891_v45 = vadd.f32 %v15112_v52, %v15111_v30  ;;  %v6099_v47 = vld [vmem:[%s14983_s7 + $0x150] sm:$0xff]  ;;  %v6162_v30 = vld [vmem:[%s14983_s7 + $0x348] sm:$0xff] }
 0x6f3   :  { %v5355_v37 = vmul.f32 %v13737_v23, %v5279_v1 }
 0x6f4   :  { %v3489_v40 = vadd.f32 %v13549_v31, %v2891_v45  ;;  %v4602_v4 = vpop.f32.mrf.mxu3 }
 0x6f5   :  { %6471 = vmatmul.f32.gmra.mxu3 %v6074_v36  ;;  %v5431_v5 = vadd.f32 %v13699_v8, %v5355_v37  ;;  %6421 = vmatmul.f32.gmra.mxu2 %v6143_v17 }
 0x6f6   :  { %v4087_v21 = vadd.f32 %v13556_v57, %v3489_v40  ;;  %v6158_v57 = vld [vmem:[%s14983_s7 + $0x328] sm:$0xff] }
 0x6f7   :  { %v5503_v51 = vmax.f32 %v5431_v5, 0.0  ;;  %v13796_v56 = vpop.f32.mrf.mxu1 }
 0x6f8   :  { %v5188_v15 = vpop.f32.mrf.mxu0  ;;  %6329 = vmatmul.f32.gmra.mxu1 %v6142_v38 }
 0x6f9   :  { %5576 = vst.msk [vmem:[#allocation2 + $0x1e8] sm:$0xff] %vm5514_vm2, %v5503_v51  ;;  %v5280_v24 = vadd.f32 %v5188_v15, %v4682_v55  ;;  %v15114_v55 = vld [vmem:[#allocation21_spill] sm:$0xff]  ;;  %v4685_v15 = vadd.f32 %v4599_v59, %v4087_v21  ;;  %v15116_v59 = vld [vmem:[#allocation22_spill] sm:$0xff] }
 0x6fa   :  { %v13783_v11 = vpop.f32.mrf.mxu2  ;;  %v2892_v51 = vadd.f32 %v15114_v55, %v15113_v34  ;;  %v6104_v21 = vld [vmem:[%s14983_s7 + $0x178] sm:$0xff]  ;;  %v6167_v34 = vld [vmem:[%s14983_s7 + $0x370] sm:$0xff] }
 0x6fb   :  { %v5356_v60 = vmul.f32 %v13737_v23, %v5280_v24 }
 0x6fc   :  { %v3490_v24 = vadd.f32 %v13580_v42, %v2892_v51  ;;  %v15119_v51 = vld [vmem:[#allocation49_spill] sm:$0xff] }
 0x6fd   :  { %6474 = vmatmul.f32.gmra.mxu3 %v6079_v61  ;;  %v5432_v41 = vadd.f32 %v13699_v8, %v5356_v60  ;;  %6424 = vmatmul.f32.gmra.mxu2 %v6148_v53 }
 0x6fe   :  { %v4088_v38 = vadd.f32 %v13589_v20, %v3490_v24  ;;  %v6163_v20 = vld [vmem:[%s14983_s7 + $0x350] sm:$0xff] }
 0x6ff   :  { %v5504_v49 = vmax.f32 %v5432_v41, 0.0  ;;  %v13816_v60 = vpop.f32.mrf.mxu1  ;;  %v4605_v41 = vpop.f32.mrf.mxu3 }
 0x700   :  { %v5191_v43 = vpop.f32.mrf.mxu0  ;;  %6332 = vmatmul.f32.gmra.mxu1 %v6147_v10 }
 0x701   :  { %5577 = vst.msk [vmem:[#allocation2 + $0x1f0] sm:$0xff] %vm5514_vm2, %v5504_v49  ;;  %v5281_v32 = vadd.f32 %v5191_v43, %v4683_v29  ;;  %v15115_v29 = vld [vmem:[#allocation47_spill] sm:$0xff]  ;;  %v4686_v43 = vadd.f32 %v4602_v4, %v4088_v38 }
 0x702   :  { %v13803_v31 = vpop.f32.mrf.mxu2  ;;  %v2893_v49 = vadd.f32 %v15116_v59, %v15115_v29  ;;  %v6172_v29 = vld [vmem:[%s14983_s7 + $0x398] sm:$0xff] }
 0x703   :  { %v5357_v39 = vmul.f32 %v13737_v23, %v5281_v32 }
 0x704   :  { %v3491_v32 = vadd.f32 %v13609_v48, %v2893_v49  ;;  %v15121_v49 = vld [vmem:[#allocation50_spill] sm:$0xff] }
 0x705   :  { %6477 = vmatmul.f32.gmra.mxu3 %v6084_v33  ;;  %v5433_v6 = vadd.f32 %v13699_v8, %v5357_v39  ;;  %6427 = vmatmul.f32.gmra.mxu2 %v6153_v19 }
 0x706   :  { %v4089_v10 = vadd.f32 %v13615_v35, %v3491_v32  ;;  %v6168_v35 = vld [vmem:[%s14983_s7 + $0x378] sm:$0xff] }
 0x707   :  { %v5505_v1 = vmax.f32 %v5433_v6, 0.0  ;;  %v4608_v48 = vpop.f32.mrf.mxu3 }
 0x708   :  { %v5194_v36 = vpop.f32.mrf.mxu0  ;;  %6335 = vmatmul.f32.gmra.mxu1 %v6152_v3  ;;  %v13836_v39 = vpop.f32.mrf.mxu1  ;;  %v4687_v19 = vadd.f32 %v4605_v41, %v4089_v10  ;;  %v6109_v41 = vld [vmem:[%s14983_s7 + $0x1a0] sm:$0xff] }
 0x709   :  { %5578 = vst.msk [vmem:[#allocation2 + $0x1f8] sm:$0xff] %vm5514_vm2, %v5505_v1  ;;  %v5282_v37 = vadd.f32 %v5194_v36, %v4684_v9  ;;  %v15117_v9 = vld [vmem:[#allocation48_spill] sm:$0xff]  ;;  %v15118_v1 = vld [vmem:[#allocation23_spill] sm:$0xff] }
 0x70a   :  { %v13823_v42 = vpop.f32.mrf.mxu2  ;;  %v2894_v36 = vadd.f32 %v15118_v1, %v15117_v9  ;;  %v6177_v9 = vld [vmem:[%s14983_s7 + $0x3c0] sm:$0xff] }
 0x70b   :  { %v5358_v5 = vmul.f32 %v13737_v23, %v5282_v37 }
 0x70c   :  { %v3492_v37 = vadd.f32 %v13631_v62, %v2894_v36  ;;  %v15123_v36 = vld [vmem:[#allocation51_spill] sm:$0xff] }
 0x70d   :  { %6480 = vmatmul.f32.gmra.mxu3 %v6089_v58  ;;  %v5434_v63 = vadd.f32 %v13699_v8, %v5358_v5  ;;  %6430 = vmatmul.f32.gmra.mxu2 %v6158_v57 }
 0x70e   :  { %v4090_v3 = vadd.f32 %v13642_v54, %v3492_v37  ;;  %v6173_v54 = vld [vmem:[%s14983_s7 + $0x3a0] sm:$0xff] }
 0x70f   :  { %v5506_v17 = vmax.f32 %v5434_v63, 0.0  ;;  %v4611_v57 = vpop.f32.mrf.mxu3 }
 0x710   :  { %v5197_v50 = vpop.f32.mrf.mxu0  ;;  %6338 = vmatmul.f32.gmra.mxu1 %v6157_v18  ;;  %v13856_v5 = vpop.f32.mrf.mxu1 }
 0x711   :  { %5579 = vst.msk [vmem:[#allocation2 + $0x200] sm:$0xff] %vm5514_vm2, %v5506_v17  ;;  %v5283_v61 = vadd.f32 %v5197_v50, %v4685_v15  ;;  %v15120_v15 = vld [vmem:[#allocation24_spill] sm:$0xff]  ;;  %v4688_v50 = vadd.f32 %v4608_v48, %v4090_v3  ;;  %v5717_v3 = vld [vmem:[#allocation2 + $0x1f2] sm:$0xff] }
 0x712   :  { %v13843_v52 = vpop.f32.mrf.mxu2  ;;  %v2895_v17 = vadd.f32 %v15120_v15, %v15119_v51 }
 0x713   :  { %v5359_v14 = vmul.f32 %v13737_v23, %v5283_v61 }
 0x715   :  { %6483 = vmatmul.f32.gmra.mxu3 %v6094_v12  ;;  %v5435_v13 = vadd.f32 %v13699_v8, %v5359_v14  ;;  %6433 = vmatmul.f32.gmra.mxu2 %v6163_v20  ;;  %v3493_v12 = vadd.f32 %v13657_v0, %v2895_v17 }
 0x717   :  { %v5507_v53 = vmax.f32 %v5435_v13, 0.0  ;;  %v4091_v18 = vadd.f32 %v13660_v7, %v3493_v12  ;;  %v6178_v7 = vld [vmem:[%s14983_s7 + $0x3c8] sm:$0xff]  ;;  %v6119_v12 = vld [vmem:[%s14983_s7 + $0x1f0] sm:$0xff] }
 0x718   :  { %v5200_v22 = vpop.f32.mrf.mxu0  ;;  %6341 = vmatmul.f32.gmra.mxu1 %v6162_v30  ;;  %v13876_v14 = vpop.f32.mrf.mxu1 }
 0x719   :  { %5580 = vst.msk [vmem:[#allocation2 + $0x208] sm:$0xff] %vm5514_vm2, %v5507_v53  ;;  %v5284_v33 = vadd.f32 %v5200_v22, %v4686_v43  ;;  %v15122_v43 = vld [vmem:[#allocation25_spill] sm:$0xff]  ;;  %v4689_v22 = vadd.f32 %v4611_v57, %v4091_v18 }
 0x71a   :  { %v13863_v55 = vpop.f32.mrf.mxu2  ;;  %v2896_v53 = vadd.f32 %v15122_v43, %v15121_v49 }
 0x71b   :  { %v5360_v6 = vmul.f32 %v13737_v23, %v5284_v33 }
 0x71c   :  { %v3494_v33 = vadd.f32 %v13679_v46, %v2896_v53  ;;  %v5649_v53 = vld [vmem:[#allocation2 + $0x1e8] sm:$0xff] }
 0x71d   :  { %6486 = vmatmul.f32.gmra.mxu3 %v6099_v47  ;;  %v5436_v45 = vadd.f32 %v13699_v8, %v5360_v6  ;;  %6436 = vmatmul.f32.gmra.mxu2 %v6168_v35  ;;  %v4614_v47 = vpop.f32.mrf.mxu3  ;;  %v6114_v6 = vld [vmem:[%s14983_s7 + $0x1c8] sm:$0xff] }
 0x71e   :  { %v4092_v48 = vadd.f32 %v13689_v28, %v3494_v33 }
 0x71f   :  { %v5508_v40 = vmax.f32 %v5436_v45, 0.0 }
 0x720   :  { %v5203_v4 = vpop.f32.mrf.mxu0  ;;  %6344 = vmatmul.f32.gmra.mxu1 %v6167_v34  ;;  %v13896_v30 = vpop.f32.mrf.mxu1  ;;  %v5849_v18 = vld [vmem:[#allocation2 + $0x204] sm:$0xff] }
 0x721   :  { %5581 = vst.msk [vmem:[#allocation2 + $0x210] sm:$0xff] %vm5514_vm2, %v5508_v40  ;;  %v5285_v58 = vadd.f32 %v5203_v4, %v4687_v19  ;;  %v15124_v19 = vld [vmem:[#allocation26_spill] sm:$0xff] }
 0x722   :  { %v13883_v59 = vpop.f32.mrf.mxu2  ;;  %v2897_v40 = vadd.f32 %v15124_v19, %v15123_v36  ;;  %v5718_v4 = vld [vmem:[#allocation2 + $0x1fa] sm:$0xff] }
 0x723   :  { %v5361_v63 = vmul.f32 %v13737_v23, %v5285_v58  ;;  %v4690_v58 = vadd.f32 %v4614_v47, %v4092_v48 }
 0x724   :  { %v3495_v34 = vadd.f32 %v13713_v2, %v2897_v40  ;;  %v5916_v2 = vld [vmem:[#allocation2 + $0x206] sm:$0xff] }
 0x725   :  { %6489 = vmatmul.f32.gmra.mxu3 %v6104_v21  ;;  %v5437_v62 = vadd.f32 %v13699_v8, %v5361_v63  ;;  %6439 = vmatmul.f32.gmra.mxu2 %v6173_v54  ;;  %v5651_v21 = vld [vmem:[#allocation2 + $0x1f8] sm:$0xff] }
 0x726   :  { %v5785_v57 = vmax.f32 %v5651_v21, %v5718_v4  ;;  %v5647_v4 = vld [vmem:[#allocation2 + $0x1d8] sm:$0xff] }
 0x727   :  { %v5509_v24 = vmax.f32 %v5437_v62, 0.0  ;;  %v5713_v21 = vld [vmem:[#allocation2 + $0x1d2] sm:$0xff] }
 0x728   :  { %v5206_v61 = vpop.f32.mrf.mxu0  ;;  %6347 = vmatmul.f32.gmra.mxu1 %v6172_v29  ;;  %v5850_v63 = vld [vmem:[#allocation2 + $0x20c] sm:$0xff]  ;;  %v4617_v29 = vpop.f32.mrf.mxu3 }
 0x729   :  { %5582 = vst.msk [vmem:[#allocation2 + $0x218] sm:$0xff] %vm5514_vm2, %v5509_v24  ;;  %v5286_v38 = vadd.f32 %v5206_v61, %v4688_v50  ;;  %v5917_v17 = vld [vmem:[#allocation2 + $0x20e] sm:$0xff] }
 0x72a   :  { %v13904_v1 = vpop.f32.mrf.mxu2  ;;  %v5650_v61 = vld [vmem:[#allocation2 + $0x1f0] sm:$0xff] }
 0x72b   :  { %v5362_v13 = vmul.f32 %v13737_v23, %v5286_v38  ;;  %v4093_v38 = vadd.f32 %v13717_v16, %v3495_v34  ;;  %v5784_v43 = vmax.f32 %v5650_v61, %v5717_v3  ;;  %v5846_v3 = vld [vmem:[#allocation2 + $0x1ec] sm:$0xff] }
 0x72d   :  { %6492 = vmatmul.f32.gmra.mxu3 %v6109_v41  ;;  %v5438_v0 = vadd.f32 %v13699_v8, %v5362_v13  ;;  %6442 = vmatmul.f32.gmra.mxu2 %v6178_v7  ;;  %v5716_v41 = vld [vmem:[#allocation2 + $0x1ea] sm:$0xff]  ;;  %v13914_v13 = vpop.f32.mrf.mxu1  ;;  %v5915_v7 = vld [vmem:[#allocation2 + $0x1fe] sm:$0xff]  ;;  %v4691_v48 = vadd.f32 %v4617_v29, %v4093_v38 }
 0x72e   :  { %v5783_v47 = vmax.f32 %v5649_v53, %v5716_v41  ;;  %v5645_v38 = vld [vmem:[#allocation2 + $0x1c8] sm:$0xff]  ;;  %v5844_v29 = vld [vmem:[#allocation2 + $0x1dc] sm:$0xff] }
 0x72f   :  { %v5510_v20 = vmax.f32 %v5438_v0, 0.0 }
 0x730   :  { %v5209_v32 = vpop.f32.mrf.mxu0  ;;  %6350 = vmatmul.f32.gmra.mxu1 %v6177_v9  ;;  %v5851_v35 = vld [vmem:[#allocation2 + $0x214] sm:$0xff] }
 0x731   :  { %5583 = vst.msk [vmem:[#allocation2 + $0x220] sm:$0xff] %vm5514_vm2, %v5510_v20  ;;  %v5287_v10 = vadd.f32 %v5209_v32, %v4689_v22  ;;  %v5918_v37 = vld [vmem:[#allocation2 + $0x216] sm:$0xff]  ;;  %v5984_v22 = vmax.f32 %v5850_v63, %v5917_v17  ;;  %v5715_v20 = vld [vmem:[#allocation2 + $0x1e2] sm:$0xff]  ;;  %v5913_v63 = vld [vmem:[#allocation2 + $0x1ee] sm:$0xff] }
 0x732   :  { %v5985_v54 = vmax.f32 %v5851_v35, %v5918_v37  ;;  %v5848_v32 = vld [vmem:[#allocation2 + $0x1fc] sm:$0xff]  ;;  %v5847_v9 = vld [vmem:[#allocation2 + $0x1f4] sm:$0xff]  ;;  %v13918_v37 = vpop.f32.mrf.mxu2  ;;  %v5980_v41 = vmax.f32 %v5846_v3, %v5913_v63  ;;  %v5641_v63 = vld [vmem:[#allocation2 + $0x1a8] sm:$0xff] }
 0x733   :  { %v5363_v45 = vmul.f32 %v13737_v23, %v5287_v10  ;;  %v5983_v10 = vmax.f32 %v5849_v18, %v5916_v2  ;;  %v6051_v19 = vmax.f32 %v5783_v47, %v5984_v22  ;;  %v5982_v35 = vmax.f32 %v5848_v32, %v5915_v7  ;;  %v6124_v17 = vld [vmem:[%s14983_s7 + $0x218] sm:$0xff]  ;;  %v5711_v2 = vld [vmem:[#allocation2 + $0x1c2] sm:$0xff] }
 0x734   :  { %v6052_v16 = vmax.f32 %v5784_v43, %v5985_v54  ;;  %v5644_v22 = vld [vmem:[#allocation2 + $0x1c0] sm:$0xff]  ;;  %v5843_v32 = vld [vmem:[#allocation2 + $0x1d4] sm:$0xff] }
 0x735   :  { %6495 = vmatmul.f32.gmra.mxu3 %v6114_v6  ;;  %v5439_v46 = vadd.f32 %v13699_v8, %v5363_v45  ;;  %v5714_v6 = vld [vmem:[#allocation2 + $0x1da] sm:$0xff]  ;;  %v13925_v18 = vpop.f32.mrf.mxu1  ;;  %v5778_v47 = vmax.f32 %v5644_v22, %v5711_v2 }
 0x736   :  { %v5648_v45 = vld [vmem:[#allocation2 + $0x1e0] sm:$0xff]  ;;  %v5910_v7 = vld [vmem:[#allocation2 + $0x1d6] sm:$0xff] }
 0x737   :  { %v5511_v28 = vmax.f32 %v5439_v46, 0.0  ;;  %v5914_v46 = vld [vmem:[#allocation2 + $0x1f6] sm:$0xff]  ;;  %v5782_v40 = vmax.f32 %v5648_v45, %v5715_v20  ;;  %v5842_v45 = vld [vmem:[#allocation2 + $0x1cc] sm:$0xff] }
 0x738   :  { %v5212_v62 = vpop.f32.mrf.mxu0  ;;  %v5852_v51 = vld [vmem:[#allocation2 + $0x21c] sm:$0xff] }
 0x739   :  { %v5919_v15 = vld [vmem:[#allocation2 + $0x21e] sm:$0xff]  ;;  %5584 = vst.msk [vmem:[#allocation2 + $0x228] sm:$0xff] %vm5514_vm2, %v5511_v28  ;;  %v5288_v50 = vadd.f32 %v5212_v62, %v4690_v58  ;;  %v5781_v28 = vmax.f32 %v5647_v4, %v5714_v6  ;;  %v6050_v62 = vmax.f32 %v5782_v40, %v5983_v10  ;;  %v5906_v2 = vld [vmem:[#allocation2 + $0x1b6] sm:$0xff] }
 0x73a   :  { %v5986_v24 = vmax.f32 %v5852_v51, %v5919_v15  ;;  %v5646_v51 = vld [vmem:[#allocation2 + $0x1d0] sm:$0xff]  ;;  %v5981_v15 = vmax.f32 %v5847_v9, %v5914_v46  ;;  %v5643_v10 = vld [vmem:[#allocation2 + $0x1b8] sm:$0xff] }
 0x73b   :  { %v5364_v0 = vmul.f32 %v13737_v23, %v5288_v50  ;;  %v5712_v50 = vld [vmem:[#allocation2 + $0x1ca] sm:$0xff]  ;;  %v6049_v54 = vmax.f32 %v5781_v28, %v5982_v35  ;;  %v6129_v4 = vld [vmem:[%s14983_s7 + $0x240] sm:$0xff] }
 0x73c   :  { %v6053_v49 = vmax.f32 %v5785_v57, %v5986_v24  ;;  %v5845_v57 = vld [vmem:[#allocation2 + $0x1e4] sm:$0xff]  ;;  %v5779_v53 = vmax.f32 %v5645_v38, %v5712_v50  ;;  %v5909_v9 = vld [vmem:[#allocation2 + $0x1ce] sm:$0xff] }
 0x73d   :  { %6498 = vmatmul.f32.gmra.mxu3 %v6119_v12  ;;  %v5440_v33 = vadd.f32 %v13699_v8, %v5364_v0  ;;  %v5912_v24 = vld [vmem:[#allocation2 + $0x1e6] sm:$0xff]  ;;  %v5780_v12 = vmax.f32 %v5646_v51, %v5713_v21  ;;  %v5911_v0 = vld [vmem:[#allocation2 + $0x1de] sm:$0xff]  ;;  %v5705_v38 = vld [vmem:[#allocation2 + $0x192] sm:$0xff] }
 0x73e   :  { %6538 = vmatpush.msra.mxu1 %v6053_v49  ;;  %v5979_v20 = vmax.f32 %v5845_v57, %v5912_v24  ;;  %v5978_v6 = vmax.f32 %v5844_v29, %v5911_v0  ;;  %v5708_v35 = vld [vmem:[#allocation2 + $0x1aa] sm:$0xff]  ;;  %v5640_v51 = vld [vmem:[#allocation2 + $0x1a0] sm:$0xff] }
 0x73f   :  { %v5512_v36 = vmax.f32 %v5440_v33, 0.0  ;;  %v6048_v43 = vmax.f32 %v5780_v12, %v5981_v15  ;;  %v5908_v28 = vld [vmem:[#allocation2 + $0x1c6] sm:$0xff]  ;;  %v5907_v50 = vld [vmem:[#allocation2 + $0x1be] sm:$0xff]  ;;  %v5775_v24 = vmax.f32 %v5641_v63, %v5708_v35  ;;  %v5654_v12 = vld [vmem:[#allocation2 + $0x210] sm:$0x3f] }
 0x740   :  { %6539 = vmatpush.msra.mxu1 %v6052_v16  ;;  %v5215_v58 = vpop.f32.mrf.mxu0  ;;  %v6047_v16 = vmax.f32 %v5779_v53, %v5980_v41  ;;  %v13928_v40 = vpop.f32.mrf.mxu2  ;;  %v5707_v15 = vld [vmem:[#allocation2 + $0x1a2] sm:$0xff]  ;;  %v5839_v41 = vld [vmem:[#allocation2 + $0x1b4] sm:$0xff]  ;;  %v5838_v29 = vld [vmem:[#allocation2 + $0x1ac] sm:$0xff] }
 0x741   :  { %5585 = vst.msk [vmem:[#allocation2 + $0x230] sm:$0xff] %vm5514_vm2, %v5512_v36  ;;  %v5289_v34 = vadd.f32 %v5215_v58, %v4691_v48  ;;  %v5709_v48 = vld [vmem:[#allocation2 + $0x1b2] sm:$0xff]  ;;  %v5841_v58 = vld [vmem:[#allocation2 + $0x1c4] sm:$0xff] }
 0x742   :  { %6540 = vmatpush.msra.mxu1 %v6051_v19  ;;  %v5642_v36 = vld [vmem:[#allocation2 + $0x1b0] sm:$0xff]  ;;  %v5977_v19 = vmax.f32 %v5843_v32, %v5910_v7  ;;  %v5904_v35 = vld [vmem:[#allocation2 + $0x1a6] sm:$0xff] }
 0x743   :  { %v5365_v61 = vmul.f32 %v13737_v23, %v5289_v34  ;;  %v5710_v23 = vld [vmem:[#allocation2 + $0x1ba] sm:$0xff]  ;;  %v5776_v3 = vmax.f32 %v5642_v36, %v5709_v48  ;;  %v5976_v34 = vmax.f32 %v5842_v45, %v5909_v9  ;;  %v5638_v32 = vld [vmem:[#allocation2 + $0x190] sm:$0xff]  ;;  %v5973_v45 = vmax.f32 %v5839_v41, %v5906_v2  ;;  %v5920_v9 = vld [vmem:[#allocation2 + $0x226] sm:$0xff] }
 0x744   :  { %6541 = vmatpush.msra.mxu1 %v6050_v62  ;;  %v5777_v46 = vmax.f32 %v5643_v10, %v5710_v23  ;;  %v5706_v62 = vld [vmem:[#allocation2 + $0x19a] sm:$0xff]  ;;  %v13933_v0 = vpop.f32.mrf.mxu1  ;;  %v5720_v7 = vld [vmem:[#allocation2 + $0x20a] sm:$0xff]  ;;  %v5719_v63 = vld [vmem:[#allocation2 + $0x202] sm:$0xff] }
 0x745   :  { %6501 = vmatmul.f32.gmra.mxu3 %v6124_v17  ;;  %v5441_v49 = vadd.f32 %v13699_v8, %v5365_v61  ;;  %v6046_v8 = vmax.f32 %v5778_v47, %v5979_v20  ;;  %v5840_v17 = vld [vmem:[#allocation2 + $0x1bc] sm:$0xff]  ;;  %v6044_v57 = vmax.f32 %v5776_v3, %v5977_v19  ;;  %v5975_v61 = vmax.f32 %v5841_v58, %v5908_v28  ;;  %v5853_v47 = vld [vmem:[#allocation2 + $0x224] sm:$0xff] }
 0x746   :  { %6542 = vmatpush.msra.mxu1 %v6049_v54  ;;  %v6045_v21 = vmax.f32 %v5777_v46, %v5978_v6  ;;  %v5639_v54 = vld [vmem:[#allocation2 + $0x198] sm:$0xff]  ;;  %v6043_v22 = vmax.f32 %v5775_v24, %v5976_v34  ;;  %v5774_v20 = vmax.f32 %v5640_v51, %v5707_v15  ;;  %v5974_v23 = vmax.f32 %v5840_v17, %v5907_v50  ;;  %v6134_v58 = vld [vmem:[%s14983_s7 + $0x268] sm:$0xff]  ;;  %v5637_v15 = vld [vmem:[#allocation2 + $0x188] sm:$0xff] }
 0x747   :  { %v5513_v33 = vmax.f32 %v5441_v49, 0.0  ;;  %v5721_v49 = vld [vmem:[#allocation2 + $0x212] sm:$0x3f]  ;;  %v5773_v10 = vmax.f32 %v5639_v54, %v5706_v62  ;;  %v5772_v28 = vmax.f32 %v5638_v32, %v5705_v38  ;;  %v5987_v17 = vmax.f32 %v5853_v47, %v5920_v9  ;;  %v5652_v24 = vld [vmem:[#allocation2 + $0x200] sm:$0xff]  ;;  %v6139_v32 = vld [vmem:[%s14983_s7 + $0x290] sm:$0xff] }
 0x748   :  { %6543 = vmatpush.msra.mxu1 %v6048_v43  ;;  %v5854_v43 = vld [vmem:[#allocation2 + $0x22c] sm:$0xff]  ;;  %v5788_v46 = vmax.f32 %v5654_v12, %v5721_v49  ;;  %v13938_v50 = vpop.f32.mrf.mxu2  ;;  %v5786_v41 = vmax.f32 %v5652_v24, %v5719_v63  ;;  %v5636_v2 = vld [vmem:[#allocation2 + $0x180] sm:$0xff]  ;;  %v6149_v9 = vld [vmem:[%s14983_s7 + $0x2e0] sm:$0xff] }
 0x749   :  { %5587 = vst.msk [vmem:[#allocation2 + $0x238] sm:$0xf] %vm5586_vm3, %v5513_v33  ;;  %v5921_v53 = vld [vmem:[#allocation2 + $0x22e] sm:$0xff]  ;;  %v6041_v34 = vmax.f32 %v5773_v10, %v5974_v23  ;;  %v6040_v12 = vmax.f32 %v5772_v28, %v5973_v45  ;;  %v6070_v45 = vld [vmem:[%s14983_s7 + $0x68] sm:$0xff] }
 0x74a   :  { %6544 = vmatpush.msra.mxu1 %v6047_v16  ;;  %v5704_v33 = vld [vmem:[#allocation2 + $0x18a] sm:$0xff]  ;;  %v5988_v19 = vmax.f32 %v5854_v43, %v5921_v53  ;;  %v6054_v49 = vmax.f32 %v5786_v41, %v5987_v17  ;;  %v6061_v43 = vld [vmem:[%s14983_s7 + $0x20] sm:$0xff] }
 0x74b   :  { %v5905_v16 = vld [vmem:[#allocation2 + $0x1ae] sm:$0xff] }
 0x74c   :  { %6545 = vmatpush.msra.mxu1 %v6046_v8  ;;  %v6042_v8 = vmax.f32 %v5774_v20, %v5975_v61  ;;  %v5972_v3 = vmax.f32 %v5838_v29, %v5905_v16  ;;  %v5703_v61 = vld [vmem:[#allocation2 + $0x182] sm:$0xff]  ;;  %v6060_v23 = vld [vmem:[%s14983_s7 + $0x18] sm:$0xff]  ;;  %v6065_v16 = vld [vmem:[%s14983_s7 + $0x40] sm:$0xff] }
 0x74d   :  { %6504 = vmatmul.f32.gmra.mxu3 %v6129_v4  ;;  %v5837_v4 = vld [vmem:[#allocation2 + $0x1a4] sm:$0xff]  ;;  %v5770_v53 = vmax.f32 %v5636_v2, %v5703_v61  ;;  %v6144_v10 = vld [vmem:[%s14983_s7 + $0x2b8] sm:$0xff] }
 0x74e   :  { %6546 = vmatpush.msra.mxu1 %v6045_v21  ;;  %v5653_v21 = vld [vmem:[#allocation2 + $0x208] sm:$0xff]  ;;  %v5971_v54 = vmax.f32 %v5837_v4, %v5904_v35  ;;  %v6154_v4 = vld [vmem:[%s14983_s7 + $0x308] sm:$0xff]  ;;  %v6080_v28 = vld [vmem:[%s14983_s7 + $0xb8] sm:$0xff] }
 0x74f   :  { %v5787_v51 = vmax.f32 %v5653_v21, %v5720_v7  ;;  %v6159_v21 = vld [vmem:[%s14983_s7 + $0x330] sm:$0xff]  ;;  %v6090_v61 = vld [vmem:[%s14983_s7 + $0x108] sm:$0xff] }
 0x750   :  { %6547 = vmatpush.msra.mxu1 %v6044_v57  ;;  %v5855_v6 = vld [vmem:[#allocation2 + $0x234] sm:$0x3f]  ;;  %v5771_v57 = vmax.f32 %v5637_v15, %v5704_v33  ;;  %v6038_v20 = vmax.f32 %v5770_v53, %v5971_v54  ;;  %v13953_v7 = vpop.f32.mrf.mxu2  ;;  %v6066_v33 = vld [vmem:[%s14983_s7 + $0x48] sm:$0xff]  ;;  %v6091_v24 = vld [vmem:[%s14983_s7 + $0x110] sm:$0xff] }
 0x751   :  { %v5922_v48 = vld [vmem:[#allocation2 + $0x236] sm:$0x3f]  ;;  %v6055_v38 = vmax.f32 %v5787_v51, %v5988_v19 }
 0x752   :  { %6548 = vmatpush.msra.mxu1 %v6043_v22  ;;  %v5989_v36 = vmax.f32 %v5855_v6, %v5922_v48  ;;  %v6039_v29 = vmax.f32 %v5771_v57, %v5972_v3  ;;  %v13944_v22 = vpop.f32.mrf.mxu1  ;;  %v6071_v6 = vld [vmem:[%s14983_s7 + $0x70] sm:$0xff]  ;;  %v6085_v51 = vld [vmem:[%s14983_s7 + $0xe0] sm:$0xff]  ;;  %v6164_v15 = vld [vmem:[%s14983_s7 + $0x358] sm:$0xff] }
 0x753   :  { %v6101_v53 = vld [vmem:[%s14983_s7 + $0x160] sm:$0xff] }
 0x754   :  { %6549 = vmatpush.msra.mxu1 %v6042_v8  ;;  %v6056_v62 = vmax.f32 %v5788_v46, %v5989_v36  ;;  %v6076_v46 = vld [vmem:[%s14983_s7 + $0x98] sm:$0xff]  ;;  %v6075_v36 = vld [vmem:[%s14983_s7 + $0x90] sm:$0xff] }
 0x755   :  { %6507 = vmatmul.f32.gmra.mxu3 %v6134_v58  ;;  %v6081_v58 = vld [vmem:[%s14983_s7 + $0xc0] sm:$0xff] }
 0x756   :  { %6550 = vmatpush.msra.mxu1 %v6041_v34  ;;  %9355 = vmatpush.msk.msra.mxu2 %vm6258_vm4, %v6056_v62  ;;  %v6086_v34 = vld [vmem:[%s14983_s7 + $0xe8] sm:$0xff] }
 0x758   :  { %6551 = vmatpush.msra.mxu1 %v6040_v12  ;;  %6644 = vmatpush.msra.mxu2 %v6055_v38  ;;  %v13970_v48 = vpop.f32.mrf.mxu2  ;;  %v6169_v12 = vld [vmem:[%s14983_s7 + $0x380] sm:$0xff]  ;;  %v6096_v38 = vld [vmem:[%s14983_s7 + $0x138] sm:$0xff] }
 0x75a   :  { %6552 = vmatpush.msra.mxu1 %v6039_v29  ;;  %6645 = vmatpush.msra.mxu2 %v6054_v49  ;;  %v13961_v47 = vpop.f32.mrf.mxu1  ;;  %v6095_v29 = vld [vmem:[%s14983_s7 + $0x130] sm:$0xff]  ;;  %v6174_v49 = vld [vmem:[%s14983_s7 + $0x3a8] sm:$0xff] }
 0x75b   :  { %9356 = vmatmul.msk.f32.vlgmr.msra.gmra.mxu2 %vm6182_vm5, %v6061_v43 }
 0x75c   :  { %6553 = vmatpush.msra.mxu1 %v6038_v20  ;;  %v6100_v20 = vld [vmem:[%s14983_s7 + $0x158] sm:$0xff] }
 0x75d   :  { %6554 = vmatmul.f32.vlgmr.msra.gmra.mxu1 %v6060_v23  ;;  %6510 = vmatmul.f32.gmra.mxu3 %v6139_v32 }
 0x760   :  { %v13987_v19 = vpop.f32.mrf.mxu2  ;;  %v14007_v63 = vpop.f32.mrf.mxu3 }
 0x762   :  { %v13979_v8 = vpop.f32.mrf.mxu1 }
 0x763   :  { %9357 = vmatmul.msk.f32.gmra.mxu2 %vm6182_vm5, %v6066_v33  ;;  %v6179_v33 = vld [vmem:[%s14983_s7 + $0x3d0] sm:$0xff] }
 0x765   :  { %6557 = vmatmul.f32.gmra.mxu1 %v6065_v16  ;;  %6513 = vmatmul.f32.gmra.mxu3 %v6144_v10  ;;  %v6106_v10 = vld [vmem:[%s14983_s7 + $0x188] sm:$0xff] }
 0x768   :  { %v14005_v3 = vpop.f32.mrf.mxu2  ;;  %v14023_v57 = vpop.f32.mrf.mxu3 }
 0x76a   :  { %v13993_v35 = vpop.f32.mrf.mxu1 }
 0x76b   :  { %9358 = vmatmul.msk.f32.gmra.mxu2 %vm6182_vm5, %v6071_v6  ;;  %v6105_v6 = vld [vmem:[%s14983_s7 + $0x180] sm:$0xff] }
 0x76d   :  { %6560 = vmatmul.f32.gmra.mxu1 %v6070_v45  ;;  %6516 = vmatmul.f32.gmra.mxu3 %v6149_v9 }
 0x770   :  { %v14021_v17 = vpop.f32.mrf.mxu2  ;;  %v14042_v2 = vpop.f32.mrf.mxu3 }
 0x772   :  { %v14012_v62 = vpop.f32.mrf.mxu1 }
 0x773   :  { %9359 = vmatmul.msk.f32.gmra.mxu2 %vm6182_vm5, %v6076_v46  ;;  %v6111_v46 = vld [vmem:[%s14983_s7 + $0x1b0] sm:$0xff] }
 0x775   :  { %6563 = vmatmul.f32.gmra.mxu1 %v6075_v36  ;;  %6519 = vmatmul.f32.gmra.mxu3 %v6154_v4  ;;  %v6110_v4 = vld [vmem:[%s14983_s7 + $0x1a8] sm:$0xff] }
 0x778   :  { %v14040_v41 = vpop.f32.mrf.mxu2  ;;  %v14061_v32 = vpop.f32.mrf.mxu3 }
 0x77a   :  { %v14031_v54 = vpop.f32.mrf.mxu1 }
 0x77b   :  { %9360 = vmatmul.msk.f32.gmra.mxu2 %vm6182_vm5, %v6081_v58 }
 0x77d   :  { %6566 = vmatmul.f32.gmra.mxu1 %v6080_v28  ;;  %6522 = vmatmul.f32.gmra.mxu3 %v6159_v21  ;;  %v6116_v21 = vld [vmem:[%s14983_s7 + $0x1d8] sm:$0xff] }
 0x780   :  { %v14059_v23 = vpop.f32.mrf.mxu2  ;;  %v14078_v9 = vpop.f32.mrf.mxu3 }
 0x782   :  { %v14051_v43 = vpop.f32.mrf.mxu1 }
 0x783   :  { %9361 = vmatmul.msk.f32.gmra.mxu2 %vm6182_vm5, %v6086_v34  ;;  %v6115_v34 = vld [vmem:[%s14983_s7 + $0x1d0] sm:$0xff] }
 0x785   :  { %6569 = vmatmul.f32.gmra.mxu1 %v6085_v51  ;;  %6525 = vmatmul.f32.gmra.mxu3 %v6164_v15  ;;  %v6121_v15 = vld [vmem:[%s14983_s7 + $0x200] sm:$0xff] }
 0x788   :  { %v14076_v45 = vpop.f32.mrf.mxu2  ;;  %v14091_v28 = vpop.f32.mrf.mxu3 }
 0x78a   :  { %v14067_v16 = vpop.f32.mrf.mxu1 }
 0x78b   :  { %9362 = vmatmul.msk.f32.gmra.mxu2 %vm6182_vm5, %v6091_v24 }
 0x78d   :  { %6572 = vmatmul.f32.gmra.mxu1 %v6090_v61  ;;  %6528 = vmatmul.f32.gmra.mxu3 %v6169_v12  ;;  %v6120_v12 = vld [vmem:[%s14983_s7 + $0x1f8] sm:$0xff] }
 0x790   :  { %v14089_v58 = vpop.f32.mrf.mxu2  ;;  %v14107_v61 = vpop.f32.mrf.mxu3 }
 0x792   :  { %v14083_v36 = vpop.f32.mrf.mxu1 }
 0x793   :  { %9363 = vmatmul.msk.f32.gmra.mxu2 %vm6182_vm5, %v6096_v38 }
 0x795   :  { %6575 = vmatmul.f32.gmra.mxu1 %v6095_v29  ;;  %6531 = vmatmul.f32.gmra.mxu3 %v6174_v49  ;;  %v6126_v29 = vld [vmem:[%s14983_s7 + $0x228] sm:$0xff]  ;;  %v6125_v49 = vld [vmem:[%s14983_s7 + $0x220] sm:$0xff] }
 0x798   :  { %v14105_v24 = vpop.f32.mrf.mxu2 }
 0x79a   :  { %v14099_v51 = vpop.f32.mrf.mxu1 }
 0x79b   :  { %9364 = vmatmul.msk.f32.gmra.mxu2 %vm6182_vm5, %v6101_v53 }
 0x79d   :  { %6578 = vmatmul.f32.gmra.mxu1 %v6100_v20  ;;  %6534 = vmatmul.f32.gmra.mxu3 %v6179_v33  ;;  %v14123_v20 = vpop.f32.mrf.mxu3 }
 0x7a0   :  { %v14121_v53 = vpop.f32.mrf.mxu2 }
 0x7a1   :  { %15126 = vst [vmem:[#allocation8_spill] sm:$0xff] %v14121_v53  ;;  %v6375_v53 = vadd.f32 %v13763_v27, %v13756_v25  ;;  %v6378_v25 = vadd.f32 %v13783_v11, %v13776_v44  ;;  %v6156_v44 = vld [vmem:[%s14983_s7 + $0x318] sm:$0xff]  ;;  %v6381_v11 = vadd.f32 %v13803_v31, %v13796_v56  ;;  %v6161_v31 = vld [vmem:[%s14983_s7 + $0x340] sm:$0xff] }
 0x7a2   :  { %v14113_v38 = vpop.f32.mrf.mxu1 }
 0x7a3   :  { %9365 = vmatmul.msk.f32.gmra.mxu2 %vm6182_vm5, %v6106_v10  ;;  %15125 = vst [vmem:[#allocation27_spill] sm:$0xff] %v14113_v38  ;;  %v6131_v10 = vld [vmem:[%s14983_s7 + $0x250] sm:$0xff] }
 0x7a5   :  { %6581 = vmatmul.f32.gmra.mxu1 %v6105_v6  ;;  %v6130_v6 = vld [vmem:[%s14983_s7 + $0x248] sm:$0xff] }
 0x7aa   :  { %v14126_v33 = vpop.f32.mrf.mxu1 }
 0x7ab   :  { %9366 = vmatmul.msk.f32.gmra.mxu2 %vm6182_vm5, %v6111_v46  ;;  %15127 = vst [vmem:[#allocation28_spill] sm:$0xff] %v14126_v33  ;;  %v14135_v46 = vpop.f32.mrf.mxu2 }
 0x7ac   :  { %15128 = vst [vmem:[#allocation29_spill] sm:$0xff] %v14135_v46  ;;  %v6146_v46 = vld [vmem:[%s14983_s7 + $0x2c8] sm:$0xff] }
 0x7ad   :  { %6584 = vmatmul.f32.gmra.mxu1 %v6110_v4  ;;  %v14137_v4 = vpop.f32.mrf.mxu3 }
 0x7b3   :  { %9367 = vmatmul.msk.f32.gmra.mxu2 %vm6182_vm5, %v6116_v21  ;;  %v14139_v21 = vpop.f32.mrf.mxu1 }
 0x7b4   :  { %15129 = vst [vmem:[#allocation9_spill] sm:$0xff] %v14139_v21  ;;  %v6464_v21 = vadd.f32 %v14007_v63, %v13744_v26  ;;  %v6145_v26 = vld [vmem:[%s14983_s7 + $0x2c0] sm:$0xff]  ;;  %v6467_v63 = vadd.f32 %v14023_v57, %v6375_v53  ;;  %v6150_v57 = vld [vmem:[%s14983_s7 + $0x2e8] sm:$0xff] }
 0x7b5   :  { %6587 = vmatmul.f32.gmra.mxu1 %v6115_v34  ;;  %v6136_v34 = vld [vmem:[%s14983_s7 + $0x278] sm:$0xff] }
 0x7bb   :  { %9368 = vmatmul.msk.f32.gmra.mxu2 %vm6182_vm5, %v6121_v15  ;;  %v9381_v15 = vld [vmem:[%s14980_s4 + $0x8] sm:$0xff] }
 0x7bc   :  { %6865 = vmatpush.msrb.mxu3 %v9381_v15  ;;  %v6140_v15 = vld [vmem:[%s14983_s7 + $0x298] sm:$0xff] }
 0x7bd   :  { %6590 = vmatmul.f32.gmra.mxu1 %v6120_v12  ;;  %v6135_v12 = vld [vmem:[%s14983_s7 + $0x270] sm:$0xff] }
 0x7c3   :  { %9369 = vmatmul.msk.f32.gmra.mxu2 %vm6182_vm5, %v6126_v29  ;;  %v14151_v29 = vpop.f32.mrf.mxu2 }
 0x7c4   :  { %15130 = vst [vmem:[#allocation30_spill] sm:$0xff] %v14151_v29 }
 0x7c5   :  { %6593 = vmatmul.f32.gmra.mxu1 %v6125_v49  ;;  %v14153_v49 = vpop.f32.mrf.mxu3 }
 0x7cb   :  { %9370 = vmatmul.msk.f32.gmra.mxu2 %vm6182_vm5, %v6131_v10  ;;  %v6141_v10 = vld [vmem:[%s14983_s7 + $0x2a0] sm:$0xff] }
 0x7cd   :  { %6596 = vmatmul.f32.gmra.mxu1 %v6130_v6  ;;  %v14167_v33 = vpop.f32.mrf.mxu3 }
 0x7d3   :  { %9371 = vmatmul.msk.f32.gmra.mxu2 %vm6182_vm5, %v6136_v34 }
 0x7d5   :  { %6599 = vmatmul.f32.gmra.mxu1 %v6135_v12  ;;  %v14186_v53 = vpop.f32.mrf.mxu3 }
 0x7da   :  { %v6555_v6 = vpop.f32.mrf.mxu1 }
 0x7db   :  { %9372 = vmatmul.msk.f32.gmra.mxu2 %vm6182_vm5, %v6141_v10  ;;  %v6556_v34 = vadd.f32 %v6555_v6, %v6464_v21 }
 0x7dd   :  { %6602 = vmatmul.f32.gmra.mxu1 %v6140_v15  ;;  %v6151_v15 = vld [vmem:[%s14983_s7 + $0x2f0] sm:$0xff] }
 0x7de   :  { %v6647_v12 = vpop.f32.mrf.mxu2 }
 0x7df   :  { %v6648_v29 = vadd.f32 %v6647_v12, %v6556_v34 }
 0x7e1   :  { %6722 = vst.msk [vmem:[#allocation3] sm:$0xff] %vm5514_vm2, %v6648_v29 }
 0x7e2   :  { %v6558_v38 = vpop.f32.mrf.mxu1 }
 0x7e3   :  { %9373 = vmatmul.msk.f32.gmra.mxu2 %vm6182_vm5, %v6146_v46  ;;  %v6559_v21 = vadd.f32 %v6558_v38, %v6467_v63  ;;  %v6470_v38 = vadd.f32 %v14042_v2, %v6378_v25  ;;  %v6155_v2 = vld [vmem:[%s14983_s7 + $0x310] sm:$0xff]  ;;  %v6473_v63 = vadd.f32 %v14061_v32, %v6381_v11  ;;  %v6384_v25 = vadd.f32 %v13823_v42, %v13816_v60  ;;  %v9527_v32 = vld [vmem:[%s14980_s4 + $0x38] sm:$0xff]  ;;  %v6165_v11 = vld [vmem:[%s14983_s7 + $0x360] sm:$0xff] }
 0x7e4   :  { %8056 = vmatpush.msra.mxu0 %v9527_v32 }
 0x7e5   :  { %6605 = vmatmul.f32.gmra.mxu1 %v6145_v26 }
 0x7e6   :  { %v6650_v10 = vpop.f32.mrf.mxu2 }
 0x7e7   :  { %v6651_v6 = vadd.f32 %v6650_v10, %v6559_v21  ;;  %v14202_v21 = vpop.f32.mrf.mxu3 }
 0x7e9   :  { %6723 = vst.msk [vmem:[#allocation3 + $0x8] sm:$0xff] %vm5514_vm2, %v6651_v6 }
 0x7ea   :  { %v6561_v27 = vpop.f32.mrf.mxu1 }
 0x7eb   :  { %9374 = vmatmul.msk.f32.gmra.mxu2 %vm6182_vm5, %v6151_v15  ;;  %v6562_v46 = vadd.f32 %v6561_v27, %v6470_v38  ;;  %v6476_v38 = vadd.f32 %v14078_v9, %v6384_v25  ;;  %v6170_v25 = vld [vmem:[%s14983_s7 + $0x388] sm:$0xff] }
 0x7ed   :  { %6608 = vmatmul.f32.gmra.mxu1 %v6150_v57  ;;  %v6160_v57 = vld [vmem:[%s14983_s7 + $0x338] sm:$0xff] }
 0x7ee   :  { %v6653_v29 = vpop.f32.mrf.mxu2 }
 0x7ef   :  { %v6654_v34 = vadd.f32 %v6653_v29, %v6562_v46  ;;  %v14219_v42 = vpop.f32.mrf.mxu3 }
 0x7f0   :  { %v6768_v12 = vld [vmem:[#allocation3 + $0x2] sm:$0xff] }
 0x7f1   :  { %6724 = vst.msk [vmem:[#allocation3 + $0x10] sm:$0xff] %vm5514_vm2, %v6654_v34  ;;  %9382 = vmatmul.msk.f32.vlgmr.msrb.gmra.mxu3 %vm5514_vm2, %v6768_v12  ;;  %v6166_v12 = vld [vmem:[%s14983_s7 + $0x368] sm:$0xff] }
 0x7f2   :  { %v6564_v26 = vpop.f32.mrf.mxu1 }
 0x7f3   :  { %9375 = vmatmul.msk.f32.gmra.mxu2 %vm6182_vm5, %v6156_v44  ;;  %v6565_v10 = vadd.f32 %v6564_v26, %v6473_v63  ;;  %v6387_v44 = vadd.f32 %v13843_v52, %v13836_v39  ;;  %v9443_v26 = vld [vmem:[%s14980_s4 + $0x18] sm:$0xff]  ;;  %v9422_v39 = vld [vmem:[%s14980_s4 + $0x10] sm:$0xff] }
 0x7f4   :  { %7340 = vmatpush.msrb.mxu2 %v9443_v26  ;;  %7161 = vmatpush.msrb.mxu1 %v9422_v39  ;;  %v6180_v26 = vld [vmem:[%s14983_s7 + $0x3d8] sm:$0xff] }
 0x7f5   :  { %6611 = vmatmul.f32.gmra.mxu1 %v6155_v2  ;;  %v6479_v2 = vadd.f32 %v14091_v28, %v6387_v44  ;;  %v6390_v28 = vadd.f32 %v13863_v55, %v13856_v5  ;;  %v6176_v5 = vld [vmem:[%s14983_s7 + $0x3b8] sm:$0xff]  ;;  %v6393_v55 = vadd.f32 %v13883_v59, %v13876_v14  ;;  %v6181_v59 = vld [vmem:[%s14983_s7 + $0x3e0] sm:$0xff] }
 0x7f6   :  { %v6656_v6 = vpop.f32.mrf.mxu2 }
 0x7f7   :  { %v6657_v15 = vadd.f32 %v6656_v6, %v6565_v10  ;;  %v6482_v32 = vadd.f32 %v14107_v61, %v6390_v28  ;;  %v6175_v61 = vld [vmem:[%s14983_s7 + $0x3b0] sm:$0xff] }
 0x7f8   :  { %v6769_v56 = vld [vmem:[#allocation3 + $0xa] sm:$0xff] }
 0x7f9   :  { %6725 = vst.msk [vmem:[#allocation3 + $0x18] sm:$0xff] %vm5514_vm2, %v6657_v15  ;;  %9383 = vmatmul.msk.f32.gmra.mxu3 %vm5514_vm2, %v6769_v56  ;;  %v6171_v15 = vld [vmem:[%s14983_s7 + $0x390] sm:$0xff]  ;;  %v14242_v56 = vpop.f32.mrf.mxu3 }
 0x7fa   :  { %v6567_v27 = vpop.f32.mrf.mxu1  ;;  %v7064_v28 = vld [vmem:[#allocation3 + $0x4] sm:$0xff] }
 0x7fb   :  { %9376 = vmatmul.msk.f32.gmra.mxu2 %vm6182_vm5, %v6161_v31  ;;  %v6568_v46 = vadd.f32 %v6567_v27, %v6476_v38 }
 0x7fd   :  { %6614 = vmatmul.f32.gmra.mxu1 %v6160_v57 }
 0x7fe   :  { %v6659_v60 = vpop.f32.mrf.mxu2 }
 0x7ff   :  { %v6660_v29 = vadd.f32 %v6659_v60, %v6568_v46 }
 0x800   :  { %v6770_v34 = vld [vmem:[#allocation3 + $0x12] sm:$0xff] }
 0x801   :  { %6726 = vst.msk [vmem:[#allocation3 + $0x20] sm:$0xff] %vm5514_vm2, %v6660_v29  ;;  %9384 = vmatmul.msk.f32.gmra.mxu3 %vm5514_vm2, %v6770_v34  ;;  %v14263_v29 = vpop.f32.mrf.mxu3  ;;  %v6485_v34 = vadd.f32 %v14123_v20, %v6393_v55 }
 0x802   :  { %v6570_v9 = vpop.f32.mrf.mxu1 }
 0x803   :  { %9377 = vmatmul.msk.f32.gmra.mxu2 %vm6182_vm5, %v6166_v12  ;;  %v6571_v52 = vadd.f32 %v6570_v9, %v6479_v2 }
 0x805   :  { %6617 = vmatmul.f32.gmra.mxu1 %v6165_v11  ;;  %v6396_v11 = vadd.f32 %v13904_v1, %v13896_v30 }
 0x806   :  { %v6662_v63 = vpop.f32.mrf.mxu2 }
 0x807   :  { %v6663_v10 = vadd.f32 %v6662_v63, %v6571_v52  ;;  %v6488_v2 = vadd.f32 %v14137_v4, %v6396_v11  ;;  %v7243_v4 = vld [vmem:[#allocation3 + $0x14] sm:$0xff] }
 0x808   :  { %v6771_v6 = vld [vmem:[#allocation3 + $0x1a] sm:$0xff] }
 0x809   :  { %6727 = vst.msk [vmem:[#allocation3 + $0x28] sm:$0xff] %vm5514_vm2, %v6663_v10  ;;  %9385 = vmatmul.msk.f32.gmra.mxu3 %vm5514_vm2, %v6771_v6  ;;  %v14280_v39 = vpop.f32.mrf.mxu3  ;;  %v6399_v10 = vadd.f32 %v13918_v37, %v13914_v13 }
 0x80a   :  { %v6573_v31 = vpop.f32.mrf.mxu1 }
 0x80b   :  { %9378 = vmatmul.msk.f32.gmra.mxu2 %vm6182_vm5, %v6171_v15  ;;  %v6574_v27 = vadd.f32 %v6573_v31, %v6482_v32  ;;  %v6491_v15 = vadd.f32 %v14153_v49, %v6399_v10 }
 0x80d   :  { %6620 = vmatmul.f32.gmra.mxu1 %v6170_v25 }
 0x80e   :  { %v6665_v57 = vpop.f32.mrf.mxu2 }
 0x80f   :  { %v6666_v38 = vadd.f32 %v6665_v57, %v6574_v27  ;;  %v6402_v27 = vadd.f32 %v13928_v40, %v13925_v18  ;;  %v7244_v57 = vld [vmem:[#allocation3 + $0x1c] sm:$0xff]  ;;  %v6405_v40 = vadd.f32 %v13938_v50, %v13933_v0  ;;  %v6408_v0 = vadd.f32 %v13953_v7, %v13944_v22 }
 0x810   :  { %v6772_v46 = vld [vmem:[#allocation3 + $0x22] sm:$0xff]  ;;  %v6411_v7 = vadd.f32 %v13970_v48, %v13961_v47  ;;  %v6414_v48 = vadd.f32 %v13987_v19, %v13979_v8  ;;  %v6417_v19 = vadd.f32 %v14005_v3, %v13993_v35  ;;  %v6420_v35 = vadd.f32 %v14021_v17, %v14012_v62 }
 0x811   :  { %6728 = vst.msk [vmem:[#allocation3 + $0x30] sm:$0xff] %vm5514_vm2, %v6666_v38  ;;  %9386 = vmatmul.msk.f32.gmra.mxu3 %vm5514_vm2, %v6772_v46  ;;  %v14290_v32 = vpop.f32.mrf.mxu3  ;;  %v6494_v38 = vadd.f32 %v14167_v33, %v6402_v27  ;;  %v7065_v46 = vld [vmem:[#allocation3 + $0xc] sm:$0xff]  ;;  %v6423_v62 = vadd.f32 %v14040_v41, %v14031_v54  ;;  %v6426_v41 = vadd.f32 %v14059_v23, %v14051_v43  ;;  %v6767_v23 = vld [vmem:[%s14980_s4] sm:$0xff] }
 0x812   :  { %v6576_v60 = vpop.f32.mrf.mxu1  ;;  %7002 = vmatpush.msra.mxu3 %v6767_v23  ;;  %v6749_v23 = vld [vmem:[#allocation3 + $0x10] sm:$0xff] }
 0x813   :  { %9379 = vmatmul.msk.f32.gmra.mxu2 %vm6182_vm5, %v6176_v5  ;;  %v6577_v12 = vadd.f32 %v6576_v60, %v6485_v34  ;;  %v7245_v34 = vld [vmem:[#allocation3 + $0x24] sm:$0xff] }
 0x815   :  { %6623 = vmatmul.f32.gmra.mxu1 %v6175_v61 }
 0x816   :  { %v6668_v44 = vpop.f32.mrf.mxu2 }
 0x817   :  { %v6669_v9 = vadd.f32 %v6668_v44, %v6577_v12  ;;  %v6497_v12 = vadd.f32 %v14186_v53, %v6405_v40 }
 0x818   :  { %v6773_v14 = vld [vmem:[#allocation3 + $0x2a] sm:$0xff] }
 0x819   :  { %6729 = vst.msk [vmem:[#allocation3 + $0x38] sm:$0xff] %vm5514_vm2, %v6669_v9  ;;  %9387 = vmatmul.msk.f32.gmra.mxu3 %vm5514_vm2, %v6773_v14  ;;  %9528 = vmatmul.msk.f32.vlgmr.msra.gmra.mxu0 %vm5514_vm2, %v6773_v14  ;;  %v14300_v18 = vpop.f32.mrf.mxu3  ;;  %v7246_v11 = vld [vmem:[#allocation3 + $0x2c] sm:$0xff] }
 0x81a   :  { %v6579_v20 = vpop.f32.mrf.mxu1 }
 0x81b   :  { %9380 = vmatmul.msk.f32.gmra.mxu2 %vm6182_vm5, %v6181_v59  ;;  %v6580_v52 = vadd.f32 %v6579_v20, %v6488_v2  ;;  %v6500_v20 = vadd.f32 %v14202_v21, %v6408_v0  ;;  %v6503_v21 = vadd.f32 %v14219_v42, %v6411_v7 }
 0x81d   :  { %6626 = vmatmul.f32.gmra.mxu1 %v6180_v26 }
 0x81e   :  { %v6671_v30 = vpop.f32.mrf.mxu2 }
 0x81f   :  { %v6672_v1 = vadd.f32 %v6671_v30, %v6580_v52 }
 0x820   :  { %v6774_v63 = vld [vmem:[#allocation3 + $0x32] sm:$0xff] }
 0x821   :  { %6730 = vst.msk [vmem:[#allocation3 + $0x40] sm:$0xff] %vm5514_vm2, %v6672_v1  ;;  %9388 = vmatmul.msk.f32.gmra.mxu3 %vm5514_vm2, %v6774_v63  ;;  %9529 = vmatmul.msk.f32.gmra.mxu0 %vm5514_vm2, %v6774_v63  ;;  %v14315_v53 = vpop.f32.mrf.mxu3  ;;  %v7247_v1 = vld [vmem:[#allocation3 + $0x34] sm:$0xff] }
 0x822   :  { %v6582_v6 = vpop.f32.mrf.mxu1 }
 0x823   :  { %9444 = vmatmul.msk.f32.vlgmr.msrb.gmra.mxu2 %vm5514_vm2, %v7243_v4  ;;  %v6583_v31 = vadd.f32 %v6582_v6, %v6491_v15 }
 0x825   :  { %9423 = vmatmul.msk.f32.vlgmr.msrb.gmra.mxu1 %vm5514_vm2, %v7064_v28  ;;  %v6506_v28 = vadd.f32 %v14242_v56, %v6414_v48 }
 0x826   :  { %v6674_v25 = vpop.f32.mrf.mxu2 }
 0x827   :  { %v6675_v13 = vadd.f32 %v6674_v25, %v6583_v31 }
 0x828   :  { %v6775_v37 = vld [vmem:[#allocation3 + $0x3a] sm:$0xff] }
 0x829   :  { %6731 = vst.msk [vmem:[#allocation3 + $0x48] sm:$0xff] %vm5514_vm2, %v6675_v13  ;;  %9389 = vmatmul.msk.f32.gmra.mxu3 %vm5514_vm2, %v6775_v37  ;;  %9530 = vmatmul.msk.f32.gmra.mxu0 %vm5514_vm2, %v6775_v37  ;;  %v14327_v63 = vpop.f32.mrf.mxu3  ;;  %v7248_v15 = vld [vmem:[#allocation3 + $0x3c] sm:$0xff] }
 0x82a   :  { %v6585_v49 = vpop.f32.mrf.mxu1 }
 0x82b   :  { %9445 = vmatmul.msk.f32.gmra.mxu2 %vm5514_vm2, %v7244_v57  ;;  %v6586_v5 = vadd.f32 %v6585_v49, %v6494_v38  ;;  %v6509_v49 = vadd.f32 %v14263_v29, %v6417_v19 }
 0x82d   :  { %9424 = vmatmul.msk.f32.gmra.mxu1 %vm5514_vm2, %v7065_v46 }
 0x82e   :  { %v6677_v55 = vpop.f32.mrf.mxu2 }
 0x82f   :  { %v6678_v60 = vadd.f32 %v6677_v55, %v6586_v5 }
 0x830   :  { %v6776_v61 = vld [vmem:[#allocation3 + $0x42] sm:$0xff] }
 0x831   :  { %6732 = vst.msk [vmem:[#allocation3 + $0x50] sm:$0xff] %vm5514_vm2, %v6678_v60  ;;  %9390 = vmatmul.msk.f32.gmra.mxu3 %vm5514_vm2, %v6776_v61  ;;  %9531 = vmatmul.msk.f32.gmra.mxu0 %vm5514_vm2, %v6776_v61  ;;  %v14338_v13 = vpop.f32.mrf.mxu3  ;;  %v7249_v27 = vld [vmem:[#allocation3 + $0x44] sm:$0xff]  ;;  %v6512_v60 = vadd.f32 %v14280_v39, %v6420_v35 }
 0x832   :  { %v6588_v33 = vpop.f32.mrf.mxu1 }
 0x833   :  { %9446 = vmatmul.msk.f32.gmra.mxu2 %vm5514_vm2, %v7245_v34  ;;  %v6589_v44 = vadd.f32 %v6588_v33, %v6497_v12 }
 0x835   :  { %9425 = vmatmul.msk.f32.gmra.mxu1 %vm5514_vm2, %v7243_v4 }
 0x836   :  { %v6680_v9 = vpop.f32.mrf.mxu2 }
 0x837   :  { %v6681_v14 = vadd.f32 %v6680_v9, %v6589_v44  ;;  %v6515_v44 = vadd.f32 %v14290_v32, %v6423_v62  ;;  %v6518_v32 = vadd.f32 %v14300_v18, %v6426_v41  ;;  %v15139_v41 = vld [vmem:[#allocation30_spill] sm:$0xff] }
 0x838   :  { %v6777_v59 = vld [vmem:[#allocation3 + $0x4a] sm:$0xff] }
 0x839   :  { %6733 = vst.msk [vmem:[#allocation3 + $0x58] sm:$0xff] %vm5514_vm2, %v6681_v14  ;;  %9391 = vmatmul.msk.f32.gmra.mxu3 %vm5514_vm2, %v6777_v59  ;;  %9532 = vmatmul.msk.f32.gmra.mxu0 %vm5514_vm2, %v6777_v59  ;;  %v14348_v55 = vpop.f32.mrf.mxu3  ;;  %v7250_v29 = vld [vmem:[#allocation3 + $0x4c] sm:$0xff] }
 0x83a   :  { %v6591_v50 = vpop.f32.mrf.mxu1 }
 0x83b   :  { %9447 = vmatmul.msk.f32.gmra.mxu2 %vm5514_vm2, %v7246_v11  ;;  %v6592_v26 = vadd.f32 %v6591_v50, %v6500_v20 }
 0x83d   :  { %9426 = vmatmul.msk.f32.gmra.mxu1 %vm5514_vm2, %v7244_v57 }
 0x83e   :  { %v6683_v2 = vpop.f32.mrf.mxu2 }
 0x83f   :  { %v6684_v52 = vadd.f32 %v6683_v2, %v6592_v26 }
 0x840   :  { %v6778_v22 = vld [vmem:[#allocation3 + $0x52] sm:$0xff] }
 0x841   :  { %6734 = vst.msk [vmem:[#allocation3 + $0x60] sm:$0xff] %vm5514_vm2, %v6684_v52  ;;  %9392 = vmatmul.msk.f32.gmra.mxu3 %vm5514_vm2, %v6778_v22  ;;  %9533 = vmatmul.msk.f32.gmra.mxu0 %vm5514_vm2, %v6778_v22  ;;  %v7251_v12 = vld [vmem:[#allocation3 + $0x54] sm:$0xff]  ;;  %v14363_v39 = vpop.f32.mrf.mxu3  ;;  %v6429_v52 = vadd.f32 %v14076_v45, %v14067_v16 }
 0x842   :  { %v6594_v30 = vpop.f32.mrf.mxu1 }
 0x843   :  { %9448 = vmatmul.msk.f32.gmra.mxu2 %vm5514_vm2, %v7247_v1  ;;  %v6595_v10 = vadd.f32 %v6594_v30, %v6503_v21  ;;  %v6521_v7 = vadd.f32 %v14315_v53, %v6429_v52 }
 0x845   :  { %9427 = vmatmul.msk.f32.gmra.mxu1 %vm5514_vm2, %v7245_v34 }
 0x846   :  { %v6686_v6 = vpop.f32.mrf.mxu2 }
 0x847   :  { %v6687_v4 = vadd.f32 %v6686_v6, %v6595_v10  ;;  %v6432_v10 = vadd.f32 %v14089_v58, %v14083_v36  ;;  %v6435_v58 = vadd.f32 %v14105_v24, %v14099_v51 }
 0x848   :  { %v6779_v47 = vld [vmem:[#allocation3 + $0x5a] sm:$0xff] }
 0x849   :  { %6735 = vst.msk [vmem:[#allocation3 + $0x68] sm:$0xff] %vm5514_vm2, %v6687_v4  ;;  %9393 = vmatmul.msk.f32.gmra.mxu3 %vm5514_vm2, %v6779_v47  ;;  %9534 = vmatmul.msk.f32.gmra.mxu0 %vm5514_vm2, %v6779_v47  ;;  %v7252_v50 = vld [vmem:[#allocation3 + $0x5c] sm:$0xff]  ;;  %v6524_v4 = vadd.f32 %v14327_v63, %v6432_v10 }
 0x84a   :  { %v6597_v42 = vpop.f32.mrf.mxu1  ;;  %v6751_v10 = vld [vmem:[#allocation3 + $0x20] sm:$0xff] }
 0x84b   :  { %9449 = vmatmul.msk.f32.gmra.mxu2 %vm5514_vm2, %v7248_v15  ;;  %v6598_v31 = vadd.f32 %v6597_v42, %v6506_v28 }
 0x84d   :  { %9428 = vmatmul.msk.f32.gmra.mxu1 %vm5514_vm2, %v7246_v11  ;;  %v14375_v11 = vpop.f32.mrf.mxu3 }
 0x84e   :  { %v6689_v25 = vpop.f32.mrf.mxu2 }
 0x84f   :  { %v6690_v37 = vadd.f32 %v6689_v25, %v6598_v31  ;;  %v6527_v31 = vadd.f32 %v14338_v13, %v6435_v58  ;;  %v6753_v58 = vld [vmem:[#allocation3 + $0x30] sm:$0xff] }
 0x850   :  { %v6780_v8 = vld [vmem:[#allocation3 + $0x62] sm:$0xff] }
 0x851   :  { %6736 = vst.msk [vmem:[#allocation3 + $0x70] sm:$0xff] %vm5514_vm2, %v6690_v37  ;;  %9394 = vmatmul.msk.f32.gmra.mxu3 %vm5514_vm2, %v6780_v8  ;;  %9535 = vmatmul.msk.f32.gmra.mxu0 %vm5514_vm2, %v6780_v8  ;;  %v7253_v22 = vld [vmem:[#allocation3 + $0x64] sm:$0xff] }
 0x852   :  { %v6600_v56 = vpop.f32.mrf.mxu1 }
 0x853   :  { %9450 = vmatmul.msk.f32.gmra.mxu2 %vm5514_vm2, %v7249_v27  ;;  %v6601_v57 = vadd.f32 %v6600_v56, %v6509_v49  ;;  %v15132_v56 = vld [vmem:[#allocation27_spill] sm:$0xff] }
 0x855   :  { %9429 = vmatmul.msk.f32.gmra.mxu1 %vm5514_vm2, %v7247_v1 }
 0x856   :  { %v6692_v38 = vpop.f32.mrf.mxu2 }
 0x857   :  { %v6693_v46 = vadd.f32 %v6692_v38, %v6601_v57 }
 0x858   :  { %v6781_v5 = vld [vmem:[#allocation3 + $0x6a] sm:$0xff] }
 0x859   :  { %6737 = vst.msk [vmem:[#allocation3 + $0x78] sm:$0xff] %vm5514_vm2, %v6693_v46  ;;  %9395 = vmatmul.msk.f32.gmra.mxu3 %vm5514_vm2, %v6781_v5  ;;  %9536 = vmatmul.msk.f32.gmra.mxu0 %vm5514_vm2, %v6781_v5  ;;  %v7254_v6 = vld [vmem:[#allocation3 + $0x6c] sm:$0xff] }
 0x85a   :  { %v6603_v3 = vpop.f32.mrf.mxu1 }
 0x85b   :  { %9451 = vmatmul.msk.f32.gmra.mxu2 %vm5514_vm2, %v7250_v29  ;;  %v6604_v61 = vadd.f32 %v6603_v3, %v6512_v60 }
 0x85d   :  { %9430 = vmatmul.msk.f32.gmra.mxu1 %vm5514_vm2, %v7248_v15 }
 0x85e   :  { %v6695_v40 = vpop.f32.mrf.mxu2 }
 0x85f   :  { %v6696_v33 = vadd.f32 %v6695_v40, %v6604_v61  ;;  %v15135_v61 = vld [vmem:[#allocation28_spill] sm:$0xff]  ;;  %v15136_v40 = vld [vmem:[#allocation29_spill] sm:$0xff] }
 0x860   :  { %v6782_v34 = vld [vmem:[#allocation3 + $0x72] sm:$0xff] }
 0x861   :  { %6738 = vst.msk [vmem:[#allocation3 + $0x80] sm:$0xff] %vm5514_vm2, %v6696_v33  ;;  %9396 = vmatmul.msk.f32.gmra.mxu3 %vm5514_vm2, %v6782_v34  ;;  %9537 = vmatmul.msk.f32.gmra.mxu0 %vm5514_vm2, %v6782_v34  ;;  %v14406_v28 = vld [vmem:[#allocation3 + $0x74] sm:$0xff]  ;;  %v6441_v33 = vadd.f32 %v15136_v40, %v15135_v61 }
 0x862   :  { %v6606_v17 = vpop.f32.mrf.mxu1  ;;  %15131 = vst [vmem:[#allocation31_spill] sm:$0xff] %v14406_v28  ;;  %v6758_v61 = vld [vmem:[#allocation3 + $0x58] sm:$0xff] }
 0x863   :  { %9452 = vmatmul.msk.f32.gmra.mxu2 %vm5514_vm2, %v7251_v12  ;;  %v6607_v9 = vadd.f32 %v6606_v17, %v6515_v44  ;;  %v6533_v62 = vadd.f32 %v14363_v39, %v6441_v33 }
 0x865   :  { %9431 = vmatmul.msk.f32.gmra.mxu1 %vm5514_vm2, %v7249_v27  ;;  %v15133_v27 = vld [vmem:[#allocation8_spill] sm:$0xff] }
 0x866   :  { %v6698_v14 = vpop.f32.mrf.mxu2  ;;  %v6438_v49 = vadd.f32 %v15133_v27, %v15132_v56 }
 0x867   :  { %v6699_v59 = vadd.f32 %v6698_v14, %v6607_v9  ;;  %v6748_v14 = vld [vmem:[#allocation3 + $0x8] sm:$0xff] }
 0x868   :  { %v6783_v54 = vld [vmem:[#allocation3 + $0x7a] sm:$0xff]  ;;  %v6530_v38 = vadd.f32 %v14348_v55, %v6438_v49  ;;  %v6756_v49 = vld [vmem:[#allocation3 + $0x48] sm:$0xff] }
 0x869   :  { %6739 = vst.msk [vmem:[#allocation3 + $0x88] sm:$0xff] %vm5514_vm2, %v6699_v59  ;;  %9397 = vmatmul.msk.f32.gmra.mxu3 %vm5514_vm2, %v6783_v54  ;;  %9538 = vmatmul.msk.f32.gmra.mxu0 %vm5514_vm2, %v6783_v54  ;;  %v14419_v57 = vld [vmem:[#allocation3 + $0x7c] sm:$0xff]  ;;  %v15138_v54 = vld [vmem:[#allocation9_spill] sm:$0xff] }
 0x86a   :  { %v6609_v0 = vpop.f32.mrf.mxu1  ;;  %15134 = vst [vmem:[#allocation32_spill] sm:$0xff] %v14419_v57 }
 0x86b   :  { %9453 = vmatmul.msk.f32.gmra.mxu2 %vm5514_vm2, %v7252_v50  ;;  %v6610_v20 = vadd.f32 %v6609_v0, %v6518_v32  ;;  %v6444_v0 = vadd.f32 %v15139_v41, %v15138_v54  ;;  %v6761_v54 = vld [vmem:[#allocation3 + $0x70] sm:$0xff] }
 0x86d   :  { %9432 = vmatmul.msk.f32.gmra.mxu1 %vm5514_vm2, %v7250_v29  ;;  %v6747_v29 = vld [vmem:[#allocation3] sm:$0xff]  ;;  %v6536_v32 = vadd.f32 %v14375_v11, %v6444_v0 }
 0x86e   :  { %v6701_v26 = vpop.f32.mrf.mxu2 }
 0x86f   :  { %v6702_v2 = vadd.f32 %v6701_v26, %v6610_v20 }
 0x870   :  { %v6784_v43 = vld [vmem:[#allocation3 + $0x82] sm:$0xff] }
 0x871   :  { %6740 = vst.msk [vmem:[#allocation3 + $0x90] sm:$0xff] %vm5514_vm2, %v6702_v2  ;;  %9398 = vmatmul.msk.f32.gmra.mxu3 %vm5514_vm2, %v6784_v43  ;;  %9539 = vmatmul.msk.f32.gmra.mxu0 %vm5514_vm2, %v6784_v43  ;;  %v14432_v34 = vld [vmem:[#allocation3 + $0x84] sm:$0xff] }
 0x872   :  { %v6612_v18 = vpop.f32.mrf.mxu1  ;;  %15137 = vst [vmem:[#allocation33_spill] sm:$0xff] %v14432_v34 }
 0x873   :  { %9454 = vmatmul.msk.f32.gmra.mxu2 %vm5514_vm2, %v7253_v22  ;;  %v6613_v1 = vadd.f32 %v6612_v18, %v6521_v7  ;;  %v9506_v18 = vld [vmem:[%s14980_s4 + $0x30] sm:$0xff]  ;;  %v9485_v7 = vld [vmem:[%s14980_s4 + $0x28] sm:$0xff] }
 0x874   :  { %v14388_v30 = vpop.f32.mrf.mxu3  ;;  %7877 = vmatpush.msra.mxu2 %v9506_v18  ;;  %7698 = vmatpush.msra.mxu1 %v9485_v7 }
 0x875   :  { %9433 = vmatmul.msk.f32.gmra.mxu1 %vm5514_vm2, %v7251_v12 }
 0x876   :  { %v6704_v21 = vpop.f32.mrf.mxu2 }
 0x877   :  { %v6705_v16 = vadd.f32 %v6704_v21, %v6613_v1  ;;  %v6750_v1 = vld [vmem:[#allocation3 + $0x18] sm:$0xff] }
 0x878   :  { %v6785_v45 = vld [vmem:[#allocation3 + $0x8a] sm:$0xff] }
 0x879   :  { %6741 = vst.msk [vmem:[#allocation3 + $0x98] sm:$0xff] %vm5514_vm2, %v6705_v16  ;;  %9399 = vmatmul.msk.f32.gmra.mxu3 %vm5514_vm2, %v6785_v45  ;;  %9540 = vmatmul.msk.f32.gmra.mxu0 %vm5514_vm2, %v6785_v45 }
 0x87a   :  { %v6615_v53 = vpop.f32.mrf.mxu1 }
 0x87b   :  { %9455 = vmatmul.msk.f32.gmra.mxu2 %vm5514_vm2, %v7254_v6  ;;  %v6616_v48 = vadd.f32 %v6615_v53, %v6524_v4 }
 0x87c   :  { %v14398_v47 = vpop.f32.mrf.mxu3 }
 0x87d   :  { %9434 = vmatmul.msk.f32.gmra.mxu1 %vm5514_vm2, %v7252_v50  ;;  %v14446_v50 = vld [vmem:[#allocation3 + $0x8c] sm:$0xff] }
 0x87e   :  { %v6707_v42 = vpop.f32.mrf.mxu2  ;;  %15140 = vst [vmem:[#allocation34_spill] sm:$0xff] %v14446_v50 }
 0x87f   :  { %v6708_v15 = vadd.f32 %v6707_v42, %v6616_v48  ;;  %v6752_v48 = vld [vmem:[#allocation3 + $0x28] sm:$0xff] }
 0x880   :  { %v6786_v36 = vld [vmem:[#allocation3 + $0x92] sm:$0xff]  ;;  %v6787_v8 = vld [vmem:[#allocation3 + $0x9a] sm:$0xf] }
 0x881   :  { %6742 = vst.msk [vmem:[#allocation3 + $0xa0] sm:$0xff] %vm5514_vm2, %v6708_v15  ;;  %9400 = vmatmul.msk.f32.gmra.mxu3 %vm5514_vm2, %v6786_v36  ;;  %9541 = vmatmul.msk.f32.gmra.mxu0 %vm5514_vm2, %v6786_v36  ;;  %v14458_v11 = vld [vmem:[#allocation3 + $0x94] sm:$0xff]  ;;  %v7083_v36 = vld [vmem:[#allocation3 + $0x9c] sm:$0xf] }
 0x882   :  { %v6618_v63 = vpop.f32.mrf.mxu1  ;;  %15141 = vst [vmem:[#allocation35_spill] sm:$0xff] %v14458_v11 }
 0x883   :  { %9456 = vmatmul.msk.f32.gmra.mxu2 %vm5514_vm2, %v14406_v28  ;;  %v6619_v37 = vadd.f32 %v6618_v63, %v6527_v31 }
 0x884   :  { %v14411_v25 = vpop.f32.mrf.mxu3 }
 0x885   :  { %9435 = vmatmul.msk.f32.gmra.mxu1 %vm5514_vm2, %v7253_v22 }
 0x886   :  { %v6710_v51 = vpop.f32.mrf.mxu2 }
 0x887   :  { %v6711_v24 = vadd.f32 %v6710_v51, %v6619_v37  ;;  %v6754_v51 = vld [vmem:[#allocation3 + $0x38] sm:$0xff] }
 0x888   :  { %v7973_v19 = vld [vmem:[#allocation3 + $0x9a] sm:$0xff] }
 0x889   :  { %6743 = vst.msk [vmem:[#allocation3 + $0xa8] sm:$0xff] %vm5514_vm2, %v6711_v24  ;;  %9401 = vmatmul.msk.f32.gmra.mxu3 %vm5514_vm2, %v6787_v8  ;;  %9542 = vmatmul.msk.f32.gmra.mxu0 %vm5514_vm2, %v7973_v19  ;;  %v14474_v16 = vld [vmem:[#allocation3 + $0x9c] sm:$0xff] }
 0x88a   :  { %v6621_v13 = vpop.f32.mrf.mxu1  ;;  %15142 = vst [vmem:[#allocation10_spill] sm:$0xff] %v14474_v16  ;;  %v6755_v19 = vld [vmem:[#allocation3 + $0x40] sm:$0xff] }
 0x88b   :  { %9457 = vmatmul.msk.f32.gmra.mxu2 %vm5514_vm2, %v14419_v57  ;;  %v6622_v5 = vadd.f32 %v6621_v13, %v6530_v38 }
 0x88c   :  { %v14424_v46 = vpop.f32.mrf.mxu3 }
 0x88d   :  { %9436 = vmatmul.msk.f32.gmra.mxu1 %vm5514_vm2, %v7254_v6 }
 0x88e   :  { %v6713_v35 = vpop.f32.mrf.mxu2 }
 0x88f   :  { %v6714_v3 = vadd.f32 %v6713_v35, %v6622_v5  ;;  %v6757_v35 = vld [vmem:[#allocation3 + $0x50] sm:$0xff] }
 0x890   :  { %v7974_v60 = vld [vmem:[#allocation3 + $0xa2] sm:$0xff]  ;;  %v7262_v42 = vld [vmem:[#allocation3 + $0xac] sm:$0xf] }
 0x891   :  { %6744 = vst.msk [vmem:[#allocation3 + $0xb0] sm:$0xff] %vm5514_vm2, %v6714_v3  ;;  %9402 = vmatmul.msk.f32.vlgmr.msra.gmra.mxu3 %vm5514_vm2, %v6747_v29  ;;  %9543 = vmatmul.msk.f32.gmra.mxu0 %vm5514_vm2, %v7974_v60  ;;  %v14484_v6 = vld [vmem:[#allocation3 + $0xa4] sm:$0xff] }
 0x892   :  { %v6624_v55 = vpop.f32.mrf.mxu1  ;;  %15143 = vst [vmem:[#allocation36_spill] sm:$0xff] %v14484_v6 }
 0x893   :  { %9458 = vmatmul.msk.f32.gmra.mxu2 %vm5514_vm2, %v14432_v34  ;;  %v6625_v12 = vadd.f32 %v6624_v55, %v6533_v62  ;;  %v6759_v62 = vld [vmem:[#allocation3 + $0x60] sm:$0xff] }
 0x894   :  { %v14437_v17 = vpop.f32.mrf.mxu3 }
 0x895   :  { %9437 = vmatmul.msk.f32.gmra.mxu1 %vm5514_vm2, %v14406_v28  ;;  %v7436_v28 = vld [vmem:[#allocation3 + $0x86] sm:$0xff] }
 0x896   :  { %v6716_v44 = vpop.f32.mrf.mxu2 }
 0x897   :  { %v6717_v9 = vadd.f32 %v6716_v44, %v6625_v12 }
 0x898   :  { %v7975_v59 = vld [vmem:[#allocation3 + $0xaa] sm:$0xff] }
 0x899   :  { %6745 = vst.msk [vmem:[#allocation3 + $0xb8] sm:$0xff] %vm5514_vm2, %v6717_v9  ;;  %9403 = vmatmul.msk.f32.gmra.mxu3 %vm5514_vm2, %v6748_v14  ;;  %9544 = vmatmul.msk.f32.gmra.mxu0 %vm5514_vm2, %v7975_v59  ;;  %v6760_v9 = vld [vmem:[#allocation3 + $0x68] sm:$0xff] }
 0x89a   :  { %v6627_v39 = vpop.f32.mrf.mxu1 }
 0x89b   :  { %9459 = vmatmul.msk.f32.gmra.mxu2 %vm5514_vm2, %v14446_v50  ;;  %v6628_v26 = vadd.f32 %v6627_v39, %v6536_v32  ;;  %v6762_v32 = vld [vmem:[#allocation3 + $0x78] sm:$0xff] }
 0x89c   :  { %v14451_v20 = vpop.f32.mrf.mxu3 }
 0x89d   :  { %9438 = vmatmul.msk.f32.gmra.mxu1 %vm5514_vm2, %v14419_v57  ;;  %v7431_v57 = vld [vmem:[#allocation3 + $0x5e] sm:$0xff] }
 0x89e   :  { %v6719_v2 = vpop.f32.mrf.mxu2 }
 0x89f   :  { %v6720_v43 = vadd.f32 %v6719_v2, %v6628_v26 }
 0x8a0   :  { %v7976_v52 = vld [vmem:[#allocation3 + $0xb2] sm:$0xff] }
 0x8a1   :  { %6746 = vst.msk [vmem:[#allocation3 + $0xc0] sm:$0xff] %vm5514_vm2, %v6720_v43  ;;  %9404 = vmatmul.msk.f32.gmra.mxu3 %vm5514_vm2, %v6749_v23  ;;  %9545 = vmatmul.msk.f32.gmra.mxu0 %vm5514_vm2, %v7976_v52  ;;  %v9464_v23 = vld [vmem:[%s14980_s4 + $0x20] sm:$0xff]  ;;  %v6763_v52 = vld [vmem:[#allocation3 + $0x80] sm:$0xff] }
 0x8a2   :  { %v14504_v37 = vpop.f32.mrf.mxu1  ;;  %7519 = vmatpush.msrb.mxu3 %v9464_v23  ;;  %v7795_v23 = vld [vmem:[#allocation3 + $0xa0] sm:$0xff] }
 0x8a3   :  { %9460 = vmatmul.msk.f32.gmra.mxu2 %vm5514_vm2, %v14458_v11 }
 0x8a4   :  { %v14465_v22 = vpop.f32.mrf.mxu3 }
 0x8a5   :  { %9439 = vmatmul.msk.f32.gmra.mxu1 %vm5514_vm2, %v14432_v34 }
 0x8a6   :  { %v14501_v31 = vpop.f32.mrf.mxu2 }
 0x8a8   :  { %v7977_v21 = vld [vmem:[#allocation3 + $0xba] sm:$0xff]  ;;  %v7978_v53 = vld [vmem:[#allocation3 + $0xc2] sm:$0xf] }
 0x8a9   :  { %9405 = vmatmul.msk.f32.gmra.mxu3 %vm5514_vm2, %v6750_v1  ;;  %9546 = vmatmul.msk.f32.gmra.mxu0 %vm5514_vm2, %v7977_v21  ;;  %v6764_v21 = vld [vmem:[#allocation3 + $0x88] sm:$0xff] }
 0x8aa   :  { %v14513_v56 = vpop.f32.mrf.mxu1 }
 0x8ab   :  { %9461 = vmatmul.msk.f32.gmra.mxu2 %vm5514_vm2, %v14474_v16  ;;  %v7425_v16 = vld [vmem:[#allocation3 + $0x2e] sm:$0xff] }
 0x8ac   :  { %v14478_v45 = vpop.f32.mrf.mxu3 }
 0x8ad   :  { %9440 = vmatmul.msk.f32.gmra.mxu1 %vm5514_vm2, %v14446_v50 }
 0x8ae   :  { %v14511_v8 = vpop.f32.mrf.mxu2 }
 0x8b1   :  { %9406 = vmatmul.msk.f32.gmra.mxu3 %vm5514_vm2, %v6751_v10  ;;  %9547 = vmatmul.msk.f32.gmra.mxu0 %vm5514_vm2, %v7978_v53 }
 0x8b2   :  { %v14523_v38 = vpop.f32.mrf.mxu1 }
 0x8b3   :  { %9462 = vmatmul.msk.f32.gmra.mxu2 %vm5514_vm2, %v14484_v6  ;;  %v7424_v6 = vld [vmem:[#allocation3 + $0x26] sm:$0xff] }
 0x8b4   :  { %v14488_v4 = vpop.f32.mrf.mxu3 }
 0x8b5   :  { %9441 = vmatmul.msk.f32.gmra.mxu1 %vm5514_vm2, %v14458_v11 }
 0x8b6   :  { %v14520_v13 = vpop.f32.mrf.mxu2 }
 0x8b9   :  { %9407 = vmatmul.msk.f32.gmra.mxu3 %vm5514_vm2, %v6752_v48 }
 0x8ba   :  { %v14535_v60 = vpop.f32.mrf.mxu1 }
 0x8bb   :  { %9463 = vmatmul.msk.f32.gmra.mxu2 %vm5514_vm2, %v7262_v42 }
 0x8bc   :  { %v14494_v15 = vpop.f32.mrf.mxu3 }
 0x8bd   :  { %9442 = vmatmul.msk.f32.gmra.mxu1 %vm5514_vm2, %v7083_v36 }
 0x8be   :  { %v14530_v3 = vpop.f32.mrf.mxu2 }
 0x8c1   :  { %9408 = vmatmul.msk.f32.gmra.mxu3 %vm5514_vm2, %v6753_v58 }
 0x8c2   :  { %v14545_v55 = vpop.f32.mrf.mxu1 }
 0x8c3   :  { %9507 = vmatmul.msk.f32.vlgmr.msra.gmra.mxu2 %vm5514_vm2, %v6752_v48 }
 0x8c4   :  { %v14499_v63 = vpop.f32.mrf.mxu3 }
 0x8c5   :  { %9486 = vmatmul.msk.f32.vlgmr.msra.gmra.mxu1 %vm5514_vm2, %v6750_v1 }
 0x8c6   :  { %v14542_v33 = vpop.f32.mrf.mxu2 }
 0x8c9   :  { %9409 = vmatmul.msk.f32.gmra.mxu3 %vm5514_vm2, %v6754_v51 }
 0x8ca   :  { %v14554_v14 = vpop.f32.mrf.mxu1 }
 0x8cb   :  { %9508 = vmatmul.msk.f32.gmra.mxu2 %vm5514_vm2, %v6753_v58 }
 0x8cc   :  { %v14508_v24 = vpop.f32.mrf.mxu3 }
 0x8cd   :  { %9487 = vmatmul.msk.f32.gmra.mxu1 %vm5514_vm2, %v6751_v10 }
 0x8ce   :  { %v14552_v44 = vpop.f32.mrf.mxu2 }
 0x8d1   :  { %9410 = vmatmul.msk.f32.gmra.mxu3 %vm5514_vm2, %v6755_v19 }
 0x8d2   :  { %v14564_v0 = vpop.f32.mrf.mxu1 }
 0x8d3   :  { %9509 = vmatmul.msk.f32.gmra.mxu2 %vm5514_vm2, %v6754_v51 }
 0x8d4   :  { %v14517_v27 = vpop.f32.mrf.mxu3 }
 0x8d5   :  { %9488 = vmatmul.msk.f32.gmra.mxu1 %vm5514_vm2, %v6752_v48  ;;  %v6765_v48 = vld [vmem:[#allocation3 + $0x90] sm:$0xff] }
 0x8d6   :  { %v14561_v41 = vpop.f32.mrf.mxu2 }
 0x8d9   :  { %9411 = vmatmul.msk.f32.gmra.mxu3 %vm5514_vm2, %v6756_v49 }
 0x8da   :  { %v14576_v43 = vpop.f32.mrf.mxu1 }
 0x8db   :  { %9510 = vmatmul.msk.f32.gmra.mxu2 %vm5514_vm2, %v6755_v19 }
 0x8dc   :  { %v14526_v5 = vpop.f32.mrf.mxu3 }
 0x8dd   :  { %9489 = vmatmul.msk.f32.gmra.mxu1 %vm5514_vm2, %v6753_v58  ;;  %v6766_v58 = vld [vmem:[#allocation3 + $0x98] sm:$0xf] }
 0x8de   :  { %v14571_v26 = vpop.f32.mrf.mxu2 }
 0x8e1   :  { %9412 = vmatmul.msk.f32.gmra.mxu3 %vm5514_vm2, %v6757_v35 }
 0x8e2   :  { %v14589_v1 = vpop.f32.mrf.mxu1 }
 0x8e3   :  { %9511 = vmatmul.msk.f32.gmra.mxu2 %vm5514_vm2, %v6756_v49 }
 0x8e4   :  { %v14533_v29 = vpop.f32.mrf.mxu3 }
 0x8e5   :  { %15144 = vst [vmem:[#allocation11_spill] sm:$0xff] %v14533_v29  ;;  %9490 = vmatmul.msk.f32.gmra.mxu1 %vm5514_vm2, %v6754_v51  ;;  %v7435_v29 = vld [vmem:[#allocation3 + $0x7e] sm:$0xff] }
 0x8e6   :  { %v14586_v7 = vpop.f32.mrf.mxu2 }
 0x8e9   :  { %9413 = vmatmul.msk.f32.gmra.mxu3 %vm5514_vm2, %v6758_v61 }
 0x8ea   :  { %v14598_v42 = vpop.f32.mrf.mxu1 }
 0x8eb   :  { %9512 = vmatmul.msk.f32.gmra.mxu2 %vm5514_vm2, %v6757_v35 }
 0x8ec   :  { %v14540_v40 = vpop.f32.mrf.mxu3 }
 0x8ed   :  { %15145 = vst [vmem:[#allocation37_spill] sm:$0xff] %v14540_v40  ;;  %9491 = vmatmul.msk.f32.gmra.mxu1 %vm5514_vm2, %v6755_v19 }
 0x8ee   :  { %v14596_v53 = vpop.f32.mrf.mxu2 }
 0x8f1   :  { %9414 = vmatmul.msk.f32.gmra.mxu3 %vm5514_vm2, %v6759_v62 }
 0x8f2   :  { %v14608_v19 = vpop.f32.mrf.mxu1 }
 0x8f3   :  { %9513 = vmatmul.msk.f32.gmra.mxu2 %vm5514_vm2, %v6758_v61 }
 0x8f4   :  { %v14549_v12 = vpop.f32.mrf.mxu3 }
 0x8f5   :  { %15146 = vst [vmem:[#allocation12_spill] sm:$0xff] %v14549_v12  ;;  %9492 = vmatmul.msk.f32.gmra.mxu1 %vm5514_vm2, %v6756_v49 }
 0x8f6   :  { %v14605_v51 = vpop.f32.mrf.mxu2 }
 0x8f9   :  { %9415 = vmatmul.msk.f32.gmra.mxu3 %vm5514_vm2, %v6760_v9 }
 0x8fb   :  { %9514 = vmatmul.msk.f32.gmra.mxu2 %vm5514_vm2, %v6759_v62 }
 0x8fc   :  { %v14558_v59 = vpop.f32.mrf.mxu3 }
 0x8fd   :  { %15147 = vst [vmem:[#allocation38_spill] sm:$0xff] %v14558_v59  ;;  %9493 = vmatmul.msk.f32.gmra.mxu1 %vm5514_vm2, %v6757_v35  ;;  %v7422_v35 = vld [vmem:[#allocation3 + $0x16] sm:$0xff] }
 0x901   :  { %9416 = vmatmul.msk.f32.gmra.mxu3 %vm5514_vm2, %v6761_v54 }
 0x903   :  { %9515 = vmatmul.msk.f32.gmra.mxu2 %vm5514_vm2, %v6760_v9 }
 0x904   :  { %v14567_v39 = vpop.f32.mrf.mxu3 }
 0x905   :  { %15148 = vst [vmem:[#allocation13_spill] sm:$0xff] %v14567_v39  ;;  %9494 = vmatmul.msk.f32.gmra.mxu1 %vm5514_vm2, %v6758_v61  ;;  %v7794_v61 = vld [vmem:[#allocation3 + $0x98] sm:$0xff] }
 0x909   :  { %9417 = vmatmul.msk.f32.gmra.mxu3 %vm5514_vm2, %v6762_v32 }
 0x90b   :  { %9516 = vmatmul.msk.f32.gmra.mxu2 %vm5514_vm2, %v6761_v54 }
 0x90c   :  { %v14574_v2 = vpop.f32.mrf.mxu3 }
 0x90d   :  { %15149 = vst [vmem:[#allocation39_spill] sm:$0xff] %v14574_v2  ;;  %9495 = vmatmul.msk.f32.gmra.mxu1 %vm5514_vm2, %v6759_v62  ;;  %v14615_v62 = vpop.f32.mrf.mxu2  ;;  %v7796_v2 = vld [vmem:[#allocation3 + $0xa8] sm:$0xff] }
 0x911   :  { %9418 = vmatmul.msk.f32.gmra.mxu3 %vm5514_vm2, %v6763_v52 }
 0x913   :  { %9517 = vmatmul.msk.f32.gmra.mxu2 %vm5514_vm2, %v6762_v32 }
 0x914   :  { %v14584_v18 = vpop.f32.mrf.mxu3 }
 0x915   :  { %9496 = vmatmul.msk.f32.gmra.mxu1 %vm5514_vm2, %v6760_v9 }
 0x919   :  { %9419 = vmatmul.msk.f32.gmra.mxu3 %vm5514_vm2, %v6764_v21 }
 0x91b   :  { %9518 = vmatmul.msk.f32.gmra.mxu2 %vm5514_vm2, %v6763_v52 }
 0x91c   :  { %v14593_v10 = vpop.f32.mrf.mxu3 }
 0x91d   :  { %9497 = vmatmul.msk.f32.gmra.mxu1 %vm5514_vm2, %v6761_v54  ;;  %v14620_v54 = vpop.f32.mrf.mxu1 }
 0x921   :  { %9420 = vmatmul.msk.f32.gmra.mxu3 %vm5514_vm2, %v6765_v48 }
 0x923   :  { %9519 = vmatmul.msk.f32.gmra.mxu2 %vm5514_vm2, %v6764_v21 }
 0x924   :  { %v14602_v36 = vpop.f32.mrf.mxu3 }
 0x925   :  { %9498 = vmatmul.msk.f32.gmra.mxu1 %vm5514_vm2, %v6762_v32  ;;  %v7423_v32 = vld [vmem:[#allocation3 + $0x1e] sm:$0xff] }
 0x929   :  { %9421 = vmatmul.msk.f32.gmra.mxu3 %vm5514_vm2, %v6766_v58  ;;  %v14627_v58 = vpop.f32.mrf.mxu2 }
 0x92b   :  { %9520 = vmatmul.msk.f32.gmra.mxu2 %vm5514_vm2, %v6765_v48 }
 0x92c   :  { %v14611_v49 = vpop.f32.mrf.mxu3 }
 0x92d   :  { %9499 = vmatmul.msk.f32.gmra.mxu1 %vm5514_vm2, %v6763_v52 }
 0x931   :  { %9465 = vmatmul.msk.f32.vlgmr.msrb.gmra.mxu3 %vm5514_vm2, %v7422_v35  ;;  %v14630_v35 = vpop.f32.mrf.mxu1 }
 0x933   :  { %9521 = vmatmul.msk.f32.gmra.mxu2 %vm5514_vm2, %v7794_v61 }
 0x934   :  { %v14618_v9 = vpop.f32.mrf.mxu3 }
 0x935   :  { %9500 = vmatmul.msk.f32.gmra.mxu1 %vm5514_vm2, %v6764_v21 }
 0x939   :  { %9466 = vmatmul.msk.f32.gmra.mxu3 %vm5514_vm2, %v7423_v32  ;;  %v14637_v32 = vpop.f32.mrf.mxu2  ;;  %v14639_v39 = vpop.f32.mrf.mxu1 }
 0x93a   :  { %15150 = vst [vmem:[#allocation14_spill] sm:$0xff] %v14637_v32  ;;  %v7434_v32 = vld [vmem:[#allocation3 + $0x76] sm:$0xff] }
 0x93b   :  { %9522 = vmatmul.msk.f32.gmra.mxu2 %vm5514_vm2, %v7795_v23 }
 0x93c   :  { %v14625_v52 = vpop.f32.mrf.mxu3 }
 0x93d   :  { %9501 = vmatmul.msk.f32.gmra.mxu1 %vm5514_vm2, %v6765_v48  ;;  %v7797_v48 = vld [vmem:[#allocation3 + $0xb0] sm:$0xff] }
 0x941   :  { %9467 = vmatmul.msk.f32.gmra.mxu3 %vm5514_vm2, %v7424_v6  ;;  %v7426_v6 = vld [vmem:[#allocation3 + $0x36] sm:$0xff]  ;;  %v14646_v59 = vpop.f32.mrf.mxu2  ;;  %v14649_v50 = vpop.f32.mrf.mxu1 }
 0x942   :  { %15151 = vst [vmem:[#allocation40_spill] sm:$0xff] %v14646_v59 }
 0x943   :  { %9523 = vmatmul.msk.f32.gmra.mxu2 %vm5514_vm2, %v7796_v2  ;;  %15152 = vst [vmem:[#allocation15_spill] sm:$0xff] %v14649_v50  ;;  %v7433_v50 = vld [vmem:[#allocation3 + $0x6e] sm:$0xff] }
 0x944   :  { %v14634_v21 = vpop.f32.mrf.mxu3 }
 0x945   :  { %9502 = vmatmul.msk.f32.gmra.mxu1 %vm5514_vm2, %v7794_v61  ;;  %v7798_v61 = vld [vmem:[#allocation3 + $0xb8] sm:$0xff] }
 0x949   :  { %9468 = vmatmul.msk.f32.gmra.mxu3 %vm5514_vm2, %v7425_v16  ;;  %v7427_v16 = vld [vmem:[#allocation3 + $0x3e] sm:$0xff]  ;;  %v14656_v34 = vpop.f32.mrf.mxu2  ;;  %v14661_v59 = vpop.f32.mrf.mxu1 }
 0x94a   :  { %15153 = vst [vmem:[#allocation41_spill] sm:$0xff] %v14656_v34  ;;  %v7430_v34 = vld [vmem:[#allocation3 + $0x56] sm:$0xff] }
 0x94b   :  { %9524 = vmatmul.msk.f32.gmra.mxu2 %vm5514_vm2, %v7797_v48  ;;  %v7799_v48 = vld [vmem:[#allocation3 + $0xc0] sm:$0xf]  ;;  %15154 = vst [vmem:[#allocation16_spill] sm:$0xff] %v14661_v59 }
 0x94c   :  { %v14643_v11 = vpop.f32.mrf.mxu3 }
 0x94d   :  { %9503 = vmatmul.msk.f32.gmra.mxu1 %vm5514_vm2, %v7795_v23 }
 0x951   :  { %9469 = vmatmul.msk.f32.gmra.mxu3 %vm5514_vm2, %v7426_v6  ;;  %v7620_v6 = vld [vmem:[#allocation3 + $0xb0] sm:$0xf] }
 0x953   :  { %9525 = vmatmul.msk.f32.gmra.mxu2 %vm5514_vm2, %v7798_v61  ;;  %v7428_v61 = vld [vmem:[#allocation3 + $0x46] sm:$0xff] }
 0x954   :  { %v14652_v12 = vpop.f32.mrf.mxu3 }
 0x955   :  { %9504 = vmatmul.msk.f32.gmra.mxu1 %vm5514_vm2, %v7796_v2  ;;  %v7429_v2 = vld [vmem:[#allocation3 + $0x4e] sm:$0xff] }
 0x959   :  { %9470 = vmatmul.msk.f32.gmra.mxu3 %vm5514_vm2, %v7427_v16 }
 0x95b   :  { %9526 = vmatmul.msk.f32.gmra.mxu2 %vm5514_vm2, %v7799_v48 }
 0x95c   :  { %v14659_v23 = vpop.f32.mrf.mxu3 }
 0x95d   :  { %9505 = vmatmul.msk.f32.gmra.mxu1 %vm5514_vm2, %v7620_v6  ;;  %v7432_v6 = vld [vmem:[#allocation3 + $0x66] sm:$0xff] }
 0x961   :  { %9471 = vmatmul.msk.f32.gmra.mxu3 %vm5514_vm2, %v7428_v61 }
 0x964   :  { %v14665_v40 = vpop.f32.mrf.mxu3 }
 0x969   :  { %9472 = vmatmul.msk.f32.gmra.mxu3 %vm5514_vm2, %v7429_v2 }
 0x96c   :  { %v14668_v16 = vpop.f32.mrf.mxu3 }
 0x971   :  { %9473 = vmatmul.msk.f32.gmra.mxu3 %vm5514_vm2, %v7430_v34 }
 0x974   :  { %v14671_v48 = vpop.f32.mrf.mxu3 }
 0x979   :  { %9474 = vmatmul.msk.f32.gmra.mxu3 %vm5514_vm2, %v7431_v57 }
 0x97c   :  { %v14674_v59 = vpop.f32.mrf.mxu3 }
 0x981   :  { %9475 = vmatmul.msk.f32.gmra.mxu3 %vm5514_vm2, %v7432_v6 }
 0x984   :  { %v14677_v61 = vpop.f32.mrf.mxu3 }
 0x985   :  { %15155 = vst [vmem:[#allocation42_spill] sm:$0xff] %v14677_v61  ;;  %v7437_v61 = vld [vmem:[#allocation3 + $0x8e] sm:$0xff] }
 0x989   :  { %9476 = vmatmul.msk.f32.gmra.mxu3 %vm5514_vm2, %v7433_v50  ;;  %v7005_v50 = vadd.f32 %v14584_v18, %v14388_v30  ;;  %v7439_v18 = vld [vmem:[#allocation3 + $0x9e] sm:$0xff] }
 0x98c   :  { %v14680_v2 = vpop.f32.mrf.mxu3 }
 0x98d   :  { %15156 = vst [vmem:[#allocation17_spill] sm:$0xff] %v14680_v2 }
 0x991   :  { %9477 = vmatmul.msk.f32.gmra.mxu3 %vm5514_vm2, %v7434_v32  ;;  %v7223_v32 = vadd.f32 %v14504_v37, %v7005_v50  ;;  %v7011_v37 = vadd.f32 %v14602_v36, %v14411_v25  ;;  %v7441_v36 = vld [vmem:[#allocation3 + $0xae] sm:$0xf] }
 0x994   :  { %v14683_v34 = vpop.f32.mrf.mxu3 }
 0x995   :  { %15157 = vst [vmem:[#allocation43_spill] sm:$0xff] %v14683_v34 }
 0x999   :  { %9478 = vmatmul.msk.f32.gmra.mxu3 %vm5514_vm2, %v7435_v29  ;;  %v9548_v29 = vld [vmem:[%s14980_s4 + $0x40] sm:$0xff] }
 0x99a   :  { %8235 = vmatpush.msra.mxu3 %v9548_v29 }
 0x99c   :  { %v14686_v57 = vpop.f32.mrf.mxu3 }
 0x99d   :  { %15158 = vst [vmem:[#allocation18_spill] sm:$0xff] %v14686_v57  ;;  %v7438_v57 = vld [vmem:[#allocation3 + $0x96] sm:$0xff] }
 0x9a1   :  { %9479 = vmatmul.msk.f32.gmra.mxu3 %vm5514_vm2, %v7436_v28  ;;  %v7008_v28 = vadd.f32 %v14593_v10, %v14398_v47  ;;  %v7225_v47 = vadd.f32 %v14523_v38, %v7011_v37  ;;  %v7440_v10 = vld [vmem:[#allocation3 + $0xa6] sm:$0xff] }
 0x9a3   :  { %v7224_v30 = vadd.f32 %v14513_v56, %v7008_v28  ;;  %v7404_v56 = vadd.f32 %v14520_v13, %v7225_v47  ;;  %v7020_v13 = vadd.f32 %v14625_v52, %v14451_v20  ;;  %v8140_v52 = vld [vmem:[#allocation3 + $0x3c] sm:$0xff] }
 0x9a4   :  { %v14689_v6 = vpop.f32.mrf.mxu3 }
 0x9a5   :  { %15159 = vst [vmem:[#allocation44_spill] sm:$0xff] %v14689_v6  ;;  %v7403_v50 = vadd.f32 %v14511_v8, %v7224_v30  ;;  %v7017_v8 = vadd.f32 %v14618_v9, %v14437_v17  ;;  %v7228_v17 = vadd.f32 %v14554_v14, %v7020_v13  ;;  %v8139_v9 = vld [vmem:[#allocation3 + $0x34] sm:$0xff] }
 0x9a9   :  { %9480 = vmatmul.msk.f32.gmra.mxu3 %vm5514_vm2, %v7437_v61  ;;  %v7402_v61 = vadd.f32 %v14501_v31, %v7223_v32  ;;  %v7014_v31 = vadd.f32 %v14611_v49, %v14424_v46  ;;  %v7227_v46 = vadd.f32 %v14545_v55, %v7017_v8  ;;  %v8138_v49 = vld [vmem:[#allocation3 + $0x2c] sm:$0xff]  ;;  %v7407_v55 = vadd.f32 %v14552_v44, %v7228_v17 }
 0x9aa   :  { %v7029_v44 = vadd.f32 %v14652_v12, %v14488_v4  ;;  %v8143_v12 = vld [vmem:[#allocation3 + $0x54] sm:$0xff] }
 0x9ab   :  { %v7226_v25 = vadd.f32 %v14535_v60, %v7014_v31  ;;  %v7406_v60 = vadd.f32 %v14542_v33, %v7227_v46  ;;  %v7026_v33 = vadd.f32 %v14643_v11, %v14478_v45  ;;  %v8142_v45 = vld [vmem:[#allocation3 + $0x4c] sm:$0xff] }
 0x9ac   :  { %v14694_v2 = vpop.f32.mrf.mxu3  ;;  %v7231_v11 = vadd.f32 %v14589_v1, %v7029_v44 }
 0x9ad   :  { %v7405_v38 = vadd.f32 %v14530_v3, %v7226_v25  ;;  %v7023_v3 = vadd.f32 %v14634_v21, %v14465_v22  ;;  %v7230_v22 = vadd.f32 %v14576_v43, %v7026_v33  ;;  %v8141_v21 = vld [vmem:[#allocation3 + $0x44] sm:$0xff]  ;;  %v7211_v25 = vpop.f32.mrf.mxu1 }
 0x9ae   :  { %v7410_v43 = vadd.f32 %v14586_v7, %v7231_v11  ;;  %v7390_v7 = vpop.f32.mrf.mxu2 }
 0x9af   :  { %v7229_v20 = vadd.f32 %v14564_v0, %v7023_v3  ;;  %v7409_v0 = vadd.f32 %v14571_v26, %v7230_v22  ;;  %v7035_v26 = vadd.f32 %v14665_v40, %v14499_v63  ;;  %v15165_v22 = vld [vmem:[#allocation32_spill] sm:$0xff] }
 0x9b1   :  { %9481 = vmatmul.msk.f32.gmra.mxu3 %vm5514_vm2, %v7438_v57  ;;  %v7408_v14 = vadd.f32 %v14561_v41, %v7229_v20  ;;  %v7032_v41 = vadd.f32 %v14659_v23, %v14494_v15  ;;  %v7233_v15 = vadd.f32 %v14608_v19, %v7035_v26  ;;  %v8144_v23 = vld [vmem:[#allocation3 + $0x5c] sm:$0xff]  ;;  %v7041_v19 = vadd.f32 %v14671_v48, %v14517_v27  ;;  %v15171_v26 = vld [vmem:[#allocation12_spill] sm:$0xff] }
 0x9b3   :  { %v7232_v4 = vadd.f32 %v14598_v42, %v7032_v41  ;;  %v7038_v42 = vadd.f32 %v14668_v16, %v14508_v24  ;;  %v7235_v24 = vadd.f32 %v14630_v35, %v7041_v19  ;;  %v8146_v16 = vld [vmem:[#allocation3 + $0x6c] sm:$0xff]  ;;  %v15161_v35 = vld [vmem:[#allocation11_spill] sm:$0xff]  ;;  %v15174_v19 = vld [vmem:[#allocation34_spill] sm:$0xff] }
 0x9b4   :  { %v7521_v6 = vpop.f32.mrf.mxu3 }
 0x9b5   :  { %v14704_v34 = vadd.f32 %v7521_v6, %v7402_v61  ;;  %v7411_v1 = vadd.f32 %v14596_v53, %v7232_v4  ;;  %v7214_v63 = vpop.f32.mrf.mxu1  ;;  %v7234_v40 = vadd.f32 %v14620_v54, %v7038_v42  ;;  %v8145_v53 = vld [vmem:[#allocation3 + $0x64] sm:$0xff]  ;;  %v7044_v54 = vadd.f32 %v14674_v59, %v14526_v5  ;;  %v8058_v42 = vpop.f32.mrf.mxu0 }
 0x9b6   :  { %v7414_v17 = vadd.f32 %v14627_v58, %v7235_v24  ;;  %v15164_v59 = vld [vmem:[#allocation15_spill] sm:$0xff]  ;;  %v15176_v24 = vld [vmem:[#allocation18_spill] sm:$0xff] }
 0x9b7   :  { %v7413_v13 = vadd.f32 %v14615_v62, %v7234_v40  ;;  %v7236_v27 = vadd.f32 %v14639_v39, %v7044_v54  ;;  %v15160_v62 = vld [vmem:[#allocation31_spill] sm:$0xff]  ;;  %v15167_v39 = vld [vmem:[#allocation17_spill] sm:$0xff] }
 0x9b9   :  { %9482 = vmatmul.msk.f32.gmra.mxu3 %vm5514_vm2, %v7439_v18 }
 0x9bc   :  { %v7524_v29 = vpop.f32.mrf.mxu3 }
 0x9bd   :  { %v14711_v57 = vadd.f32 %v7524_v29, %v7403_v50 }
 0x9c1   :  { %9483 = vmatmul.msk.f32.gmra.mxu3 %vm5514_vm2, %v7440_v10 }
 0x9c4   :  { %v7527_v6 = vpop.f32.mrf.mxu3 }
 0x9c5   :  { %v14718_v32 = vadd.f32 %v7527_v6, %v7404_v56 }
 0x9c9   :  { %9484 = vmatmul.msk.f32.gmra.mxu3 %vm5514_vm2, %v7441_v36 }
 0x9cc   :  { %v7530_v28 = vpop.f32.mrf.mxu3 }
 0x9cd   :  { %v14725_v61 = vadd.f32 %v7530_v28, %v7405_v38  ;;  %v7412_v38 = vadd.f32 %v14605_v51, %v7233_v15  ;;  %v7217_v51 = vpop.f32.mrf.mxu1  ;;  %v15173_v15 = vld [vmem:[#allocation41_spill] sm:$0xff] }
 0x9d1   :  { %9549 = vmatmul.msk.f32.vlgmr.msra.gmra.mxu3 %vm5514_vm2, %v8138_v49  ;;  %v7393_v49 = vpop.f32.mrf.mxu2 }
 0x9d4   :  { %v7533_v30 = vpop.f32.mrf.mxu3 }
 0x9d5   :  { %v14732_v18 = vadd.f32 %v7533_v30, %v7406_v60  ;;  %v7220_v48 = vpop.f32.mrf.mxu1 }
 0x9d9   :  { %9550 = vmatmul.msk.f32.gmra.mxu3 %vm5514_vm2, %v8139_v9  ;;  %v7396_v9 = vpop.f32.mrf.mxu2 }
 0x9dc   :  { %v7536_v37 = vpop.f32.mrf.mxu3 }
 0x9dd   :  { %v14739_v50 = vadd.f32 %v7536_v37, %v7407_v55  ;;  %v15162_v37 = vld [vmem:[#allocation42_spill] sm:$0xff]  ;;  %v7700_v11 = vpop.f32.mrf.mxu1 }
 0x9de   :  { %v7047_v20 = vadd.f32 %v15162_v37, %v15161_v35  ;;  %v15177_v37 = vld [vmem:[#allocation35_spill] sm:$0xff] }
 0x9e0   :  { %v7237_v58 = vadd.f32 %v15164_v59, %v7047_v20  ;;  %v15178_v20 = vld [vmem:[#allocation13_spill] sm:$0xff] }
 0x9e1   :  { %9551 = vmatmul.msk.f32.gmra.mxu3 %vm5514_vm2, %v8140_v52  ;;  %v15163_v52 = vld [vmem:[#allocation14_spill] sm:$0xff]  ;;  %v7399_v5 = vpop.f32.mrf.mxu2 }
 0x9e2   :  { %v7415_v33 = vadd.f32 %v15163_v52, %v7236_v27  ;;  %v8061_v27 = vpop.f32.mrf.mxu0  ;;  %v15179_v52 = vld [vmem:[#allocation44_spill] sm:$0xff] }
 0x9e4   :  { %v7539_v29 = vpop.f32.mrf.mxu3 }
 0x9e5   :  { %v14746_v47 = vadd.f32 %v7539_v29, %v7408_v14  ;;  %v7703_v40 = vpop.f32.mrf.mxu1 }
 0x9e9   :  { %9552 = vmatmul.msk.f32.gmra.mxu3 %vm5514_vm2, %v8141_v21  ;;  %v15166_v21 = vld [vmem:[#allocation37_spill] sm:$0xff]  ;;  %v7879_v4 = vpop.f32.mrf.mxu2 }
 0x9ea   :  { %v7050_v44 = vadd.f32 %v15167_v39, %v15166_v21  ;;  %v8064_v21 = vpop.f32.mrf.mxu0 }
 0x9ec   :  { %v7542_v10 = vpop.f32.mrf.mxu3 }
 0x9ed   :  { %v14753_v31 = vadd.f32 %v7542_v10, %v7409_v0  ;;  %v15168_v0 = vld [vmem:[#allocation40_spill] sm:$0xff]  ;;  %v7706_v35 = vpop.f32.mrf.mxu1 }
 0x9ee   :  { %v7416_v10 = vadd.f32 %v15168_v0, %v7237_v58 }
 0x9f1   :  { %9553 = vmatmul.msk.f32.gmra.mxu3 %vm5514_vm2, %v8142_v45 }
 0x9f4   :  { %v7545_v56 = vpop.f32.mrf.mxu3 }
 0x9f5   :  { %v14760_v6 = vadd.f32 %v7545_v56, %v7410_v43  ;;  %v15169_v43 = vld [vmem:[#allocation16_spill] sm:$0xff]  ;;  %v7709_v39 = vpop.f32.mrf.mxu1 }
 0x9f6   :  { %v7238_v56 = vadd.f32 %v15169_v43, %v7050_v44  ;;  %v15181_v44 = vld [vmem:[#allocation39_spill] sm:$0xff] }
 0x9f9   :  { %9554 = vmatmul.msk.f32.gmra.mxu3 %vm5514_vm2, %v8143_v12  ;;  %v15170_v12 = vld [vmem:[#allocation33_spill] sm:$0xff] }
 0x9fc   :  { %v7548_v36 = vpop.f32.mrf.mxu3 }
 0x9fd   :  { %v14767_v8 = vadd.f32 %v7548_v36, %v7411_v1  ;;  %v15172_v1 = vld [vmem:[#allocation43_spill] sm:$0xff] }
 0x9fe   :  { %v7053_v36 = vadd.f32 %v15172_v1, %v15171_v26  ;;  %v7712_v1 = vpop.f32.mrf.mxu1 }
 0xa01   :  { %9555 = vmatmul.msk.f32.gmra.mxu3 %vm5514_vm2, %v8144_v23  ;;  %v7417_v23 = vadd.f32 %v15173_v15, %v7238_v56 }
 0xa04   :  { %v7551_v28 = vpop.f32.mrf.mxu3 }
 0xa05   :  { %v14774_v46 = vadd.f32 %v7551_v28, %v7412_v38 }
 0xa09   :  { %9556 = vmatmul.msk.f32.gmra.mxu3 %vm5514_vm2, %v8145_v53  ;;  %v7239_v53 = vadd.f32 %v7211_v25, %v7053_v36  ;;  %v7059_v25 = vadd.f32 %v15179_v52, %v15178_v20 }
 0xa0b   :  { %v7418_v54 = vadd.f32 %v7390_v7, %v7239_v53  ;;  %v15180_v7 = vld [vmem:[#allocation10_spill] sm:$0xff] }
 0xa0c   :  { %v7554_v60 = vpop.f32.mrf.mxu3 }
 0xa0d   :  { %v14781_v30 = vadd.f32 %v7554_v60, %v7413_v13  ;;  %v7882_v13 = vpop.f32.mrf.mxu2  ;;  %v15175_v60 = vld [vmem:[#allocation38_spill] sm:$0xff] }
 0xa11   :  { %9557 = vmatmul.msk.f32.gmra.mxu3 %vm5514_vm2, %v8146_v16  ;;  %v7056_v16 = vadd.f32 %v15176_v24, %v15175_v60 }
 0xa14   :  { %v7557_v3 = vpop.f32.mrf.mxu3 }
 0xa15   :  { %v14788_v55 = vadd.f32 %v7557_v3, %v7414_v17 }
 0xa19   :  { %9558 = vmatmul.msk.f32.gmra.mxu3 %vm5514_vm2, %v15160_v62  ;;  %v7240_v62 = vadd.f32 %v7214_v63, %v7056_v16  ;;  %v7062_v63 = vadd.f32 %v14694_v2, %v15181_v44  ;;  %v8154_v2 = vld [vmem:[#allocation3 + $0xac] sm:$0xff]  ;;  %v8155_v16 = vld [vmem:[#allocation3 + $0xb4] sm:$0xff] }
 0xa1b   :  { %v7242_v56 = vadd.f32 %v7220_v48, %v7062_v63  ;;  %v14842_v48 = vld [vmem:[%s14981_s5] ss:$0 sm:$0xff] }
 0xa1c   :  { %v7560_v14 = vpop.f32.mrf.mxu3 }
 0xa1d   :  { %v14796_v29 = vadd.f32 %v7560_v14, %v7415_v33  ;;  %v7419_v33 = vadd.f32 %v7393_v49, %v7240_v62  ;;  %v7885_v14 = vpop.f32.mrf.mxu2  ;;  %v15182_v49 = vld [vmem:[#allocation36_spill] sm:$0xff]  ;;  %v7421_v26 = vadd.f32 %v7399_v5, %v7242_v56 }
 0xa21   :  { %9559 = vmatmul.msk.f32.gmra.mxu3 %vm5514_vm2, %v15165_v22  ;;  %v7241_v22 = vadd.f32 %v7217_v51, %v7059_v25  ;;  %v7760_v51 = vadd.f32 %v7700_v11, %v14704_v34  ;;  %v14847_v11 = vld [vmem:[%s14982_s6] ss:$0 sm:$0xff]  ;;  %s9615_s6 = smov [#allocation5]  }
 0xa23   :  { %v7420_v0 = vadd.f32 %v7396_v9, %v7241_v22  ;;  %v7761_v9 = vadd.f32 %v7703_v40, %v14711_v57  ;;  %v7762_v40 = vadd.f32 %v7706_v35, %v14718_v32  ;;  %v7763_v22 = vadd.f32 %v7709_v39, %v14725_v61 }
 0xa24   :  { %v7563_v45 = vpop.f32.mrf.mxu3 }
 0xa25   :  { %v14804_v41 = vadd.f32 %v7563_v45, %v7416_v10  ;;  %v7888_v43 = vpop.f32.mrf.mxu2  ;;  %v7940_v24 = vadd.f32 %v7882_v13, %v7761_v9  ;;  %v7941_v25 = vadd.f32 %v7885_v14, %v7762_v40  ;;  %v8157_v14 = vld [vmem:[#allocation3 + $0xc4] sm:$0xf] }
 0xa27   :  { %v8120_v32 = vadd.f32 %v8064_v21, %v7941_v25 }
 0xa29   :  { %9560 = vmatmul.msk.f32.gmra.mxu3 %vm5514_vm2, %v15170_v12  ;;  %v8067_v12 = vpop.f32.mrf.mxu0 }
 0xa2c   :  { %v7566_v38 = vpop.f32.mrf.mxu3 }
 0xa2d   :  { %v14812_v28 = vadd.f32 %v7566_v38, %v7417_v23  ;;  %v7939_v23 = vadd.f32 %v7879_v4, %v7760_v51  ;;  %v7891_v38 = vpop.f32.mrf.mxu2  ;;  %v7715_v4 = vpop.f32.mrf.mxu1  ;;  %v7764_v51 = vadd.f32 %v7712_v1, %v14732_v18 }
 0xa2f   :  { %v8118_v53 = vadd.f32 %v8058_v42, %v7939_v23 }
 0xa31   :  { %9561 = vmatmul.msk.f32.gmra.mxu3 %vm5514_vm2, %v15174_v19  ;;  %v8070_v19 = vpop.f32.mrf.mxu0 }
 0xa34   :  { %v7569_v17 = vpop.f32.mrf.mxu3 }
 0xa35   :  { %v14818_v3 = vadd.f32 %v7569_v17, %v7418_v54  ;;  %v7894_v42 = vpop.f32.mrf.mxu2  ;;  %v8119_v17 = vadd.f32 %v8061_v27, %v7940_v24  ;;  %v7718_v13 = vpop.f32.mrf.mxu1 }
 0xa39   :  { %9562 = vmatmul.msk.f32.gmra.mxu3 %vm5514_vm2, %v15177_v37  ;;  %v8073_v20 = vpop.f32.mrf.mxu0 }
 0xa3c   :  { %v7572_v59 = vpop.f32.mrf.mxu3 }
 0xa3d   :  { %v14824_v58 = vadd.f32 %v7572_v59, %v7419_v33  ;;  %v8156_v33 = vld [vmem:[#allocation3 + $0xbc] sm:$0xff]  ;;  %v7897_v35 = vpop.f32.mrf.mxu2 }
 0xa41   :  { %9563 = vmatmul.msk.f32.gmra.mxu3 %vm5514_vm2, %v15180_v7 }
 0xa44   :  { %v7575_v10 = vpop.f32.mrf.mxu3 }
 0xa45   :  { %v14830_v45 = vadd.f32 %v7575_v10, %v7420_v0  ;;  %v7942_v0 = vadd.f32 %v7888_v43, %v7763_v22  ;;  %v8076_v10 = vpop.f32.mrf.mxu0 }
 0xa47   :  { %v8121_v39 = vadd.f32 %v8067_v12, %v7942_v0 }
 0xa49   :  { %9564 = vmatmul.msk.f32.gmra.mxu3 %vm5514_vm2, %v15182_v49  ;;  %v7721_v49 = vpop.f32.mrf.mxu1 }
 0xa4c   :  { %v7578_v36 = vpop.f32.mrf.mxu3 }
 0xa4d   :  { %v14835_v15 = vadd.f32 %v7578_v36, %v7421_v26  ;;  %v7900_v36 = vpop.f32.mrf.mxu2  ;;  %v8079_v9 = vpop.f32.mrf.mxu0 }
 0xa51   :  { %9565 = vmatmul.msk.f32.gmra.mxu3 %vm5514_vm2, %v8154_v2  ;;  %v7943_v2 = vadd.f32 %v7891_v38, %v7764_v51  ;;  %v7766_v38 = vadd.f32 %v7718_v13, %v14746_v47 }
 0xa54   :  { %v8237_v34 = vpop.f32.mrf.mxu3 }
 0xa55   :  { %v8297_v5 = vadd.f32 %v8237_v34, %v8118_v53  ;;  %v7765_v53 = vadd.f32 %v7715_v4, %v14739_v50 }
 0xa57   :  { %v8321_v60 = vmul.f32 %v14842_v48, %v8297_v5  ;;  %v8122_v5 = vadd.f32 %v8070_v19, %v7943_v2  ;;  %v7944_v1 = vadd.f32 %v7894_v42, %v7765_v53  ;;  %v7767_v42 = vadd.f32 %v7721_v49, %v14753_v31 }
 0xa59   :  { %v8345_v57 = vadd.f32 %v14847_v11, %v8321_v60  ;;  %9566 = vmatmul.msk.f32.gmra.mxu3 %vm5514_vm2, %v8155_v16  ;;  %v7724_v60 = vpop.f32.mrf.mxu1  ;;  %v7903_v16 = vpop.f32.mrf.mxu2 }
 0xa5b   :  { %v8365_v54 = vmax.f32 %v8345_v57, 0.0 }
 0xa5c   :  { %v8240_v62 = vpop.f32.mrf.mxu3 }
 0xa5d   :  { %8386 = vst.msk [vmem:[#allocation4] sm:$0xff] %vm8385_vm6, %v8365_v54  ;;  %v8298_v37 = vadd.f32 %v8240_v62, %v8119_v17  ;;  %v8123_v54 = vadd.f32 %v8073_v20, %v7944_v1  ;;  %v8082_v17 = vpop.f32.mrf.mxu0 }
 0xa5f   :  { %v8322_v52 = vmul.f32 %v14842_v48, %v8298_v37  ;;  %v7945_v37 = vadd.f32 %v7897_v35, %v7766_v38  ;;  %v7768_v35 = vadd.f32 %v7724_v60, %v14760_v6 }
 0xa61   :  { %v8346_v59 = vadd.f32 %v14847_v11, %v8322_v52  ;;  %9567 = vmatmul.msk.f32.gmra.mxu3 %vm5514_vm2, %v8156_v33  ;;  %v7727_v19 = vpop.f32.mrf.mxu1  ;;  %v7906_v25 = vpop.f32.mrf.mxu2 }
 0xa63   :  { %v8366_v7 = vmax.f32 %v8346_v59, 0.0  ;;  %v8124_v59 = vadd.f32 %v8076_v10, %v7945_v37 }
 0xa64   :  { %v8243_v27 = vpop.f32.mrf.mxu3 }
 0xa65   :  { %8387 = vst.msk [vmem:[#allocation4 + $0x8] sm:$0xff] %vm8385_vm6, %v8366_v7  ;;  %v8299_v44 = vadd.f32 %v8243_v27, %v8120_v32  ;;  %v8085_v20 = vpop.f32.mrf.mxu0  ;;  %v7946_v7 = vadd.f32 %v7900_v36, %v7767_v42 }
 0xa67   :  { %v8323_v63 = vmul.f32 %v14842_v48, %v8299_v44 }
 0xa69   :  { %v8347_v56 = vadd.f32 %v14847_v11, %v8323_v63  ;;  %9568 = vmatmul.msk.f32.gmra.mxu3 %vm5514_vm2, %v8157_v14  ;;  %v7730_v32 = vpop.f32.mrf.mxu1  ;;  %v8125_v63 = vadd.f32 %v8079_v9, %v7946_v7  ;;  %v7909_v0 = vpop.f32.mrf.mxu2 }
 0xa6b   :  { %v8367_v61 = vmax.f32 %v8347_v56, 0.0  ;;  %v7947_v56 = vadd.f32 %v7903_v16, %v7768_v35 }
 0xa6c   :  { %v8246_v21 = vpop.f32.mrf.mxu3 }
 0xa6d   :  { %8388 = vst.msk [vmem:[#allocation4 + $0x10] sm:$0xff] %vm8385_vm6, %v8367_v61  ;;  %v8300_v26 = vadd.f32 %v8246_v21, %v8121_v39  ;;  %v8088_v49 = vpop.f32.mrf.mxu0  ;;  %v7769_v39 = vadd.f32 %v7727_v19, %v14767_v8 }
 0xa6f   :  { %v8324_v23 = vmul.f32 %v14842_v48, %v8300_v26  ;;  %v8126_v26 = vadd.f32 %v8082_v17, %v7947_v56 }
 0xa71   :  { %v8348_v43 = vadd.f32 %v14847_v11, %v8324_v23  ;;  %v7733_v61 = vpop.f32.mrf.mxu1  ;;  %v7912_v23 = vpop.f32.mrf.mxu2 }
 0xa72   :  { %v7771_v38 = vadd.f32 %v7733_v61, %v14781_v30 }
 0xa73   :  { %v8368_v34 = vmax.f32 %v8348_v43, 0.0  ;;  %v7948_v43 = vadd.f32 %v7906_v25, %v7769_v39 }
 0xa74   :  { %v8249_v24 = vpop.f32.mrf.mxu3 }
 0xa75   :  { %8389 = vst.msk [vmem:[#allocation4 + $0x18] sm:$0xff] %vm8385_vm6, %v8368_v34  ;;  %v8301_v18 = vadd.f32 %v8249_v24, %v8122_v5  ;;  %v8091_v53 = vpop.f32.mrf.mxu0  ;;  %v7770_v34 = vadd.f32 %v7730_v32, %v14774_v46  ;;  %v8127_v60 = vadd.f32 %v8085_v20, %v7948_v43 }
 0xa77   :  { %v8325_v12 = vmul.f32 %v14842_v48, %v8301_v18  ;;  %v7949_v1 = vadd.f32 %v7909_v0, %v7770_v34 }
 0xa79   :  { %v8349_v57 = vadd.f32 %v14847_v11, %v8325_v12  ;;  %v7736_v24 = vpop.f32.mrf.mxu1  ;;  %v7915_v16 = vpop.f32.mrf.mxu2 }
 0xa7a   :  { %v7772_v25 = vadd.f32 %v7736_v24, %v14788_v55 }
 0xa7b   :  { %v8369_v40 = vmax.f32 %v8349_v57, 0.0 }
 0xa7c   :  { %v8252_v62 = vpop.f32.mrf.mxu3  ;;  %v7951_v20 = vadd.f32 %v7915_v16, %v7772_v25 }
 0xa7d   :  { %8390 = vst.msk [vmem:[#allocation4 + $0x20] sm:$0xff] %vm8385_vm6, %v8369_v40  ;;  %v8302_v50 = vadd.f32 %v8252_v62, %v8123_v54  ;;  %v8128_v54 = vadd.f32 %v8088_v49, %v7949_v1  ;;  %v8094_v17 = vpop.f32.mrf.mxu0 }
 0xa7e   :  { %v8130_v35 = vadd.f32 %v8094_v17, %v7951_v20 }
 0xa7f   :  { %v8326_v4 = vmul.f32 %v14842_v48, %v8302_v50 }
 0xa81   :  { %v8350_v52 = vadd.f32 %v14847_v11, %v8326_v4  ;;  %v7739_v50 = vpop.f32.mrf.mxu1  ;;  %v7950_v4 = vadd.f32 %v7912_v23, %v7771_v38 }
 0xa82   :  { %v7773_v32 = vadd.f32 %v7739_v50, %v14796_v29 }
 0xa83   :  { %v8370_v33 = vmax.f32 %v8350_v52, 0.0  ;;  %v7918_v52 = vpop.f32.mrf.mxu2 }
 0xa84   :  { %v8255_v22 = vpop.f32.mrf.mxu3 }
 0xa85   :  { %8391 = vst.msk [vmem:[#allocation4 + $0x28] sm:$0xff] %vm8385_vm6, %v8370_v33  ;;  %v8303_v47 = vadd.f32 %v8255_v22, %v8124_v59  ;;  %v8129_v33 = vadd.f32 %v8091_v53, %v7950_v4  ;;  %v8097_v22 = vpop.f32.mrf.mxu0 }
 0xa87   :  { %v8327_v13 = vmul.f32 %v14842_v48, %v8303_v47 }
 0xa89   :  { %v8351_v27 = vadd.f32 %v14847_v11, %v8327_v13  ;;  %v7742_v13 = vpop.f32.mrf.mxu1 }
 0xa8a   :  { %v7774_v49 = vadd.f32 %v7742_v13, %v14804_v41 }
 0xa8b   :  { %v8371_v44 = vmax.f32 %v8351_v27, 0.0 }
 0xa8c   :  { %v8258_v14 = vpop.f32.mrf.mxu3 }
 0xa8d   :  { %8392 = vst.msk [vmem:[#allocation4 + $0x30] sm:$0xff] %vm8385_vm6, %v8371_v44  ;;  %v8304_v31 = vadd.f32 %v8258_v14, %v8125_v63  ;;  %v7921_v44 = vpop.f32.mrf.mxu2  ;;  %v7952_v14 = vadd.f32 %v7918_v52, %v7773_v32 }
 0xa8f   :  { %v8328_v10 = vmul.f32 %v14842_v48, %v8304_v31  ;;  %v8100_v31 = vpop.f32.mrf.mxu0  ;;  %v8131_v61 = vadd.f32 %v8097_v22, %v7952_v14 }
 0xa91   :  { %v8352_v51 = vadd.f32 %v14847_v11, %v8328_v10  ;;  %v7745_v56 = vpop.f32.mrf.mxu1 }
 0xa93   :  { %v8372_v21 = vmax.f32 %v8352_v51, 0.0 }
 0xa94   :  { %v8261_v36 = vpop.f32.mrf.mxu3 }
 0xa95   :  { %8393 = vst.msk [vmem:[#allocation4 + $0x38] sm:$0xff] %vm8385_vm6, %v8372_v21  ;;  %v8305_v6 = vadd.f32 %v8261_v36, %v8126_v26  ;;  %v7924_v21 = vpop.f32.mrf.mxu2  ;;  %v7953_v36 = vadd.f32 %v7921_v44, %v7774_v49 }
 0xa97   :  { %v8329_v2 = vmul.f32 %v14842_v48, %v8305_v6  ;;  %v8103_v23 = vpop.f32.mrf.mxu0 }
 0xa99   :  { %v8353_v9 = vadd.f32 %v14847_v11, %v8329_v2  ;;  %v7775_v2 = vadd.f32 %v7745_v56, %v14812_v28  ;;  %v7748_v53 = vpop.f32.mrf.mxu1 }
 0xa9b   :  { %v8373_v5 = vmax.f32 %v8353_v9, 0.0  ;;  %v8132_v9 = vadd.f32 %v8100_v31, %v7953_v36 }
 0xa9c   :  { %v8264_v18 = vpop.f32.mrf.mxu3 }
 0xa9d   :  { %8394 = vst.msk [vmem:[#allocation4 + $0x40] sm:$0xff] %vm8385_vm6, %v8373_v5  ;;  %v8306_v8 = vadd.f32 %v8264_v18, %v8127_v60  ;;  %v7954_v60 = vadd.f32 %v7924_v21, %v7775_v2  ;;  %v7927_v24 = vpop.f32.mrf.mxu2 }
 0xa9f   :  { %v8330_v12 = vmul.f32 %v14842_v48, %v8306_v8  ;;  %v7776_v8 = vadd.f32 %v7748_v53, %v14818_v3  ;;  %v8133_v1 = vadd.f32 %v8103_v23, %v7954_v60  ;;  %v8106_v16 = vpop.f32.mrf.mxu0 }
 0xaa1   :  { %v8354_v57 = vadd.f32 %v14847_v11, %v8330_v12  ;;  %v7751_v38 = vpop.f32.mrf.mxu1 }
 0xaa3   :  { %v8374_v40 = vmax.f32 %v8354_v57, 0.0 }
 0xaa4   :  { %v8267_v62 = vpop.f32.mrf.mxu3 }
 0xaa5   :  { %8395 = vst.msk [vmem:[#allocation4 + $0x48] sm:$0xff] %vm8385_vm6, %v8374_v40  ;;  %v8307_v46 = vadd.f32 %v8267_v62, %v8128_v54  ;;  %v7955_v54 = vadd.f32 %v7927_v24, %v7776_v8  ;;  %v7930_v62 = vpop.f32.mrf.mxu2 }
 0xaa7   :  { %v8331_v19 = vmul.f32 %v14842_v48, %v8307_v46  ;;  %v7777_v46 = vadd.f32 %v7751_v38, %v14824_v58 }
 0xaa9   :  { %v8355_v37 = vadd.f32 %v14847_v11, %v8331_v19  ;;  %v8134_v19 = vadd.f32 %v8106_v16, %v7955_v54  ;;  %v7956_v25 = vadd.f32 %v7930_v62, %v7777_v46  ;;  %v8578_v62 = vld [vmem:[%s14985_s9] sm:$0xff] }
 0xaab   :  { %v8375_v42 = vmax.f32 %v8355_v37, 0.0  ;;  %v8109_v37 = vpop.f32.mrf.mxu0 }
 0xaac   :  { %v8270_v59 = vpop.f32.mrf.mxu3  ;;  %v8135_v22 = vadd.f32 %v8109_v37, %v7956_v25 }
 0xaad   :  { %8396 = vst.msk [vmem:[#allocation4 + $0x50] sm:$0xff] %vm8385_vm6, %v8375_v42  ;;  %v8308_v30 = vadd.f32 %v8270_v59, %v8129_v33  ;;  %v7754_v42 = vpop.f32.mrf.mxu1 }
 0xaae   :  { %v7778_v59 = vadd.f32 %v7754_v42, %v14830_v45 }
 0xaaf   :  { %v8332_v47 = vmul.f32 %v14842_v48, %v8308_v30 }
 0xab1   :  { %v8356_v7 = vadd.f32 %v14847_v11, %v8332_v47  ;;  %v7933_v47 = vpop.f32.mrf.mxu2 }
 0xab3   :  { %v8376_v27 = vmax.f32 %v8356_v7, 0.0  ;;  %v7957_v7 = vadd.f32 %v7933_v47, %v7778_v59  ;;  %v8112_v32 = vpop.f32.mrf.mxu0 }
 0xab4   :  { %v8273_v63 = vpop.f32.mrf.mxu3 }
 0xab5   :  { %8397 = vst.msk [vmem:[#allocation4 + $0x58] sm:$0xff] %vm8385_vm6, %v8376_v27  ;;  %v8309_v55 = vadd.f32 %v8273_v63, %v8130_v35  ;;  %v7757_v35 = vpop.f32.mrf.mxu1 }
 0xab6   :  { %v7779_v44 = vadd.f32 %v7757_v35, %v14835_v15 }
 0xab7   :  { %v8333_v0 = vmul.f32 %v14842_v48, %v8309_v55  ;;  %v8136_v55 = vadd.f32 %v8112_v32, %v7957_v7 }
 0xab9   :  { %v8357_v10 = vadd.f32 %v14847_v11, %v8333_v0  ;;  %v7936_v14 = vpop.f32.mrf.mxu2 }
 0xabb   :  { %v8377_v51 = vmax.f32 %v8357_v10, 0.0  ;;  %v7958_v10 = vadd.f32 %v7936_v14, %v7779_v44  ;;  %v8115_v49 = vpop.f32.mrf.mxu0 }
 0xabc   :  { %v8276_v39 = vpop.f32.mrf.mxu3  ;;  %v8434_v47 = vld [vmem:[#allocation4 + $0x52] sm:$0xff] }
 0xabd   :  { %8398 = vst.msk [vmem:[#allocation4 + $0x60] sm:$0xff] %vm8385_vm6, %v8377_v51  ;;  %v8310_v29 = vadd.f32 %v8276_v39, %v8131_v61  ;;  %v8137_v61 = vadd.f32 %v8115_v49, %v7958_v10  ;;  %v8526_v39 = vld [vmem:[%s14984_s8] sm:$0xf]  ;;  %v8466_v14 = vld [vmem:[#allocation4 + $0x54] sm:$0xff]  ;;  %v8416_v49 = vld [vmem:[#allocation4 + $0x48] sm:$0xff]  ;;  %s8679_s8 = sshll.u32 %s9615_s6, 4  ;;  %s8680_s8 = int_to_ptr.vmem [resolvable:$true] %s8679_s8 }
 0xabe   :  { %8528 = vst [vmem:[#allocation1] ss:$4 sm:$0xff] %v8526_v39  ;;  %v8432_v39 = vld [vmem:[#allocation4 + $0x42] sm:$0xff] }
 0xabf   :  { %v8334_v26 = vmul.f32 %v14842_v48, %v8310_v29 }
 0xac1   :  { %v8358_v6 = vadd.f32 %v14847_v11, %v8334_v26 }
 0xac3   :  { %v8378_v43 = vmax.f32 %v8358_v6, 0.0 }
 0xac4   :  { %v8279_v34 = vpop.f32.mrf.mxu3  ;;  %v8484_v32 = vld [vmem:[#allocation4 + $0x5e] sm:$0xff] }
 0xac5   :  { %8399 = vst.msk [vmem:[#allocation4 + $0x68] sm:$0xff] %vm8385_vm6, %v8378_v43  ;;  %v8311_v41 = vadd.f32 %v8279_v34, %v8132_v9 }
 0xac7   :  { %v8335_v5 = vmul.f32 %v14842_v48, %v8311_v41 }
 0xac9   :  { %v8359_v18 = vadd.f32 %v14847_v11, %v8335_v5 }
 0xacb   :  { %v8379_v12 = vmax.f32 %v8359_v18, 0.0 }
 0xacc   :  { %v8282_v57 = vpop.f32.mrf.mxu3  ;;  %v8436_v38 = vld [vmem:[#allocation4 + $0x62] sm:$0xff] }
 0xacd   :  { %8400 = vst.msk [vmem:[#allocation4 + $0x70] sm:$0xff] %vm8385_vm6, %v8379_v12  ;;  %v8312_v28 = vadd.f32 %v8282_v57, %v8133_v1  ;;  %v8420_v57 = vld [vmem:[#allocation4 + $0x68] sm:$0xff] }
 0xace   :  { %v8468_v37 = vld [vmem:[#allocation4 + $0x64] sm:$0xff] }
 0xacf   :  { %v8336_v40 = vmul.f32 %v14842_v48, %v8312_v28  ;;  %v8485_v42 = vld [vmem:[#allocation4 + $0x66] sm:$0xff] }
 0xad1   :  { %v8360_v17 = vadd.f32 %v14847_v11, %v8336_v40  ;;  %v8579_v40 = vld [vmem:[%s14985_s9 + $0x8] sm:$0xff] }
 0xad2   :  { %8601 = vmatpush.msrb.mxu1 %v8579_v40 }
 0xad3   :  { %v8380_v50 = vmax.f32 %v8360_v17, 0.0 }
 0xad4   :  { %v8285_v4 = vpop.f32.mrf.mxu3  ;;  %v8421_v18 = vld [vmem:[#allocation4 + $0x70] sm:$0xff]  ;;  %8602 = vmatpush.msrb.mxu1 %v8578_v62 }
 0xad5   :  { %8401 = vst.msk [vmem:[#allocation4 + $0x78] sm:$0xff] %vm8385_vm6, %v8380_v50  ;;  %v8313_v3 = vadd.f32 %v8285_v4, %v8134_v19  ;;  %v8437_v12 = vld [vmem:[#allocation4 + $0x6a] sm:$0xff]  ;;  %v8419_v19 = vld [vmem:[#allocation4 + $0x60] sm:$0xff] }
 0xad6   :  { %v8469_v54 = vld [vmem:[#allocation4 + $0x6c] sm:$0xff]  ;;  %v8454_v50 = vmax.f32 %v8420_v57, %v8437_v12  ;;  %v8453_v59 = vmax.f32 %v8419_v19, %v8436_v38  ;;  %v8411_v19 = vld [vmem:[#allocation4 + $0x20] sm:$0xff] }
 0xad7   :  { %v8337_v52 = vmul.f32 %v14842_v48, %v8313_v3  ;;  %v8486_v17 = vld [vmem:[#allocation4 + $0x6e] sm:$0xff]  ;;  %v8435_v3 = vld [vmem:[#allocation4 + $0x5a] sm:$0xff] }
 0xad8   :  { %v8413_v12 = vld [vmem:[#allocation4 + $0x30] sm:$0xff]  ;;  %v8412_v38 = vld [vmem:[#allocation4 + $0x28] sm:$0xff] }
 0xad9   :  { %v8361_v33 = vadd.f32 %v14847_v11, %v8337_v52  ;;  %v8478_v62 = vld [vmem:[#allocation4 + $0x2e] sm:$0xff] }
 0xadb   :  { %v8381_v30 = vmax.f32 %v8361_v33, 0.0 }
 0xadc   :  { %v8288_v20 = vpop.f32.mrf.mxu3  ;;  %v8422_v43 = vld [vmem:[#allocation4 + $0x78] sm:$0xff] }
 0xadd   :  { %8402 = vst.msk [vmem:[#allocation4 + $0x80] sm:$0xff] %vm8385_vm6, %v8381_v30  ;;  %v8314_v58 = vadd.f32 %v8288_v20, %v8135_v22  ;;  %v8438_v9 = vld [vmem:[#allocation4 + $0x72] sm:$0xff]  ;;  %v8503_v22 = vmax.f32 %v8469_v54, %v8486_v17  ;;  %v8467_v20 = vld [vmem:[#allocation4 + $0x5c] sm:$0xff] }
 0xade   :  { %v8487_v1 = vld [vmem:[#allocation4 + $0x76] sm:$0xff]  ;;  %v8455_v16 = vmax.f32 %v8421_v18, %v8438_v9  ;;  %v8428_v54 = vld [vmem:[#allocation4 + $0x22] sm:$0xff]  ;;  %v8461_v17 = vld [vmem:[#allocation4 + $0x2c] sm:$0xff] }
 0xadf   :  { %v8338_v13 = vmul.f32 %v14842_v48, %v8314_v58  ;;  %v8418_v30 = vld [vmem:[#allocation4 + $0x58] sm:$0xff] }
 0xae0   :  { %v8452_v58 = vmax.f32 %v8418_v30, %v8435_v3  ;;  %v8427_v3 = vld [vmem:[#allocation4 + $0x1a] sm:$0xff]  ;;  %v8426_v30 = vld [vmem:[#allocation4 + $0x12] sm:$0xff] }
 0xae1   :  { %v8362_v27 = vadd.f32 %v14847_v11, %v8338_v13 }
 0xae2   :  { %v8520_v10 = vmax.f32 %v8452_v58, %v8503_v22  ;;  %v8459_v22 = vld [vmem:[#allocation4 + $0x1c] sm:$0xff] }
 0xae3   :  { %v8382_v63 = vmax.f32 %v8362_v27, 0.0 }
 0xae4   :  { %v8291_v0 = vpop.f32.mrf.mxu3  ;;  %v8439_v36 = vld [vmem:[#allocation4 + $0x7a] sm:$0xff]  ;;  %v8440_v25 = vld [vmem:[#allocation4 + $0x82] sm:$0x3f] }
 0xae5   :  { %8403 = vst.msk [vmem:[#allocation4 + $0x88] sm:$0xff] %vm8385_vm6, %v8382_v63  ;;  %v8315_v45 = vadd.f32 %v8291_v0, %v8136_v55  ;;  %v8471_v53 = vld [vmem:[#allocation4 + $0x7c] sm:$0xff]  ;;  %v8456_v60 = vmax.f32 %v8422_v43, %v8439_v36  ;;  %v8417_v63 = vld [vmem:[#allocation4 + $0x50] sm:$0xff]  ;;  %v8502_v55 = vmax.f32 %v8468_v37, %v8485_v42  ;;  %v8481_v43 = vld [vmem:[#allocation4 + $0x46] sm:$0xff]  ;;  %v8445_v42 = vmax.f32 %v8411_v19, %v8428_v54 }
 0xae6   :  { %v8488_v5 = vld [vmem:[#allocation4 + $0x7e] sm:$0xff]  ;;  %v8451_v0 = vmax.f32 %v8417_v63, %v8434_v47 }
 0xae7   :  { %v8339_v31 = vmul.f32 %v14842_v48, %v8315_v45  ;;  %v8505_v28 = vmax.f32 %v8471_v53, %v8488_v5  ;;  %v8423_v52 = vld [vmem:[#allocation4 + $0x80] sm:$0x3f]  ;;  %v8433_v45 = vld [vmem:[#allocation4 + $0x4a] sm:$0xff]  ;;  %v8430_v5 = vld [vmem:[#allocation4 + $0x32] sm:$0xff] }
 0xae8   :  { %v8457_v35 = vmax.f32 %v8423_v52, %v8440_v25  ;;  %v8415_v36 = vld [vmem:[#allocation4 + $0x40] sm:$0xff] }
 0xae9   :  { %v8363_v56 = vadd.f32 %v14847_v11, %v8339_v31  ;;  %v8522_v33 = vmax.f32 %v8454_v50, %v8505_v28  ;;  %v8483_v31 = vld [vmem:[#allocation4 + $0x56] sm:$0xff]  ;;  %v8449_v53 = vmax.f32 %v8415_v36, %v8432_v39  ;;  %v8447_v28 = vmax.f32 %v8413_v12, %v8430_v5  ;;  %v8460_v37 = vld [vmem:[#allocation4 + $0x24] sm:$0xff] }
 0xaea   :  { %v8477_v52 = vld [vmem:[#allocation4 + $0x26] sm:$0xff]  ;;  %v8476_v47 = vld [vmem:[#allocation4 + $0x1e] sm:$0xff]  ;;  %v8529_v39 = vld.sshfl [vmem:[#allocation1] sm:$0xff pattern:$0x73625140] }
 0xaeb   :  { %v8383_v51 = vmax.f32 %v8363_v56, 0.0  ;;  %v8642_v5 = vld [vmem:[%s14989_s13 + $0x8] sm:$0xff] }
 0xaec   :  { %v8294_v15 = vpop.f32.mrf.mxu3  ;;  %v8472_v6 = vld [vmem:[#allocation4 + $0x84] sm:$0xff] }
 0xaed   :  { %8404 = vst.msk [vmem:[#allocation4 + $0x90] sm:$0xff] %vm8385_vm6, %v8383_v51  ;;  %v8316_v29 = vadd.f32 %v8294_v15, %v8137_v61  ;;  %v8489_v23 = vld [vmem:[#allocation4 + $0x86] sm:$0xff]  ;;  %v8501_v51 = vmax.f32 %v8467_v20, %v8484_v32  ;;  %v8530_v61 = vld.sshfl [vmem:[#allocation1 + $0x8] sm:$0xff pattern:$0x73625140] }
 0xaee   :  { %v8506_v8 = vmax.f32 %v8472_v6, %v8489_v23  ;;  %v8465_v15 = vld [vmem:[#allocation4 + $0x4c] sm:$0xff]  ;;  %v8500_v6 = vmax.f32 %v8466_v14, %v8483_v31  ;;  %v8431_v23 = vld [vmem:[#allocation4 + $0x3a] sm:$0xff] }
 0xaef   :  { %v8340_v21 = vmul.f32 %v14842_v48, %v8316_v29  ;;  %v8470_v48 = vld [vmem:[#allocation4 + $0x74] sm:$0xff]  ;;  %v8425_v32 = vld [vmem:[#allocation4 + $0xa] sm:$0xff] }
 0xaf0   :  { %v8523_v46 = vmax.f32 %v8455_v16, %v8506_v8  ;;  %v8504_v4 = vmax.f32 %v8470_v48, %v8487_v1  ;;  %v8482_v29 = vld [vmem:[#allocation4 + $0x4e] sm:$0xff]  ;;  %v8517_v18 = vmax.f32 %v8449_v53, %v8500_v6  ;;  %v8479_v16 = vld [vmem:[#allocation4 + $0x36] sm:$0xff] }
 0xaf1   :  { %v8364_v26 = vadd.f32 %v14847_v11, %v8340_v21  ;;  %v8519_v21 = vmax.f32 %v8451_v0, %v8502_v55  ;;  %v8429_v1 = vld [vmem:[#allocation4 + $0x2a] sm:$0xff]  ;;  %v8493_v55 = vmax.f32 %v8459_v22, %v8476_v47  ;;  %v8609_v6 = vld [vmem:[%s14987_s11 + $0x8] sm:$0xff] }
 0xaf2   :  { %v8521_v27 = vmax.f32 %v8453_v59, %v8504_v4  ;;  %v8446_v50 = vmax.f32 %v8412_v38, %v8429_v1  ;;  %v8495_v59 = vmax.f32 %v8461_v17, %v8478_v62  ;;  %v8408_v0 = vld [vmem:[#allocation4 + $0x8] sm:$0xff] }
 0xaf3   :  { %v8384_v2 = vmax.f32 %v8364_v26, 0.0  ;;  %v8450_v26 = vmax.f32 %v8416_v49, %v8433_v45  ;;  %v8424_v45 = vld [vmem:[#allocation4 + $0x2] sm:$0xff]  ;;  %v8442_v31 = vmax.f32 %v8408_v0, %v8425_v32 }
 0xaf4   :  { %v8473_v34 = vld [vmem:[#allocation4 + $0x8c] sm:$0xff] }
 0xaf5   :  { %v8490_v41 = vld [vmem:[#allocation4 + $0x8e] sm:$0xff]  ;;  %8406 = vst.msk [vmem:[#allocation4 + $0x98] sm:$0xf] %vm8405_vm7, %v8384_v2  ;;  %v8464_v2 = vld [vmem:[#allocation4 + $0x44] sm:$0xff]  ;;  %v8518_v9 = vmax.f32 %v8450_v26, %v8501_v51  ;;  %v8510_v49 = vmax.f32 %v8442_v31, %v8493_v55 }
 0xaf6   :  { %v8507_v24 = vmax.f32 %v8473_v34, %v8490_v41  ;;  %v8414_v34 = vld [vmem:[#allocation4 + $0x38] sm:$0xff]  ;;  %v8499_v41 = vmax.f32 %v8465_v15, %v8482_v29  ;;  %v8498_v48 = vmax.f32 %v8464_v2, %v8481_v43  ;;  %v8611_v15 = vld [vmem:[%s14987_s11 + $0x18] sm:$0xff]  ;;  %v8610_v29 = vld [vmem:[%s14987_s11 + $0x10] sm:$0xff] }
 0xaf7   :  { %v8448_v8 = vmax.f32 %v8414_v34, %v8431_v23  ;;  %v8608_v23 = vld [vmem:[%s14987_s11] sm:$0xff]  ;;  %v8644_v2 = vld [vmem:[%s14989_s13 + $0x18] sm:$0xff]  ;;  %v8643_v43 = vld [vmem:[%s14989_s13 + $0x10] sm:$0xff] }
 0xaf8   :  { %v8524_v11 = vmax.f32 %v8456_v60, %v8507_v24  ;;  %v8463_v60 = vld [vmem:[#allocation4 + $0x3c] sm:$0xff] }
 0xaf9   :  { %v8480_v24 = vld [vmem:[#allocation4 + $0x3e] sm:$0xff]  ;;  %v8516_v57 = vmax.f32 %v8448_v8, %v8499_v41 }
 0xafa   :  { %8538 = vmatpush.msrb.mxu0 %v8524_v11  ;;  %v8462_v11 = vld [vmem:[#allocation4 + $0x34] sm:$0xff]  ;;  %v8497_v40 = vmax.f32 %v8463_v60, %v8480_v24  ;;  %v9583_v24 = vld [vmem:[%s14988_s12] ss:$0 sm:$0xff] }
 0xafb   :  { %v8496_v4 = vmax.f32 %v8462_v11, %v8479_v16  ;;  %v8641_v60 = vld [vmem:[%s14989_s13] sm:$0xff]  ;;  %s8681_s13 = sshll.u32 %s14991_s15, 4  ;;  %s8682_s13 = int_to_ptr.hbm [resolvable:$true] %s8681_s13 }
 0xafc   :  { %8539 = vmatpush.msrb.mxu0 %v8523_v46  ;;  %v8474_v13 = vld [vmem:[#allocation4 + $0x94] sm:$0x3f]  ;;  %v8515_v46 = vmax.f32 %v8447_v28, %v8498_v48  ;;  %v8514_v25 = vmax.f32 %v8446_v50, %v8497_v40  ;;  %v9584_v48 = vld [vmem:[%s14990_s14] ss:$0 sm:$0xff] }
 0xafd   :  { %v8491_v7 = vld [vmem:[#allocation4 + $0x96] sm:$0x3f]  ;;  %v8513_v20 = vmax.f32 %v8445_v42, %v8496_v4 }
 0xafe   :  { %8540 = vmatpush.msrb.mxu0 %v8522_v33  ;;  %v8508_v44 = vmax.f32 %v8474_v13, %v8491_v7  ;;  %v8410_v33 = vld [vmem:[#allocation4 + $0x18] sm:$0xff]  ;;  %v8409_v13 = vld [vmem:[#allocation4 + $0x10] sm:$0xff]  ;;  %v8494_v7 = vmax.f32 %v8460_v37, %v8477_v52 }
 0xaff   :  { %v8444_v58 = vmax.f32 %v8410_v33, %v8427_v3  ;;  %v8443_v63 = vmax.f32 %v8409_v13, %v8426_v30 }
 0xb00   :  { %8541 = vmatpush.msrb.mxu0 %v8521_v27  ;;  %v8525_v56 = vmax.f32 %v8457_v35, %v8508_v44  ;;  %v8458_v27 = vld [vmem:[#allocation4 + $0x14] sm:$0xff] }
 0xb01   :  { %v8475_v35 = vld [vmem:[#allocation4 + $0x16] sm:$0xff]  ;;  %v8512_v44 = vmax.f32 %v8444_v58, %v8495_v59  ;;  %v8511_v14 = vmax.f32 %v8443_v63, %v8494_v7 }
 0xb02   :  { %8542 = vmatpush.msrb.mxu0 %v8520_v10  ;;  %9569 = vmatpush.msk.msrb.mxu2 %vm6258_vm4, %v8525_v56  ;;  %v8492_v10 = vmax.f32 %v8458_v27, %v8475_v35  ;;  %v8407_v56 = vld [vmem:[#allocation4] sm:$0xff] }
 0xb03   :  { %9570 = vmatmul.msk.f32.vlgmr.msrb.gmra.mxu2 %vm8532_vm8, %v8530_v61  ;;  %v8441_v51 = vmax.f32 %v8407_v56, %v8424_v45 }
 0xb04   :  { %8543 = vmatpush.msrb.mxu0 %v8519_v21  ;;  %8632 = vmatpush.msra.mxu2 %v8611_v15 }
 0xb05   :  { %v8509_v61 = vmax.f32 %v8441_v51, %v8492_v10 }
 0xb06   :  { %8544 = vmatpush.msrb.mxu0 %v8518_v9  ;;  %8633 = vmatpush.msra.mxu2 %v8610_v29  ;;  %v9582_v9 = vld [vmem:[%s14986_s10] ss:$0 sm:$0xff] }
 0xb08   :  { %8545 = vmatpush.msrb.mxu0 %v8517_v18  ;;  %8634 = vmatpush.msra.mxu2 %v8609_v6 }
 0xb0a   :  { %8546 = vmatpush.msrb.mxu0 %v8516_v57  ;;  %8635 = vmatpush.msra.mxu2 %v8608_v23 }
 0xb0c   :  { %8547 = vmatpush.msrb.mxu0 %v8515_v46 }
 0xb0e   :  { %8548 = vmatpush.msrb.mxu0 %v8514_v25 }
 0xb10   :  { %8549 = vmatpush.msrb.mxu0 %v8513_v20 }
 0xb12   :  { %8550 = vmatpush.msrb.mxu0 %v8512_v44 }
 0xb14   :  { %8551 = vmatpush.msrb.mxu0 %v8511_v14 }
 0xb16   :  { %8552 = vmatpush.msrb.mxu0 %v8510_v49 }
 0xb18   :  { %8553 = vmatpush.msrb.mxu0 %v8509_v61 }
 0xb19   :  { %8554 = vmatmul.f32.vlgmr.msrb.gmra.mxu0 %v8529_v39 }
 0xb1a   :  { %8664 = vmatpush.msra.mxu0 %v8644_v2 }
 0xb1c   :  { %8665 = vmatpush.msra.mxu0 %v8643_v43 }
 0xb1e   :  { %8666 = vmatpush.msra.mxu0 %v8642_v5 }
 0xb20   :  { %8667 = vmatpush.msra.mxu0 %v8641_v60 }
 0xb86   :  { %v8575_v21 = vpop.f32.mrf.mxu2 }
 0xb96   :  { %v8555_v26 = vpop.f32.mrf.mxu0 }
 0xb97   :  { %v8576_v36 = vadd.f32 %v8575_v21, %v8555_v26 }
 0xb99   :  { %9571 = vmatmul.msk.f32.vlgmr.msrb.gmra.mxu1 %vm8385_vm6, %v8576_v36 }
 0xc16   :  { %v8604_v53 = vpop.f32.mrf.mxu1 }
 0xc17   :  { %v8605_v34 = vadd.f32 %v9582_v9, %v8604_v53 }
 0xc19   :  { %v8607_v41 = vmax.f32 %v8605_v34, 0.0 }
 0xc1b   :  { %9572 = vmatmul.msk.f32.vlgmr.msra.gmra.mxu2 %vm8616_vm9, %v8607_v41 }
 0xc9e   :  { %v8637_v18 = vpop.f32.mrf.mxu2 }
 0xc9f   :  { %v8638_v8 = vadd.f32 %v9583_v24, %v8637_v18 }
 0xca1   :  { %v8640_v12 = vmax.f32 %v8638_v8, 0.0 }
 0xca3   :  { %9573 = vmatmul.msk.f32.vlgmr.msra.gmra.mxu0 %vm8616_vm9, %v8640_v12 }
 0xd20   :  { %v8669_v1 = vpop.f32.mrf.mxu0 }
 0xd21   :  { %v8670_v11 = vadd.f32 %v9584_v48, %v8669_v1 }
 0xd23   :  { %8673 = vst.msk [vmem:[#allocation5] sm:$0x3] %vm8672_vm10, %v8670_v11 }
 0xd24   :  { %8684 = dma.vmem_to_hbm [thread:$0]  %s8680_s8, 32, %s8682_s13, [#allocation6]  }
 0xd25   :  { %9613 = dma.done.wait [#allocation6], 32  }
 0xd26   :  { %9614 = vsyncadd [#allocation6], 4294967264 }
 0xd27   :  { %8689 = vsyncpa [#allocation6], 1 }

</bundles_post_ra>
